<compile_context>
chip_gen: v7x
topology: tpu7x:2x2x1
jax: 0.10.0
libtpu: 0.0.40
codegen_flags: <defaults>
</compile_context>

<pallas_src>
import functools

import jax
import jax.numpy as jnp
from jax import lax
from jax.experimental import pallas as pl
from jax.experimental.pallas import tpu as pltpu


def _round_up(x, m):
    return (x + m - 1) // m * m


def _fused_pwgan_kernel(x_ref, w0_ref, b0_ref, wm_ref, bm_ref, wl_ref, bl_ref,
                        o_ref, act_a, act_b, *,
                        dilations, t_tile, t_real, conv_ch, out_ch, ksize,
                        leaky_slope, act_dtype, buf_len):
    """Fused forward over all conv layers for one (batch, time-tile) block.

    x_ref : (1, 1, n0, K0p)            layer-0 im2col window (K padded to 8)
    w0_ref: (K0p, conv_ch)             first-layer weight (f32)
    b0_ref: (1, conv_ch)               f32
    wm_ref: (n_mid, ksize, conv_ch, conv_ch)   act_dtype
    bm_ref: (n_mid, conv_ch)           f32
    wl_ref: (ksize, conv_ch[, out_ch]) act_dtype
    bl_ref: (1, out_ch)                f32
    o_ref : (1, t_tile, out_ch)
    act_a, act_b: (buf_len, conv_ch)   VMEM ping-pong activation buffers
    """
    g0 = pl.program_id(1) * t_tile          # global time index of output row 0
    halo = sum(dilations)
    d0 = dilations[0]
    max_rem = halo - d0                     # largest remaining halo (layer 0 out)

    # Only boundary tiles contain rows whose global time index falls outside
    # [0, t_real); interior tiles skip all masking work.
    interior = jnp.logical_and(g0 >= max_rem,
                               g0 + t_tile + max_rem <= t_real)

    # Hoisted once per grid step (JAX does not CSE broadcast_in_dim).
    row_idx = lax.broadcasted_iota(jnp.int32, (buf_len, conv_ch), 0)

    def leaky(v):
        return jnp.maximum(v, leaky_slope * v)

    def store_act(buf, n, val, rem):
        # Reproduce each layer's "same" zero padding: rows whose global time
        # index is outside [0, t_real) must be zero before the next conv.
        @pl.when(interior)
        def _():
            buf[pl.ds(0, n), :] = val.astype(act_dtype)

        @pl.when(jnp.logical_not(interior))
        def _():
            rows = row_idx[:n, :] + (g0 - rem)
            masked = jnp.where(
                jnp.logical_and(rows >= 0, rows < t_real), val, 0.0)
            buf[pl.ds(0, n), :] = masked.astype(act_dtype)

    # ---- layer 0: single aligned (n0, K0p) @ (K0p, conv_ch) MXU matmul -----
    rem = max_rem
    n = t_tile + 2 * rem
    y = jnp.dot(x_ref[0, 0], w0_ref[...], preferred_element_type=jnp.float32)
    y = leaky(y + b0_ref[...])
    store_act(act_a, n, y, rem)
    cur, nxt = act_a, act_b

    # ---- middle layers: 3 accumulating per-tap matmuls (no im2col slab) ----
    for li, d in enumerate(dilations[1:-1]):
        rem -= d
        n = t_tile + 2 * rem
        acc = jnp.dot(cur[pl.ds(0, n), :], wm_ref[li, 0],
                      preferred_element_type=jnp.float32)
        for k in range(1, ksize):
            acc += jnp.dot(cur[pl.ds(k * d, n), :], wm_ref[li, k],
                           preferred_element_type=jnp.float32)
        y = leaky(acc + bm_ref[li][None, :].astype(jnp.float32))
        store_act(nxt, n, y, rem)
        cur, nxt = nxt, cur

    # ---- final layer: conv_ch -> out_ch, no activation ---------------------
    d = dilations[-1]
    if out_ch == 1:
        # Avoid an N=1 MXU matmul: per-tap broadcast-multiply + lane reduce.
        acc = jnp.zeros((t_tile, 1), jnp.float32)
        for k in range(ksize):
            seg = cur[pl.ds(k * d, t_tile), :].astype(jnp.float32)
            acc += jnp.sum(seg * wl_ref[k][None, :].astype(jnp.float32),
                           axis=1, keepdims=True)
    else:
        acc = jnp.dot(cur[pl.ds(0, t_tile), :], wl_ref[0],
                      preferred_element_type=jnp.float32)
        for k in range(1, ksize):
            acc += jnp.dot(cur[pl.ds(k * d, t_tile), :], wl_ref[k],
                           preferred_element_type=jnp.float32)
    o_ref[0] = (acc + bl_ref[...].astype(jnp.float32)).astype(o_ref.dtype)


def parallel_wavegan_discriminator(x_bct, layer_params, *, t_tile=2048,
                                   act_dtype=jnp.bfloat16):
    """Forward pass. x_bct: (B, in_channels, T) -> (B, out_channels, T).

    layer_params: list of (w (K, C_in, C_out), b (C_out,), dilation, slope)
    as produced by `init_params`.  All conv layers run inside one pallas_call.
    act_dtype=bfloat16 stores weights/activations in bf16 (f32 accumulation);
    pass jnp.float32 for a full-precision path.
    """
    assert len(layer_params) >= 3, "fused kernel expects >= 3 conv layers"
    B, in_ch, T = x_bct.shape
    ksize = layer_params[0][0].shape[0]
    conv_ch = layer_params[0][0].shape[2]
    out_ch = layer_params[-1][0].shape[-1]
    dilations = tuple(int(p[2]) for p in layer_params)
    slope = float(layer_params[0][3])
    halo = sum(dilations)
    d0 = dilations[0]
    max_rem = halo - d0
    n_mid = len(layer_params) - 2

    t_tile = max(8, min(_round_up(T, 8), _round_up(t_tile, 8)))
    n_tiles = -(-T // t_tile)
    if B * n_tiles < 2 and t_tile > 512:
        # Split into >= 2 time tiles so v7x's 2 TensorCores both get work
        # (halo recompute overhead is negligible at these tile sizes).
        t_tile = _round_up(-(-T // 2), 8)
        n_tiles = -(-T // t_tile)
    t_pad = n_tiles * t_tile
    t_win = t_tile + 2 * halo
    n0 = t_tile + 2 * max_rem
    buf_len = _round_up(n0, 8)
    k0 = ksize * in_ch
    k0p = _round_up(k0, 8)

    # Overlapped layer-0 im2col windows: (B, n_tiles, n0, K0p).  The input is
    # the only tensor duplicated in HBM (1 channel -> negligible bytes); every
    # intermediate activation stays resident in VMEM.
    x_btc = jnp.transpose(x_bct, (0, 2, 1)).astype(jnp.float32)
    xp = jnp.pad(x_btc, ((0, 0), (halo, halo + (t_pad - T)), (0, 0)))
    xwin = jnp.stack([xp[:, i * t_tile:i * t_tile + t_win, :]
                      for i in range(n_tiles)], axis=1)
    x_im2col = jnp.concatenate(
        [xwin[:, :, k * d0:k * d0 + n0, :] for k in range(ksize)], axis=-1)
    if k0p > k0:
        x_im2col = jnp.pad(x_im2col, ((0, 0), (0, 0), (0, 0), (0, k0p - k0)))

    # Parameters. Layer 0 stays f32 (tiny); middle/last weights in act_dtype.
    w0 = layer_params[0][0].reshape(k0, conv_ch).astype(jnp.float32)
    if k0p > k0:
        w0 = jnp.pad(w0, ((0, k0p - k0), (0, 0)))
    b0 = layer_params[0][1].reshape(1, conv_ch).astype(jnp.float32)
    wm = jnp.stack([p[0] for p in layer_params[1:-1]]).astype(act_dtype)
    bm = jnp.stack([p[1] for p in layer_params[1:-1]]).astype(jnp.float32)
    w_last = layer_params[-1][0]                         # (K, conv_ch, out_ch)
    if out_ch == 1:
        wl = w_last[:, :, 0].astype(act_dtype)           # (K, conv_ch)
    else:
        wl = w_last.astype(act_dtype)                    # (K, conv_ch, out_ch)
    bl = layer_params[-1][1].reshape(1, out_ch).astype(jnp.float32)
    wl_zeros = (0,) * wl.ndim

    kernel = functools.partial(
        _fused_pwgan_kernel, dilations=dilations, t_tile=t_tile, t_real=T,
        conv_ch=conv_ch, out_ch=out_ch, ksize=ksize, leaky_slope=slope,
        act_dtype=act_dtype, buf_len=buf_len)

    def _nbytes(a):
        return int(a.size) * a.dtype.itemsize

    flops = 2 * B * t_pad * ksize * (in_ch * conv_ch
                                     + n_mid * conv_ch * conv_ch
                                     + conv_ch * out_ch)
    bytes_accessed = (_nbytes(x_im2col)
                      + B * t_pad * out_ch * x_bct.dtype.itemsize
                      + _nbytes(w0) + _nbytes(b0) + _nbytes(wm) + _nbytes(bm)
                      + _nbytes(wl) + _nbytes(bl))

    out = pl.pallas_call(
        kernel,
        out_shape=jax.ShapeDtypeStruct((B, t_pad, out_ch), x_bct.dtype),
        grid_spec=pltpu.PrefetchScalarGridSpec(
            num_scalar_prefetch=0,
            grid=(B, n_tiles),
            in_specs=[
                pl.BlockSpec((1, 1, n0, k0p), lambda b, t: (b, t, 0, 0)),
                pl.BlockSpec(w0.shape, lambda b, t: (0, 0)),
                pl.BlockSpec(b0.shape, lambda b, t: (0, 0)),
                pl.BlockSpec(wm.shape, lambda b, t: (0, 0, 0, 0)),
                pl.BlockSpec(bm.shape, lambda b, t: (0, 0)),
                pl.BlockSpec(wl.shape, lambda b, t: wl_zeros),
                pl.BlockSpec(bl.shape, lambda b, t: (0, 0)),
            ],
            out_specs=pl.BlockSpec((1, t_tile, out_ch), lambda b, t: (b, t, 0)),
            scratch_shapes=[pltpu.VMEM((buf_len, conv_ch), act_dtype),
                            pltpu.VMEM((buf_len, conv_ch), act_dtype)],
        ),
        compiler_params=pltpu.CompilerParams(
            dimension_semantics=("parallel", "parallel")),
        cost_estimate=pl.CostEstimate(flops=int(flops), transcendentals=0,
                                      bytes_accessed=int(bytes_accessed)),
    )(x_im2col, w0, b0, wm, bm, wl, bl)

    return jnp.transpose(out[:, :T, :], (0, 2, 1))


def init_params(key, in_channels=1, out_channels=1, kernel_size=3, layers=10,
                conv_channels=64, dilation_factor=1):
    """Deterministic synthetic parameters matching the module's shapes.

    Returns a list of (w (K, C_in, C_out), b (C_out,), dilation, slope).
    Weight-norm at init is the identity (g = ||v||), so raw weights suffice.
    """
    params = []
    c_in = in_channels
    for i in range(layers - 1):
        dilation = 1 if i == 0 else (
            i if dilation_factor == 1 else dilation_factor ** i)
        key, kw, kb = jax.random.split(key, 3)
        w = 0.1 * jax.random.normal(kw, (kernel_size, c_in, conv_channels),
                                    jnp.float32)
        b = 0.1 * jax.random.normal(kb, (conv_channels,), jnp.float32)
        params.append((w, b, dilation, 0.2))
        c_in = conv_channels
    key, kw, kb = jax.random.split(key, 3)
    w = 0.1 * jax.random.normal(kw, (kernel_size, c_in, out_channels),
                                jnp.float32)
    b = 0.1 * jax.random.normal(kb, (out_channels,), jnp.float32)
    params.append((w, b, 1, None))  # last conv: no activation
    return params


def _reference_forward(x_bct, params):
    """Pure-JAX reference using lax.conv_general_dilated (NCH layout)."""
    x = x_bct
    for w_kio, b, dilation, slope in params:
        w_oik = jnp.transpose(w_kio, (2, 1, 0))  # (C_out, C_in, K)
        K = w_oik.shape[-1]
        pad = (K - 1) // 2 * dilation
        y = lax.conv_general_dilated(
            x, w_oik, window_strides=(1,), padding=((pad, pad),),
            rhs_dilation=(dilation,),
            dimension_numbers=("NCH", "OIH", "NCH"))
        y = y + b[None, :, None]
        if slope is not None:
            y = jnp.where(y >= 0, y, slope * y)
        x = y
    return x


if __name__ == "__main__":
    key = jax.random.PRNGKey(0)
    kx, kp, kx2 = jax.random.split(key, 3)

    params = init_params(kp, in_channels=1, out_channels=1, kernel_size=3,
                         layers=10, conv_channels=64)

    # Case 1: one time tile per batch element, f32 end-to-end.
    B, C_in, T = 2, 1, 128
    x = jax.random.normal(kx, (B, C_in, T), jnp.float32)
    out = jax.block_until_ready(
        parallel_wavegan_discriminator(x, params, act_dtype=jnp.float32))
    assert out.shape == (B, 1, T), out.shape
    ref = jax.block_until_ready(_reference_forward(x, params))
    assert jnp.allclose(out, ref, atol=2e-4, rtol=2e-4), (
        float(jnp.max(jnp.abs(out - ref))))

    # Case 2: several T tiles, T not a multiple of the tile -> exercises both
    # the interior (unmasked) and boundary (masked) store paths + halo logic.
    B2, T2 = 1, 520
    x2 = jax.random.normal(kx2, (B2, C_in, T2), jnp.float32)
    out2 = jax.block_until_ready(
        parallel_wavegan_discriminator(x2, params, t_tile=128,
                                       act_dtype=jnp.float32))
    assert out2.shape == (B2, 1, T2), out2.shape
    ref2 = jax.block_until_ready(_reference_forward(x2, params))
    assert jnp.allclose(out2, ref2, atol=2e-4, rtol=2e-4), (
        float(jnp.max(jnp.abs(out2 - ref2))))

    # Case 3: default bf16 weights/activations (MXU-friendly on v6e/v7x),
    # f32 accumulation/bias/LeakyReLU.
    out3 = jax.block_until_ready(parallel_wavegan_discriminator(x, params))
    assert out3.shape == (B, 1, T), out3.shape
    assert jnp.allclose(out3, ref, atol=5e-2, rtol=5e-2), (
        float(jnp.max(jnp.abs(out3 - ref))))

    print("KERNEL_OK")
</pallas_src>

<mosaic_0001>
module attributes {stable_mosaic.version = 11 : i64} {
  func.func @_fused_pwgan_kernel(%arg0: i32, %arg1: i32, %arg2: memref<1x1x202x8xf32, #tpu.memory_space<vmem>>, %arg3: memref<8x64xf32, #tpu.memory_space<vmem>>, %arg4: memref<1x64xf32, #tpu.memory_space<vmem>>, %arg5: memref<8x3x64x64xf32, #tpu.memory_space<vmem>>, %arg6: memref<8x64xf32, #tpu.memory_space<vmem>>, %arg7: memref<3x64xf32, #tpu.memory_space<vmem>>, %arg8: memref<1x1xf32, #tpu.memory_space<vmem>>, %arg9: memref<1x128x1xf32, #tpu.memory_space<vmem>>, %arg10: memref<208x64xf32, #tpu.memory_space<vmem>>, %arg11: memref<208x64xf32, #tpu.memory_space<vmem>>) attributes {dimension_semantics = [#tpu.dimension_semantics<parallel>, #tpu.dimension_semantics<parallel>], iteration_bounds = array<i64: 2, 1>, scalar_prefetch = 0 : i64, scratch_operands = 2 : i64, tpu.core_type = #tpu.core_type<tc>, window_params = [{transform_indices = @transform_0, window_bounds = array<i64: 1, 1, 202, 8>}, {pipeline_mode = #tpu.pipeline_mode<synchronous>, transform_indices = @transform_1, window_bounds = array<i64: 8, 64>}, {pipeline_mode = #tpu.pipeline_mode<synchronous>, transform_indices = @transform_2, window_bounds = array<i64: 1, 64>}, {pipeline_mode = #tpu.pipeline_mode<synchronous>, transform_indices = @transform_3, window_bounds = array<i64: 8, 3, 64, 64>}, {pipeline_mode = #tpu.pipeline_mode<synchronous>, transform_indices = @transform_4, window_bounds = array<i64: 8, 64>}, {pipeline_mode = #tpu.pipeline_mode<synchronous>, transform_indices = @transform_5, window_bounds = array<i64: 3, 64>}, {pipeline_mode = #tpu.pipeline_mode<synchronous>, transform_indices = @transform_6, window_bounds = array<i64: 1, 1>}, {transform_indices = @transform_7, window_bounds = array<i64: 1, 128, 1>}]} {
    %c128_i32 = arith.constant 128 : i32
    %0 = arith.muli %arg1, %c128_i32 : i32
    %c37_i32 = arith.constant 37 : i32
    %1 = arith.cmpi sge, %0, %c37_i32 : i32
    %c128_i32_0 = arith.constant 128 : i32
    %2 = arith.addi %0, %c128_i32_0 : i32
    %c37_i32_1 = arith.constant 37 : i32
    %3 = arith.addi %2, %c37_i32_1 : i32
    %c128_i32_2 = arith.constant 128 : i32
    %4 = arith.cmpi sle, %3, %c128_i32_2 : i32
    %5 = arith.andi %1, %4 : i1
    %6 = tpu.iota {dimensions = array<i32: 0>} : vector<208x64xi32>
    %c0 = arith.constant 0 : index
    %c0_3 = arith.constant 0 : index
    %c0_4 = arith.constant 0 : index
    %c0_5 = arith.constant 0 : index
    %7 = vector.load %arg2[%c0, %c0_3, %c0_4, %c0_5] : memref<1x1x202x8xf32, #tpu.memory_space<vmem>>, vector<1x1x202x8xf32>
    %8 = vector.shape_cast %7 : vector<1x1x202x8xf32> to vector<202x8xf32>
    %c0_6 = arith.constant 0 : index
    %c0_7 = arith.constant 0 : index
    %9 = vector.load %arg3[%c0_6, %c0_7] : memref<8x64xf32, #tpu.memory_space<vmem>>, vector<8x64xf32>
    %cst = arith.constant dense<0.000000e+00> : vector<202x64xf32>
    %10 = tpu.matmul %8, %9, %cst {dimension_numbers = #tpu.dot_dimension_numbers<[1], [0], [0], [1], [0, 0, 1, 1], [], []>} : vector<202x8xf32>, vector<8x64xf32>, vector<202x64xf32> -> vector<202x64xf32>
    %c0_8 = arith.constant 0 : index
    %c0_9 = arith.constant 0 : index
    %11 = vector.load %arg4[%c0_8, %c0_9] : memref<1x64xf32, #tpu.memory_space<vmem>>, vector<1x64xf32>
    %12 = vector.broadcast %11 : vector<1x64xf32> to vector<202x64xf32>
    %13 = arith.addf %10, %12 : vector<202x64xf32>
    %cst_10 = arith.constant 2.000000e-01 : f32
    %14 = vector.broadcast %cst_10 : f32 to vector<202x64xf32>
    %15 = arith.mulf %14, %13 : vector<202x64xf32>
    %16 = arith.maximumf %13, %15 : vector<202x64xf32>
    %17 = arith.extui %5 : i1 to i32
    %c0_i32 = arith.constant 0 : i32
    %18 = arith.cmpi ne, %17, %c0_i32 : i32
    scf.if %18 {
      %c0_237 = arith.constant 0 : index
      %c0_238 = arith.constant 0 : index
      %272 = vector.load %arg10[%c0_237, %c0_238] : memref<208x64xf32, #tpu.memory_space<vmem>>, vector<202x64xf32>
      tpu.vector_store %arg10[%c0_237, %c0_238], %16 {strides = array<i32>} : memref<208x64xf32, #tpu.memory_space<vmem>>, vector<202x64xf32>,
    } else {
    }
    %true = arith.constant true
    %19 = arith.xori %5, %true : i1
    %20 = arith.extui %19 : i1 to i32
    %c0_i32_11 = arith.constant 0 : i32
    %21 = arith.cmpi ne, %20, %c0_i32_11 : i32
    scf.if %21 {
      %272 = vector.extract_strided_slice %6 {offsets = [0, 0], sizes = [202, 64], strides = [1, 1]} : vector<208x64xi32> to vector<202x64xi32>
      %c37_i32_237 = arith.constant 37 : i32
      %273 = arith.subi %0, %c37_i32_237 : i32
      %274 = vector.broadcast %273 : i32 to vector<202x64xi32>
      %275 = arith.addi %272, %274 : vector<202x64xi32>
      %c0_i32_238 = arith.constant 0 : i32
      %276 = vector.broadcast %c0_i32_238 : i32 to vector<202x64xi32>
      %277 = arith.cmpi sge, %275, %276 : vector<202x64xi32>
      %c128_i32_239 = arith.constant 128 : i32
      %278 = vector.broadcast %c128_i32_239 : i32 to vector<202x64xi32>
      %279 = arith.cmpi slt, %275, %278 : vector<202x64xi32>
      %280 = arith.andi %277, %279 : vector<202x64xi1>
      %cst_240 = arith.constant 0.000000e+00 : f32
      %281 = vector.broadcast %cst_240 : f32 to vector<202x64xf32>
      %282 = arith.select %280, %16, %281 : vector<202x64xi1>, vector<202x64xf32>
      %c0_241 = arith.constant 0 : index
      %c0_242 = arith.constant 0 : index
      %283 = vector.load %arg10[%c0_241, %c0_242] : memref<208x64xf32, #tpu.memory_space<vmem>>, vector<202x64xf32>
      tpu.vector_store %arg10[%c0_241, %c0_242], %282 {strides = array<i32>} : memref<208x64xf32, #tpu.memory_space<vmem>>, vector<202x64xf32>,
    } else {
    }
    %c0_12 = arith.constant 0 : index
    %c0_13 = arith.constant 0 : index
    %22 = vector.load %arg10[%c0_12, %c0_13] : memref<208x64xf32, #tpu.memory_space<vmem>>, vector<200x64xf32>
    %c0_14 = arith.constant 0 : index
    %c0_15 = arith.constant 0 : index
    %c0_16 = arith.constant 0 : index
    %c0_17 = arith.constant 0 : index
    %23 = vector.load %arg5[%c0_14, %c0_15, %c0_16, %c0_17] : memref<8x3x64x64xf32, #tpu.memory_space<vmem>>, vector<1x1x64x64xf32>
    %24 = vector.shape_cast %23 : vector<1x1x64x64xf32> to vector<64x64xf32>
    %cst_18 = arith.constant dense<0.000000e+00> : vector<200x64xf32>
    %25 = tpu.matmul %22, %24, %cst_18 {dimension_numbers = #tpu.dot_dimension_numbers<[1], [0], [0], [1], [0, 0, 1, 1], [], []>} : vector<200x64xf32>, vector<64x64xf32>, vector<200x64xf32> -> vector<200x64xf32>
    %c1 = arith.constant 1 : index
    %c0_19 = arith.constant 0 : index
    %26 = vector.load %arg10[%c1, %c0_19] : memref<208x64xf32, #tpu.memory_space<vmem>>, vector<200x64xf32>
    %c0_20 = arith.constant 0 : index
    %c1_21 = arith.constant 1 : index
    %c0_22 = arith.constant 0 : index
    %c0_23 = arith.constant 0 : index
    %27 = vector.load %arg5[%c0_20, %c1_21, %c0_22, %c0_23] : memref<8x3x64x64xf32, #tpu.memory_space<vmem>>, vector<1x1x64x64xf32>
    %28 = vector.shape_cast %27 : vector<1x1x64x64xf32> to vector<64x64xf32>
    %cst_24 = arith.constant dense<0.000000e+00> : vector<200x64xf32>
    %29 = tpu.matmul %26, %28, %cst_24 {dimension_numbers = #tpu.dot_dimension_numbers<[1], [0], [0], [1], [0, 0, 1, 1], [], []>} : vector<200x64xf32>, vector<64x64xf32>, vector<200x64xf32> -> vector<200x64xf32>
    %30 = arith.addf %25, %29 : vector<200x64xf32>
    %c2 = arith.constant 2 : index
    %c0_25 = arith.constant 0 : index
    %31 = vector.load %arg10[%c2, %c0_25] : memref<208x64xf32, #tpu.memory_space<vmem>>, vector<200x64xf32>
    %c0_26 = arith.constant 0 : index
    %c2_27 = arith.constant 2 : index
    %c0_28 = arith.constant 0 : index
    %c0_29 = arith.constant 0 : index
    %32 = vector.load %arg5[%c0_26, %c2_27, %c0_28, %c0_29] : memref<8x3x64x64xf32, #tpu.memory_space<vmem>>, vector<1x1x64x64xf32>
    %33 = vector.shape_cast %32 : vector<1x1x64x64xf32> to vector<64x64xf32>
    %cst_30 = arith.constant dense<0.000000e+00> : vector<200x64xf32>
    %34 = tpu.matmul %31, %33, %cst_30 {dimension_numbers = #tpu.dot_dimension_numbers<[1], [0], [0], [1], [0, 0, 1, 1], [], []>} : vector<200x64xf32>, vector<64x64xf32>, vector<200x64xf32> -> vector<200x64xf32>
    %35 = arith.addf %30, %34 : vector<200x64xf32>
    %c0_31 = arith.constant 0 : index
    %c0_32 = arith.constant 0 : index
    %36 = vector.load %arg6[%c0_31, %c0_32] : memref<8x64xf32, #tpu.memory_space<vmem>>, vector<1x64xf32>
    %37 = vector.shape_cast %36 : vector<1x64xf32> to vector<64xf32>
    %38 = vector.shape_cast %37 : vector<64xf32> to vector<1x64xf32>
    %39 = vector.broadcast %38 : vector<1x64xf32> to vector<200x64xf32>
    %40 = arith.addf %35, %39 : vector<200x64xf32>
    %cst_33 = arith.constant 2.000000e-01 : f32
    %41 = vector.broadcast %cst_33 : f32 to vector<200x64xf32>
    %42 = arith.mulf %41, %40 : vector<200x64xf32>
    %43 = arith.maximumf %40, %42 : vector<200x64xf32>
    %44 = arith.extui %5 : i1 to i32
    %c0_i32_34 = arith.constant 0 : i32
    %45 = arith.cmpi ne, %44, %c0_i32_34 : i32
    scf.if %45 {
      %c0_237 = arith.constant 0 : index
      %c0_238 = arith.constant 0 : index
      %272 = vector.load %arg11[%c0_237, %c0_238] : memref<208x64xf32, #tpu.memory_space<vmem>>, vector<200x64xf32>
      tpu.vector_store %arg11[%c0_237, %c0_238], %43 {strides = array<i32>} : memref<208x64xf32, #tpu.memory_space<vmem>>, vector<200x64xf32>,
    } else {
    }
    %true_35 = arith.constant true
    %46 = arith.xori %5, %true_35 : i1
    %47 = arith.extui %46 : i1 to i32
    %c0_i32_36 = arith.constant 0 : i32
    %48 = arith.cmpi ne, %47, %c0_i32_36 : i32
    scf.if %48 {
      %272 = vector.extract_strided_slice %6 {offsets = [0, 0], sizes = [200, 64], strides = [1, 1]} : vector<208x64xi32> to vector<200x64xi32>
      %c36_i32 = arith.constant 36 : i32
      %273 = arith.subi %0, %c36_i32 : i32
      %274 = vector.broadcast %273 : i32 to vector<200x64xi32>
      %275 = arith.addi %272, %274 : vector<200x64xi32>
      %c0_i32_237 = arith.constant 0 : i32
      %276 = vector.broadcast %c0_i32_237 : i32 to vector<200x64xi32>
      %277 = arith.cmpi sge, %275, %276 : vector<200x64xi32>
      %c128_i32_238 = arith.constant 128 : i32
      %278 = vector.broadcast %c128_i32_238 : i32 to vector<200x64xi32>
      %279 = arith.cmpi slt, %275, %278 : vector<200x64xi32>
      %280 = arith.andi %277, %279 : vector<200x64xi1>
      %cst_239 = arith.constant 0.000000e+00 : f32
      %281 = vector.broadcast %cst_239 : f32 to vector<200x64xf32>
      %282 = arith.select %280, %43, %281 : vector<200x64xi1>, vector<200x64xf32>
      %c0_240 = arith.constant 0 : index
      %c0_241 = arith.constant 0 : index
      %283 = vector.load %arg11[%c0_240, %c0_241] : memref<208x64xf32, #tpu.memory_space<vmem>>, vector<200x64xf32>
      tpu.vector_store %arg11[%c0_240, %c0_241], %282 {strides = array<i32>} : memref<208x64xf32, #tpu.memory_space<vmem>>, vector<200x64xf32>,
    } else {
    }
    %c0_37 = arith.constant 0 : index
    %c0_38 = arith.constant 0 : index
    %49 = vector.load %arg11[%c0_37, %c0_38] : memref<208x64xf32, #tpu.memory_space<vmem>>, vector<196x64xf32>
    %c1_39 = arith.constant 1 : index
    %c0_40 = arith.constant 0 : index
    %c0_41 = arith.constant 0 : index
    %c0_42 = arith.constant 0 : index
    %50 = vector.load %arg5[%c1_39, %c0_40, %c0_41, %c0_42] : memref<8x3x64x64xf32, #tpu.memory_space<vmem>>, vector<1x1x64x64xf32>
    %51 = vector.shape_cast %50 : vector<1x1x64x64xf32> to vector<64x64xf32>
    %cst_43 = arith.constant dense<0.000000e+00> : vector<196x64xf32>
    %52 = tpu.matmul %49, %51, %cst_43 {dimension_numbers = #tpu.dot_dimension_numbers<[1], [0], [0], [1], [0, 0, 1, 1], [], []>} : vector<196x64xf32>, vector<64x64xf32>, vector<196x64xf32> -> vector<196x64xf32>
    %c2_44 = arith.constant 2 : index
    %c0_45 = arith.constant 0 : index
    %53 = vector.load %arg11[%c2_44, %c0_45] : memref<208x64xf32, #tpu.memory_space<vmem>>, vector<196x64xf32>
    %c1_46 = arith.constant 1 : index
    %c1_47 = arith.constant 1 : index
    %c0_48 = arith.constant 0 : index
    %c0_49 = arith.constant 0 : index
    %54 = vector.load %arg5[%c1_46, %c1_47, %c0_48, %c0_49] : memref<8x3x64x64xf32, #tpu.memory_space<vmem>>, vector<1x1x64x64xf32>
    %55 = vector.shape_cast %54 : vector<1x1x64x64xf32> to vector<64x64xf32>
    %cst_50 = arith.constant dense<0.000000e+00> : vector<196x64xf32>
    %56 = tpu.matmul %53, %55, %cst_50 {dimension_numbers = #tpu.dot_dimension_numbers<[1], [0], [0], [1], [0, 0, 1, 1], [], []>} : vector<196x64xf32>, vector<64x64xf32>, vector<196x64xf32> -> vector<196x64xf32>
    %57 = arith.addf %52, %56 : vector<196x64xf32>
    %c4 = arith.constant 4 : index
    %c0_51 = arith.constant 0 : index
    %58 = vector.load %arg11[%c4, %c0_51] : memref<208x64xf32, #tpu.memory_space<vmem>>, vector<196x64xf32>
    %c1_52 = arith.constant 1 : index
    %c2_53 = arith.constant 2 : index
    %c0_54 = arith.constant 0 : index
    %c0_55 = arith.constant 0 : index
    %59 = vector.load %arg5[%c1_52, %c2_53, %c0_54, %c0_55] : memref<8x3x64x64xf32, #tpu.memory_space<vmem>>, vector<1x1x64x64xf32>
    %60 = vector.shape_cast %59 : vector<1x1x64x64xf32> to vector<64x64xf32>
    %cst_56 = arith.constant dense<0.000000e+00> : vector<196x64xf32>
    %61 = tpu.matmul %58, %60, %cst_56 {dimension_numbers = #tpu.dot_dimension_numbers<[1], [0], [0], [1], [0, 0, 1, 1], [], []>} : vector<196x64xf32>, vector<64x64xf32>, vector<196x64xf32> -> vector<196x64xf32>
    %62 = arith.addf %57, %61 : vector<196x64xf32>
    %c1_57 = arith.constant 1 : index
    %c0_58 = arith.constant 0 : index
    %63 = vector.load %arg6[%c1_57, %c0_58] : memref<8x64xf32, #tpu.memory_space<vmem>>, vector<1x64xf32>
    %64 = vector.shape_cast %63 : vector<1x64xf32> to vector<64xf32>
    %65 = vector.shape_cast %64 : vector<64xf32> to vector<1x64xf32>
    %66 = vector.broadcast %65 : vector<1x64xf32> to vector<196x64xf32>
    %67 = arith.addf %62, %66 : vector<196x64xf32>
    %cst_59 = arith.constant 2.000000e-01 : f32
    %68 = vector.broadcast %cst_59 : f32 to vector<196x64xf32>
    %69 = arith.mulf %68, %67 : vector<196x64xf32>
    %70 = arith.maximumf %67, %69 : vector<196x64xf32>
    %71 = arith.extui %5 : i1 to i32
    %c0_i32_60 = arith.constant 0 : i32
    %72 = arith.cmpi ne, %71, %c0_i32_60 : i32
    scf.if %72 {
      %c0_237 = arith.constant 0 : index
      %c0_238 = arith.constant 0 : index
      %272 = vector.load %arg10[%c0_237, %c0_238] : memref<208x64xf32, #tpu.memory_space<vmem>>, vector<196x64xf32>
      tpu.vector_store %arg10[%c0_237, %c0_238], %70 {strides = array<i32>} : memref<208x64xf32, #tpu.memory_space<vmem>>, vector<196x64xf32>,
    } else {
    }
    %true_61 = arith.constant true
    %73 = arith.xori %5, %true_61 : i1
    %74 = arith.extui %73 : i1 to i32
    %c0_i32_62 = arith.constant 0 : i32
    %75 = arith.cmpi ne, %74, %c0_i32_62 : i32
    scf.if %75 {
      %272 = vector.extract_strided_slice %6 {offsets = [0, 0], sizes = [196, 64], strides = [1, 1]} : vector<208x64xi32> to vector<196x64xi32>
      %c34_i32 = arith.constant 34 : i32
      %273 = arith.subi %0, %c34_i32 : i32
      %274 = vector.broadcast %273 : i32 to vector<196x64xi32>
      %275 = arith.addi %272, %274 : vector<196x64xi32>
      %c0_i32_237 = arith.constant 0 : i32
      %276 = vector.broadcast %c0_i32_237 : i32 to vector<196x64xi32>
      %277 = arith.cmpi sge, %275, %276 : vector<196x64xi32>
      %c128_i32_238 = arith.constant 128 : i32
      %278 = vector.broadcast %c128_i32_238 : i32 to vector<196x64xi32>
      %279 = arith.cmpi slt, %275, %278 : vector<196x64xi32>
      %280 = arith.andi %277, %279 : vector<196x64xi1>
      %cst_239 = arith.constant 0.000000e+00 : f32
      %281 = vector.broadcast %cst_239 : f32 to vector<196x64xf32>
      %282 = arith.select %280, %70, %281 : vector<196x64xi1>, vector<196x64xf32>
      %c0_240 = arith.constant 0 : index
      %c0_241 = arith.constant 0 : index
      %283 = vector.load %arg10[%c0_240, %c0_241] : memref<208x64xf32, #tpu.memory_space<vmem>>, vector<196x64xf32>
      tpu.vector_store %arg10[%c0_240, %c0_241], %282 {strides = array<i32>} : memref<208x64xf32, #tpu.memory_space<vmem>>, vector<196x64xf32>,
    } else {
    }
    %c0_63 = arith.constant 0 : index
    %c0_64 = arith.constant 0 : index
    %76 = vector.load %arg10[%c0_63, %c0_64] : memref<208x64xf32, #tpu.memory_space<vmem>>, vector<190x64xf32>
    %c2_65 = arith.constant 2 : index
    %c0_66 = arith.constant 0 : index
    %c0_67 = arith.constant 0 : index
    %c0_68 = arith.constant 0 : index
    %77 = vector.load %arg5[%c2_65, %c0_66, %c0_67, %c0_68] : memref<8x3x64x64xf32, #tpu.memory_space<vmem>>, vector<1x1x64x64xf32>
    %78 = vector.shape_cast %77 : vector<1x1x64x64xf32> to vector<64x64xf32>
    %cst_69 = arith.constant dense<0.000000e+00> : vector<190x64xf32>
    %79 = tpu.matmul %76, %78, %cst_69 {dimension_numbers = #tpu.dot_dimension_numbers<[1], [0], [0], [1], [0, 0, 1, 1], [], []>} : vector<190x64xf32>, vector<64x64xf32>, vector<190x64xf32> -> vector<190x64xf32>
    %c3 = arith.constant 3 : index
    %c0_70 = arith.constant 0 : index
    %80 = vector.load %arg10[%c3, %c0_70] : memref<208x64xf32, #tpu.memory_space<vmem>>, vector<190x64xf32>
    %c2_71 = arith.constant 2 : index
    %c1_72 = arith.constant 1 : index
    %c0_73 = arith.constant 0 : index
    %c0_74 = arith.constant 0 : index
    %81 = vector.load %arg5[%c2_71, %c1_72, %c0_73, %c0_74] : memref<8x3x64x64xf32, #tpu.memory_space<vmem>>, vector<1x1x64x64xf32>
    %82 = vector.shape_cast %81 : vector<1x1x64x64xf32> to vector<64x64xf32>
    %cst_75 = arith.constant dense<0.000000e+00> : vector<190x64xf32>
    %83 = tpu.matmul %80, %82, %cst_75 {dimension_numbers = #tpu.dot_dimension_numbers<[1], [0], [0], [1], [0, 0, 1, 1], [], []>} : vector<190x64xf32>, vector<64x64xf32>, vector<190x64xf32> -> vector<190x64xf32>
    %84 = arith.addf %79, %83 : vector<190x64xf32>
    %c6 = arith.constant 6 : index
    %c0_76 = arith.constant 0 : index
    %85 = vector.load %arg10[%c6, %c0_76] : memref<208x64xf32, #tpu.memory_space<vmem>>, vector<190x64xf32>
    %c2_77 = arith.constant 2 : index
    %c2_78 = arith.constant 2 : index
    %c0_79 = arith.constant 0 : index
    %c0_80 = arith.constant 0 : index
    %86 = vector.load %arg5[%c2_77, %c2_78, %c0_79, %c0_80] : memref<8x3x64x64xf32, #tpu.memory_space<vmem>>, vector<1x1x64x64xf32>
    %87 = vector.shape_cast %86 : vector<1x1x64x64xf32> to vector<64x64xf32>
    %cst_81 = arith.constant dense<0.000000e+00> : vector<190x64xf32>
    %88 = tpu.matmul %85, %87, %cst_81 {dimension_numbers = #tpu.dot_dimension_numbers<[1], [0], [0], [1], [0, 0, 1, 1], [], []>} : vector<190x64xf32>, vector<64x64xf32>, vector<190x64xf32> -> vector<190x64xf32>
    %89 = arith.addf %84, %88 : vector<190x64xf32>
    %c2_82 = arith.constant 2 : index
    %c0_83 = arith.constant 0 : index
    %90 = vector.load %arg6[%c2_82, %c0_83] : memref<8x64xf32, #tpu.memory_space<vmem>>, vector<1x64xf32>
    %91 = vector.shape_cast %90 : vector<1x64xf32> to vector<64xf32>
    %92 = vector.shape_cast %91 : vector<64xf32> to vector<1x64xf32>
    %93 = vector.broadcast %92 : vector<1x64xf32> to vector<190x64xf32>
    %94 = arith.addf %89, %93 : vector<190x64xf32>
    %cst_84 = arith.constant 2.000000e-01 : f32
    %95 = vector.broadcast %cst_84 : f32 to vector<190x64xf32>
    %96 = arith.mulf %95, %94 : vector<190x64xf32>
    %97 = arith.maximumf %94, %96 : vector<190x64xf32>
    %98 = arith.extui %5 : i1 to i32
    %c0_i32_85 = arith.constant 0 : i32
    %99 = arith.cmpi ne, %98, %c0_i32_85 : i32
    scf.if %99 {
      %c0_237 = arith.constant 0 : index
      %c0_238 = arith.constant 0 : index
      %272 = vector.load %arg11[%c0_237, %c0_238] : memref<208x64xf32, #tpu.memory_space<vmem>>, vector<190x64xf32>
      tpu.vector_store %arg11[%c0_237, %c0_238], %97 {strides = array<i32>} : memref<208x64xf32, #tpu.memory_space<vmem>>, vector<190x64xf32>,
    } else {
    }
    %true_86 = arith.constant true
    %100 = arith.xori %5, %true_86 : i1
    %101 = arith.extui %100 : i1 to i32
    %c0_i32_87 = arith.constant 0 : i32
    %102 = arith.cmpi ne, %101, %c0_i32_87 : i32
    scf.if %102 {
      %272 = vector.extract_strided_slice %6 {offsets = [0, 0], sizes = [190, 64], strides = [1, 1]} : vector<208x64xi32> to vector<190x64xi32>
      %c31_i32 = arith.constant 31 : i32
      %273 = arith.subi %0, %c31_i32 : i32
      %274 = vector.broadcast %273 : i32 to vector<190x64xi32>
      %275 = arith.addi %272, %274 : vector<190x64xi32>
      %c0_i32_237 = arith.constant 0 : i32
      %276 = vector.broadcast %c0_i32_237 : i32 to vector<190x64xi32>
      %277 = arith.cmpi sge, %275, %276 : vector<190x64xi32>
      %c128_i32_238 = arith.constant 128 : i32
      %278 = vector.broadcast %c128_i32_238 : i32 to vector<190x64xi32>
      %279 = arith.cmpi slt, %275, %278 : vector<190x64xi32>
      %280 = arith.andi %277, %279 : vector<190x64xi1>
      %cst_239 = arith.constant 0.000000e+00 : f32
      %281 = vector.broadcast %cst_239 : f32 to vector<190x64xf32>
      %282 = arith.select %280, %97, %281 : vector<190x64xi1>, vector<190x64xf32>
      %c0_240 = arith.constant 0 : index
      %c0_241 = arith.constant 0 : index
      %283 = vector.load %arg11[%c0_240, %c0_241] : memref<208x64xf32, #tpu.memory_space<vmem>>, vector<190x64xf32>
      tpu.vector_store %arg11[%c0_240, %c0_241], %282 {strides = array<i32>} : memref<208x64xf32, #tpu.memory_space<vmem>>, vector<190x64xf32>,
    } else {
    }
    %c0_88 = arith.constant 0 : index
    %c0_89 = arith.constant 0 : index
    %103 = vector.load %arg11[%c0_88, %c0_89] : memref<208x64xf32, #tpu.memory_space<vmem>>, vector<182x64xf32>
    %c3_90 = arith.constant 3 : index
    %c0_91 = arith.constant 0 : index
    %c0_92 = arith.constant 0 : index
    %c0_93 = arith.constant 0 : index
    %104 = vector.load %arg5[%c3_90, %c0_91, %c0_92, %c0_93] : memref<8x3x64x64xf32, #tpu.memory_space<vmem>>, vector<1x1x64x64xf32>
    %105 = vector.shape_cast %104 : vector<1x1x64x64xf32> to vector<64x64xf32>
    %cst_94 = arith.constant dense<0.000000e+00> : vector<182x64xf32>
    %106 = tpu.matmul %103, %105, %cst_94 {dimension_numbers = #tpu.dot_dimension_numbers<[1], [0], [0], [1], [0, 0, 1, 1], [], []>} : vector<182x64xf32>, vector<64x64xf32>, vector<182x64xf32> -> vector<182x64xf32>
    %c4_95 = arith.constant 4 : index
    %c0_96 = arith.constant 0 : index
    %107 = vector.load %arg11[%c4_95, %c0_96] : memref<208x64xf32, #tpu.memory_space<vmem>>, vector<182x64xf32>
    %c3_97 = arith.constant 3 : index
    %c1_98 = arith.constant 1 : index
    %c0_99 = arith.constant 0 : index
    %c0_100 = arith.constant 0 : index
    %108 = vector.load %arg5[%c3_97, %c1_98, %c0_99, %c0_100] : memref<8x3x64x64xf32, #tpu.memory_space<vmem>>, vector<1x1x64x64xf32>
    %109 = vector.shape_cast %108 : vector<1x1x64x64xf32> to vector<64x64xf32>
    %cst_101 = arith.constant dense<0.000000e+00> : vector<182x64xf32>
    %110 = tpu.matmul %107, %109, %cst_101 {dimension_numbers = #tpu.dot_dimension_numbers<[1], [0], [0], [1], [0, 0, 1, 1], [], []>} : vector<182x64xf32>, vector<64x64xf32>, vector<182x64xf32> -> vector<182x64xf32>
    %111 = arith.addf %106, %110 : vector<182x64xf32>
    %c8 = arith.constant 8 : index
    %c0_102 = arith.constant 0 : index
    %112 = vector.load %arg11[%c8, %c0_102] : memref<208x64xf32, #tpu.memory_space<vmem>>, vector<182x64xf32>
    %c3_103 = arith.constant 3 : index
    %c2_104 = arith.constant 2 : index
    %c0_105 = arith.constant 0 : index
    %c0_106 = arith.constant 0 : index
    %113 = vector.load %arg5[%c3_103, %c2_104, %c0_105, %c0_106] : memref<8x3x64x64xf32, #tpu.memory_space<vmem>>, vector<1x1x64x64xf32>
    %114 = vector.shape_cast %113 : vector<1x1x64x64xf32> to vector<64x64xf32>
    %cst_107 = arith.constant dense<0.000000e+00> : vector<182x64xf32>
    %115 = tpu.matmul %112, %114, %cst_107 {dimension_numbers = #tpu.dot_dimension_numbers<[1], [0], [0], [1], [0, 0, 1, 1], [], []>} : vector<182x64xf32>, vector<64x64xf32>, vector<182x64xf32> -> vector<182x64xf32>
    %116 = arith.addf %111, %115 : vector<182x64xf32>
    %c3_108 = arith.constant 3 : index
    %c0_109 = arith.constant 0 : index
    %117 = vector.load %arg6[%c3_108, %c0_109] : memref<8x64xf32, #tpu.memory_space<vmem>>, vector<1x64xf32>
    %118 = vector.shape_cast %117 : vector<1x64xf32> to vector<64xf32>
    %119 = vector.shape_cast %118 : vector<64xf32> to vector<1x64xf32>
    %120 = vector.broadcast %119 : vector<1x64xf32> to vector<182x64xf32>
    %121 = arith.addf %116, %120 : vector<182x64xf32>
    %cst_110 = arith.constant 2.000000e-01 : f32
    %122 = vector.broadcast %cst_110 : f32 to vector<182x64xf32>
    %123 = arith.mulf %122, %121 : vector<182x64xf32>
    %124 = arith.maximumf %121, %123 : vector<182x64xf32>
    %125 = arith.extui %5 : i1 to i32
    %c0_i32_111 = arith.constant 0 : i32
    %126 = arith.cmpi ne, %125, %c0_i32_111 : i32
    scf.if %126 {
      %c0_237 = arith.constant 0 : index
      %c0_238 = arith.constant 0 : index
      %272 = vector.load %arg10[%c0_237, %c0_238] : memref<208x64xf32, #tpu.memory_space<vmem>>, vector<182x64xf32>
      tpu.vector_store %arg10[%c0_237, %c0_238], %124 {strides = array<i32>} : memref<208x64xf32, #tpu.memory_space<vmem>>, vector<182x64xf32>,
    } else {
    }
    %true_112 = arith.constant true
    %127 = arith.xori %5, %true_112 : i1
    %128 = arith.extui %127 : i1 to i32
    %c0_i32_113 = arith.constant 0 : i32
    %129 = arith.cmpi ne, %128, %c0_i32_113 : i32
    scf.if %129 {
      %272 = vector.extract_strided_slice %6 {offsets = [0, 0], sizes = [182, 64], strides = [1, 1]} : vector<208x64xi32> to vector<182x64xi32>
      %c27_i32 = arith.constant 27 : i32
      %273 = arith.subi %0, %c27_i32 : i32
      %274 = vector.broadcast %273 : i32 to vector<182x64xi32>
      %275 = arith.addi %272, %274 : vector<182x64xi32>
      %c0_i32_237 = arith.constant 0 : i32
      %276 = vector.broadcast %c0_i32_237 : i32 to vector<182x64xi32>
      %277 = arith.cmpi sge, %275, %276 : vector<182x64xi32>
      %c128_i32_238 = arith.constant 128 : i32
      %278 = vector.broadcast %c128_i32_238 : i32 to vector<182x64xi32>
      %279 = arith.cmpi slt, %275, %278 : vector<182x64xi32>
      %280 = arith.andi %277, %279 : vector<182x64xi1>
      %cst_239 = arith.constant 0.000000e+00 : f32
      %281 = vector.broadcast %cst_239 : f32 to vector<182x64xf32>
      %282 = arith.select %280, %124, %281 : vector<182x64xi1>, vector<182x64xf32>
      %c0_240 = arith.constant 0 : index
      %c0_241 = arith.constant 0 : index
      %283 = vector.load %arg10[%c0_240, %c0_241] : memref<208x64xf32, #tpu.memory_space<vmem>>, vector<182x64xf32>
      tpu.vector_store %arg10[%c0_240, %c0_241], %282 {strides = array<i32>} : memref<208x64xf32, #tpu.memory_space<vmem>>, vector<182x64xf32>,
    } else {
    }
    %c0_114 = arith.constant 0 : index
    %c0_115 = arith.constant 0 : index
    %130 = vector.load %arg10[%c0_114, %c0_115] : memref<208x64xf32, #tpu.memory_space<vmem>>, vector<172x64xf32>
    %c4_116 = arith.constant 4 : index
    %c0_117 = arith.constant 0 : index
    %c0_118 = arith.constant 0 : index
    %c0_119 = arith.constant 0 : index
    %131 = vector.load %arg5[%c4_116, %c0_117, %c0_118, %c0_119] : memref<8x3x64x64xf32, #tpu.memory_space<vmem>>, vector<1x1x64x64xf32>
    %132 = vector.shape_cast %131 : vector<1x1x64x64xf32> to vector<64x64xf32>
    %cst_120 = arith.constant dense<0.000000e+00> : vector<172x64xf32>
    %133 = tpu.matmul %130, %132, %cst_120 {dimension_numbers = #tpu.dot_dimension_numbers<[1], [0], [0], [1], [0, 0, 1, 1], [], []>} : vector<172x64xf32>, vector<64x64xf32>, vector<172x64xf32> -> vector<172x64xf32>
    %c5 = arith.constant 5 : index
    %c0_121 = arith.constant 0 : index
    %134 = vector.load %arg10[%c5, %c0_121] : memref<208x64xf32, #tpu.memory_space<vmem>>, vector<172x64xf32>
    %c4_122 = arith.constant 4 : index
    %c1_123 = arith.constant 1 : index
    %c0_124 = arith.constant 0 : index
    %c0_125 = arith.constant 0 : index
    %135 = vector.load %arg5[%c4_122, %c1_123, %c0_124, %c0_125] : memref<8x3x64x64xf32, #tpu.memory_space<vmem>>, vector<1x1x64x64xf32>
    %136 = vector.shape_cast %135 : vector<1x1x64x64xf32> to vector<64x64xf32>
    %cst_126 = arith.constant dense<0.000000e+00> : vector<172x64xf32>
    %137 = tpu.matmul %134, %136, %cst_126 {dimension_numbers = #tpu.dot_dimension_numbers<[1], [0], [0], [1], [0, 0, 1, 1], [], []>} : vector<172x64xf32>, vector<64x64xf32>, vector<172x64xf32> -> vector<172x64xf32>
    %138 = arith.addf %133, %137 : vector<172x64xf32>
    %c10 = arith.constant 10 : index
    %c0_127 = arith.constant 0 : index
    %139 = vector.load %arg10[%c10, %c0_127] : memref<208x64xf32, #tpu.memory_space<vmem>>, vector<172x64xf32>
    %c4_128 = arith.constant 4 : index
    %c2_129 = arith.constant 2 : index
    %c0_130 = arith.constant 0 : index
    %c0_131 = arith.constant 0 : index
    %140 = vector.load %arg5[%c4_128, %c2_129, %c0_130, %c0_131] : memref<8x3x64x64xf32, #tpu.memory_space<vmem>>, vector<1x1x64x64xf32>
    %141 = vector.shape_cast %140 : vector<1x1x64x64xf32> to vector<64x64xf32>
    %cst_132 = arith.constant dense<0.000000e+00> : vector<172x64xf32>
    %142 = tpu.matmul %139, %141, %cst_132 {dimension_numbers = #tpu.dot_dimension_numbers<[1], [0], [0], [1], [0, 0, 1, 1], [], []>} : vector<172x64xf32>, vector<64x64xf32>, vector<172x64xf32> -> vector<172x64xf32>
    %143 = arith.addf %138, %142 : vector<172x64xf32>
    %c4_133 = arith.constant 4 : index
    %c0_134 = arith.constant 0 : index
    %144 = vector.load %arg6[%c4_133, %c0_134] : memref<8x64xf32, #tpu.memory_space<vmem>>, vector<1x64xf32>
    %145 = vector.shape_cast %144 : vector<1x64xf32> to vector<64xf32>
    %146 = vector.shape_cast %145 : vector<64xf32> to vector<1x64xf32>
    %147 = vector.broadcast %146 : vector<1x64xf32> to vector<172x64xf32>
    %148 = arith.addf %143, %147 : vector<172x64xf32>
    %cst_135 = arith.constant 2.000000e-01 : f32
    %149 = vector.broadcast %cst_135 : f32 to vector<172x64xf32>
    %150 = arith.mulf %149, %148 : vector<172x64xf32>
    %151 = arith.maximumf %148, %150 : vector<172x64xf32>
    %152 = arith.extui %5 : i1 to i32
    %c0_i32_136 = arith.constant 0 : i32
    %153 = arith.cmpi ne, %152, %c0_i32_136 : i32
    scf.if %153 {
      %c0_237 = arith.constant 0 : index
      %c0_238 = arith.constant 0 : index
      %272 = vector.load %arg11[%c0_237, %c0_238] : memref<208x64xf32, #tpu.memory_space<vmem>>, vector<172x64xf32>
      tpu.vector_store %arg11[%c0_237, %c0_238], %151 {strides = array<i32>} : memref<208x64xf32, #tpu.memory_space<vmem>>, vector<172x64xf32>,
    } else {
    }
    %true_137 = arith.constant true
    %154 = arith.xori %5, %true_137 : i1
    %155 = arith.extui %154 : i1 to i32
    %c0_i32_138 = arith.constant 0 : i32
    %156 = arith.cmpi ne, %155, %c0_i32_138 : i32
    scf.if %156 {
      %272 = vector.extract_strided_slice %6 {offsets = [0, 0], sizes = [172, 64], strides = [1, 1]} : vector<208x64xi32> to vector<172x64xi32>
      %c22_i32 = arith.constant 22 : i32
      %273 = arith.subi %0, %c22_i32 : i32
      %274 = vector.broadcast %273 : i32 to vector<172x64xi32>
      %275 = arith.addi %272, %274 : vector<172x64xi32>
      %c0_i32_237 = arith.constant 0 : i32
      %276 = vector.broadcast %c0_i32_237 : i32 to vector<172x64xi32>
      %277 = arith.cmpi sge, %275, %276 : vector<172x64xi32>
      %c128_i32_238 = arith.constant 128 : i32
      %278 = vector.broadcast %c128_i32_238 : i32 to vector<172x64xi32>
      %279 = arith.cmpi slt, %275, %278 : vector<172x64xi32>
      %280 = arith.andi %277, %279 : vector<172x64xi1>
      %cst_239 = arith.constant 0.000000e+00 : f32
      %281 = vector.broadcast %cst_239 : f32 to vector<172x64xf32>
      %282 = arith.select %280, %151, %281 : vector<172x64xi1>, vector<172x64xf32>
      %c0_240 = arith.constant 0 : index
      %c0_241 = arith.constant 0 : index
      %283 = vector.load %arg11[%c0_240, %c0_241] : memref<208x64xf32, #tpu.memory_space<vmem>>, vector<172x64xf32>
      tpu.vector_store %arg11[%c0_240, %c0_241], %282 {strides = array<i32>} : memref<208x64xf32, #tpu.memory_space<vmem>>, vector<172x64xf32>,
    } else {
    }
    %c0_139 = arith.constant 0 : index
    %c0_140 = arith.constant 0 : index
    %157 = vector.load %arg11[%c0_139, %c0_140] : memref<208x64xf32, #tpu.memory_space<vmem>>, vector<160x64xf32>
    %c5_141 = arith.constant 5 : index
    %c0_142 = arith.constant 0 : index
    %c0_143 = arith.constant 0 : index
    %c0_144 = arith.constant 0 : index
    %158 = vector.load %arg5[%c5_141, %c0_142, %c0_143, %c0_144] : memref<8x3x64x64xf32, #tpu.memory_space<vmem>>, vector<1x1x64x64xf32>
    %159 = vector.shape_cast %158 : vector<1x1x64x64xf32> to vector<64x64xf32>
    %cst_145 = arith.constant dense<0.000000e+00> : vector<160x64xf32>
    %160 = tpu.matmul %157, %159, %cst_145 {dimension_numbers = #tpu.dot_dimension_numbers<[1], [0], [0], [1], [0, 0, 1, 1], [], []>} : vector<160x64xf32>, vector<64x64xf32>, vector<160x64xf32> -> vector<160x64xf32>
    %c6_146 = arith.constant 6 : index
    %c0_147 = arith.constant 0 : index
    %161 = vector.load %arg11[%c6_146, %c0_147] : memref<208x64xf32, #tpu.memory_space<vmem>>, vector<160x64xf32>
    %c5_148 = arith.constant 5 : index
    %c1_149 = arith.constant 1 : index
    %c0_150 = arith.constant 0 : index
    %c0_151 = arith.constant 0 : index
    %162 = vector.load %arg5[%c5_148, %c1_149, %c0_150, %c0_151] : memref<8x3x64x64xf32, #tpu.memory_space<vmem>>, vector<1x1x64x64xf32>
    %163 = vector.shape_cast %162 : vector<1x1x64x64xf32> to vector<64x64xf32>
    %cst_152 = arith.constant dense<0.000000e+00> : vector<160x64xf32>
    %164 = tpu.matmul %161, %163, %cst_152 {dimension_numbers = #tpu.dot_dimension_numbers<[1], [0], [0], [1], [0, 0, 1, 1], [], []>} : vector<160x64xf32>, vector<64x64xf32>, vector<160x64xf32> -> vector<160x64xf32>
    %165 = arith.addf %160, %164 : vector<160x64xf32>
    %c12 = arith.constant 12 : index
    %c0_153 = arith.constant 0 : index
    %166 = vector.load %arg11[%c12, %c0_153] : memref<208x64xf32, #tpu.memory_space<vmem>>, vector<160x64xf32>
    %c5_154 = arith.constant 5 : index
    %c2_155 = arith.constant 2 : index
    %c0_156 = arith.constant 0 : index
    %c0_157 = arith.constant 0 : index
    %167 = vector.load %arg5[%c5_154, %c2_155, %c0_156, %c0_157] : memref<8x3x64x64xf32, #tpu.memory_space<vmem>>, vector<1x1x64x64xf32>
    %168 = vector.shape_cast %167 : vector<1x1x64x64xf32> to vector<64x64xf32>
    %cst_158 = arith.constant dense<0.000000e+00> : vector<160x64xf32>
    %169 = tpu.matmul %166, %168, %cst_158 {dimension_numbers = #tpu.dot_dimension_numbers<[1], [0], [0], [1], [0, 0, 1, 1], [], []>} : vector<160x64xf32>, vector<64x64xf32>, vector<160x64xf32> -> vector<160x64xf32>
    %170 = arith.addf %165, %169 : vector<160x64xf32>
    %c5_159 = arith.constant 5 : index
    %c0_160 = arith.constant 0 : index
    %171 = vector.load %arg6[%c5_159, %c0_160] : memref<8x64xf32, #tpu.memory_space<vmem>>, vector<1x64xf32>
    %172 = vector.shape_cast %171 : vector<1x64xf32> to vector<64xf32>
    %173 = vector.shape_cast %172 : vector<64xf32> to vector<1x64xf32>
    %174 = vector.broadcast %173 : vector<1x64xf32> to vector<160x64xf32>
    %175 = arith.addf %170, %174 : vector<160x64xf32>
    %cst_161 = arith.constant 2.000000e-01 : f32
    %176 = vector.broadcast %cst_161 : f32 to vector<160x64xf32>
    %177 = arith.mulf %176, %175 : vector<160x64xf32>
    %178 = arith.maximumf %175, %177 : vector<160x64xf32>
    %179 = arith.extui %5 : i1 to i32
    %c0_i32_162 = arith.constant 0 : i32
    %180 = arith.cmpi ne, %179, %c0_i32_162 : i32
    scf.if %180 {
      %c0_237 = arith.constant 0 : index
      %c0_238 = arith.constant 0 : index
      %272 = vector.load %arg10[%c0_237, %c0_238] : memref<208x64xf32, #tpu.memory_space<vmem>>, vector<160x64xf32>
      tpu.vector_store %arg10[%c0_237, %c0_238], %178 {strides = array<i32>} : memref<208x64xf32, #tpu.memory_space<vmem>>, vector<160x64xf32>,
    } else {
    }
    %true_163 = arith.constant true
    %181 = arith.xori %5, %true_163 : i1
    %182 = arith.extui %181 : i1 to i32
    %c0_i32_164 = arith.constant 0 : i32
    %183 = arith.cmpi ne, %182, %c0_i32_164 : i32
    scf.if %183 {
      %272 = vector.extract_strided_slice %6 {offsets = [0, 0], sizes = [160, 64], strides = [1, 1]} : vector<208x64xi32> to vector<160x64xi32>
      %c16_i32 = arith.constant 16 : i32
      %273 = arith.subi %0, %c16_i32 : i32
      %274 = vector.broadcast %273 : i32 to vector<160x64xi32>
      %275 = arith.addi %272, %274 : vector<160x64xi32>
      %c0_i32_237 = arith.constant 0 : i32
      %276 = vector.broadcast %c0_i32_237 : i32 to vector<160x64xi32>
      %277 = arith.cmpi sge, %275, %276 : vector<160x64xi32>
      %c128_i32_238 = arith.constant 128 : i32
      %278 = vector.broadcast %c128_i32_238 : i32 to vector<160x64xi32>
      %279 = arith.cmpi slt, %275, %278 : vector<160x64xi32>
      %280 = arith.andi %277, %279 : vector<160x64xi1>
      %cst_239 = arith.constant 0.000000e+00 : f32
      %281 = vector.broadcast %cst_239 : f32 to vector<160x64xf32>
      %282 = arith.select %280, %178, %281 : vector<160x64xi1>, vector<160x64xf32>
      %c0_240 = arith.constant 0 : index
      %c0_241 = arith.constant 0 : index
      %283 = vector.load %arg10[%c0_240, %c0_241] : memref<208x64xf32, #tpu.memory_space<vmem>>, vector<160x64xf32>
      tpu.vector_store %arg10[%c0_240, %c0_241], %282 {strides = array<i32>} : memref<208x64xf32, #tpu.memory_space<vmem>>, vector<160x64xf32>,
    } else {
    }
    %c0_165 = arith.constant 0 : index
    %c0_166 = arith.constant 0 : index
    %184 = vector.load %arg10[%c0_165, %c0_166] : memref<208x64xf32, #tpu.memory_space<vmem>>, vector<146x64xf32>
    %c6_167 = arith.constant 6 : index
    %c0_168 = arith.constant 0 : index
    %c0_169 = arith.constant 0 : index
    %c0_170 = arith.constant 0 : index
    %185 = vector.load %arg5[%c6_167, %c0_168, %c0_169, %c0_170] : memref<8x3x64x64xf32, #tpu.memory_space<vmem>>, vector<1x1x64x64xf32>
    %186 = vector.shape_cast %185 : vector<1x1x64x64xf32> to vector<64x64xf32>
    %cst_171 = arith.constant dense<0.000000e+00> : vector<146x64xf32>
    %187 = tpu.matmul %184, %186, %cst_171 {dimension_numbers = #tpu.dot_dimension_numbers<[1], [0], [0], [1], [0, 0, 1, 1], [], []>} : vector<146x64xf32>, vector<64x64xf32>, vector<146x64xf32> -> vector<146x64xf32>
    %c7 = arith.constant 7 : index
    %c0_172 = arith.constant 0 : index
    %188 = vector.load %arg10[%c7, %c0_172] : memref<208x64xf32, #tpu.memory_space<vmem>>, vector<146x64xf32>
    %c6_173 = arith.constant 6 : index
    %c1_174 = arith.constant 1 : index
    %c0_175 = arith.constant 0 : index
    %c0_176 = arith.constant 0 : index
    %189 = vector.load %arg5[%c6_173, %c1_174, %c0_175, %c0_176] : memref<8x3x64x64xf32, #tpu.memory_space<vmem>>, vector<1x1x64x64xf32>
    %190 = vector.shape_cast %189 : vector<1x1x64x64xf32> to vector<64x64xf32>
    %cst_177 = arith.constant dense<0.000000e+00> : vector<146x64xf32>
    %191 = tpu.matmul %188, %190, %cst_177 {dimension_numbers = #tpu.dot_dimension_numbers<[1], [0], [0], [1], [0, 0, 1, 1], [], []>} : vector<146x64xf32>, vector<64x64xf32>, vector<146x64xf32> -> vector<146x64xf32>
    %192 = arith.addf %187, %191 : vector<146x64xf32>
    %c14 = arith.constant 14 : index
    %c0_178 = arith.constant 0 : index
    %193 = vector.load %arg10[%c14, %c0_178] : memref<208x64xf32, #tpu.memory_space<vmem>>, vector<146x64xf32>
    %c6_179 = arith.constant 6 : index
    %c2_180 = arith.constant 2 : index
    %c0_181 = arith.constant 0 : index
    %c0_182 = arith.constant 0 : index
    %194 = vector.load %arg5[%c6_179, %c2_180, %c0_181, %c0_182] : memref<8x3x64x64xf32, #tpu.memory_space<vmem>>, vector<1x1x64x64xf32>
    %195 = vector.shape_cast %194 : vector<1x1x64x64xf32> to vector<64x64xf32>
    %cst_183 = arith.constant dense<0.000000e+00> : vector<146x64xf32>
    %196 = tpu.matmul %193, %195, %cst_183 {dimension_numbers = #tpu.dot_dimension_numbers<[1], [0], [0], [1], [0, 0, 1, 1], [], []>} : vector<146x64xf32>, vector<64x64xf32>, vector<146x64xf32> -> vector<146x64xf32>
    %197 = arith.addf %192, %196 : vector<146x64xf32>
    %c6_184 = arith.constant 6 : index
    %c0_185 = arith.constant 0 : index
    %198 = vector.load %arg6[%c6_184, %c0_185] : memref<8x64xf32, #tpu.memory_space<vmem>>, vector<1x64xf32>
    %199 = vector.shape_cast %198 : vector<1x64xf32> to vector<64xf32>
    %200 = vector.shape_cast %199 : vector<64xf32> to vector<1x64xf32>
    %201 = vector.broadcast %200 : vector<1x64xf32> to vector<146x64xf32>
    %202 = arith.addf %197, %201 : vector<146x64xf32>
    %cst_186 = arith.constant 2.000000e-01 : f32
    %203 = vector.broadcast %cst_186 : f32 to vector<146x64xf32>
    %204 = arith.mulf %203, %202 : vector<146x64xf32>
    %205 = arith.maximumf %202, %204 : vector<146x64xf32>
    %206 = arith.extui %5 : i1 to i32
    %c0_i32_187 = arith.constant 0 : i32
    %207 = arith.cmpi ne, %206, %c0_i32_187 : i32
    scf.if %207 {
      %c0_237 = arith.constant 0 : index
      %c0_238 = arith.constant 0 : index
      %272 = vector.load %arg11[%c0_237, %c0_238] : memref<208x64xf32, #tpu.memory_space<vmem>>, vector<146x64xf32>
      tpu.vector_store %arg11[%c0_237, %c0_238], %205 {strides = array<i32>} : memref<208x64xf32, #tpu.memory_space<vmem>>, vector<146x64xf32>,
    } else {
    }
    %true_188 = arith.constant true
    %208 = arith.xori %5, %true_188 : i1
    %209 = arith.extui %208 : i1 to i32
    %c0_i32_189 = arith.constant 0 : i32
    %210 = arith.cmpi ne, %209, %c0_i32_189 : i32
    scf.if %210 {
      %272 = vector.extract_strided_slice %6 {offsets = [0, 0], sizes = [146, 64], strides = [1, 1]} : vector<208x64xi32> to vector<146x64xi32>
      %c9_i32 = arith.constant 9 : i32
      %273 = arith.subi %0, %c9_i32 : i32
      %274 = vector.broadcast %273 : i32 to vector<146x64xi32>
      %275 = arith.addi %272, %274 : vector<146x64xi32>
      %c0_i32_237 = arith.constant 0 : i32
      %276 = vector.broadcast %c0_i32_237 : i32 to vector<146x64xi32>
      %277 = arith.cmpi sge, %275, %276 : vector<146x64xi32>
      %c128_i32_238 = arith.constant 128 : i32
      %278 = vector.broadcast %c128_i32_238 : i32 to vector<146x64xi32>
      %279 = arith.cmpi slt, %275, %278 : vector<146x64xi32>
      %280 = arith.andi %277, %279 : vector<146x64xi1>
      %cst_239 = arith.constant 0.000000e+00 : f32
      %281 = vector.broadcast %cst_239 : f32 to vector<146x64xf32>
      %282 = arith.select %280, %205, %281 : vector<146x64xi1>, vector<146x64xf32>
      %c0_240 = arith.constant 0 : index
      %c0_241 = arith.constant 0 : index
      %283 = vector.load %arg11[%c0_240, %c0_241] : memref<208x64xf32, #tpu.memory_space<vmem>>, vector<146x64xf32>
      tpu.vector_store %arg11[%c0_240, %c0_241], %282 {strides = array<i32>} : memref<208x64xf32, #tpu.memory_space<vmem>>, vector<146x64xf32>,
    } else {
    }
    %c0_190 = arith.constant 0 : index
    %c0_191 = arith.constant 0 : index
    %211 = vector.load %arg11[%c0_190, %c0_191] : memref<208x64xf32, #tpu.memory_space<vmem>>, vector<130x64xf32>
    %c7_192 = arith.constant 7 : index
    %c0_193 = arith.constant 0 : index
    %c0_194 = arith.constant 0 : index
    %c0_195 = arith.constant 0 : index
    %212 = vector.load %arg5[%c7_192, %c0_193, %c0_194, %c0_195] : memref<8x3x64x64xf32, #tpu.memory_space<vmem>>, vector<1x1x64x64xf32>
    %213 = vector.shape_cast %212 : vector<1x1x64x64xf32> to vector<64x64xf32>
    %cst_196 = arith.constant dense<0.000000e+00> : vector<130x64xf32>
    %214 = tpu.matmul %211, %213, %cst_196 {dimension_numbers = #tpu.dot_dimension_numbers<[1], [0], [0], [1], [0, 0, 1, 1], [], []>} : vector<130x64xf32>, vector<64x64xf32>, vector<130x64xf32> -> vector<130x64xf32>
    %c8_197 = arith.constant 8 : index
    %c0_198 = arith.constant 0 : index
    %215 = vector.load %arg11[%c8_197, %c0_198] : memref<208x64xf32, #tpu.memory_space<vmem>>, vector<130x64xf32>
    %c7_199 = arith.constant 7 : index
    %c1_200 = arith.constant 1 : index
    %c0_201 = arith.constant 0 : index
    %c0_202 = arith.constant 0 : index
    %216 = vector.load %arg5[%c7_199, %c1_200, %c0_201, %c0_202] : memref<8x3x64x64xf32, #tpu.memory_space<vmem>>, vector<1x1x64x64xf32>
    %217 = vector.shape_cast %216 : vector<1x1x64x64xf32> to vector<64x64xf32>
    %cst_203 = arith.constant dense<0.000000e+00> : vector<130x64xf32>
    %218 = tpu.matmul %215, %217, %cst_203 {dimension_numbers = #tpu.dot_dimension_numbers<[1], [0], [0], [1], [0, 0, 1, 1], [], []>} : vector<130x64xf32>, vector<64x64xf32>, vector<130x64xf32> -> vector<130x64xf32>
    %219 = arith.addf %214, %218 : vector<130x64xf32>
    %c16 = arith.constant 16 : index
    %c0_204 = arith.constant 0 : index
    %220 = vector.load %arg11[%c16, %c0_204] : memref<208x64xf32, #tpu.memory_space<vmem>>, vector<130x64xf32>
    %c7_205 = arith.constant 7 : index
    %c2_206 = arith.constant 2 : index
    %c0_207 = arith.constant 0 : index
    %c0_208 = arith.constant 0 : index
    %221 = vector.load %arg5[%c7_205, %c2_206, %c0_207, %c0_208] : memref<8x3x64x64xf32, #tpu.memory_space<vmem>>, vector<1x1x64x64xf32>
    %222 = vector.shape_cast %221 : vector<1x1x64x64xf32> to vector<64x64xf32>
    %cst_209 = arith.constant dense<0.000000e+00> : vector<130x64xf32>
    %223 = tpu.matmul %220, %222, %cst_209 {dimension_numbers = #tpu.dot_dimension_numbers<[1], [0], [0], [1], [0, 0, 1, 1], [], []>} : vector<130x64xf32>, vector<64x64xf32>, vector<130x64xf32> -> vector<130x64xf32>
    %224 = arith.addf %219, %223 : vector<130x64xf32>
    %c7_210 = arith.constant 7 : index
    %c0_211 = arith.constant 0 : index
    %225 = vector.load %arg6[%c7_210, %c0_211] : memref<8x64xf32, #tpu.memory_space<vmem>>, vector<1x64xf32>
    %226 = vector.shape_cast %225 : vector<1x64xf32> to vector<64xf32>
    %227 = vector.shape_cast %226 : vector<64xf32> to vector<1x64xf32>
    %228 = vector.broadcast %227 : vector<1x64xf32> to vector<130x64xf32>
    %229 = arith.addf %224, %228 : vector<130x64xf32>
    %cst_212 = arith.constant 2.000000e-01 : f32
    %230 = vector.broadcast %cst_212 : f32 to vector<130x64xf32>
    %231 = arith.mulf %230, %229 : vector<130x64xf32>
    %232 = arith.maximumf %229, %231 : vector<130x64xf32>
    %233 = arith.extui %5 : i1 to i32
    %c0_i32_213 = arith.constant 0 : i32
    %234 = arith.cmpi ne, %233, %c0_i32_213 : i32
    scf.if %234 {
      %c0_237 = arith.constant 0 : index
      %c0_238 = arith.constant 0 : index
      %272 = vector.load %arg10[%c0_237, %c0_238] : memref<208x64xf32, #tpu.memory_space<vmem>>, vector<130x64xf32>
      tpu.vector_store %arg10[%c0_237, %c0_238], %232 {strides = array<i32>} : memref<208x64xf32, #tpu.memory_space<vmem>>, vector<130x64xf32>,
    } else {
    }
    %true_214 = arith.constant true
    %235 = arith.xori %5, %true_214 : i1
    %236 = arith.extui %235 : i1 to i32
    %c0_i32_215 = arith.constant 0 : i32
    %237 = arith.cmpi ne, %236, %c0_i32_215 : i32
    scf.if %237 {
      %272 = vector.extract_strided_slice %6 {offsets = [0, 0], sizes = [130, 64], strides = [1, 1]} : vector<208x64xi32> to vector<130x64xi32>
      %c1_i32 = arith.constant 1 : i32
      %273 = arith.subi %0, %c1_i32 : i32
      %274 = vector.broadcast %273 : i32 to vector<130x64xi32>
      %275 = arith.addi %272, %274 : vector<130x64xi32>
      %c0_i32_237 = arith.constant 0 : i32
      %276 = vector.broadcast %c0_i32_237 : i32 to vector<130x64xi32>
      %277 = arith.cmpi sge, %275, %276 : vector<130x64xi32>
      %c128_i32_238 = arith.constant 128 : i32
      %278 = vector.broadcast %c128_i32_238 : i32 to vector<130x64xi32>
      %279 = arith.cmpi slt, %275, %278 : vector<130x64xi32>
      %280 = arith.andi %277, %279 : vector<130x64xi1>
      %cst_239 = arith.constant 0.000000e+00 : f32
      %281 = vector.broadcast %cst_239 : f32 to vector<130x64xf32>
      %282 = arith.select %280, %232, %281 : vector<130x64xi1>, vector<130x64xf32>
      %c0_240 = arith.constant 0 : index
      %c0_241 = arith.constant 0 : index
      %283 = vector.load %arg10[%c0_240, %c0_241] : memref<208x64xf32, #tpu.memory_space<vmem>>, vector<130x64xf32>
      tpu.vector_store %arg10[%c0_240, %c0_241], %282 {strides = array<i32>} : memref<208x64xf32, #tpu.memory_space<vmem>>, vector<130x64xf32>,
    } else {
    }
    %cst_216 = arith.constant 0.000000e+00 : f32
    %238 = vector.broadcast %cst_216 : f32 to vector<128x1xf32>
    %c0_217 = arith.constant 0 : index
    %c0_218 = arith.constant 0 : index
    %239 = vector.load %arg10[%c0_217, %c0_218] : memref<208x64xf32, #tpu.memory_space<vmem>>, vector<128x64xf32>
    %c0_219 = arith.constant 0 : index
    %c0_220 = arith.constant 0 : index
    %240 = vector.load %arg7[%c0_219, %c0_220] : memref<3x64xf32, #tpu.memory_space<vmem>>, vector<1x64xf32>
    %241 = vector.shape_cast %240 : vector<1x64xf32> to vector<64xf32>
    %242 = vector.shape_cast %241 : vector<64xf32> to vector<1x64xf32>
    %243 = vector.broadcast %242 : vector<1x64xf32> to vector<128x64xf32>
    %244 = arith.mulf %239, %243 : vector<128x64xf32>
    %cst_221 = arith.constant dense<0.000000e+00> : vector<128xf32>
    %245 = vector.multi_reduction <add>, %244, %cst_221 [1] : vector<128x64xf32> to vector<128xf32>
    %246 = vector.shape_cast %245 : vector<128xf32> to vector<128x1xf32>
    %247 = arith.addf %238, %246 : vector<128x1xf32>
    %c1_222 = arith.constant 1 : index
    %c0_223 = arith.constant 0 : index
    %248 = vector.load %arg10[%c1_222, %c0_223] : memref<208x64xf32, #tpu.memory_space<vmem>>, vector<128x64xf32>
    %c1_224 = arith.constant 1 : index
    %c0_225 = arith.constant 0 : index
    %249 = vector.load %arg7[%c1_224, %c0_225] : memref<3x64xf32, #tpu.memory_space<vmem>>, vector<1x64xf32>
    %250 = vector.shape_cast %249 : vector<1x64xf32> to vector<64xf32>
    %251 = vector.shape_cast %250 : vector<64xf32> to vector<1x64xf32>
    %252 = vector.broadcast %251 : vector<1x64xf32> to vector<128x64xf32>
    %253 = arith.mulf %248, %252 : vector<128x64xf32>
    %cst_226 = arith.constant dense<0.000000e+00> : vector<128xf32>
    %254 = vector.multi_reduction <add>, %253, %cst_226 [1] : vector<128x64xf32> to vector<128xf32>
    %255 = vector.shape_cast %254 : vector<128xf32> to vector<128x1xf32>
    %256 = arith.addf %247, %255 : vector<128x1xf32>
    %c2_227 = arith.constant 2 : index
    %c0_228 = arith.constant 0 : index
    %257 = vector.load %arg10[%c2_227, %c0_228] : memref<208x64xf32, #tpu.memory_space<vmem>>, vector<128x64xf32>
    %c2_229 = arith.constant 2 : index
    %c0_230 = arith.constant 0 : index
    %258 = vector.load %arg7[%c2_229, %c0_230] : memref<3x64xf32, #tpu.memory_space<vmem>>, vector<1x64xf32>
    %259 = vector.shape_cast %258 : vector<1x64xf32> to vector<64xf32>
    %260 = vector.shape_cast %259 : vector<64xf32> to vector<1x64xf32>
    %261 = vector.broadcast %260 : vector<1x64xf32> to vector<128x64xf32>
    %262 = arith.mulf %257, %261 : vector<128x64xf32>
    %cst_231 = arith.constant dense<0.000000e+00> : vector<128xf32>
    %263 = vector.multi_reduction <add>, %262, %cst_231 [1] : vector<128x64xf32> to vector<128xf32>
    %264 = vector.shape_cast %263 : vector<128xf32> to vector<128x1xf32>
    %265 = arith.addf %256, %264 : vector<128x1xf32>
    %c0_232 = arith.constant 0 : index
    %c0_233 = arith.constant 0 : index
    %266 = vector.load %arg8[%c0_232, %c0_233] : memref<1x1xf32, #tpu.memory_space<vmem>>, vector<1x1xf32>
    %267 = vector.broadcast %266 : vector<1x1xf32> to vector<128x1xf32>
    %268 = arith.addf %265, %267 : vector<128x1xf32>
    %c0_234 = arith.constant 0 : index
    %c0_235 = arith.constant 0 : index
    %c0_236 = arith.constant 0 : index
    %269 = vector.load %arg9[%c0_234, %c0_235, %c0_236] : memref<1x128x1xf32, #tpu.memory_space<vmem>>, vector<1x128x1xf32>
    %270 = vector.shape_cast %269 : vector<1x128x1xf32> to vector<128x1xf32>
    %271 = vector.shape_cast %268 : vector<128x1xf32> to vector<1x128x1xf32>
    tpu.vector_store %arg9[%c0_234, %c0_235, %c0_236], %271 {strides = array<i32>} : memref<1x128x1xf32, #tpu.memory_space<vmem>>, vector<1x128x1xf32>,
    return
  }
  func.func @transform_0(%arg0: i32, %arg1: i32) -> (i32, i32, i32, i32) {
    %c0_i32 = arith.constant 0 : i32
    %c0_i32_0 = arith.constant 0 : i32
    %c0_i32_1 = arith.constant 0 : i32
    return %arg0, %arg1, %c0_i32, %c0_i32_0 : i32, i32, i32, i32
  }
  func.func @transform_1(%arg0: i32, %arg1: i32) -> (i32, i32) {
    %c0_i32 = arith.constant 0 : i32
    %c0_i32_0 = arith.constant 0 : i32
    %c0_i32_1 = arith.constant 0 : i32
    return %c0_i32, %c0_i32_0 : i32, i32
  }
  func.func @transform_2(%arg0: i32, %arg1: i32) -> (i32, i32) {
    %c0_i32 = arith.constant 0 : i32
    %c0_i32_0 = arith.constant 0 : i32
    %c0_i32_1 = arith.constant 0 : i32
    return %c0_i32, %c0_i32_0 : i32, i32
  }
  func.func @transform_3(%arg0: i32, %arg1: i32) -> (i32, i32, i32, i32) {
    %c0_i32 = arith.constant 0 : i32
    %c0_i32_0 = arith.constant 0 : i32
    %c0_i32_1 = arith.constant 0 : i32
    %c0_i32_2 = arith.constant 0 : i32
    %c0_i32_3 = arith.constant 0 : i32
    return %c0_i32, %c0_i32_0, %c0_i32_1, %c0_i32_2 : i32, i32, i32, i32
  }
  func.func @transform_4(%arg0: i32, %arg1: i32) -> (i32, i32) {
    %c0_i32 = arith.constant 0 : i32
    %c0_i32_0 = arith.constant 0 : i32
    %c0_i32_1 = arith.constant 0 : i32
    return %c0_i32, %c0_i32_0 : i32, i32
  }
  func.func @transform_5(%arg0: i32, %arg1: i32) -> (i32, i32) {
    %c0_i32 = arith.constant 0 : i32
    %c0_i32_0 = arith.constant 0 : i32
    %c0_i32_1 = arith.constant 0 : i32
    return %c0_i32, %c0_i32_0 : i32, i32
  }
  func.func @transform_6(%arg0: i32, %arg1: i32) -> (i32, i32) {
    %c0_i32 = arith.constant 0 : i32
    %c0_i32_0 = arith.constant 0 : i32
    %c0_i32_1 = arith.constant 0 : i32
    return %c0_i32, %c0_i32_0 : i32, i32
  }
  func.func @transform_7(%arg0: i32, %arg1: i32) -> (i32, i32, i32) {
    %c0_i32 = arith.constant 0 : i32
    %c0_i32_0 = arith.constant 0 : i32
    return %arg0, %arg1, %c0_i32 : i32, i32, i32
  }
}

</mosaic_0001>

<bundles_post_ra>
// kernel: tpu_custom_call.1
= control target key start
LH: loop header
LB: loop body
LE: loop exit
PB: predicated region body
PF: predicated region fallthrough
CT: control target
= control target key end

     0   :  { %s16058_s0 = inlined_call_operand.vmem [shape: f32[2,1,202,8], index: 0, kind: input, shape index: {}]   ;;  %s16059_s1 = inlined_call_operand.vmem [shape: f32[8,64], index: 1, kind: input, shape index: {}]   ;;  %s16060_s2 = inlined_call_operand.vmem [shape: f32[1,64], index: 2, kind: input, shape index: {}]   ;;  %s16061_s3 = inlined_call_operand.hbm [shape: f32[8,3,64,64], index: 3, kind: input, shape index: {}]   ;;  %s16062_s4 = inlined_call_operand.vmem [shape: f32[8,64], index: 4, kind: input, shape index: {}]   ;;  %s16063_s5 = inlined_call_operand.vmem [shape: f32[3,64], index: 5, kind: input, shape index: {}]   ;;  %s16064_s6 = inlined_call_operand.<no memory space> [shape: f32[1,1], index: 6, kind: input, shape index: {}]   ;;  %s16065_s7 = inlined_call_operand.vmem [shape: f32[2,128,1], index: 7, kind: output, shape index: {}]  }
   0x1   :  { %v12_v0 = vstv %s16064_s6 }
   0x2   :  { %13 = vst [vmem:[#allocation4] sm:$0x1] %v12_v0 }
   0x3   :  { %14 = vsyncpa [#allocation6], 0  ;;  %s13428_s26 = smov 0   ;;  %s13430_s27 = smov 0  }
   0x4   :  { %s13432_s28 = smov 0  }
   0x5 LB: > { %s9838_s6 = sadd.s32 4294967295, %s13377_s28   ;;  %s32_s29 = sadd.s32 1, %s13373_s27  ;;  %s13377_s28 = sphi %s13432_s28, %s20_s28   ;;  %s13373_s27 = sphi %s13430_s27, %s16075_s27   ;;  %s13369_s26 = sphi %s13428_s26, %s16074_s26  }
   0x6   : > { %p34_p0 = scmp.ge.s32.totalorder %s32_s29, 2  ;;  %p9840_p1 = scmp.ge.s32.totalorder %s13377_s28, 1 }
   0x7   : > { %p219_p2 = scmp.lt.s32.totalorder %s13377_s28, 3  ;;  %p13453_p4 = scmp.eq.s32.totalorder %s9838_s6, 0 }
   0x8   : > { %s16077_s29 = smov (%p34_p0, %s32_s29), 0  ;;  %s13379_s9 = smov [#allocation5]  }
   0x9   : > { %p13449_p3 = pnand %p9840_p1, %p219_p2  ;;  %s237_s10 = sshll.u32 %s13379_s9, 4  ;;  %s238_s10 = int_to_ptr.vmem [resolvable:$true] %s237_s10 }
   0xa   : > { %s16070_s8 = scalar_select %p13453_p4, 1, 0 }
   0xb   : > { %s16069_s30 = scalar_select %p13449_p3, 1, 0 }
   0xc   : > { %p13287_p5 = pneg %p13449_p3  ;;  %s13323_s14 = scalar_lea.hbm %s16061_s3, 24576 }
   0xd   : > { %p13324_p7 = scmp.ne.s32.totalorder %s16061_s3, %s13323_s14  ;;  %p13330_p11 = scmp.lt.u32.totalorder %s13323_s14, %s16061_s3 }
   0xe   : > { %p13461_p6 = pnand %p13453_p4, %p13287_p5 }
  0x10   : > { %p13325_p8 = pneg %p13461_p6 }
  0x12   : > { %p13326_p9 = pnand %p13325_p8, %p13324_p7 }
  0x14   : > { %p13327_p10 = pneg %p13326_p9 }
  0x16   : > { %p13332_p12 = pnand %p13330_p11, %p13327_p10 }
  0x18   : > { %13335 = shalt.err (!%p13332_p12)
}
  0x19   : > { %s13336_s19 = scalar_lea.vmem %s238_s10, 24576  ;;  %p13344_p2 = scmp.lt.s32.totalorder %s238_s10, %s238_s10 }
  0x1a   : > { %p13337_p13 = scmp.ne.s32.totalorder %s238_s10, %s13336_s19  ;;  %p13345_p5 = scmp.lt.s32.totalorder %s13336_s19, %s13336_s19 }
  0x1c   : > { %p13339_p0 = pnand %p13337_p13, %p13325_p8  ;;  %p13346_p4 = por %p13345_p5, %p13344_p2 }
  0x1e   : > { %p13340_p1 = pneg %p13339_p0 }
  0x20   : > { %p13347_p3 = pnand %p13346_p4, %p13340_p1 }
  0x22   : > { %13350 = shalt.err (!%p13347_p3)
}
  0x23   : > { %s13380_s20 = smov 128   ;;  %s13381_s21 = smov 8  }
  0x24   : > { %13290 = dma.hbm_to_vmem [thread:$0]  (!%p13461_p6), %s16061_s3, 24576, %s238_s10, [#allocation6], %s13380_s20, %s13380_s20, %s13381_s21  }
  0x25   : > { %p16072_p7 = scmp.ne.s32.totalorder %s16069_s30, 0 }
  0x26   : > { %p16073_p9 = scmp.ne.s32.totalorder (!%p16072_p7), %s16070_s8, 0 }
  0x27   : > { %274 = sbr.rel (%p16072_p7) target bundleno = 3156 (0xc54), region = 48 }
  0x2e   : > { %13364 = dma.done.wait (%p16073_p9), [#allocation6], 24576  }
  0x2f   : > { %13366 = vsyncadd (%p16073_p9), [#allocation6], 4294942720  ;;  %p314_p3 = scmp.lt.s32.totalorder %s13369_s26, 1  ;;  %v13382_v1 = vmov 0.0|0.0   ;;  %vm400_vm0 = vcmask 64512   ;;  %v392_v2 = vld [vmem:[%s16059_s1] sm:$0xff] }
  0x30   : > { %12862 = vmatprep.subr.bf16.mxu1 %v13382_v1  ;;  %11159 = vmatprep.subr.mxu0 %v392_v2  ;;  %v944_v9 = vld [vmem:[#allocation5] sm:$0xff]  ;;  %v945_v10 = vld [vmem:[#allocation5 + $0x8] sm:$0xff]  ;;  %v946_v16 = vld [vmem:[#allocation5 + $0x10] sm:$0xff]  ;;  %vm891_vm1 = vcmask 523264   ;;  %v13383_v42 = vmov 0.0   ;;  %vm13384_vm2 = vmmov 0  }
  0x31   : > { %s16079_s26 = smov (!%p314_p3, %s13369_s26), 1  ;;  %11160 = vmatpush3.msra.mxu0 %v392_v2  ;;  %v978_v11 = vld [vmem:[#allocation5 + $0x40] sm:$0xff]  ;;  %v979_v12 = vld [vmem:[#allocation5 + $0x48] sm:$0xff]  ;;  %v12875_v14 = vpack.c.bf16 %v945_v10, %v944_v9  ;;  %v947_v17 = vld [vmem:[#allocation5 + $0x18] sm:$0xff]  ;;  %892 = vst.msk [vmem:[#allocation2] sm:$0xff] %vm891_vm1, %v13383_v42  ;;  %11216 = vmatprep.mubr.msk.f32.mxu1 %vm13384_vm2, %v13383_v42  ;;  %vm917_vm3 = vcmask 517120  }
  0x32   : > { %s13282_s24 = smul.u32 208, %s16079_s26  ;;  %12874 = vmatprep.subr.bf16.mxu0 %v13382_v1  ;;  %v12863_v15 = vpack.c.bf16 %v979_v12, %v978_v11  ;;  %v12878_v19 = vpack.c.bf16 %v947_v17, %v946_v16  ;;  %v980_v34 = vld [vmem:[#allocation5 + $0x50] sm:$0xff]  ;;  %v981_v35 = vld [vmem:[#allocation5 + $0x58] sm:$0xff]  ;;  %v948_v38 = vld [vmem:[#allocation5 + $0x20] sm:$0xff]  ;;  %893 = vst.msk [vmem:[#allocation2 + $0x8] sm:$0xff] %vm891_vm1, %v13383_v42  ;;  %vm3287_vm6 = vcmask 519168  }
  0x33   : > { %v12866_v37 = vpack.c.bf16 %v981_v35, %v980_v34  ;;  %v949_v39 = vld [vmem:[#allocation5 + $0x28] sm:$0xff]  ;;  %894 = vst.msk [vmem:[#allocation2 + $0x10] sm:$0xff] %vm891_vm1, %v13383_v42  ;;  %895 = vst.msk [vmem:[#allocation2 + $0x18] sm:$0xff] %vm891_vm1, %v13383_v42  ;;  %v982_v43 = vld [vmem:[#allocation5 + $0x60] sm:$0xff]  ;;  %vm4435_vm11 = vcmask 521216   ;;  %s10414_s14 = sshll.u32 %s16079_s26, 7 }
  0x34   : > { %s13496_s30 = scalar_lea.vmem %s16058_s0, %s13282_s24  ;;  %12864 = vmatpush3.bf16.msra.mxu1 %v12863_v15  ;;  %v12881_v41 = vpack.c.bf16 %v949_v39, %v948_v38  ;;  %913 = vst.msk [vmem:[#allocation2 + $0xa8] sm:$0xff] %vm891_vm1, %v13383_v42  ;;  %914 = vst.msk [vmem:[#allocation2 + $0xb0] sm:$0xff] %vm891_vm1, %v13383_v42  ;;  %v983_v44 = vld [vmem:[#allocation5 + $0x68] sm:$0xff]  ;;  %v950_v47 = vld [vmem:[#allocation5 + $0x30] sm:$0xff]  ;;  %s15999_s17 = scalar_lea.vmem %s16065_s7, %s10414_s14 }
  0x35   : > { %v366_v3 = vld [vmem:[%s13496_s30] sm:$0xff]  ;;  %v367_v4 = vld [vmem:[%s13496_s30 + $0x8] sm:$0xff]  ;;  %v368_v5 = vld [vmem:[%s13496_s30 + $0x10] sm:$0xff]  ;;  %12865 = vmatprep.subr.bf16.mxu1 %v13382_v1  ;;  %915 = vst.msk [vmem:[#allocation2 + $0xb8] sm:$0xff] %vm891_vm1, %v13383_v42  ;;  %v12869_v46 = vpack.c.bf16 %v983_v44, %v982_v43 }
  0x36   : > { %11161 = vmatprep.mubr.msk.f32.mxu0 %vm400_vm0, %v366_v3  ;;  %v369_v6 = vld [vmem:[%s13496_s30 + $0x18] sm:$0xff]  ;;  %v370_v7 = vld [vmem:[%s13496_s30 + $0x20] sm:$0xff]  ;;  %v371_v8 = vld [vmem:[%s13496_s30 + $0x28] sm:$0xff]  ;;  %916 = vst.msk [vmem:[#allocation2 + $0xc0] sm:$0xff] %vm891_vm1, %v13383_v42 }
  0x37   : > { %11162 = vmatmul.mubr.msk.f32.vlgmr.msra.gmra.mrb[0].mxu0 %vm400_vm0, %v367_v4  ;;  %v372_v13 = vld [vmem:[%s13496_s30 + $0x30] sm:$0xff]  ;;  %v373_v18 = vld [vmem:[%s13496_s30 + $0x38] sm:$0xff]  ;;  %v374_v20 = vld [vmem:[%s13496_s30 + $0x40] sm:$0xff]  ;;  %2078 = vst.msk [vmem:[#allocation3] sm:$0xff] %vm891_vm1, %v13383_v42 }
  0x38   : > { %11164 = vmatprep.mubr.msk.f32.mxu0 %vm400_vm0, %v368_v5  ;;  %12876 = vmatpush3.bf16.msra.mxu0 %v12875_v14  ;;  %v375_v21 = vld [vmem:[%s13496_s30 + $0x48] sm:$0xff]  ;;  %v376_v22 = vld [vmem:[%s13496_s30 + $0x50] sm:$0xff]  ;;  %v377_v23 = vld [vmem:[%s13496_s30 + $0x58] sm:$0xff]  ;;  %2079 = vst.msk [vmem:[#allocation3 + $0x8] sm:$0xff] %vm891_vm1, %v13383_v42 }
  0x39   : > { %12877 = vmatprep.subr.bf16.mxu0 %v13382_v1  ;;  %v378_v24 = vld [vmem:[%s13496_s30 + $0x60] sm:$0xff]  ;;  %v379_v25 = vld [vmem:[%s13496_s30 + $0x68] sm:$0xff]  ;;  %v380_v26 = vld [vmem:[%s13496_s30 + $0x70] sm:$0xff]  ;;  %12867 = vmatpush3.bf16.msra.mxu1 %v12866_v37  ;;  %2080 = vst.msk [vmem:[#allocation3 + $0x10] sm:$0xff] %vm891_vm1, %v13383_v42 }
  0x3a   : > { %v381_v27 = vld [vmem:[%s13496_s30 + $0x78] sm:$0xff]  ;;  %v382_v28 = vld [vmem:[%s13496_s30 + $0x80] sm:$0xff]  ;;  %v383_v29 = vld [vmem:[%s13496_s30 + $0x88] sm:$0xff]  ;;  %2081 = vst.msk [vmem:[#allocation3 + $0x18] sm:$0xff] %vm891_vm1, %v13383_v42  ;;  %12868 = vmatprep.subr.bf16.mxu1 %v13382_v1 }
  0x3b   : > { %11165 = vmatmul.mubr.msk.f32.gmra.mrb[2].mxu0 %vm400_vm0, %v369_v6  ;;  %v384_v30 = vld [vmem:[%s13496_s30 + $0x90] sm:$0xff]  ;;  %v385_v31 = vld [vmem:[%s13496_s30 + $0x98] sm:$0xff]  ;;  %v386_v32 = vld [vmem:[%s13496_s30 + $0xa0] sm:$0xff]  ;;  %2099 = vst.msk [vmem:[#allocation3 + $0xa8] sm:$0xff] %vm891_vm1, %v13383_v42 }
  0x3c   : > { %11167 = vmatprep.mubr.msk.f32.mxu0 %vm400_vm0, %v370_v7  ;;  %12879 = vmatpush3.bf16.msra.mxu0 %v12878_v19  ;;  %v387_v33 = vld [vmem:[%s13496_s30 + $0xa8] sm:$0xff]  ;;  %v388_v36 = vld [vmem:[%s13496_s30 + $0xb0] sm:$0xff]  ;;  %v389_v40 = vld [vmem:[%s13496_s30 + $0xb8] sm:$0xff]  ;;  %2100 = vst.msk [vmem:[#allocation3 + $0xb0] sm:$0xff] %vm891_vm1, %v13383_v42 }
  0x3d   : > { %12880 = vmatprep.subr.bf16.mxu0 %v13382_v1  ;;  %2101 = vst.msk [vmem:[#allocation3 + $0xb8] sm:$0xff] %vm891_vm1, %v13383_v42  ;;  %2102 = vst.msk [vmem:[#allocation3 + $0xc0] sm:$0xff] %vm891_vm1, %v13383_v42  ;;  %v390_v45 = vld [vmem:[%s13496_s30 + $0xc0] sm:$0xff]  ;;  %v391_v49 = vld [vmem:[%s13496_s30 + $0xc8] sm:$0x3]  ;;  %12870 = vmatpush3.bf16.msra.mxu1 %v12869_v46 }
  0x3e   : > { %v951_v48 = vld [vmem:[#allocation5 + $0x38] sm:$0xff]  ;;  %12871 = vmatprep.subr.bf16.mxu1 %v13382_v1  ;;  %v984_v51 = vld [vmem:[#allocation5 + $0x70] sm:$0xff]  ;;  %v952_v55 = vld [vmem:[#allocation2 + $0x1] sm:$0xff]  ;;  %918 = vst.msk [vmem:[#allocation2 + $0xc8] sm:$0x3] %vm917_vm3, %v13383_v42 }
  0x3f   : > { %11168 = vmatmul.mubr.msk.f32.gmra.mrb[4].mxu0 %vm400_vm0, %v371_v8  ;;  %v12884_v50 = vpack.c.bf16 %v951_v48, %v950_v47  ;;  %v985_v52 = vld [vmem:[#allocation5 + $0x78] sm:$0xff]  ;;  %v920_v56 = vld [vmem:[#allocation2 + $0x8] sm:$0xff]  ;;  %v921_v58 = vld [vmem:[#allocation2 + $0x10] sm:$0xff] }
  0x40   : > { %11170 = vmatprep.mubr.msk.f32.mxu0 %vm400_vm0, %v372_v13  ;;  %12882 = vmatpush3.bf16.msra.mxu0 %v12881_v41  ;;  %v12872_v53 = vpack.c.bf16 %v985_v52, %v984_v51  ;;  %v919_v54 = vld [vmem:[#allocation2] sm:$0xff]  ;;  %v953_v57 = vld [vmem:[#allocation2 + $0x9] sm:$0xff]  ;;  %v954_v59 = vld [vmem:[#allocation2 + $0x11] sm:$0xff]  ;;  %v339_v13 = vlaneseq }
  0x41   : > { %12883 = vmatprep.subr.bf16.mxu0 %v13382_v1  ;;  %v1543_v60 = vld [vmem:[#allocation5 + $0x80] sm:$0xff]  ;;  %v1544_v61 = vld [vmem:[#allocation5 + $0x88] sm:$0xff]  ;;  %v922_v62 = vld [vmem:[#allocation2 + $0x18] sm:$0xff] }
  0x42   : > { %12873 = vmatpush3.bf16.msra.mxu1 %v12872_v53  ;;  %v12887_v63 = vpack.c.bf16 %v1544_v61, %v1543_v60  ;;  %v1545_v0 = vld [vmem:[#allocation5 + $0x90] sm:$0xff]  ;;  %v1546_v2 = vld [vmem:[#allocation5 + $0x98] sm:$0xff]  ;;  %v1547_v4 = vld [vmem:[#allocation5 + $0xa0] sm:$0xff]  ;;  %v13637_v16 = vshrl.u32 %v339_v13, 7 }
  0x43   : > { %11171 = vmatmul.mubr.msk.f32.gmra.mrb[6].mxu0 %vm400_vm0, %v373_v18  ;;  %12886 = vmatprep.subr.bf16.mxu1 %v13382_v1  ;;  %v12890_v3 = vpack.c.bf16 %v1546_v2, %v1545_v0  ;;  %v1548_v5 = vld [vmem:[#allocation5 + $0xa8] sm:$0xff]  ;;  %v1549_v7 = vld [vmem:[#allocation5 + $0xb0] sm:$0xff]  ;;  %v1550_v8 = vld [vmem:[#allocation5 + $0xb8] sm:$0xff] }
  0x44   : > { %11173 = vmatprep.mubr.msk.f32.mxu0 %vm400_vm0, %v374_v20  ;;  %12885 = vmatpush3.bf16.msra.mxu0 %v12884_v50  ;;  %v12893_v6 = vpack.c.bf16 %v1548_v5, %v1547_v4  ;;  %v12896_v9 = vpack.c.bf16 %v1550_v8, %v1549_v7  ;;  %v13625_v10 = vld [vmem:[#allocation2 + $0x2] sm:$0xff]  ;;  %v13629_v11 = vld [vmem:[#allocation2 + $0xa] sm:$0xff]  ;;  %v13633_v12 = vld [vmem:[#allocation2 + $0x12] sm:$0xff]  ;;  %v13640_v19 = vadd.s32 32, %v13637_v16 }
  0x45   : > { %12898 = vmatprep.subr.bf16.mxu0 %v13382_v1  ;;  %11217 = vmatmul.mubr.msk.f32.vlgmr.msra.gmra.mrb[0].mxu1 %vm891_vm1, %v952_v55  ;;  %3263 = vst.msk [vmem:[#allocation2] sm:$0xff] %vm891_vm1, %v13383_v42  ;;  %3264 = vst.msk [vmem:[#allocation2 + $0x8] sm:$0xff] %vm891_vm1, %v13383_v42  ;;  %v13645_v20 = vld [vmem:[%s16060_s2] ss:$0 sm:$0xff] }
  0x46   : > { %11219 = vmatprep.mubr.msk.f32.mxu1 %vm13384_vm2, %v13383_v42  ;;  %12888 = vmatpush3.bf16.msra.mxu1 %v12887_v63  ;;  %3265 = vst.msk [vmem:[#allocation2 + $0x10] sm:$0xff] %vm891_vm1, %v13383_v42 }
  0x47   : > { %11174 = vmatmul.mubr.msk.f32.gmra.mrb[8].mxu0 %vm400_vm0, %v375_v21  ;;  %12889 = vmatprep.subr.bf16.mxu1 %v13382_v1 }
  0x48   : > { %11176 = vmatprep.mubr.msk.f32.mxu0 %vm400_vm0, %v376_v22 }
  0x49   : > { %11220 = vmatmul.mubr.msk.f32.gmra.mrb[2].mxu1 %vm891_vm1, %v953_v57 }
  0x4a   : > { %11222 = vmatprep.mubr.msk.f32.mxu1 %vm13384_vm2, %v13383_v42  ;;  %12891 = vmatpush3.bf16.msra.mxu1 %v12890_v3 }
  0x4b   : > { %11177 = vmatmul.mubr.msk.f32.gmra.mrb[10].mxu0 %vm400_vm0, %v377_v23  ;;  %12892 = vmatprep.subr.bf16.mxu1 %v13382_v1 }
  0x4c   : > { %11179 = vmatprep.mubr.msk.f32.mxu0 %vm400_vm0, %v378_v24  ;;  %v765_v24 = vadd.s32 4294967259, %v13640_v19 }
  0x4d   : > { %11223 = vmatmul.mubr.msk.f32.gmra.mrb[4].mxu1 %vm891_vm1, %v954_v59 }
  0x4e   : > { %11225 = vmatprep.mubr.msk.f32.mxu1 %vm13384_vm2, %v13383_v42  ;;  %12894 = vmatpush3.bf16.msra.mxu1 %v12893_v6  ;;  %vm791_vm4 = vcmp.ge.s32.totalorder %v765_v24, 0 }
  0x4f   : > { %11180 = vmatmul.mubr.msk.f32.gmra.mrb[12].mxu0 %vm400_vm0, %v379_v25  ;;  %12895 = vmatprep.subr.bf16.mxu1 %v13382_v1 }
  0x50   : > { %11182 = vmatprep.mubr.msk.f32.mxu0 %vm400_vm0, %v380_v26 }
  0x52   : > { %12897 = vmatpush3.bf16.msra.mxu1 %v12896_v9 }
  0x53   : > { %11183 = vmatmul.mubr.msk.f32.gmra.mrb[14].mxu0 %vm400_vm0, %v381_v27  ;;  %12910 = vmatprep.subr.bf16.mxu1 %v13382_v1 }
  0x54   : > { %11185 = vmatprep.mubr.msk.f32.mxu0 %vm400_vm0, %v382_v28 }
  0x57   : > { %11186 = vmatmul.mubr.msk.f32.gmra.mrb[16].mxu0 %vm400_vm0, %v383_v29 }
  0x58   : > { %11188 = vmatprep.mubr.msk.f32.mxu0 %vm400_vm0, %v384_v30 }
  0x5b   : > { %11189 = vmatmul.mubr.msk.f32.gmra.mrb[18].mxu0 %vm400_vm0, %v385_v31 }
  0x5c   : > { %11191 = vmatprep.mubr.msk.f32.mxu0 %vm400_vm0, %v386_v32 }
  0x5f   : > { %11192 = vmatmul.mubr.msk.f32.gmra.mrb[20].mxu0 %vm400_vm0, %v387_v33 }
  0x60   : > { %11194 = vmatprep.mubr.msk.f32.mxu0 %vm400_vm0, %v388_v36 }
  0x63   : > { %11195 = vmatmul.mubr.msk.f32.gmra.mrb[22].mxu0 %vm400_vm0, %v389_v40 }
  0x64   : > { %11197 = vmatprep.mubr.msk.f32.mxu0 %vm400_vm0, %v390_v45 }
  0x67   : > { %11198 = vmatmul.mubr.msk.f32.gmra.mrb[24].mxu0 %vm400_vm0, %v391_v49 }
  0x68   : > { %11307 = vmatprep.mubr.msk.f32.mxu0 %vm13384_vm2, %v13383_v42 }
  0x6b   : > { %11308 = vmatmul.mubr.msk.f32.vlgmr.msra.gmra.mrb[26].mxu0 %vm891_vm1, %v919_v54 }
  0x6c   : > { %11310 = vmatprep.mubr.msk.f32.mxu0 %vm13384_vm2, %v13383_v42 }
  0x6f   : > { %11311 = vmatmul.mubr.msk.f32.gmra.mrb[28].mxu0 %vm891_vm1, %v920_v56 }
  0x70   : > { %11313 = vmatprep.mubr.msk.f32.mxu0 %vm13384_vm2, %v13383_v42 }
  0x73   : > { %11314 = vmatmul.mubr.msk.f32.gmra.mrb[30].mxu0 %vm891_vm1, %v921_v58 }
  0x74   : > { %11316 = vmatprep.mubr.msk.f32.mxu0 %vm13384_vm2, %v13383_v42 }
  0x77   : > { %11317 = vmatmul.mubr.msk.f32.gmra.mrb[32].mxu0 %vm891_vm1, %v922_v62 }
  0x78   : > { %11319 = vmatprep.mubr.msk.f32.mxu0 %vm13384_vm2, %v13383_v42 }
 0x10a   : > { %v11163_v14 = vpop.f32.mrb[0].mxu0 }
 0x10b   : > { %v545_v15 = vpop.f32.mrb[1].mxu0 }
 0x10e   : > { %v11166_v17 = vpop.f32.mrb[2].mxu0 }
 0x10f   : > { %v555_v18 = vpop.f32.mrb[3].mxu0 }
 0x112   : > { %v11169_v21 = vpop.f32.mrb[4].mxu0 }
 0x113   : > { %v571_v22 = vadd.f32 %v11169_v21, %v13645_v20  ;;  %v565_v23 = vpop.f32.mrb[5].mxu0 }
 0x114   : > { %v566_v25 = vadd.f32 %v13645_v20, %v565_v23 }
 0x115   : > { %v679_v26 = vmul.f32 0.2, %v571_v22 }
 0x116   : > { %v678_v27 = vmul.f32 0.2, %v566_v25  ;;  %v11172_v28 = vpop.f32.mrb[6].mxu0 }
 0x117   : > { %v705_v29 = vmax.f32 %v571_v22, %v679_v26  ;;  %v581_v30 = vadd.f32 %v11172_v28, %v13645_v20  ;;  %v575_v31 = vpop.f32.mrb[7].mxu0 }
 0x118   : > { %v704_v32 = vmax.f32 %v566_v25, %v678_v27  ;;  %v576_v33 = vadd.f32 %v13645_v20, %v575_v31 }
 0x119   : > { %897 = vst.msk [vmem:[#allocation2 + $0x28] sm:$0xff] %vm891_vm1, %v705_v29  ;;  %v681_v34 = vmul.f32 0.2, %v581_v30 }
 0x11a   : > { %v869_v35 = vsel %vm791_vm4, %v704_v32, 0.0  ;;  %v680_v36 = vmul.f32 0.2, %v576_v33  ;;  %v11175_v37 = vpop.f32.mrb[8].mxu0 }
 0x11b   : > { %896 = vst.msk [vmem:[#allocation2 + $0x20] sm:$0xff] %vm891_vm1, %v869_v35  ;;  %v707_v38 = vmax.f32 %v581_v30, %v681_v34  ;;  %v591_v39 = vadd.f32 %v11175_v37, %v13645_v20  ;;  %v585_v40 = vpop.f32.mrb[9].mxu0  ;;  %v13700_v34 = vadd.s32 160, %v13637_v16 }
 0x11c   : > { %v706_v41 = vmax.f32 %v576_v33, %v680_v36  ;;  %v586_v43 = vadd.f32 %v13645_v20, %v585_v40 }
 0x11d   : > { %899 = vst.msk [vmem:[#allocation2 + $0x38] sm:$0xff] %vm891_vm1, %v707_v38  ;;  %v683_v44 = vmul.f32 0.2, %v591_v39 }
 0x11e   : > { %898 = vst.msk [vmem:[#allocation2 + $0x30] sm:$0xff] %vm891_vm1, %v706_v41  ;;  %v682_v45 = vmul.f32 0.2, %v586_v43  ;;  %v11178_v46 = vpop.f32.mrb[10].mxu0 }
 0x11f   : > { %v709_v47 = vmax.f32 %v591_v39, %v683_v44  ;;  %v601_v48 = vadd.f32 %v11178_v46, %v13645_v20  ;;  %v595_v49 = vpop.f32.mrb[11].mxu0 }
 0x120   : > { %v708_v50 = vmax.f32 %v586_v43, %v682_v45  ;;  %v596_v51 = vadd.f32 %v13645_v20, %v595_v49  ;;  %v924_v2 = vld [vmem:[#allocation2 + $0x28] sm:$0xff]  ;;  %v781_v45 = vadd.s32 4294967259, %v13700_v34 }
 0x121   : > { %901 = vst.msk [vmem:[#allocation2 + $0x48] sm:$0xff] %vm891_vm1, %v709_v47  ;;  %v685_v52 = vmul.f32 0.2, %v601_v48 }
 0x122   : > { %900 = vst.msk [vmem:[#allocation2 + $0x40] sm:$0xff] %vm891_vm1, %v708_v50  ;;  %v684_v53 = vmul.f32 0.2, %v596_v51  ;;  %v955_v54 = vld [vmem:[#allocation2 + $0x19] sm:$0xff]  ;;  %v11181_v56 = vpop.f32.mrb[12].mxu0  ;;  %v956_v0 = vld [vmem:[#allocation2 + $0x21] sm:$0xff] }
 0x123   : > { %v923_v55 = vld [vmem:[#allocation2 + $0x20] sm:$0xff]  ;;  %v711_v57 = vmax.f32 %v601_v48, %v685_v52  ;;  %11226 = vmatmul.mubr.msk.f32.gmra.mrb[6].mxu1 %vm891_vm1, %v955_v54  ;;  %v611_v58 = vadd.f32 %v11181_v56, %v13645_v20  ;;  %v605_v59 = vpop.f32.mrb[13].mxu0  ;;  %vm833_vm5 = vcmp.lt.s32.totalorder %v781_v45, 128 }
 0x124   : > { %11320 = vmatmul.mubr.msk.f32.gmra.mrb[34].mxu0 %vm891_vm1, %v923_v55  ;;  %v13665_v60 = vld [vmem:[#allocation2 + $0x1a] sm:$0xff]  ;;  %v710_v61 = vmax.f32 %v596_v51, %v684_v53  ;;  %11228 = vmatprep.mubr.msk.f32.mxu1 %vm13384_vm2, %v13383_v42  ;;  %v606_v62 = vadd.f32 %v13645_v20, %v605_v59 }
 0x125   : > { %11322 = vmatprep.mubr.msk.f32.mxu0 %vm13384_vm2, %v13383_v42  ;;  %3266 = vst.msk [vmem:[#allocation2 + $0x18] sm:$0xff] %vm891_vm1, %v13383_v42  ;;  %903 = vst.msk [vmem:[#allocation2 + $0x58] sm:$0xff] %vm891_vm1, %v711_v57  ;;  %v687_v63 = vmul.f32 0.2, %v611_v58  ;;  %v957_v14 = vld [vmem:[#allocation2 + $0x29] sm:$0xff]  ;;  %v958_v27 = vld [vmem:[#allocation2 + $0x31] sm:$0xff] }
 0x126   : > { %902 = vst.msk [vmem:[#allocation2 + $0x50] sm:$0xff] %vm891_vm1, %v710_v61  ;;  %v686_v3 = vmul.f32 0.2, %v606_v62  ;;  %v11184_v4 = vpop.f32.mrb[14].mxu0  ;;  %v925_v15 = vld [vmem:[#allocation2 + $0x30] sm:$0xff]  ;;  %v926_v28 = vld [vmem:[#allocation2 + $0x38] sm:$0xff] }
 0x127   : > { %11229 = vmatmul.mubr.msk.f32.gmra.mrb[8].mxu1 %vm891_vm1, %v956_v0  ;;  %v713_v5 = vmax.f32 %v611_v58, %v687_v63  ;;  %v621_v6 = vadd.f32 %v11184_v4, %v13645_v20  ;;  %v615_v7 = vpop.f32.mrb[15].mxu0 }
 0x128   : > { %11323 = vmatmul.mubr.msk.f32.gmra.mrb[36].mxu0 %vm891_vm1, %v924_v2  ;;  %v712_v8 = vmax.f32 %v606_v62, %v686_v3  ;;  %11231 = vmatprep.mubr.msk.f32.mxu1 %vm13384_vm2, %v13383_v42  ;;  %v616_v9 = vadd.f32 %v13645_v20, %v615_v7  ;;  %v928_v49 = vld [vmem:[#allocation2 + $0x48] sm:$0xff] }
 0x129   : > { %11325 = vmatprep.mubr.msk.f32.mxu0 %vm13384_vm2, %v13383_v42  ;;  %905 = vst.msk [vmem:[#allocation2 + $0x68] sm:$0xff] %vm891_vm1, %v713_v5  ;;  %v689_v13 = vmul.f32 0.2, %v621_v6  ;;  %v959_v38 = vld [vmem:[#allocation2 + $0x39] sm:$0xff]  ;;  %v960_v48 = vld [vmem:[#allocation2 + $0x41] sm:$0xff] }
 0x12a   : > { %904 = vst.msk [vmem:[#allocation2 + $0x60] sm:$0xff] %vm891_vm1, %v712_v8  ;;  %v688_v17 = vmul.f32 0.2, %v616_v9  ;;  %v11187_v18 = vpop.f32.mrb[16].mxu0  ;;  %v927_v39 = vld [vmem:[#allocation2 + $0x40] sm:$0xff] }
 0x12b   : > { %11232 = vmatmul.mubr.msk.f32.gmra.mrb[10].mxu1 %vm891_vm1, %v957_v14  ;;  %v715_v21 = vmax.f32 %v621_v6, %v689_v13  ;;  %v631_v22 = vadd.f32 %v11187_v18, %v13645_v20  ;;  %v625_v23 = vpop.f32.mrb[17].mxu0 }
 0x12c   : > { %11326 = vmatmul.mubr.msk.f32.gmra.mrb[38].mxu0 %vm891_vm1, %v925_v15  ;;  %11234 = vmatprep.mubr.msk.f32.mxu1 %vm13384_vm2, %v13383_v42  ;;  %v714_v24 = vmax.f32 %v616_v9, %v688_v17  ;;  %v626_v25 = vadd.f32 %v13645_v20, %v625_v23  ;;  %v930_v55 = vld [vmem:[#allocation2 + $0x58] sm:$0xff] }
 0x12d   : > { %11328 = vmatprep.mubr.msk.f32.mxu0 %vm13384_vm2, %v13383_v42  ;;  %907 = vst.msk [vmem:[#allocation2 + $0x78] sm:$0xff] %vm891_vm1, %v715_v21  ;;  %v691_v26 = vmul.f32 0.2, %v631_v22  ;;  %v929_v52 = vld [vmem:[#allocation2 + $0x50] sm:$0xff] }
 0x12e   : > { %906 = vst.msk [vmem:[#allocation2 + $0x70] sm:$0xff] %vm891_vm1, %v714_v24  ;;  %v690_v29 = vmul.f32 0.2, %v626_v25  ;;  %v11190_v30 = vpop.f32.mrb[18].mxu0  ;;  %v962_v54 = vld [vmem:[#allocation2 + $0x51] sm:$0xff] }
 0x12f   : > { %11235 = vmatmul.mubr.msk.f32.gmra.mrb[12].mxu1 %vm891_vm1, %v958_v27  ;;  %v717_v31 = vmax.f32 %v631_v22, %v691_v26  ;;  %v641_v32 = vadd.f32 %v11190_v30, %v13645_v20  ;;  %v635_v33 = vpop.f32.mrb[19].mxu0  ;;  %v1128_v26 = vpop.f32.mrb[0].mxu1  ;;  %v974_v30 = vld [vmem:[#allocation2 + $0xb1] sm:$0xff] }
 0x130   : > { %11329 = vmatmul.mubr.msk.f32.gmra.mrb[40].mxu0 %vm891_vm1, %v926_v28  ;;  %11237 = vmatprep.mubr.msk.f32.mxu1 %vm13384_vm2, %v13383_v42  ;;  %v716_v35 = vmax.f32 %v626_v25, %v690_v29  ;;  %v636_v36 = vadd.f32 %v13645_v20, %v635_v33  ;;  %v932_v59 = vld [vmem:[#allocation2 + $0x68] sm:$0xff]  ;;  %v11218_v27 = vpop.f32.mrb[1].mxu1 }
 0x131   : > { %11331 = vmatprep.mubr.msk.f32.mxu0 %vm13384_vm2, %v13383_v42  ;;  %909 = vst.msk [vmem:[#allocation2 + $0x88] sm:$0xff] %vm891_vm1, %v717_v31  ;;  %v693_v37 = vmul.f32 0.2, %v641_v32  ;;  %v963_v56 = vld [vmem:[#allocation2 + $0x59] sm:$0xff]  ;;  %v964_v58 = vld [vmem:[#allocation2 + $0x61] sm:$0xff]  ;;  %v973_v25 = vld [vmem:[#allocation2 + $0xa9] sm:$0xff] }
 0x132   : > { %908 = vst.msk [vmem:[#allocation2 + $0x80] sm:$0xff] %vm891_vm1, %v716_v35  ;;  %v692_v40 = vmul.f32 0.2, %v636_v36  ;;  %v11193_v41 = vpop.f32.mrb[20].mxu0  ;;  %v931_v57 = vld [vmem:[#allocation2 + $0x60] sm:$0xff]  ;;  %v1133_v31 = vpop.f32.mrb[2].mxu1 }
 0x133   : > { %11238 = vmatmul.mubr.msk.f32.gmra.mrb[14].mxu1 %vm891_vm1, %v959_v38  ;;  %v719_v43 = vmax.f32 %v641_v32, %v693_v37  ;;  %v645_v44 = vpop.f32.mrb[21].mxu0  ;;  %v11221_v32 = vpop.f32.mrb[3].mxu1  ;;  %v976_v41 = vld [vmem:[#allocation2 + $0xc1] sm:$0xff]  ;;  %v2135_v27 = vld [vmem:[#allocation5 + $0xf0] sm:$0xff] }
 0x134   : > { %11332 = vmatmul.mubr.msk.f32.gmra.mrb[42].mxu0 %vm891_vm1, %v927_v39  ;;  %11240 = vmatprep.mubr.msk.f32.mxu1 %vm13384_vm2, %v13383_v42  ;;  %v718_v46 = vmax.f32 %v636_v36, %v692_v40  ;;  %v646_v47 = vadd.f32 %v13645_v20, %v645_v44  ;;  %v961_v20 = vld [vmem:[#allocation2 + $0x49] sm:$0xff]  ;;  %v934_v0 = vld [vmem:[#allocation2 + $0x78] sm:$0xff]  ;;  %v1138_v37 = vpop.f32.mrb[4].mxu1 }
 0x135   : > { %11334 = vmatprep.mubr.msk.f32.mxu0 %vm13384_vm2, %v13383_v42  ;;  %911 = vst.msk [vmem:[#allocation2 + $0x98] sm:$0xff] %vm891_vm1, %v719_v43  ;;  %v965_v61 = vld [vmem:[#allocation2 + $0x69] sm:$0xff]  ;;  %v966_v63 = vld [vmem:[#allocation2 + $0x71] sm:$0xff]  ;;  %v975_v36 = vld [vmem:[#allocation2 + $0xb9] sm:$0xff]  ;;  %v11224_v38 = vpop.f32.mrb[5].mxu1 }
 0x136   : > { %910 = vst.msk [vmem:[#allocation2 + $0x90] sm:$0xff] %vm891_vm1, %v718_v46  ;;  %v694_v50 = vmul.f32 0.2, %v646_v47  ;;  %v933_v62 = vld [vmem:[#allocation2 + $0x70] sm:$0xff]  ;;  %v11196_v13 = vpop.f32.mrb[22].mxu0  ;;  %v2163_v43 = vld [vmem:[#allocation5 + $0x100] sm:$0xff] }
 0x137   : > { %11241 = vmatmul.mubr.msk.f32.gmra.mrb[16].mxu1 %vm891_vm1, %v960_v48  ;;  %v655_v14 = vpop.f32.mrb[23].mxu0  ;;  %v2164_v44 = vld [vmem:[#allocation5 + $0x108] sm:$0xff]  ;;  %v2165_v46 = vld [vmem:[#allocation5 + $0x110] sm:$0xff]  ;;  %v2727_v37 = vld [vmem:[#allocation5 + $0x140] sm:$0xff] }
 0x138   : > { %11335 = vmatmul.mubr.msk.f32.gmra.mrb[44].mxu0 %vm891_vm1, %v928_v49  ;;  %11243 = vmatprep.mubr.msk.f32.mxu1 %vm13384_vm2, %v13383_v42  ;;  %v720_v51 = vmax.f32 %v646_v47, %v694_v50  ;;  %v936_v5 = vld [vmem:[#allocation2 + $0x88] sm:$0xff]  ;;  %v12899_v45 = vpack.c.bf16 %v2164_v44, %v2163_v43  ;;  %v2166_v47 = vld [vmem:[#allocation5 + $0x118] sm:$0xff]  ;;  %v2131_v14 = vld [vmem:[#allocation5 + $0xd0] sm:$0xff] }
 0x139   : > { %11337 = vmatprep.mubr.msk.f32.mxu0 %vm13384_vm2, %v13383_v42  ;;  %v967_v2 = vld [vmem:[#allocation2 + $0x79] sm:$0xff]  ;;  %v968_v4 = vld [vmem:[#allocation2 + $0x81] sm:$0xff]  ;;  %v12902_v48 = vpack.c.bf16 %v2166_v47, %v2165_v46  ;;  %v1526_v50 = vld [vmem:[#allocation2 + $0x4a] sm:$0xff] }
 0x13a   : > { %v885_v53 = vsel %vm833_vm5, %v720_v51, 0.0  ;;  %v935_v3 = vld [vmem:[#allocation2 + $0x80] sm:$0xff]  ;;  %v11199_v18 = vpop.f32.mrb[24].mxu0  ;;  %12900 = vmatpush3.bf16.msra.mxu0 %v12899_v45  ;;  %v1527_v51 = vld [vmem:[#allocation2 + $0x52] sm:$0xff]  ;;  %v2728_v38 = vld [vmem:[#allocation5 + $0x148] sm:$0xff] }
 0x13b   : > { %11244 = vmatmul.mubr.msk.f32.gmra.mrb[18].mxu1 %vm891_vm1, %v961_v20  ;;  %912 = vst.msk [vmem:[#allocation2 + $0xa0] sm:$0xff] %vm891_vm1, %v885_v53  ;;  %v665_v21 = vpop.f32.mrb[25].mxu0  ;;  %12901 = vmatprep.subr.bf16.mxu0 %v13382_v1  ;;  %v1525_v49 = vld [vmem:[#allocation2 + $0x42] sm:$0xff]  ;;  %v1528_v20 = vld [vmem:[#allocation2 + $0x5a] sm:$0xff]  ;;  %v1530_v53 = vld [vmem:[#allocation2 + $0x6a] sm:$0xff] }
 0x13c   : > { %11338 = vmatmul.mubr.msk.f32.gmra.mrb[46].mxu0 %vm891_vm1, %v929_v52  ;;  %11246 = vmatprep.mubr.msk.f32.mxu1 %vm13384_vm2, %v13383_v42  ;;  %v938_v9 = vld [vmem:[#allocation2 + $0x98] sm:$0xff]  ;;  %v1529_v52 = vld [vmem:[#allocation2 + $0x62] sm:$0xff]  ;;  %v941_v18 = vld [vmem:[#allocation2 + $0xb0] sm:$0xff] }
 0x13d   : > { %11340 = vmatprep.mubr.msk.f32.mxu0 %vm13384_vm2, %v13383_v42  ;;  %v969_v6 = vld [vmem:[#allocation2 + $0x89] sm:$0xff]  ;;  %v970_v8 = vld [vmem:[#allocation2 + $0x91] sm:$0xff]  ;;  %v1540_v21 = vld [vmem:[#allocation2 + $0xba] sm:$0xff] }
 0x13e   : > { %v937_v7 = vld [vmem:[#allocation2 + $0x90] sm:$0xff]  ;;  %v1393_v23 = vpop.f32.mrb[26].mxu0  ;;  %12903 = vmatpush3.bf16.msra.mxu0 %v12902_v48  ;;  %v1541_v26 = vld [vmem:[#allocation2 + $0xc2] sm:$0xff] }
 0x13f   : > { %11247 = vmatmul.mubr.msk.f32.gmra.mrb[20].mxu1 %vm891_vm1, %v962_v54  ;;  %v11309_v24 = vpop.f32.mrb[27].mxu0  ;;  %12904 = vmatprep.subr.bf16.mxu0 %v13382_v1  ;;  %v1531_v54 = vld [vmem:[#allocation2 + $0x72] sm:$0xff]  ;;  %v2134_v23 = vld [vmem:[#allocation5 + $0xe8] sm:$0xff] }
 0x140   : > { %11341 = vmatmul.mubr.msk.f32.gmra.mrb[48].mxu0 %vm891_vm1, %v930_v55  ;;  %11249 = vmatprep.mubr.msk.f32.mxu1 %vm13384_vm2, %v13383_v42  ;;  %v2167_v55 = vld [vmem:[#allocation5 + $0x120] sm:$0xff]  ;;  %v1539_v13 = vld [vmem:[#allocation2 + $0xb2] sm:$0xff] }
 0x141   : > { %11343 = vmatprep.mubr.msk.f32.mxu0 %vm13384_vm2, %v13383_v42  ;;  %v2103_v31 = vld [vmem:[#allocation3] sm:$0xff] }
 0x142   : > { %v971_v15 = vld [vmem:[#allocation2 + $0x99] sm:$0xff]  ;;  %v972_v22 = vld [vmem:[#allocation2 + $0xa1] sm:$0xff]  ;;  %v1398_v28 = vpop.f32.mrb[28].mxu0 }
 0x143   : > { %11250 = vmatmul.mubr.msk.f32.gmra.mrb[22].mxu1 %vm891_vm1, %v963_v56  ;;  %v939_v17 = vld [vmem:[#allocation2 + $0xa0] sm:$0xff]  ;;  %v11312_v29 = vpop.f32.mrb[29].mxu0  ;;  %v2168_v56 = vld [vmem:[#allocation5 + $0x128] sm:$0xff]  ;;  %v2137_v32 = vld [vmem:[#allocation3 + $0x2] sm:$0xff] }
 0x144   : > { %11344 = vmatmul.mubr.msk.f32.gmra.mrb[50].mxu0 %vm891_vm1, %v931_v57  ;;  %11252 = vmatprep.mubr.msk.f32.mxu1 %vm13384_vm2, %v13383_v42  ;;  %v12905_v57 = vpack.c.bf16 %v2168_v56, %v2167_v55  ;;  %v2136_v28 = vld [vmem:[#allocation5 + $0xf8] sm:$0xff] }
 0x145   : > { %11346 = vmatprep.mubr.msk.f32.mxu0 %vm13384_vm2, %v13383_v42  ;;  %v12920_v29 = vpack.c.bf16 %v2136_v28, %v2135_v27 }
 0x146   : > { %v1403_v33 = vpop.f32.mrb[30].mxu0  ;;  %12906 = vmatpush3.bf16.msra.mxu0 %v12905_v57  ;;  %v2729_v57 = vld [vmem:[#allocation5 + $0x150] sm:$0xff] }
 0x147   : > { %11253 = vmatmul.mubr.msk.f32.gmra.mrb[24].mxu1 %vm891_vm1, %v964_v58  ;;  %v11315_v35 = vpop.f32.mrb[31].mxu0  ;;  %v1532_v58 = vld [vmem:[#allocation2 + $0x7a] sm:$0xff]  ;;  %12907 = vmatprep.subr.bf16.mxu0 %v13382_v1 }
 0x148   : > { %11347 = vmatmul.mubr.msk.f32.gmra.mrb[52].mxu0 %vm891_vm1, %v932_v59  ;;  %11255 = vmatprep.mubr.msk.f32.mxu1 %vm13384_vm2, %v13383_v42  ;;  %v1533_v59 = vld [vmem:[#allocation2 + $0x82] sm:$0xff]  ;;  %v2104_v33 = vld [vmem:[#allocation3 + $0x8] sm:$0xff] }
 0x149   : > { %11349 = vmatprep.mubr.msk.f32.mxu0 %vm13384_vm2, %v13383_v42  ;;  %v2138_v35 = vld [vmem:[#allocation3 + $0xa] sm:$0xff] }
 0x14a   : > { %v1408_v39 = vpop.f32.mrb[32].mxu0 }
 0x14b   : > { %11256 = vmatmul.mubr.msk.f32.gmra.mrb[26].mxu1 %vm891_vm1, %v965_v61  ;;  %v11318_v40 = vpop.f32.mrb[33].mxu0  ;;  %v1534_v61 = vld [vmem:[#allocation2 + $0x8a] sm:$0xff]  ;;  %v2139_v39 = vld [vmem:[#allocation3 + $0x12] sm:$0xff] }
 0x14c   : > { %11350 = vmatmul.mubr.msk.f32.gmra.mrb[54].mxu0 %vm891_vm1, %v933_v62  ;;  %11258 = vmatprep.mubr.msk.f32.mxu1 %vm13384_vm2, %v13383_v42  ;;  %v1535_v62 = vld [vmem:[#allocation2 + $0x92] sm:$0xff]  ;;  %v12923_v40 = vpack.c.bf16 %v2728_v38, %v2727_v37 }
 0x14d   : > { %11352 = vmatprep.mubr.msk.f32.mxu0 %vm13384_vm2, %v13383_v42 }
 0x14f   : > { %11259 = vmatmul.mubr.msk.f32.gmra.mrb[28].mxu1 %vm891_vm1, %v966_v63  ;;  %v1536_v63 = vld [vmem:[#allocation2 + $0x9a] sm:$0xff] }
 0x150   : > { %11353 = vmatmul.mubr.msk.f32.gmra.mrb[56].mxu0 %vm891_vm1, %v934_v0  ;;  %11261 = vmatprep.mubr.msk.f32.mxu1 %vm13384_vm2, %v13383_v42  ;;  %v1537_v0 = vld [vmem:[#allocation2 + $0xa2] sm:$0xff] }
 0x151   : > { %11355 = vmatprep.mubr.msk.f32.mxu0 %vm13384_vm2, %v13383_v42 }
 0x153   : > { %11262 = vmatmul.mubr.msk.f32.gmra.mrb[30].mxu1 %vm891_vm1, %v967_v2  ;;  %v2169_v2 = vld [vmem:[#allocation5 + $0x130] sm:$0xff] }
 0x154   : > { %11356 = vmatmul.mubr.msk.f32.gmra.mrb[58].mxu0 %vm891_vm1, %v935_v3  ;;  %11264 = vmatprep.mubr.msk.f32.mxu1 %vm13384_vm2, %v13383_v42  ;;  %v2170_v3 = vld [vmem:[#allocation5 + $0x138] sm:$0xff] }
 0x155   : > { %11358 = vmatprep.mubr.msk.f32.mxu0 %vm13384_vm2, %v13383_v42 }
 0x157   : > { %11265 = vmatmul.mubr.msk.f32.gmra.mrb[32].mxu1 %vm891_vm1, %v968_v4  ;;  %v12908_v4 = vpack.c.bf16 %v2170_v3, %v2169_v2 }
 0x158   : > { %11359 = vmatmul.mubr.msk.f32.gmra.mrb[60].mxu0 %vm891_vm1, %v936_v5  ;;  %11267 = vmatprep.mubr.msk.f32.mxu1 %vm13384_vm2, %v13383_v42  ;;  %v1538_v5 = vld [vmem:[#allocation2 + $0xaa] sm:$0xff] }
 0x159   : > { %11361 = vmatprep.mubr.msk.f32.mxu0 %vm13384_vm2, %v13383_v42  ;;  %12909 = vmatpush3.bf16.msra.mxu0 %v12908_v4  ;;  %3285 = vst.msk [vmem:[#allocation2 + $0xb0] sm:$0xff] %vm891_vm1, %v13383_v42 }
 0x15a   : > { %12922 = vmatprep.subr.bf16.mxu0 %v13382_v1 }
 0x15b   : > { %11268 = vmatmul.mubr.msk.f32.gmra.mrb[34].mxu1 %vm891_vm1, %v969_v6  ;;  %v2129_v6 = vld [vmem:[#allocation5 + $0xc0] sm:$0xff] }
 0x15c   : > { %11362 = vmatmul.mubr.msk.f32.gmra.mrb[62].mxu0 %vm891_vm1, %v937_v7  ;;  %11270 = vmatprep.mubr.msk.f32.mxu1 %vm13384_vm2, %v13383_v42  ;;  %v2130_v7 = vld [vmem:[#allocation5 + $0xc8] sm:$0xff] }
 0x15d   : > { %11364 = vmatprep.mubr.msk.f32.mxu0 %vm13384_vm2, %v13383_v42 }
 0x15f   : > { %11271 = vmatmul.mubr.msk.f32.gmra.mrb[36].mxu1 %vm891_vm1, %v970_v8  ;;  %v12911_v8 = vpack.c.bf16 %v2130_v7, %v2129_v6 }
 0x160   : > { %11365 = vmatmul.mubr.msk.f32.gmra.mrb[64].mxu0 %vm891_vm1, %v938_v9  ;;  %11273 = vmatprep.mubr.msk.f32.mxu1 %vm13384_vm2, %v13383_v42  ;;  %v940_v9 = vld [vmem:[#allocation2 + $0xa8] sm:$0xff] }
 0x161   : > { %11367 = vmatprep.mubr.msk.f32.mxu0 %vm13384_vm2, %v13383_v42  ;;  %3284 = vst.msk [vmem:[#allocation2 + $0xa8] sm:$0xff] %vm891_vm1, %v13383_v42 }
 0x163   : > { %11274 = vmatmul.mubr.msk.f32.gmra.mrb[38].mxu1 %vm891_vm1, %v971_v15  ;;  %v2132_v15 = vld [vmem:[#allocation5 + $0xd8] sm:$0xff] }
 0x164   : > { %11368 = vmatmul.mubr.msk.f32.gmra.mrb[66].mxu0 %vm891_vm1, %v939_v17  ;;  %11276 = vmatprep.mubr.msk.f32.mxu1 %vm13384_vm2, %v13383_v42  ;;  %v12914_v17 = vpack.c.bf16 %v2132_v15, %v2131_v14 }
 0x165   : > { %11370 = vmatprep.mubr.msk.f32.mxu0 %vm13384_vm2, %v13383_v42 }
 0x167   : > { %11277 = vmatmul.mubr.msk.f32.gmra.mrb[40].mxu1 %vm891_vm1, %v972_v22  ;;  %v2133_v22 = vld [vmem:[#allocation5 + $0xe0] sm:$0xff] }
 0x168   : > { %11279 = vmatprep.mubr.msk.f32.mxu1 %vm13384_vm2, %v13383_v42  ;;  %11371 = vmatmul.mubr.msk.f32.gmra.mrb[68].mxu0 %vm891_vm1, %v940_v9  ;;  %v12917_v24 = vpack.c.bf16 %v2134_v23, %v2133_v22 }
 0x169   : > { %11373 = vmatprep.mubr.msk.f32.mxu0 %vm13384_vm2, %v13383_v42 }
 0x16b   : > { %11280 = vmatmul.mubr.msk.f32.gmra.mrb[42].mxu1 %vm891_vm1, %v973_v25  ;;  %v942_v25 = vld [vmem:[#allocation2 + $0xb8] sm:$0xff] }
 0x16c   : > { %11282 = vmatprep.mubr.msk.f32.mxu1 %vm13384_vm2, %v13383_v42  ;;  %11374 = vmatmul.mubr.msk.f32.gmra.mrb[70].mxu0 %vm891_vm1, %v941_v18  ;;  %3286 = vst.msk [vmem:[#allocation2 + $0xb8] sm:$0xff] %vm891_vm1, %v13383_v42 }
 0x16d   : > { %11376 = vmatprep.mubr.msk.f32.mxu0 %vm13384_vm2, %v13383_v42 }
 0x16f   : > { %11283 = vmatmul.mubr.msk.f32.gmra.mrb[44].mxu1 %vm891_vm1, %v974_v30  ;;  %v943_v30 = vld [vmem:[#allocation2 + $0xc0] sm:$0xff] }
 0x170   : > { %11285 = vmatprep.mubr.msk.f32.mxu1 %vm13384_vm2, %v13383_v42  ;;  %11377 = vmatmul.mubr.msk.f32.gmra.mrb[72].mxu0 %vm891_vm1, %v942_v25  ;;  %3288 = vst.msk [vmem:[#allocation2 + $0xc0] sm:$0xf] %vm3287_vm6, %v13383_v42 }
 0x171   : > { %11379 = vmatprep.mubr.msk.f32.mxu0 %vm13384_vm2, %v13383_v42 }
 0x173   : > { %11286 = vmatmul.mubr.msk.f32.gmra.mrb[46].mxu1 %vm891_vm1, %v975_v36  ;;  %v2105_v36 = vld [vmem:[#allocation3 + $0x10] sm:$0xff] }
 0x174   : > { %11288 = vmatprep.mubr.msk.f32.mxu1 %vm13384_vm2, %v13383_v42  ;;  %11380 = vmatmul.mubr.msk.f32.gmra.mrb[74].mxu0 %vm891_vm1, %v943_v30 }
 0x175   : > { %11489 = vmatprep.mubr.msk.f32.mxu0 %vm13384_vm2, %v13383_v42 }
 0x177   : > { %11289 = vmatmul.mubr.msk.f32.gmra.mrb[48].mxu1 %vm891_vm1, %v976_v41  ;;  %v2106_v41 = vld [vmem:[#allocation3 + $0x18] sm:$0xff] }
 0x178   : > { %11398 = vmatprep.mubr.msk.f32.mxu1 %vm13384_vm2, %v13383_v42  ;;  %11490 = vmatmul.mubr.msk.f32.vlgmr.msra.gmra.mrb[76].mxu0 %vm891_vm1, %v2137_v32 }
 0x179   : > { %11492 = vmatprep.mubr.msk.f32.mxu0 %vm13384_vm2, %v13383_v42  ;;  %12924 = vmatpush3.bf16.msra.mxu0 %v12923_v40  ;;  %v2731_v40 = vld [vmem:[#allocation5 + $0x160] sm:$0xff] }
 0x17a   : > { %12925 = vmatprep.subr.bf16.mxu0 %v13382_v1 }
 0x17b   : > { %11399 = vmatmul.mubr.msk.f32.vlgmr.msra.gmra.mrb[50].mxu1 %vm891_vm1, %v13625_v10  ;;  %v1521_v10 = vld [vmem:[#allocation2 + $0x22] sm:$0xff] }
 0x17c   : > { %11401 = vmatprep.mubr.msk.f32.mxu1 %vm13384_vm2, %v13383_v42  ;;  %12912 = vmatpush3.bf16.msra.mxu1 %v12911_v8 }
 0x17d   : > { %12913 = vmatprep.subr.bf16.mxu1 %v13382_v1  ;;  %11493 = vmatmul.mubr.msk.f32.gmra.mrb[78].mxu0 %vm891_vm1, %v2138_v35 }
 0x17e   : > { %11495 = vmatprep.mubr.msk.f32.mxu0 %vm13384_vm2, %v13383_v42 }
 0x17f   : > { %11402 = vmatmul.mubr.msk.f32.gmra.mrb[52].mxu1 %vm891_vm1, %v13629_v11  ;;  %v1522_v11 = vld [vmem:[#allocation2 + $0x2a] sm:$0xff] }
 0x180   : > { %11404 = vmatprep.mubr.msk.f32.mxu1 %vm13384_vm2, %v13383_v42  ;;  %12915 = vmatpush3.bf16.msra.mxu1 %v12914_v17 }
 0x181   : > { %12916 = vmatprep.subr.bf16.mxu1 %v13382_v1  ;;  %11496 = vmatmul.mubr.msk.f32.gmra.mrb[80].mxu0 %vm891_vm1, %v2139_v39 }
 0x182   : > { %11498 = vmatprep.mubr.msk.f32.mxu0 %vm13384_vm2, %v13383_v42 }
 0x183   : > { %11405 = vmatmul.mubr.msk.f32.gmra.mrb[54].mxu1 %vm891_vm1, %v13633_v12  ;;  %v1523_v12 = vld [vmem:[#allocation2 + $0x32] sm:$0xff] }
 0x184   : > { %11407 = vmatprep.mubr.msk.f32.mxu1 %vm13384_vm2, %v13383_v42  ;;  %12918 = vmatpush3.bf16.msra.mxu1 %v12917_v24 }
 0x185   : > { %12919 = vmatprep.subr.bf16.mxu1 %v13382_v1 }
 0x187   : > { %11408 = vmatmul.mubr.msk.f32.gmra.mrb[56].mxu1 %vm891_vm1, %v13665_v60  ;;  %v1524_v60 = vld [vmem:[#allocation2 + $0x3a] sm:$0xff] }
 0x188   : > { %11410 = vmatprep.mubr.msk.f32.mxu1 %vm13384_vm2, %v13383_v42  ;;  %12921 = vmatpush3.bf16.msra.mxu1 %v12920_v29 }
 0x18b   : > { %11411 = vmatmul.mubr.msk.f32.gmra.mrb[58].mxu1 %vm891_vm1, %v1521_v10 }
 0x18c   : > { %11413 = vmatprep.mubr.msk.f32.mxu1 %vm13384_vm2, %v13383_v42 }
 0x18f   : > { %11414 = vmatmul.mubr.msk.f32.gmra.mrb[60].mxu1 %vm891_vm1, %v1522_v11 }
 0x190   : > { %11416 = vmatprep.mubr.msk.f32.mxu1 %vm13384_vm2, %v13383_v42 }
 0x193   : > { %11417 = vmatmul.mubr.msk.f32.gmra.mrb[62].mxu1 %vm891_vm1, %v1523_v12 }
 0x194   : > { %11419 = vmatprep.mubr.msk.f32.mxu1 %vm13384_vm2, %v13383_v42 }
 0x197   : > { %11420 = vmatmul.mubr.msk.f32.gmra.mrb[64].mxu1 %vm891_vm1, %v1524_v60 }
 0x198   : > { %11422 = vmatprep.mubr.msk.f32.mxu1 %vm13384_vm2, %v13383_v42 }
 0x19b   : > { %11423 = vmatmul.mubr.msk.f32.gmra.mrb[66].mxu1 %vm891_vm1, %v1525_v49 }
 0x19c   : > { %11425 = vmatprep.mubr.msk.f32.mxu1 %vm13384_vm2, %v13383_v42 }
 0x19f   : > { %11426 = vmatmul.mubr.msk.f32.gmra.mrb[68].mxu1 %vm891_vm1, %v1526_v50 }
 0x1a0   : > { %11428 = vmatprep.mubr.msk.f32.mxu1 %vm13384_vm2, %v13383_v42 }
 0x1a3   : > { %11429 = vmatmul.mubr.msk.f32.gmra.mrb[70].mxu1 %vm891_vm1, %v1527_v51 }
 0x1a4   : > { %11431 = vmatprep.mubr.msk.f32.mxu1 %vm13384_vm2, %v13383_v42 }
 0x1a7   : > { %11432 = vmatmul.mubr.msk.f32.gmra.mrb[72].mxu1 %vm891_vm1, %v1528_v20 }
 0x1a8   : > { %11434 = vmatprep.mubr.msk.f32.mxu1 %vm13384_vm2, %v13383_v42 }
 0x1ab   : > { %11435 = vmatmul.mubr.msk.f32.gmra.mrb[74].mxu1 %vm891_vm1, %v1529_v52 }
 0x1ac   : > { %11437 = vmatprep.mubr.msk.f32.mxu1 %vm13384_vm2, %v13383_v42 }
 0x1af   : > { %11438 = vmatmul.mubr.msk.f32.gmra.mrb[76].mxu1 %vm891_vm1, %v1530_v53 }
 0x1b0   : > { %11440 = vmatprep.mubr.msk.f32.mxu1 %vm13384_vm2, %v13383_v42 }
 0x1b3   : > { %11441 = vmatmul.mubr.msk.f32.gmra.mrb[78].mxu1 %vm891_vm1, %v1531_v54 }
 0x1b4   : > { %11443 = vmatprep.mubr.msk.f32.mxu1 %vm13384_vm2, %v13383_v42 }
 0x1b7   : > { %11444 = vmatmul.mubr.msk.f32.gmra.mrb[80].mxu1 %vm891_vm1, %v1532_v58  ;;  %v2730_v58 = vld [vmem:[#allocation5 + $0x158] sm:$0xff] }
 0x1b8   : > { %11446 = vmatprep.mubr.msk.f32.mxu1 %vm13384_vm2, %v13383_v42 }
 0x1bb   : > { %11447 = vmatmul.mubr.msk.f32.gmra.mrb[82].mxu1 %vm891_vm1, %v1533_v59  ;;  %v12926_v59 = vpack.c.bf16 %v2730_v58, %v2729_v57  ;;  %v2733_v57 = vld [vmem:[#allocation5 + $0x170] sm:$0xff]  ;;  %v2734_v58 = vld [vmem:[#allocation5 + $0x178] sm:$0xff] }
 0x1bc   : > { %11449 = vmatprep.mubr.msk.f32.mxu1 %vm13384_vm2, %v13383_v42 }
 0x1bd   : > { %12927 = vmatpush3.bf16.msra.mxu0 %v12926_v59 }
 0x1be   : > { %12928 = vmatprep.subr.bf16.mxu0 %v13382_v1 }
 0x1bf   : > { %11450 = vmatmul.mubr.msk.f32.gmra.mrb[84].mxu1 %vm891_vm1, %v1534_v61 }
 0x1c0   : > { %11452 = vmatprep.mubr.msk.f32.mxu1 %vm13384_vm2, %v13383_v42 }
 0x1c3   : > { %11453 = vmatmul.mubr.msk.f32.gmra.mrb[86].mxu1 %vm891_vm1, %v1535_v62 }
 0x1c4   : > { %11455 = vmatprep.mubr.msk.f32.mxu1 %vm13384_vm2, %v13383_v42 }
 0x1c7   : > { %11456 = vmatmul.mubr.msk.f32.gmra.mrb[88].mxu1 %vm891_vm1, %v1536_v63 }
 0x1c8   : > { %11458 = vmatprep.mubr.msk.f32.mxu1 %vm13384_vm2, %v13383_v42 }
 0x1cb   : > { %11459 = vmatmul.mubr.msk.f32.gmra.mrb[90].mxu1 %vm891_vm1, %v1537_v0 }
 0x1cc   : > { %11461 = vmatprep.mubr.msk.f32.mxu1 %vm13384_vm2, %v13383_v42 }
 0x1cf   : > { %11462 = vmatmul.mubr.msk.f32.gmra.mrb[92].mxu1 %vm891_vm1, %v1538_v5 }
 0x1d0   : > { %11464 = vmatprep.mubr.msk.f32.mxu1 %vm13384_vm2, %v13383_v42 }
 0x1d3   : > { %11465 = vmatmul.mubr.msk.f32.gmra.mrb[94].mxu1 %vm891_vm1, %v1539_v13 }
 0x1d4   : > { %11467 = vmatprep.mubr.msk.f32.mxu1 %vm13384_vm2, %v13383_v42 }
 0x1d7   : > { %11468 = vmatmul.mubr.msk.f32.gmra.mrb[96].mxu1 %vm891_vm1, %v1540_v21 }
 0x1d8   : > { %11470 = vmatprep.mubr.msk.f32.mxu1 %vm13384_vm2, %v13383_v42 }
 0x1db   : > { %11471 = vmatmul.mubr.msk.f32.gmra.mrb[98].mxu1 %vm891_vm1, %v1541_v26 }
 0x1dc   : > { %11580 = vmatprep.mubr.msk.f32.mxu1 %vm13384_vm2, %v13383_v42 }
 0x1df   : > { %11581 = vmatmul.mubr.msk.f32.vlgmr.msra.gmra.mrb[100].mxu1 %vm891_vm1, %v2103_v31 }
 0x1e0   : > { %11583 = vmatprep.mubr.msk.f32.mxu1 %vm13384_vm2, %v13383_v42 }
 0x1e3   : > { %11584 = vmatmul.mubr.msk.f32.gmra.mrb[102].mxu1 %vm891_vm1, %v2104_v33 }
 0x1e4   : > { %11586 = vmatprep.mubr.msk.f32.mxu1 %vm13384_vm2, %v13383_v42 }
 0x1e7   : > { %11587 = vmatmul.mubr.msk.f32.gmra.mrb[104].mxu1 %vm891_vm1, %v2105_v36 }
 0x1e8   : > { %11589 = vmatprep.mubr.msk.f32.mxu1 %vm13384_vm2, %v13383_v42 }
 0x1eb   : > { %11590 = vmatmul.mubr.msk.f32.gmra.mrb[106].mxu1 %vm891_vm1, %v2106_v41  ;;  %v2732_v41 = vld [vmem:[#allocation5 + $0x168] sm:$0xff] }
 0x1ec   : > { %11592 = vmatprep.mubr.msk.f32.mxu1 %vm13384_vm2, %v13383_v42 }
 0x1f6   : > { %v1143_v43 = vpop.f32.mrb[6].mxu1 }
 0x1f7   : > { %v1413_v44 = vpop.f32.mrb[34].mxu0  ;;  %v11227_v45 = vpop.f32.mrb[7].mxu1  ;;  %v12929_v43 = vpack.c.bf16 %v2732_v41, %v2731_v40  ;;  %v13980_v40 = vld [vmem:[#allocation3 + $0x14] sm:$0xff] }
 0x1f8   : > { %v11321_v10 = vpop.f32.mrb[35].mxu0 }
 0x1f9   : > { %12930 = vmatpush3.bf16.msra.mxu0 %v12929_v43 }
 0x1fa   : > { %v1148_v11 = vpop.f32.mrb[8].mxu1  ;;  %12931 = vmatprep.subr.bf16.mxu0 %v13382_v1 }
 0x1fb   : > { %v1418_v12 = vpop.f32.mrb[36].mxu0  ;;  %v13935_v60 = vadd.f32 %v1413_v44, %v1148_v11  ;;  %v11230_v46 = vpop.f32.mrb[9].mxu1 }
 0x1fc   : > { %v11324_v47 = vpop.f32.mrb[37].mxu0 }
 0x1fe   : > { %v1153_v48 = vpop.f32.mrb[10].mxu1 }
 0x1ff   : > { %v1423_v49 = vpop.f32.mrb[38].mxu0  ;;  %v13937_v50 = vadd.f32 %v1418_v12, %v1153_v48  ;;  %v11233_v51 = vpop.f32.mrb[11].mxu1 }
 0x200   : > { %v11327_v20 = vpop.f32.mrb[39].mxu0 }
 0x202   : > { %v1158_v52 = vpop.f32.mrb[12].mxu1 }
 0x203   : > { %v1428_v53 = vpop.f32.mrb[40].mxu0  ;;  %v13939_v54 = vadd.f32 %v1423_v49, %v1158_v52  ;;  %v11236_v55 = vpop.f32.mrb[13].mxu1 }
 0x204   : > { %v11330_v56 = vpop.f32.mrb[41].mxu0 }
 0x206   : > { %v1163_v61 = vpop.f32.mrb[14].mxu1 }
 0x207   : > { %v1433_v62 = vpop.f32.mrb[42].mxu0  ;;  %v13941_v63 = vadd.f32 %v1428_v53, %v1163_v61  ;;  %v11239_v0 = vpop.f32.mrb[15].mxu1 }
 0x208   : > { %v11333_v2 = vpop.f32.mrb[43].mxu0 }
 0x20a   : > { %v1168_v3 = vpop.f32.mrb[16].mxu1 }
 0x20b   : > { %v1438_v4 = vpop.f32.mrb[44].mxu0  ;;  %v13944_v5 = vadd.f32 %v1433_v62, %v1168_v3  ;;  %v11242_v6 = vpop.f32.mrb[17].mxu1  ;;  %v12932_v62 = vpack.c.bf16 %v2734_v58, %v2733_v57 }
 0x20c   : > { %v11336_v7 = vpop.f32.mrb[45].mxu0 }
 0x20d   : > { %12933 = vmatpush3.bf16.msra.mxu0 %v12932_v62 }
 0x20e   : > { %v1173_v8 = vpop.f32.mrb[18].mxu1  ;;  %12982 = vmatprep.subr.bf16.mxu0 %v13382_v1 }
 0x20f   : > { %v1443_v9 = vpop.f32.mrb[46].mxu0  ;;  %v13946_v13 = vadd.f32 %v1438_v4, %v1173_v8  ;;  %v11245_v14 = vpop.f32.mrb[19].mxu1 }
 0x210   : > { %v11339_v15 = vpop.f32.mrb[47].mxu0 }
 0x212   : > { %v1178_v17 = vpop.f32.mrb[20].mxu1 }
 0x213   : > { %v1448_v18 = vpop.f32.mrb[48].mxu0  ;;  %v13948_v21 = vadd.f32 %v1443_v9, %v1178_v17  ;;  %v11248_v22 = vpop.f32.mrb[21].mxu1 }
 0x214   : > { %v11342_v23 = vpop.f32.mrb[49].mxu0 }
 0x216   : > { %v1183_v24 = vpop.f32.mrb[22].mxu1 }
 0x217   : > { %v1453_v25 = vpop.f32.mrb[50].mxu0  ;;  %v13950_v26 = vadd.f32 %v1448_v18, %v1183_v24  ;;  %v11251_v27 = vpop.f32.mrb[23].mxu1 }
 0x218   : > { %v11345_v28 = vpop.f32.mrb[51].mxu0 }
 0x21a   : > { %v1188_v29 = vpop.f32.mrb[24].mxu1 }
 0x21b   : > { %v1458_v30 = vpop.f32.mrb[52].mxu0  ;;  %v13952_v31 = vadd.f32 %v1453_v25, %v1188_v29  ;;  %v11254_v32 = vpop.f32.mrb[25].mxu1 }
 0x21c   : > { %v11348_v33 = vpop.f32.mrb[53].mxu0  ;;  %v13972_v32 = vld [vmem:[#allocation3 + $0x4] sm:$0xff] }
 0x21d   : > { %4412 = vst.msk [vmem:[#allocation3] sm:$0xff] %vm891_vm1, %v13383_v42 }
 0x21e   : > { %v1193_v35 = vpop.f32.mrb[26].mxu1 }
 0x21f   : > { %v1463_v36 = vpop.f32.mrb[54].mxu0  ;;  %v13954_v37 = vadd.f32 %v1458_v30, %v1193_v35  ;;  %v11257_v38 = vpop.f32.mrb[27].mxu1 }
 0x220   : > { %v11351_v39 = vpop.f32.mrb[55].mxu0 }
 0x222   : > { %v1198_v44 = vpop.f32.mrb[28].mxu1 }
 0x223   : > { %v1468_v45 = vpop.f32.mrb[56].mxu0  ;;  %v13956_v10 = vadd.f32 %v1463_v36, %v1198_v44  ;;  %v11260_v11 = vpop.f32.mrb[29].mxu1  ;;  %v13976_v36 = vld [vmem:[#allocation3 + $0xc] sm:$0xff] }
 0x224   : > { %v11354_v12 = vpop.f32.mrb[57].mxu0  ;;  %4413 = vst.msk [vmem:[#allocation3 + $0x8] sm:$0xff] %vm891_vm1, %v13383_v42  ;;  %4414 = vst.msk [vmem:[#allocation3 + $0x10] sm:$0xff] %vm891_vm1, %v13383_v42 }
 0x226   : > { %v1203_v46 = vpop.f32.mrb[30].mxu1 }
 0x227   : > { %v1473_v47 = vpop.f32.mrb[58].mxu0  ;;  %v13959_v48 = vadd.f32 %v1468_v45, %v1203_v46  ;;  %v11263_v49 = vpop.f32.mrb[31].mxu1 }
 0x228   : > { %v11357_v51 = vpop.f32.mrb[59].mxu0 }
 0x229   : > { %v13987_v51 = vld [vmem:[%s16062_s4] ss:$0 sm:$0xff] }
 0x22a   : > { %v1208_v20 = vpop.f32.mrb[32].mxu1 }
 0x22b   : > { %v1478_v52 = vpop.f32.mrb[60].mxu0  ;;  %v13961_v53 = vadd.f32 %v1473_v47, %v1208_v20  ;;  %v11266_v55 = vpop.f32.mrb[33].mxu1 }
 0x22c   : > { %v11360_v56 = vpop.f32.mrb[61].mxu0  ;;  %v1957_v55 = vadd.s32 4294967260, %v13640_v19 }
 0x22e   : > { %v1213_v59 = vpop.f32.mrb[34].mxu1  ;;  %vm1982_vm7 = vcmp.ge.s32.totalorder %v1957_v55, 0 }
 0x22f   : > { %v1483_v61 = vpop.f32.mrb[62].mxu0  ;;  %v13963_v0 = vadd.f32 %v1478_v52, %v1213_v59  ;;  %v11269_v2 = vpop.f32.mrb[35].mxu1 }
 0x230   : > { %v11363_v3 = vpop.f32.mrb[63].mxu0 }
 0x232   : > { %v1218_v4 = vpop.f32.mrb[36].mxu1 }
 0x233   : > { %v1488_v6 = vpop.f32.mrb[64].mxu0  ;;  %v13966_v7 = vadd.f32 %v1483_v61, %v1218_v4  ;;  %v11272_v8 = vpop.f32.mrb[37].mxu1 }
 0x234   : > { %v11366_v9 = vpop.f32.mrb[65].mxu0 }
 0x236   : > { %v1223_v14 = vpop.f32.mrb[38].mxu1 }
 0x237   : > { %v1493_v15 = vpop.f32.mrb[66].mxu0  ;;  %v13968_v17 = vadd.f32 %v1488_v6, %v1223_v14  ;;  %v11275_v18 = vpop.f32.mrb[39].mxu1 }
 0x238   : > { %v11369_v22 = vpop.f32.mrb[67].mxu0 }
 0x23a   : > { %v1228_v23 = vpop.f32.mrb[40].mxu1 }
 0x23b   : > { %v13970_v24 = vadd.f32 %v1493_v15, %v1228_v23  ;;  %v11278_v25 = vpop.f32.mrb[41].mxu1 }
 0x23e   : > { %v1233_v27 = vpop.f32.mrb[42].mxu1 }
 0x23f   : > { %v11281_v28 = vpop.f32.mrb[43].mxu1 }
 0x242   : > { %v1238_v29 = vpop.f32.mrb[44].mxu1 }
 0x243   : > { %v11284_v30 = vpop.f32.mrb[45].mxu1 }
 0x246   : > { %v1243_v33 = vpop.f32.mrb[46].mxu1 }
 0x247   : > { %v11287_v35 = vpop.f32.mrb[47].mxu1 }
 0x24a   : > { %v1248_v38 = vpop.f32.mrb[48].mxu1 }
 0x24b   : > { %v11290_v39 = vpop.f32.mrb[49].mxu1 }
 0x24e   : > { %v1692_v41 = vpop.f32.mrb[50].mxu1 }
 0x24f   : > { %v11400_v43 = vpop.f32.mrb[51].mxu1 }
 0x252   : > { %v1697_v44 = vpop.f32.mrb[52].mxu1 }
 0x253   : > { %v11403_v45 = vpop.f32.mrb[53].mxu1 }
 0x256   : > { %v1702_v11 = vpop.f32.mrb[54].mxu1 }
 0x257   : > { %v11406_v12 = vpop.f32.mrb[55].mxu1 }
 0x25a   : > { %v1707_v46 = vpop.f32.mrb[56].mxu1 }
 0x25b   : > { %v11409_v47 = vpop.f32.mrb[57].mxu1 }
 0x25e   : > { %v1712_v49 = vpop.f32.mrb[58].mxu1 }
 0x25f   : > { %v1820_v20 = vadd.f32 %v1712_v49, %v13935_v60  ;;  %v11412_v52 = vpop.f32.mrb[59].mxu1 }
 0x261   : > { %v1850_v56 = vadd.f32 %v13987_v51, %v1820_v20 }
 0x262   : > { %v1717_v57 = vpop.f32.mrb[60].mxu1 }
 0x263   : > { %v1875_v58 = vmul.f32 0.2, %v1850_v56  ;;  %v1821_v59 = vadd.f32 %v1717_v57, %v13937_v50  ;;  %v11415_v61 = vpop.f32.mrb[61].mxu1 }
 0x265   : > { %v1900_v62 = vmax.f32 %v1850_v56, %v1875_v58  ;;  %v1851_v2 = vadd.f32 %v13987_v51, %v1821_v59 }
 0x266   : > { %v1722_v3 = vpop.f32.mrb[62].mxu1 }
 0x267   : > { %v2057_v4 = vsel %vm1982_vm7, %v1900_v62, 0.0  ;;  %v1876_v6 = vmul.f32 0.2, %v1851_v2  ;;  %v1822_v8 = vadd.f32 %v1722_v3, %v13939_v54  ;;  %v11418_v60 = vpop.f32.mrb[63].mxu1 }
 0x268   : > { %2082 = vst.msk [vmem:[#allocation3 + $0x20] sm:$0xff] %vm891_vm1, %v2057_v4 }
 0x269   : > { %v1901_v9 = vmax.f32 %v1851_v2, %v1876_v6  ;;  %v1852_v14 = vadd.f32 %v13987_v51, %v1822_v8 }
 0x26a   : > { %v1727_v15 = vpop.f32.mrb[64].mxu1 }
 0x26b   : > { %2083 = vst.msk [vmem:[#allocation3 + $0x28] sm:$0xff] %vm891_vm1, %v1901_v9  ;;  %v1877_v50 = vmul.f32 0.2, %v1852_v14  ;;  %v1823_v18 = vadd.f32 %v1727_v15, %v13941_v63  ;;  %v11421_v22 = vpop.f32.mrb[65].mxu1 }
 0x26d   : > { %v1902_v23 = vmax.f32 %v1852_v14, %v1877_v50  ;;  %v1853_v25 = vadd.f32 %v13987_v51, %v1823_v18 }
 0x26e   : > { %v1732_v27 = vpop.f32.mrb[66].mxu1 }
 0x26f   : > { %2084 = vst.msk [vmem:[#allocation3 + $0x30] sm:$0xff] %vm891_vm1, %v1902_v23  ;;  %v1878_v54 = vmul.f32 0.2, %v1853_v25  ;;  %v1824_v28 = vadd.f32 %v1732_v27, %v13944_v5  ;;  %v11424_v29 = vpop.f32.mrb[67].mxu1  ;;  %v2140_v30 = vld [vmem:[#allocation3 + $0x1a] sm:$0xff] }
 0x270   : > { %v2107_v33 = vld [vmem:[#allocation3 + $0x20] sm:$0xff]  ;;  %11499 = vmatmul.mubr.msk.f32.gmra.mrb[82].mxu0 %vm891_vm1, %v2140_v30 }
 0x271   : > { %11593 = vmatmul.mubr.msk.f32.gmra.mrb[108].mxu1 %vm891_vm1, %v2107_v33  ;;  %v1903_v35 = vmax.f32 %v1853_v25, %v1878_v54  ;;  %v1854_v63 = vadd.f32 %v13987_v51, %v1824_v28  ;;  %11501 = vmatprep.mubr.msk.f32.mxu0 %vm13384_vm2, %v13383_v42 }
 0x272   : > { %11595 = vmatprep.mubr.msk.f32.mxu1 %vm13384_vm2, %v13383_v42  ;;  %v1737_v38 = vpop.f32.mrb[68].mxu1  ;;  %v2141_v39 = vld [vmem:[#allocation3 + $0x22] sm:$0xff] }
 0x273   : > { %v2108_v41 = vld [vmem:[#allocation3 + $0x28] sm:$0xff]  ;;  %2085 = vst.msk [vmem:[#allocation3 + $0x38] sm:$0xff] %vm891_vm1, %v1903_v35  ;;  %v1879_v5 = vmul.f32 0.2, %v1854_v63  ;;  %v1825_v43 = vadd.f32 %v1737_v38, %v13946_v13  ;;  %v11427_v44 = vpop.f32.mrb[69].mxu1 }
 0x274   : > { %11502 = vmatmul.mubr.msk.f32.gmra.mrb[84].mxu0 %vm891_vm1, %v2141_v39 }
 0x275   : > { %11596 = vmatmul.mubr.msk.f32.gmra.mrb[110].mxu1 %vm891_vm1, %v2108_v41  ;;  %v1904_v45 = vmax.f32 %v1854_v63, %v1879_v5  ;;  %v1855_v11 = vadd.f32 %v13987_v51, %v1825_v43  ;;  %11504 = vmatprep.mubr.msk.f32.mxu0 %vm13384_vm2, %v13383_v42 }
 0x276   : > { %11598 = vmatprep.mubr.msk.f32.mxu1 %vm13384_vm2, %v13383_v42  ;;  %v1742_v12 = vpop.f32.mrb[70].mxu1  ;;  %v2142_v46 = vld [vmem:[#allocation3 + $0x2a] sm:$0xff] }
 0x277   : > { %v2109_v47 = vld [vmem:[#allocation3 + $0x30] sm:$0xff]  ;;  %2086 = vst.msk [vmem:[#allocation3 + $0x40] sm:$0xff] %vm891_vm1, %v1904_v45  ;;  %v1880_v13 = vmul.f32 0.2, %v1855_v11  ;;  %v1826_v49 = vadd.f32 %v1742_v12, %v13948_v21  ;;  %v11430_v20 = vpop.f32.mrb[71].mxu1 }
 0x278   : > { %11505 = vmatmul.mubr.msk.f32.gmra.mrb[86].mxu0 %vm891_vm1, %v2142_v46 }
 0x279   : > { %11599 = vmatmul.mubr.msk.f32.gmra.mrb[112].mxu1 %vm891_vm1, %v2109_v47  ;;  %v1905_v52 = vmax.f32 %v1855_v11, %v1880_v13  ;;  %v1856_v55 = vadd.f32 %v13987_v51, %v1826_v49  ;;  %11507 = vmatprep.mubr.msk.f32.mxu0 %vm13384_vm2, %v13383_v42 }
 0x27a   : > { %11601 = vmatprep.mubr.msk.f32.mxu1 %vm13384_vm2, %v13383_v42  ;;  %v1747_v56 = vpop.f32.mrb[72].mxu1  ;;  %v2143_v57 = vld [vmem:[#allocation3 + $0x32] sm:$0xff] }
 0x27b   : > { %v2110_v58 = vld [vmem:[#allocation3 + $0x38] sm:$0xff]  ;;  %2087 = vst.msk [vmem:[#allocation3 + $0x48] sm:$0xff] %vm891_vm1, %v1905_v52  ;;  %v1881_v21 = vmul.f32 0.2, %v1856_v55  ;;  %v1827_v59 = vadd.f32 %v1747_v56, %v13950_v26  ;;  %v11433_v61 = vpop.f32.mrb[73].mxu1 }
 0x27c   : > { %11508 = vmatmul.mubr.msk.f32.gmra.mrb[88].mxu0 %vm891_vm1, %v2143_v57 }
 0x27d   : > { %11602 = vmatmul.mubr.msk.f32.gmra.mrb[114].mxu1 %vm891_vm1, %v2110_v58  ;;  %v1906_v62 = vmax.f32 %v1856_v55, %v1881_v21  ;;  %v1857_v2 = vadd.f32 %v13987_v51, %v1827_v59  ;;  %11510 = vmatprep.mubr.msk.f32.mxu0 %vm13384_vm2, %v13383_v42 }
 0x27e   : > { %11604 = vmatprep.mubr.msk.f32.mxu1 %vm13384_vm2, %v13383_v42  ;;  %v1752_v3 = vpop.f32.mrb[74].mxu1  ;;  %v2144_v4 = vld [vmem:[#allocation3 + $0x3a] sm:$0xff] }
 0x27f   : > { %v2111_v6 = vld [vmem:[#allocation3 + $0x40] sm:$0xff]  ;;  %2088 = vst.msk [vmem:[#allocation3 + $0x50] sm:$0xff] %vm891_vm1, %v1906_v62  ;;  %v1882_v26 = vmul.f32 0.2, %v1857_v2  ;;  %v1828_v8 = vadd.f32 %v1752_v3, %v13952_v31  ;;  %v11436_v60 = vpop.f32.mrb[75].mxu1 }
 0x280   : > { %11511 = vmatmul.mubr.msk.f32.gmra.mrb[90].mxu0 %vm891_vm1, %v2144_v4 }
 0x281   : > { %11605 = vmatmul.mubr.msk.f32.gmra.mrb[116].mxu1 %vm891_vm1, %v2111_v6  ;;  %v1907_v9 = vmax.f32 %v1857_v2, %v1882_v26  ;;  %v1858_v14 = vadd.f32 %v13987_v51, %v1828_v8  ;;  %11513 = vmatprep.mubr.msk.f32.mxu0 %vm13384_vm2, %v13383_v42 }
 0x282   : > { %11607 = vmatprep.mubr.msk.f32.mxu1 %vm13384_vm2, %v13383_v42  ;;  %v1757_v15 = vpop.f32.mrb[76].mxu1  ;;  %v2145_v50 = vld [vmem:[#allocation3 + $0x42] sm:$0xff] }
 0x283   : > { %v2112_v18 = vld [vmem:[#allocation3 + $0x48] sm:$0xff]  ;;  %2089 = vst.msk [vmem:[#allocation3 + $0x58] sm:$0xff] %vm891_vm1, %v1907_v9  ;;  %v1883_v31 = vmul.f32 0.2, %v1858_v14  ;;  %v1829_v22 = vadd.f32 %v1757_v15, %v13954_v37  ;;  %v11439_v23 = vpop.f32.mrb[77].mxu1 }
 0x284   : > { %11514 = vmatmul.mubr.msk.f32.gmra.mrb[92].mxu0 %vm891_vm1, %v2145_v50 }
 0x285   : > { %11608 = vmatmul.mubr.msk.f32.gmra.mrb[118].mxu1 %vm891_vm1, %v2112_v18  ;;  %v1908_v25 = vmax.f32 %v1858_v14, %v1883_v31  ;;  %v1859_v27 = vadd.f32 %v13987_v51, %v1829_v22  ;;  %11516 = vmatprep.mubr.msk.f32.mxu0 %vm13384_vm2, %v13383_v42 }
 0x286   : > { %11610 = vmatprep.mubr.msk.f32.mxu1 %vm13384_vm2, %v13383_v42  ;;  %v1762_v54 = vpop.f32.mrb[78].mxu1  ;;  %v2146_v28 = vld [vmem:[#allocation3 + $0x4a] sm:$0xff] }
 0x287   : > { %v2113_v29 = vld [vmem:[#allocation3 + $0x50] sm:$0xff]  ;;  %2090 = vst.msk [vmem:[#allocation3 + $0x60] sm:$0xff] %vm891_vm1, %v1908_v25  ;;  %v1884_v37 = vmul.f32 0.2, %v1859_v27  ;;  %v1830_v30 = vadd.f32 %v1762_v54, %v13956_v10  ;;  %v11442_v33 = vpop.f32.mrb[79].mxu1  ;;  %v1973_v54 = vadd.s32 4294967260, %v13700_v34 }
 0x288   : > { %11517 = vmatmul.mubr.msk.f32.gmra.mrb[94].mxu0 %vm891_vm1, %v2146_v28 }
 0x289   : > { %11611 = vmatmul.mubr.msk.f32.gmra.mrb[120].mxu1 %vm891_vm1, %v2113_v29  ;;  %v1909_v35 = vmax.f32 %v1859_v27, %v1884_v37  ;;  %v1860_v63 = vadd.f32 %v13987_v51, %v1830_v30  ;;  %11519 = vmatprep.mubr.msk.f32.mxu0 %vm13384_vm2, %v13383_v42  ;;  %vm2023_vm8 = vcmp.lt.s32.totalorder %v1973_v54, 128 }
 0x28a   : > { %11613 = vmatprep.mubr.msk.f32.mxu1 %vm13384_vm2, %v13383_v42  ;;  %v1767_v38 = vpop.f32.mrb[80].mxu1  ;;  %v2147_v39 = vld [vmem:[#allocation3 + $0x52] sm:$0xff] }
 0x28b   : > { %v2114_v41 = vld [vmem:[#allocation3 + $0x58] sm:$0xff]  ;;  %2091 = vst.msk [vmem:[#allocation3 + $0x68] sm:$0xff] %vm891_vm1, %v1909_v35  ;;  %v1885_v10 = vmul.f32 0.2, %v1860_v63  ;;  %v1831_v5 = vadd.f32 %v1767_v38, %v13959_v48  ;;  %v11445_v43 = vpop.f32.mrb[81].mxu1 }
 0x28c   : > { %11520 = vmatmul.mubr.msk.f32.gmra.mrb[96].mxu0 %vm891_vm1, %v2147_v39  ;;  %v1498_v39 = vpop.f32.mrb[68].mxu0 }
 0x28d   : > { %11614 = vmatmul.mubr.msk.f32.gmra.mrb[122].mxu1 %vm891_vm1, %v2114_v41  ;;  %v1910_v44 = vmax.f32 %v1860_v63, %v1885_v10  ;;  %v1861_v45 = vadd.f32 %v13987_v51, %v1831_v5  ;;  %11522 = vmatprep.mubr.msk.f32.mxu0 %vm13384_vm2, %v13383_v42  ;;  %v11372_v10 = vpop.f32.mrb[69].mxu0  ;;  %v3350_v39 = vld [vmem:[#allocation5 + $0x1d8] sm:$0xff] }
 0x28e   : > { %11616 = vmatprep.mubr.msk.f32.mxu1 %vm13384_vm2, %v13383_v42  ;;  %v1772_v11 = vpop.f32.mrb[82].mxu1  ;;  %v2148_v12 = vld [vmem:[#allocation3 + $0x5a] sm:$0xff] }
 0x28f   : > { %v2115_v46 = vld [vmem:[#allocation3 + $0x60] sm:$0xff]  ;;  %2092 = vst.msk [vmem:[#allocation3 + $0x70] sm:$0xff] %vm891_vm1, %v1910_v44  ;;  %v1886_v48 = vmul.f32 0.2, %v1861_v45  ;;  %v1832_v47 = vadd.f32 %v1772_v11, %v13961_v53  ;;  %v11448_v13 = vpop.f32.mrb[83].mxu1  ;;  %v1503_v11 = vpop.f32.mrb[70].mxu0 }
 0x290   : > { %11523 = vmatmul.mubr.msk.f32.gmra.mrb[98].mxu0 %vm891_vm1, %v2148_v12  ;;  %v11375_v12 = vpop.f32.mrb[71].mxu0  ;;  %v2712_v54 = vld [vmem:[#allocation3 + $0x5c] sm:$0xff]  ;;  %v2125_v11 = vld [vmem:[#allocation3 + $0xb0] sm:$0xff] }
 0x291   : > { %11617 = vmatmul.mubr.msk.f32.gmra.mrb[124].mxu1 %vm891_vm1, %v2115_v46  ;;  %v1911_v49 = vmax.f32 %v1861_v45, %v1886_v48  ;;  %v1862_v20 = vadd.f32 %v13987_v51, %v1832_v47  ;;  %11525 = vmatprep.mubr.msk.f32.mxu0 %vm13384_vm2, %v13383_v42  ;;  %v1508_v47 = vpop.f32.mrb[72].mxu0  ;;  %v2126_v12 = vld [vmem:[#allocation3 + $0xb8] sm:$0xff] }
 0x292   : > { %11619 = vmatprep.mubr.msk.f32.mxu1 %vm13384_vm2, %v13383_v42  ;;  %v1777_v52 = vpop.f32.mrb[84].mxu1  ;;  %v2149_v55 = vld [vmem:[#allocation3 + $0x62] sm:$0xff] }
 0x293   : > { %v2116_v56 = vld [vmem:[#allocation3 + $0x68] sm:$0xff]  ;;  %2093 = vst.msk [vmem:[#allocation3 + $0x78] sm:$0xff] %vm891_vm1, %v1911_v49  ;;  %v1887_v53 = vmul.f32 0.2, %v1862_v20  ;;  %v1833_v57 = vadd.f32 %v1777_v52, %v13963_v0  ;;  %v11451_v58 = vpop.f32.mrb[85].mxu1 }
 0x294   : > { %11526 = vmatmul.mubr.msk.f32.gmra.mrb[100].mxu0 %vm891_vm1, %v2149_v55 }
 0x295   : > { %11620 = vmatmul.mubr.msk.f32.gmra.mrb[126].mxu1 %vm891_vm1, %v2116_v56  ;;  %v1912_v21 = vmax.f32 %v1862_v20, %v1887_v53  ;;  %v1863_v59 = vadd.f32 %v13987_v51, %v1833_v57  ;;  %11528 = vmatprep.mubr.msk.f32.mxu0 %vm13384_vm2, %v13383_v42  ;;  %v11378_v20 = vpop.f32.mrb[73].mxu0 }
 0x296   : > { %11622 = vmatprep.mubr.msk.f32.mxu1 %vm13384_vm2, %v13383_v42  ;;  %v1782_v61 = vpop.f32.mrb[86].mxu1  ;;  %v2150_v62 = vld [vmem:[#allocation3 + $0x6a] sm:$0xff]  ;;  %v1513_v58 = vpop.f32.mrb[74].mxu0  ;;  %v3323_v20 = vld [vmem:[#allocation2 + $0xb] sm:$0xff] }
 0x297   : > { %v2117_v2 = vld [vmem:[#allocation3 + $0x70] sm:$0xff]  ;;  %2094 = vst.msk [vmem:[#allocation3 + $0x80] sm:$0xff] %vm891_vm1, %v1912_v21  ;;  %v1888_v0 = vmul.f32 0.2, %v1863_v59  ;;  %v1834_v3 = vadd.f32 %v1782_v61, %v13966_v7  ;;  %v11454_v4 = vpop.f32.mrb[87].mxu1  ;;  %v11381_v21 = vpop.f32.mrb[75].mxu0 }
 0x298   : > { %11529 = vmatmul.mubr.msk.f32.gmra.mrb[102].mxu0 %vm891_vm1, %v2150_v62  ;;  %v2158_v61 = vld [vmem:[#allocation3 + $0xaa] sm:$0xff]  ;;  %v2159_v4 = vld [vmem:[#allocation3 + $0xb2] sm:$0xff] }
 0x299   : > { %11623 = vmatmul.mubr.msk.f32.gmra.mrb[128].mxu1 %vm891_vm1, %v2117_v2  ;;  %v1913_v6 = vmax.f32 %v1863_v59, %v1888_v0  ;;  %v1864_v26 = vadd.f32 %v13987_v51, %v1834_v3  ;;  %11531 = vmatprep.mubr.msk.f32.mxu0 %vm13384_vm2, %v13383_v42  ;;  %v2312_v2 = vpop.f32.mrb[76].mxu0 }
 0x29a   : > { %11625 = vmatprep.mubr.msk.f32.mxu1 %vm13384_vm2, %v13383_v42  ;;  %v1787_v8 = vpop.f32.mrb[88].mxu1  ;;  %v2151_v60 = vld [vmem:[#allocation3 + $0x72] sm:$0xff]  ;;  %v11491_v0 = vpop.f32.mrb[77].mxu0 }
 0x29b   : > { %v2118_v9 = vld [vmem:[#allocation3 + $0x78] sm:$0xff]  ;;  %2095 = vst.msk [vmem:[#allocation3 + $0x88] sm:$0xff] %vm891_vm1, %v1913_v6  ;;  %v1889_v7 = vmul.f32 0.2, %v1864_v26  ;;  %v1835_v14 = vadd.f32 %v1787_v8, %v13968_v17  ;;  %v11457_v15 = vpop.f32.mrb[89].mxu1 }
 0x29c   : > { %11532 = vmatmul.mubr.msk.f32.gmra.mrb[104].mxu0 %vm891_vm1, %v2151_v60 }
 0x29d   : > { %11626 = vmatmul.mubr.msk.f32.gmra.mrb[130].mxu1 %vm891_vm1, %v2118_v9  ;;  %v1914_v50 = vmax.f32 %v1864_v26, %v1889_v7  ;;  %v1865_v18 = vadd.f32 %v13987_v51, %v1835_v14  ;;  %11534 = vmatprep.mubr.msk.f32.mxu0 %vm13384_vm2, %v13383_v42  ;;  %v2317_v26 = vpop.f32.mrb[78].mxu0  ;;  %v2160_v9 = vld [vmem:[#allocation3 + $0xba] sm:$0xff] }
 0x29e   : > { %11628 = vmatprep.mubr.msk.f32.mxu1 %vm13384_vm2, %v13383_v42  ;;  %v1792_v31 = vpop.f32.mrb[90].mxu1  ;;  %v2152_v22 = vld [vmem:[#allocation3 + $0x7a] sm:$0xff]  ;;  %v11494_v8 = vpop.f32.mrb[79].mxu0 }
 0x29f   : > { %v2119_v23 = vld [vmem:[#allocation3 + $0x80] sm:$0xff]  ;;  %2096 = vst.msk [vmem:[#allocation3 + $0x90] sm:$0xff] %vm891_vm1, %v1914_v50  ;;  %v1890_v17 = vmul.f32 0.2, %v1865_v18  ;;  %v1836_v25 = vadd.f32 %v1792_v31, %v13970_v24  ;;  %v11460_v27 = vpop.f32.mrb[91].mxu1  ;;  %v2322_v14 = vpop.f32.mrb[80].mxu0 }
 0x2a0   : > { %11535 = vmatmul.mubr.msk.f32.gmra.mrb[106].mxu0 %vm891_vm1, %v2152_v22  ;;  %v11497_v15 = vpop.f32.mrb[81].mxu0  ;;  %v2704_v22 = vld [vmem:[#allocation3 + $0x1c] sm:$0xff]  ;;  %v2711_v27 = vld [vmem:[#allocation3 + $0x54] sm:$0xff] }
 0x2a1   : > { %11629 = vmatmul.mubr.msk.f32.gmra.mrb[132].mxu1 %vm891_vm1, %v2119_v23  ;;  %v1915_v28 = vmax.f32 %v1865_v18, %v1890_v17  ;;  %v1866_v29 = vadd.f32 %v13987_v51, %v1836_v25  ;;  %11537 = vmatprep.mubr.msk.f32.mxu0 %vm13384_vm2, %v13383_v42  ;;  %v2161_v18 = vld [vmem:[#allocation3 + $0xc2] sm:$0xf]  ;;  %v2710_v25 = vld [vmem:[#allocation3 + $0x4c] sm:$0xff] }
 0x2a2   : > { %11631 = vmatprep.mubr.msk.f32.mxu1 %vm13384_vm2, %v13383_v42  ;;  %v2153_v37 = vld [vmem:[#allocation3 + $0x82] sm:$0xff]  ;;  %v1797_v33 = vpop.f32.mrb[92].mxu1 }
 0x2a3   : > { %v2120_v30 = vld [vmem:[#allocation3 + $0x88] sm:$0xff]  ;;  %2097 = vst.msk [vmem:[#allocation3 + $0x98] sm:$0xff] %vm891_vm1, %v1915_v28  ;;  %v1891_v24 = vmul.f32 0.2, %v1866_v29  ;;  %v11463_v35 = vpop.f32.mrb[93].mxu1  ;;  %v2708_v23 = vld [vmem:[#allocation3 + $0x3c] sm:$0xff] }
 0x2a4   : > { %11538 = vmatmul.mubr.msk.f32.gmra.mrb[108].mxu0 %vm891_vm1, %v2153_v37  ;;  %v2709_v17 = vld [vmem:[#allocation3 + $0x44] sm:$0xff]  ;;  %v3347_v28 = vld [vmem:[#allocation5 + $0x1c0] sm:$0xff]  ;;  %v2716_v35 = vld [vmem:[#allocation3 + $0x7c] sm:$0xff] }
 0x2a5   : > { %11632 = vmatmul.mubr.msk.f32.gmra.mrb[134].mxu1 %vm891_vm1, %v2120_v30  ;;  %v1916_v63 = vmax.f32 %v1866_v29, %v1891_v24  ;;  %11540 = vmatprep.mubr.msk.f32.mxu0 %vm13384_vm2, %v13383_v42  ;;  %v3348_v29 = vld [vmem:[#allocation5 + $0x1c8] sm:$0xff]  ;;  %v2713_v30 = vld [vmem:[#allocation3 + $0x64] sm:$0xff]  ;;  %v2714_v24 = vld [vmem:[#allocation3 + $0x6c] sm:$0xff] }
 0x2a6   : > { %11634 = vmatprep.mubr.msk.f32.mxu1 %vm13384_vm2, %v13383_v42  ;;  %v2154_v51 = vld [vmem:[#allocation3 + $0x8a] sm:$0xff]  ;;  %v1802_v5 = vpop.f32.mrb[94].mxu1  ;;  %v12934_v37 = vpack.c.bf16 %v3348_v29, %v3347_v28  ;;  %v2715_v33 = vld [vmem:[#allocation3 + $0x74] sm:$0xff] }
 0x2a7   : > { %v2121_v38 = vld [vmem:[#allocation3 + $0x90] sm:$0xff]  ;;  %v2073_v41 = vsel %vm2023_vm8, %v1916_v63, 0.0  ;;  %v11466_v43 = vpop.f32.mrb[95].mxu1  ;;  %v2717_v63 = vld [vmem:[#allocation3 + $0x84] sm:$0xff] }
 0x2a8   : > { %2098 = vst.msk [vmem:[#allocation3 + $0xa0] sm:$0xff] %vm891_vm1, %v2073_v41  ;;  %11541 = vmatmul.mubr.msk.f32.gmra.mrb[110].mxu0 %vm891_vm1, %v2154_v51  ;;  %12935 = vmatprep.subr.bf16.mxu1 %v12934_v37  ;;  %v2718_v51 = vld [vmem:[#allocation3 + $0x8c] sm:$0xff]  ;;  %v3352_v43 = vld [vmem:[#allocation5 + $0x1e8] sm:$0xff] }
 0x2a9   : > { %11635 = vmatmul.mubr.msk.f32.gmra.mrb[136].mxu1 %vm891_vm1, %v2121_v38  ;;  %11543 = vmatprep.mubr.msk.f32.mxu0 %vm13384_vm2, %v13383_v42  ;;  %v3349_v38 = vld [vmem:[#allocation5 + $0x1d0] sm:$0xff]  ;;  %v3351_v5 = vld [vmem:[#allocation5 + $0x1e0] sm:$0xff] }
 0x2aa   : > { %11637 = vmatprep.mubr.msk.f32.mxu1 %vm13384_vm2, %v13383_v42  ;;  %v2155_v44 = vld [vmem:[#allocation3 + $0x92] sm:$0xff]  ;;  %v1807_v46 = vpop.f32.mrb[96].mxu1  ;;  %12937 = vmatpush3.bf16.msra.mxu1 %v12934_v37  ;;  %v12938_v41 = vpack.c.bf16 %v3350_v39, %v3349_v38 }
 0x2ab   : > { %v2122_v45 = vld [vmem:[#allocation3 + $0x98] sm:$0xff]  ;;  %v11469_v48 = vpop.f32.mrb[97].mxu1  ;;  %v3353_v46 = vld [vmem:[#allocation5 + $0x1f0] sm:$0xff] }
 0x2ac   : > { %11544 = vmatmul.mubr.msk.f32.gmra.mrb[112].mxu0 %vm891_vm1, %v2155_v44  ;;  %v2719_v10 = vld [vmem:[#allocation3 + $0x94] sm:$0xff]  ;;  %12939 = vmatprep.subr.bf16.mxu1 %v12938_v41  ;;  %v12942_v44 = vpack.c.bf16 %v3352_v43, %v3351_v5  ;;  %v3354_v48 = vld [vmem:[#allocation5 + $0x1f8] sm:$0xff] }
 0x2ad   : > { %11638 = vmatmul.mubr.msk.f32.gmra.mrb[138].mxu1 %vm891_vm1, %v2122_v45  ;;  %11546 = vmatprep.mubr.msk.f32.mxu0 %vm13384_vm2, %v13383_v42  ;;  %v2124_v45 = vld [vmem:[#allocation3 + $0xa8] sm:$0xff]  ;;  %v12946_v47 = vpack.c.bf16 %v3354_v48, %v3353_v46 }
 0x2ae   : > { %11640 = vmatprep.mubr.msk.f32.mxu1 %vm13384_vm2, %v13383_v42  ;;  %v1812_v52 = vpop.f32.mrb[98].mxu1  ;;  %12941 = vmatpush3.bf16.msra.mxu1 %v12938_v41 }
 0x2af   : > { %v2156_v13 = vld [vmem:[#allocation3 + $0x9a] sm:$0xff]  ;;  %v2157_v55 = vld [vmem:[#allocation3 + $0xa2] sm:$0xff]  ;;  %v11472_v57 = vpop.f32.mrb[99].mxu1  ;;  %12943 = vmatprep.subr.bf16.mxu1 %v12942_v44 }
 0x2b0   : > { %v2123_v49 = vld [vmem:[#allocation3 + $0xa0] sm:$0xff]  ;;  %11547 = vmatmul.mubr.msk.f32.gmra.mrb[114].mxu0 %vm891_vm1, %v2156_v13 }
 0x2b1   : > { %11641 = vmatmul.mubr.msk.f32.gmra.mrb[140].mxu1 %vm891_vm1, %v2123_v49  ;;  %v14140_v56 = vld [vmem:[#allocation3 + $0x9c] sm:$0xff]  ;;  %v14142_v53 = vld [vmem:[#allocation3 + $0xa4] sm:$0xff]  ;;  %11549 = vmatprep.mubr.msk.f32.mxu0 %vm13384_vm2, %v13383_v42  ;;  %v3322_v49 = vld [vmem:[#allocation2 + $0x3] sm:$0xff] }
 0x2b2   : > { %4432 = vst.msk [vmem:[#allocation3 + $0xa0] sm:$0xff] %vm891_vm1, %v13383_v42  ;;  %11643 = vmatprep.mubr.msk.f32.mxu1 %vm13384_vm2, %v13383_v42  ;;  %v2577_v59 = vpop.f32.mrb[100].mxu1  ;;  %12945 = vmatpush3.bf16.msra.mxu1 %v12942_v44  ;;  %v2127_v13 = vld [vmem:[#allocation3 + $0xc0] sm:$0xf] }
 0x2b3   : > { %v11582_v62 = vpop.f32.mrb[101].mxu1  ;;  %12947 = vmatprep.subr.bf16.mxu1 %v12946_v47  ;;  %v3324_v52 = vld [vmem:[#allocation2 + $0x13] sm:$0xff] }
 0x2b4   : > { %11550 = vmatmul.mubr.msk.f32.gmra.mrb[116].mxu0 %vm891_vm1, %v2157_v55 }
 0x2b5   : > { %11552 = vmatprep.mubr.msk.f32.mxu0 %vm13384_vm2, %v13383_v42  ;;  %11644 = vmatmul.mubr.msk.f32.gmra.mrb[142].mxu1 %vm891_vm1, %v2124_v45 }
 0x2b6   : > { %v2582_v3 = vpop.f32.mrb[102].mxu1  ;;  %11646 = vmatprep.mubr.msk.f32.mxu1 %vm13384_vm2, %v13383_v42  ;;  %12949 = vmatpush3.bf16.msra.mxu1 %v12946_v47 }
 0x2b7   : > { %v11585_v6 = vpop.f32.mrb[103].mxu1 }
 0x2b8   : > { %11553 = vmatmul.mubr.msk.f32.gmra.mrb[118].mxu0 %vm891_vm1, %v2158_v61 }
 0x2b9   : > { %11555 = vmatprep.mubr.msk.f32.mxu0 %vm13384_vm2, %v13383_v42  ;;  %11647 = vmatmul.mubr.msk.f32.gmra.mrb[144].mxu1 %vm891_vm1, %v2125_v11 }
 0x2ba   : > { %v2587_v60 = vpop.f32.mrb[104].mxu1  ;;  %11649 = vmatprep.mubr.msk.f32.mxu1 %vm13384_vm2, %v13383_v42 }
 0x2bb   : > { %v11588_v7 = vpop.f32.mrb[105].mxu1 }
 0x2bc   : > { %11556 = vmatmul.mubr.msk.f32.gmra.mrb[120].mxu0 %vm891_vm1, %v2159_v4 }
 0x2bd   : > { %11558 = vmatprep.mubr.msk.f32.mxu0 %vm13384_vm2, %v13383_v42  ;;  %11650 = vmatmul.mubr.msk.f32.gmra.mrb[146].mxu1 %vm891_vm1, %v2126_v12 }
 0x2be   : > { %v2592_v50 = vpop.f32.mrb[106].mxu1  ;;  %11652 = vmatprep.mubr.msk.f32.mxu1 %vm13384_vm2, %v13383_v42 }
 0x2bf   : > { %v11591_v31 = vpop.f32.mrb[107].mxu1 }
 0x2c0   : > { %11559 = vmatmul.mubr.msk.f32.gmra.mrb[122].mxu0 %vm891_vm1, %v2160_v9 }
 0x2c1   : > { %11561 = vmatprep.mubr.msk.f32.mxu0 %vm13384_vm2, %v13383_v42  ;;  %11653 = vmatmul.mubr.msk.f32.gmra.mrb[148].mxu1 %vm891_vm1, %v2127_v13 }
 0x2c2   : > { %11762 = vmatprep.mubr.msk.f32.mxu1 %vm891_vm1, %v3322_v49 }
 0x2c4   : > { %11562 = vmatmul.mubr.msk.f32.gmra.mrb[124].mxu0 %vm891_vm1, %v2161_v18 }
 0x2c5   : > { %11671 = vmatprep.mubr.msk.f32.mxu0 %vm13384_vm2, %v13383_v42  ;;  %11763 = vmatmul.mubr.msk.f32.vlgmr.msra.gmra.mrb[150].mxu1 %vm891_vm1, %v3323_v20  ;;  %v3316_v20 = vld [vmem:[#allocation5 + $0x190] sm:$0xff] }
 0x2c6   : > { %11765 = vmatprep.mubr.msk.f32.mxu1 %vm891_vm1, %v3324_v52  ;;  %v3317_v52 = vld [vmem:[#allocation5 + $0x198] sm:$0xff] }
 0x2c8   : > { %11672 = vmatmul.mubr.msk.f32.vlgmr.msra.gmra.mrb[126].mxu0 %vm891_vm1, %v13972_v32  ;;  %v2705_v32 = vld [vmem:[#allocation3 + $0x24] sm:$0xff] }
 0x2c9   : > { %11674 = vmatprep.mubr.msk.f32.mxu0 %vm13384_vm2, %v13383_v42 }
 0x2cc   : > { %11675 = vmatmul.mubr.msk.f32.gmra.mrb[128].mxu0 %vm891_vm1, %v13976_v36  ;;  %v2706_v36 = vld [vmem:[#allocation3 + $0x2c] sm:$0xff] }
 0x2cd   : > { %11677 = vmatprep.mubr.msk.f32.mxu0 %vm13384_vm2, %v13383_v42 }
 0x2d0   : > { %11678 = vmatmul.mubr.msk.f32.gmra.mrb[130].mxu0 %vm891_vm1, %v13980_v40  ;;  %v2707_v40 = vld [vmem:[#allocation3 + $0x34] sm:$0xff] }
 0x2d1   : > { %11680 = vmatprep.mubr.msk.f32.mxu0 %vm13384_vm2, %v13383_v42 }
 0x2d4   : > { %11681 = vmatmul.mubr.msk.f32.gmra.mrb[132].mxu0 %vm891_vm1, %v2704_v22 }
 0x2d5   : > { %11683 = vmatprep.mubr.msk.f32.mxu0 %vm13384_vm2, %v13383_v42 }
 0x2d8   : > { %11684 = vmatmul.mubr.msk.f32.gmra.mrb[134].mxu0 %vm891_vm1, %v2705_v32 }
 0x2d9   : > { %11686 = vmatprep.mubr.msk.f32.mxu0 %vm13384_vm2, %v13383_v42 }
 0x2dc   : > { %11687 = vmatmul.mubr.msk.f32.gmra.mrb[136].mxu0 %vm891_vm1, %v2706_v36 }
 0x2dd   : > { %11689 = vmatprep.mubr.msk.f32.mxu0 %vm13384_vm2, %v13383_v42 }
 0x2e0   : > { %11690 = vmatmul.mubr.msk.f32.gmra.mrb[138].mxu0 %vm891_vm1, %v2707_v40 }
 0x2e1   : > { %11692 = vmatprep.mubr.msk.f32.mxu0 %vm13384_vm2, %v13383_v42 }
 0x2e4   : > { %11693 = vmatmul.mubr.msk.f32.gmra.mrb[140].mxu0 %vm891_vm1, %v2708_v23 }
 0x2e5   : > { %11695 = vmatprep.mubr.msk.f32.mxu0 %vm13384_vm2, %v13383_v42 }
 0x2e8   : > { %11696 = vmatmul.mubr.msk.f32.gmra.mrb[142].mxu0 %vm891_vm1, %v2709_v17 }
 0x2e9   : > { %11698 = vmatprep.mubr.msk.f32.mxu0 %vm13384_vm2, %v13383_v42 }
 0x2ec   : > { %11699 = vmatmul.mubr.msk.f32.gmra.mrb[144].mxu0 %vm891_vm1, %v2710_v25 }
 0x2ed   : > { %11701 = vmatprep.mubr.msk.f32.mxu0 %vm13384_vm2, %v13383_v42 }
 0x2f0   : > { %11702 = vmatmul.mubr.msk.f32.gmra.mrb[146].mxu0 %vm891_vm1, %v2711_v27 }
 0x2f1   : > { %11704 = vmatprep.mubr.msk.f32.mxu0 %vm13384_vm2, %v13383_v42 }
 0x2f4   : > { %11705 = vmatmul.mubr.msk.f32.gmra.mrb[148].mxu0 %vm891_vm1, %v2712_v54 }
 0x2f5   : > { %11707 = vmatprep.mubr.msk.f32.mxu0 %vm13384_vm2, %v13383_v42 }
 0x2f8   : > { %11708 = vmatmul.mubr.msk.f32.gmra.mrb[150].mxu0 %vm891_vm1, %v2713_v30 }
 0x2f9   : > { %11710 = vmatprep.mubr.msk.f32.mxu0 %vm13384_vm2, %v13383_v42 }
 0x2fc   : > { %11711 = vmatmul.mubr.msk.f32.gmra.mrb[152].mxu0 %vm891_vm1, %v2714_v24 }
 0x2fd   : > { %11713 = vmatprep.mubr.msk.f32.mxu0 %vm13384_vm2, %v13383_v42 }
 0x300   : > { %11714 = vmatmul.mubr.msk.f32.gmra.mrb[154].mxu0 %vm891_vm1, %v2715_v33 }
 0x301   : > { %11716 = vmatprep.mubr.msk.f32.mxu0 %vm13384_vm2, %v13383_v42 }
 0x304   : > { %11717 = vmatmul.mubr.msk.f32.gmra.mrb[156].mxu0 %vm891_vm1, %v2716_v35  ;;  %v3314_v35 = vld [vmem:[#allocation5 + $0x180] sm:$0xff] }
 0x305   : > { %11719 = vmatprep.mubr.msk.f32.mxu0 %vm13384_vm2, %v13383_v42 }
 0x308   : > { %11720 = vmatmul.mubr.msk.f32.gmra.mrb[158].mxu0 %vm891_vm1, %v2717_v63  ;;  %v3315_v63 = vld [vmem:[#allocation5 + $0x188] sm:$0xff] }
 0x309   : > { %11722 = vmatprep.mubr.msk.f32.mxu0 %vm13384_vm2, %v13383_v42 }
 0x30c   : > { %11723 = vmatmul.mubr.msk.f32.gmra.mrb[160].mxu0 %vm891_vm1, %v2718_v51  ;;  %v12950_v51 = vpack.c.bf16 %v3315_v63, %v3314_v35 }
 0x30d   : > { %11725 = vmatprep.mubr.msk.f32.mxu0 %vm13384_vm2, %v13383_v42 }
 0x30e   : > { %12951 = vmatprep.subr.bf16.mxu1 %v12950_v51 }
 0x30f   : > { %12953 = vmatpush3.bf16.msra.mxu1 %v12950_v51 }
 0x310   : > { %11726 = vmatmul.mubr.msk.f32.gmra.mrb[162].mxu0 %vm891_vm1, %v2719_v10 }
 0x311   : > { %11728 = vmatprep.mubr.msk.f32.mxu0 %vm13384_vm2, %v13383_v42 }
 0x314   : > { %11729 = vmatmul.mubr.msk.f32.gmra.mrb[164].mxu0 %vm891_vm1, %v14140_v56 }
 0x315   : > { %11731 = vmatprep.mubr.msk.f32.mxu0 %vm13384_vm2, %v13383_v42 }
 0x318   : > { %11732 = vmatmul.mubr.msk.f32.gmra.mrb[166].mxu0 %vm891_vm1, %v14142_v53 }
 0x319   : > { %11734 = vmatprep.mubr.msk.f32.mxu0 %vm13384_vm2, %v13383_v42 }
 0x343   : > { %v2327_v55 = vpop.f32.mrb[82].mxu0 }
 0x344   : > { %v2597_v56 = vpop.f32.mrb[108].mxu1  ;;  %v11500_v53 = vpop.f32.mrb[83].mxu0  ;;  %v12954_v55 = vpack.c.bf16 %v3317_v52, %v3316_v20 }
 0x345   : > { %v11594_v57 = vpop.f32.mrb[109].mxu1 }
 0x346   : > { %12955 = vmatprep.subr.bf16.mxu1 %v12954_v55 }
 0x347   : > { %v2332_v58 = vpop.f32.mrb[84].mxu0  ;;  %12957 = vmatpush3.bf16.msra.mxu1 %v12954_v55 }
 0x348   : > { %v2602_v21 = vpop.f32.mrb[110].mxu1  ;;  %v14246_v59 = vadd.f32 %v2597_v56, %v2332_v58  ;;  %v11503_v61 = vpop.f32.mrb[85].mxu0 }
 0x349   : > { %v11597_v62 = vpop.f32.mrb[111].mxu1 }
 0x34b   : > { %v2337_v2 = vpop.f32.mrb[86].mxu0 }
 0x34c   : > { %v2607_v0 = vpop.f32.mrb[112].mxu1  ;;  %v14248_v3 = vadd.f32 %v2602_v21, %v2337_v2  ;;  %v11506_v4 = vpop.f32.mrb[87].mxu0 }
 0x34d   : > { %v11600_v6 = vpop.f32.mrb[113].mxu1 }
 0x34e   : > { %v3318_v6 = vld [vmem:[#allocation5 + $0x1a0] sm:$0xff] }
 0x34f   : > { %v2342_v26 = vpop.f32.mrb[88].mxu0 }
 0x350   : > { %v2612_v8 = vpop.f32.mrb[114].mxu1  ;;  %v14250_v60 = vadd.f32 %v2607_v0, %v2342_v26  ;;  %v11509_v9 = vpop.f32.mrb[89].mxu0  ;;  %v3319_v26 = vld [vmem:[#allocation5 + $0x1a8] sm:$0xff] }
 0x351   : > { %v11603_v7 = vpop.f32.mrb[115].mxu1 }
 0x353   : > { %v2347_v14 = vpop.f32.mrb[90].mxu0 }
 0x354   : > { %v2617_v15 = vpop.f32.mrb[116].mxu1  ;;  %v14252_v50 = vadd.f32 %v2612_v8, %v2347_v14  ;;  %v11512_v18 = vpop.f32.mrb[91].mxu0  ;;  %v12958_v8 = vpack.c.bf16 %v3319_v26, %v3318_v6 }
 0x355   : > { %v11606_v31 = vpop.f32.mrb[117].mxu1 }
 0x356   : > { %12959 = vmatprep.subr.bf16.mxu1 %v12958_v8  ;;  %v3320_v31 = vld [vmem:[#allocation5 + $0x1b0] sm:$0xff] }
 0x357   : > { %v2352_v22 = vpop.f32.mrb[92].mxu0  ;;  %12961 = vmatpush3.bf16.msra.mxu1 %v12958_v8  ;;  %v14286_v8 = vld [vmem:[%s16062_s4 + $0x1] ss:$0 sm:$0xff] }
 0x358   : > { %v2622_v32 = vpop.f32.mrb[118].mxu1  ;;  %v14254_v36 = vadd.f32 %v2617_v15, %v2352_v22  ;;  %v11515_v40 = vpop.f32.mrb[93].mxu0  ;;  %v3321_v22 = vld [vmem:[#allocation5 + $0x1b8] sm:$0xff] }
 0x359   : > { %v11609_v23 = vpop.f32.mrb[119].mxu1 }
 0x35b   : > { %v2357_v17 = vpop.f32.mrb[94].mxu0 }
 0x35c   : > { %v2627_v25 = vpop.f32.mrb[120].mxu1  ;;  %v14256_v27 = vadd.f32 %v2622_v32, %v2357_v17  ;;  %v11518_v54 = vpop.f32.mrb[95].mxu0  ;;  %v12962_v32 = vpack.c.bf16 %v3321_v22, %v3320_v31 }
 0x35d   : > { %v11612_v28 = vpop.f32.mrb[121].mxu1 }
 0x35e   : > { %12963 = vmatprep.subr.bf16.mxu1 %v12962_v32 }
 0x35f   : > { %v2362_v29 = vpop.f32.mrb[96].mxu0  ;;  %12965 = vmatpush3.bf16.msra.mxu1 %v12962_v32 }
 0x360   : > { %v2632_v37 = vpop.f32.mrb[122].mxu1  ;;  %v14258_v30 = vadd.f32 %v2627_v25, %v2362_v29  ;;  %v11521_v24 = vpop.f32.mrb[97].mxu0 }
 0x361   : > { %v11615_v33 = vpop.f32.mrb[123].mxu1 }
 0x363   : > { %v2367_v38 = vpop.f32.mrb[98].mxu0 }
 0x364   : > { %v2637_v39 = vpop.f32.mrb[124].mxu1  ;;  %v14260_v41 = vadd.f32 %v2632_v37, %v2367_v38  ;;  %v11524_v10 = vpop.f32.mrb[99].mxu0 }
 0x365   : > { %v11618_v5 = vpop.f32.mrb[125].mxu1  ;;  %v3894_v10 = vld [vmem:[#allocation5 + $0x200] sm:$0xff] }
 0x366   : > { %v3895_v5 = vld [vmem:[#allocation5 + $0x208] sm:$0xff] }
 0x367   : > { %v2372_v43 = vpop.f32.mrb[100].mxu0 }
 0x368   : > { %v2642_v44 = vpop.f32.mrb[126].mxu1  ;;  %v14262_v45 = vadd.f32 %v2637_v39, %v2372_v43  ;;  %v11527_v11 = vpop.f32.mrb[101].mxu0 }
 0x369   : > { %v11621_v12 = vpop.f32.mrb[127].mxu1 }
 0x36b   : > { %v2377_v46 = vpop.f32.mrb[102].mxu0 }
 0x36c   : > { %v2647_v48 = vpop.f32.mrb[128].mxu1  ;;  %v14264_v47 = vadd.f32 %v2642_v44, %v2377_v46  ;;  %v11530_v13 = vpop.f32.mrb[103].mxu0  ;;  %v14278_v44 = vpack.c.bf16 %v3895_v5, %v3894_v10 }
 0x36d   : > { %v11624_v49 = vpop.f32.mrb[129].mxu1 }
 0x36e   : > { %12967 = vmatprep.subr.bf16.mxu1 %v14278_v44 }
 0x36f   : > { %v2382_v56 = vpop.f32.mrb[104].mxu0 }
 0x370   : > { %v2652_v53 = vpop.f32.mrb[130].mxu1  ;;  %v14266_v57 = vadd.f32 %v2647_v48, %v2382_v56  ;;  %v11533_v58 = vpop.f32.mrb[105].mxu0 }
 0x371   : > { %v11627_v21 = vpop.f32.mrb[131].mxu1 }
 0x373   : > { %v2387_v61 = vpop.f32.mrb[106].mxu0 }
 0x374   : > { %v2657_v62 = vpop.f32.mrb[132].mxu1  ;;  %v11536_v2 = vpop.f32.mrb[107].mxu0  ;;  %v14268_v4 = vadd.f32 %v2652_v53, %v2387_v61 }
 0x375   : > { %v11630_v0 = vpop.f32.mrb[133].mxu1 }
 0x377   : > { %v2392_v9 = vpop.f32.mrb[108].mxu0 }
 0x378   : > { %v2662_v7 = vpop.f32.mrb[134].mxu1  ;;  %v11539_v14 = vpop.f32.mrb[109].mxu0  ;;  %v14270_v18 = vadd.f32 %v2657_v62, %v2392_v9 }
 0x379   : > { %v11633_v15 = vpop.f32.mrb[135].mxu1  ;;  %v3142_v14 = vadd.s32 4294967262, %v13640_v19  ;;  %v14295_v19 = vld [vmem:[#allocation2] sm:$0xff] }
 0x37b   : > { %v2397_v40 = vpop.f32.mrb[110].mxu0  ;;  %vm3167_vm9 = vcmp.ge.s32.totalorder %v3142_v14, 0 }
 0x37c   : > { %v2667_v23 = vpop.f32.mrb[136].mxu1  ;;  %v11542_v17 = vpop.f32.mrb[111].mxu0  ;;  %v14272_v54 = vadd.f32 %v2662_v7, %v2397_v40 }
 0x37d   : > { %v11636_v25 = vpop.f32.mrb[137].mxu1 }
 0x37f   : > { %v2402_v28 = vpop.f32.mrb[112].mxu0 }
 0x380   : > { %v2672_v29 = vpop.f32.mrb[138].mxu1  ;;  %v11545_v37 = vpop.f32.mrb[113].mxu0  ;;  %v14274_v33 = vadd.f32 %v2667_v23, %v2402_v28 }
 0x381   : > { %v11639_v24 = vpop.f32.mrb[139].mxu1 }
 0x382   : > { %v14297_v24 = vld [vmem:[#allocation2 + $0x6] sm:$0xff] }
 0x383   : > { %v2407_v35 = vpop.f32.mrb[114].mxu0  ;;  %5523 = vst.msk [vmem:[#allocation2] sm:$0xff] %vm891_vm1, %v13383_v42 }
 0x384   : > { %v2677_v63 = vpop.f32.mrb[140].mxu1  ;;  %v11548_v51 = vpop.f32.mrb[115].mxu0  ;;  %v14276_v39 = vadd.f32 %v2672_v29, %v2407_v35 }
 0x385   : > { %v11642_v38 = vpop.f32.mrb[141].mxu1  ;;  %v14304_v51 = vld [vmem:[#allocation2 + $0xe] sm:$0xff] }
 0x387   : > { %v2412_v43 = vpop.f32.mrb[116].mxu0 }
 0x388   : > { %v11551_v11 = vpop.f32.mrb[117].mxu0  ;;  %v14280_v12 = vadd.f32 %v2677_v63, %v2412_v43  ;;  %v14300_v63 = vld [vmem:[#allocation2 + $0x8] sm:$0xff]  ;;  %v14310_v43 = vld [vmem:[#allocation2 + $0x10] sm:$0xff] }
 0x389   : > { %5524 = vst.msk [vmem:[#allocation2 + $0x8] sm:$0xff] %vm891_vm1, %v13383_v42  ;;  %v14312_v11 = vld [vmem:[#allocation2 + $0x16] sm:$0xff] }
 0x38a   : > { %5525 = vst.msk [vmem:[#allocation2 + $0x10] sm:$0xff] %vm891_vm1, %v13383_v42 }
 0x38b   : > { %v2417_v46 = vpop.f32.mrb[118].mxu0 }
 0x38c   : > { %v11554_v48 = vpop.f32.mrb[119].mxu0 }
 0x38f   : > { %v2422_v13 = vpop.f32.mrb[120].mxu0 }
 0x390   : > { %v11557_v49 = vpop.f32.mrb[121].mxu0 }
 0x393   : > { %v2427_v20 = vpop.f32.mrb[122].mxu0 }
 0x394   : > { %v11560_v52 = vpop.f32.mrb[123].mxu0 }
 0x397   : > { %v2432_v55 = vpop.f32.mrb[124].mxu0 }
 0x398   : > { %v11563_v56 = vpop.f32.mrb[125].mxu0 }
 0x39b   : > { %v2876_v53 = vpop.f32.mrb[126].mxu0 }
 0x39c   : > { %v11673_v58 = vpop.f32.mrb[127].mxu0 }
 0x39f   : > { %v2881_v21 = vpop.f32.mrb[128].mxu0 }
 0x3a0   : > { %v11676_v61 = vpop.f32.mrb[129].mxu0 }
 0x3a3   : > { %v2886_v62 = vpop.f32.mrb[130].mxu0 }
 0x3a4   : > { %v11679_v2 = vpop.f32.mrb[131].mxu0 }
 0x3a7   : > { %v2891_v0 = vpop.f32.mrb[132].mxu0 }
 0x3a8   : > { %v11682_v6 = vpop.f32.mrb[133].mxu0 }
 0x3ab   : > { %v2896_v26 = vpop.f32.mrb[134].mxu0 }
 0x3ac   : > { %v3004_v9 = vadd.f32 %v2896_v26, %v14246_v59  ;;  %v11685_v7 = vpop.f32.mrb[135].mxu0 }
 0x3ae   : > { %v3034_v15 = vadd.f32 %v14286_v8, %v3004_v9 }
 0x3af   : > { %v2901_v31 = vpop.f32.mrb[136].mxu0 }
 0x3b0   : > { %v3059_v22 = vmul.f32 0.2, %v3034_v15  ;;  %v3005_v32 = vadd.f32 %v2901_v31, %v14248_v3  ;;  %v11688_v40 = vpop.f32.mrb[137].mxu0 }
 0x3b2   : > { %v3084_v23 = vmax.f32 %v3034_v15, %v3059_v22  ;;  %v3035_v17 = vadd.f32 %v14286_v8, %v3005_v32 }
 0x3b3   : > { %v2906_v25 = vpop.f32.mrb[138].mxu0 }
 0x3b4   : > { %v3242_v28 = vsel %vm3167_vm9, %v3084_v23, 0.0  ;;  %v3060_v29 = vmul.f32 0.2, %v3035_v17  ;;  %v3006_v37 = vadd.f32 %v2906_v25, %v14250_v60  ;;  %v11691_v59 = vpop.f32.mrb[139].mxu0 }
 0x3b5   : > { %3267 = vst.msk [vmem:[#allocation2 + $0x20] sm:$0xff] %vm891_vm1, %v3242_v28 }
 0x3b6   : > { %v3085_v35 = vmax.f32 %v3035_v17, %v3060_v29  ;;  %v3036_v3 = vadd.f32 %v14286_v8, %v3006_v37 }
 0x3b7   : > { %v2911_v38 = vpop.f32.mrb[140].mxu0 }
 0x3b8   : > { %3268 = vst.msk [vmem:[#allocation2 + $0x28] sm:$0xff] %vm891_vm1, %v3085_v35  ;;  %v3061_v60 = vmul.f32 0.2, %v3036_v3  ;;  %v3007_v10 = vadd.f32 %v2911_v38, %v14252_v50  ;;  %v11694_v5 = vpop.f32.mrb[141].mxu0 }
 0x3ba   : > { %v3086_v46 = vmax.f32 %v3036_v3, %v3061_v60  ;;  %v3037_v48 = vadd.f32 %v14286_v8, %v3007_v10 }
 0x3bb   : > { %v2916_v13 = vpop.f32.mrb[142].mxu0 }
 0x3bc   : > { %3269 = vst.msk [vmem:[#allocation2 + $0x30] sm:$0xff] %vm891_vm1, %v3086_v46  ;;  %v3062_v49 = vmul.f32 0.2, %v3037_v48  ;;  %v3008_v20 = vadd.f32 %v2916_v13, %v14254_v36  ;;  %v11697_v52 = vpop.f32.mrb[143].mxu0  ;;  %v3325_v55 = vld [vmem:[#allocation2 + $0x1b] sm:$0xff] }
 0x3bd   : > { %11766 = vmatmul.mubr.msk.f32.gmra.mrb[152].mxu1 %vm891_vm1, %v3325_v55 }
 0x3be   : > { %v3087_v50 = vmax.f32 %v3037_v48, %v3062_v49  ;;  %v3038_v56 = vadd.f32 %v14286_v8, %v3008_v20 }
 0x3bf   : > { %v2921_v53 = vpop.f32.mrb[144].mxu0  ;;  %v3326_v58 = vld [vmem:[#allocation2 + $0x23] sm:$0xff] }
 0x3c0   : > { %3270 = vst.msk [vmem:[#allocation2 + $0x38] sm:$0xff] %vm891_vm1, %v3087_v50  ;;  %v3063_v21 = vmul.f32 0.2, %v3038_v56  ;;  %v3009_v61 = vadd.f32 %v2921_v53, %v14256_v27  ;;  %v11700_v62 = vpop.f32.mrb[145].mxu0  ;;  %11768 = vmatprep.mubr.msk.f32.mxu1 %vm891_vm1, %v3326_v58 }
 0x3c2   : > { %v3088_v2 = vmax.f32 %v3038_v56, %v3063_v21  ;;  %v3039_v36 = vadd.f32 %v14286_v8, %v3009_v61 }
 0x3c3   : > { %v2926_v0 = vpop.f32.mrb[146].mxu0  ;;  %v3327_v6 = vld [vmem:[#allocation2 + $0x2b] sm:$0xff] }
 0x3c4   : > { %3271 = vst.msk [vmem:[#allocation2 + $0x40] sm:$0xff] %vm891_vm1, %v3088_v2  ;;  %v3064_v26 = vmul.f32 0.2, %v3039_v36  ;;  %v3010_v9 = vadd.f32 %v2926_v0, %v14258_v30  ;;  %v11703_v7 = vpop.f32.mrb[147].mxu0  ;;  %11769 = vmatmul.mubr.msk.f32.gmra.mrb[154].mxu1 %vm891_vm1, %v3327_v6 }
 0x3c6   : > { %v3089_v14 = vmax.f32 %v3039_v36, %v3064_v26  ;;  %v3040_v15 = vadd.f32 %v14286_v8, %v3010_v9 }
 0x3c7   : > { %v2931_v27 = vpop.f32.mrb[148].mxu0  ;;  %v3328_v31 = vld [vmem:[#allocation2 + $0x33] sm:$0xff] }
 0x3c8   : > { %3272 = vst.msk [vmem:[#allocation2 + $0x48] sm:$0xff] %vm891_vm1, %v3089_v14  ;;  %v3065_v22 = vmul.f32 0.2, %v3040_v15  ;;  %v3011_v32 = vadd.f32 %v2931_v27, %v14260_v41  ;;  %v11706_v40 = vpop.f32.mrb[149].mxu0  ;;  %11771 = vmatprep.mubr.msk.f32.mxu1 %vm891_vm1, %v3328_v31 }
 0x3ca   : > { %v3090_v23 = vmax.f32 %v3040_v15, %v3065_v22  ;;  %v3041_v17 = vadd.f32 %v14286_v8, %v3011_v32 }
 0x3cb   : > { %v2936_v30 = vpop.f32.mrb[150].mxu0  ;;  %v3329_v25 = vld [vmem:[#allocation2 + $0x3b] sm:$0xff] }
 0x3cc   : > { %3273 = vst.msk [vmem:[#allocation2 + $0x50] sm:$0xff] %vm891_vm1, %v3090_v23  ;;  %v3066_v28 = vmul.f32 0.2, %v3041_v17  ;;  %v3012_v29 = vadd.f32 %v2936_v30, %v14262_v45  ;;  %v11709_v37 = vpop.f32.mrb[151].mxu0  ;;  %11772 = vmatmul.mubr.msk.f32.gmra.mrb[156].mxu1 %vm891_vm1, %v3329_v25 }
 0x3ce   : > { %v3091_v59 = vmax.f32 %v3041_v17, %v3066_v28  ;;  %v3042_v35 = vadd.f32 %v14286_v8, %v3012_v29 }
 0x3cf   : > { %v2941_v41 = vpop.f32.mrb[152].mxu0  ;;  %v3330_v3 = vld [vmem:[#allocation2 + $0x43] sm:$0xff] }
 0x3d0   : > { %3274 = vst.msk [vmem:[#allocation2 + $0x58] sm:$0xff] %vm891_vm1, %v3091_v59  ;;  %v3067_v38 = vmul.f32 0.2, %v3042_v35  ;;  %v3013_v60 = vadd.f32 %v2941_v41, %v14264_v47  ;;  %v11712_v10 = vpop.f32.mrb[153].mxu0  ;;  %11774 = vmatprep.mubr.msk.f32.mxu1 %vm891_vm1, %v3330_v3 }
 0x3d1   : > { %v3158_v10 = vadd.s32 4294967262, %v13700_v34 }
 0x3d2   : > { %v3092_v5 = vmax.f32 %v3042_v35, %v3067_v38  ;;  %v3043_v46 = vadd.f32 %v14286_v8, %v3013_v60 }
 0x3d3   : > { %v2946_v45 = vpop.f32.mrb[154].mxu0  ;;  %v3331_v48 = vld [vmem:[#allocation2 + $0x4b] sm:$0xff]  ;;  %vm3208_vm10 = vcmp.lt.s32.totalorder %v3158_v10, 128 }
 0x3d4   : > { %3275 = vst.msk [vmem:[#allocation2 + $0x60] sm:$0xff] %vm891_vm1, %v3092_v5  ;;  %v3068_v13 = vmul.f32 0.2, %v3043_v46  ;;  %v3014_v49 = vadd.f32 %v2946_v45, %v14266_v57  ;;  %v11715_v20 = vpop.f32.mrb[155].mxu0  ;;  %11775 = vmatmul.mubr.msk.f32.gmra.mrb[158].mxu1 %vm891_vm1, %v3331_v48 }
 0x3d6   : > { %v3093_v52 = vmax.f32 %v3043_v46, %v3068_v13  ;;  %v3044_v55 = vadd.f32 %v14286_v8, %v3014_v49 }
 0x3d7   : > { %v2951_v47 = vpop.f32.mrb[156].mxu0  ;;  %v3332_v50 = vld [vmem:[#allocation2 + $0x53] sm:$0xff] }
 0x3d8   : > { %3276 = vst.msk [vmem:[#allocation2 + $0x68] sm:$0xff] %vm891_vm1, %v3093_v52  ;;  %v3069_v56 = vmul.f32 0.2, %v3044_v55  ;;  %v3015_v53 = vadd.f32 %v2951_v47, %v14268_v4  ;;  %v11718_v58 = vpop.f32.mrb[157].mxu0  ;;  %11777 = vmatprep.mubr.msk.f32.mxu1 %vm891_vm1, %v3332_v50 }
 0x3da   : > { %v3094_v21 = vmax.f32 %v3044_v55, %v3069_v56  ;;  %v3045_v61 = vadd.f32 %v14286_v8, %v3015_v53  ;;  %v3343_v56 = vld [vmem:[#allocation2 + $0xab] sm:$0xff]  ;;  %v3344_v53 = vld [vmem:[#allocation2 + $0xb3] sm:$0xff] }
 0x3db   : > { %v2956_v57 = vpop.f32.mrb[158].mxu0  ;;  %v3333_v62 = vld [vmem:[#allocation2 + $0x5b] sm:$0xff] }
 0x3dc   : > { %3277 = vst.msk [vmem:[#allocation2 + $0x70] sm:$0xff] %vm891_vm1, %v3094_v21  ;;  %v3070_v2 = vmul.f32 0.2, %v3045_v61  ;;  %v3016_v36 = vadd.f32 %v2956_v57, %v14270_v18  ;;  %v11721_v0 = vpop.f32.mrb[159].mxu0  ;;  %11778 = vmatmul.mubr.msk.f32.gmra.mrb[160].mxu1 %vm891_vm1, %v3333_v62  ;;  %v3345_v21 = vld [vmem:[#allocation2 + $0xbb] sm:$0x3f] }
 0x3dd   : > { %v3896_v57 = vld [vmem:[#allocation5 + $0x210] sm:$0xff]  ;;  %v3897_v62 = vld [vmem:[#allocation5 + $0x218] sm:$0xff] }
 0x3de   : > { %v3095_v6 = vmax.f32 %v3045_v61, %v3070_v2  ;;  %v3046_v26 = vadd.f32 %v14286_v8, %v3016_v36  ;;  %v12970_v0 = vpack.c.bf16 %v3897_v62, %v3896_v57  ;;  %v4499_v57 = vld [vmem:[#allocation5 + $0x2b0] sm:$0xff] }
 0x3df   : > { %v2961_v4 = vpop.f32.mrb[160].mxu0  ;;  %v3334_v9 = vld [vmem:[#allocation2 + $0x63] sm:$0xff] }
 0x3e0   : > { %3278 = vst.msk [vmem:[#allocation2 + $0x78] sm:$0xff] %vm891_vm1, %v3095_v6  ;;  %v3071_v7 = vmul.f32 0.2, %v3046_v26  ;;  %v3017_v14 = vadd.f32 %v2961_v4, %v14272_v54  ;;  %v11724_v15 = vpop.f32.mrb[161].mxu0  ;;  %11780 = vmatprep.mubr.msk.f32.mxu1 %vm891_vm1, %v3334_v9  ;;  %v3898_v6 = vld [vmem:[#allocation5 + $0x220] sm:$0xff]  ;;  %v3292_v9 = vld [vmem:[#allocation2 + $0x18] sm:$0xff] }
 0x3e1   : > { %v3900_v15 = vld [vmem:[#allocation5 + $0x230] sm:$0xff] }
 0x3e2   : > { %v3096_v27 = vmax.f32 %v3046_v26, %v3071_v7  ;;  %v3047_v31 = vadd.f32 %v14286_v8, %v3017_v14  ;;  %v3899_v26 = vld [vmem:[#allocation5 + $0x228] sm:$0xff] }
 0x3e3   : > { %v2966_v18 = vpop.f32.mrb[162].mxu0  ;;  %v3335_v22 = vld [vmem:[#allocation2 + $0x6b] sm:$0xff]  ;;  %v12974_v14 = vpack.c.bf16 %v3899_v26, %v3898_v6 }
 0x3e4   : > { %3279 = vst.msk [vmem:[#allocation2 + $0x80] sm:$0xff] %vm891_vm1, %v3096_v27  ;;  %v3072_v32 = vmul.f32 0.2, %v3047_v31  ;;  %v3018_v40 = vadd.f32 %v2966_v18, %v14274_v33  ;;  %v11727_v23 = vpop.f32.mrb[163].mxu0  ;;  %11781 = vmatmul.mubr.msk.f32.gmra.mrb[162].mxu1 %vm891_vm1, %v3335_v22  ;;  %v3901_v27 = vld [vmem:[#allocation5 + $0x238] sm:$0xff]  ;;  %v3295_v22 = vld [vmem:[#allocation2 + $0x30] sm:$0xff] }
 0x3e5   : > { %v12978_v18 = vpack.c.bf16 %v3901_v27, %v3900_v15  ;;  %v2723_v26 = vld [vmem:[#allocation3 + $0xb4] sm:$0xff]  ;;  %v2724_v27 = vld [vmem:[#allocation3 + $0xbc] sm:$0xff] }
 0x3e6   : > { %v3097_v17 = vmax.f32 %v3047_v31, %v3072_v32  ;;  %v3048_v30 = vadd.f32 %v14286_v8, %v3018_v40  ;;  %v4494_v32 = vld [vmem:[#allocation5 + $0x288] sm:$0xff]  ;;  %v4495_v40 = vld [vmem:[#allocation5 + $0x290] sm:$0xff]  ;;  %4436 = vst.msk [vmem:[#allocation3 + $0xb8] sm:$0x3f] %vm4435_vm11, %v13383_v42 }
 0x3e7   : > { %v2971_v54 = vpop.f32.mrb[164].mxu0  ;;  %v3336_v25 = vld [vmem:[#allocation2 + $0x73] sm:$0xff] }
 0x3e8   : > { %3280 = vst.msk [vmem:[#allocation2 + $0x88] sm:$0xff] %vm891_vm1, %v3097_v17  ;;  %v3073_v28 = vmul.f32 0.2, %v3048_v30  ;;  %v3019_v29 = vadd.f32 %v2971_v54, %v14276_v39  ;;  %v11730_v37 = vpop.f32.mrb[165].mxu0  ;;  %11783 = vmatprep.mubr.msk.f32.mxu1 %vm891_vm1, %v3336_v25  ;;  %v4496_v17 = vld [vmem:[#allocation5 + $0x298] sm:$0xff] }
 0x3e9   : > { %v12986_v54 = vpack.c.bf16 %v4496_v17, %v4495_v40  ;;  %v3297_v25 = vld [vmem:[#allocation2 + $0x40] sm:$0xff]  ;;  %v3300_v37 = vld [vmem:[#allocation2 + $0x58] sm:$0xff] }
 0x3ea   : > { %v3098_v59 = vmax.f32 %v3048_v30, %v3073_v28  ;;  %v3049_v35 = vadd.f32 %v14286_v8, %v3019_v29  ;;  %v3296_v30 = vld [vmem:[#allocation2 + $0x38] sm:$0xff]  ;;  %v3298_v28 = vld [vmem:[#allocation2 + $0x48] sm:$0xff]  ;;  %v3299_v29 = vld [vmem:[#allocation2 + $0x50] sm:$0xff] }
 0x3eb   : > { %v2976_v33 = vpop.f32.mrb[166].mxu0  ;;  %v3337_v41 = vld [vmem:[#allocation2 + $0x7b] sm:$0xff] }
 0x3ec   : > { %3281 = vst.msk [vmem:[#allocation2 + $0x90] sm:$0xff] %vm891_vm1, %v3098_v59  ;;  %v3074_v3 = vmul.f32 0.2, %v3049_v35  ;;  %v3020_v38 = vadd.f32 %v2976_v33, %v14280_v12  ;;  %v11733_v60 = vpop.f32.mrb[167].mxu0  ;;  %11784 = vmatmul.mubr.msk.f32.gmra.mrb[164].mxu1 %vm891_vm1, %v3337_v41  ;;  %v3301_v59 = vld [vmem:[#allocation2 + $0x60] sm:$0xff]  ;;  %v3303_v33 = vld [vmem:[#allocation2 + $0x70] sm:$0xff] }
 0x3ed   : > { %v3304_v41 = vld [vmem:[#allocation2 + $0x78] sm:$0xff] }
 0x3ee   : > { %v3099_v5 = vmax.f32 %v3049_v35, %v3074_v3  ;;  %v3050_v39 = vadd.f32 %v14286_v8, %v3020_v38  ;;  %v2682_v8 = vpop.f32.mrb[142].mxu1  ;;  %v3302_v35 = vld [vmem:[#allocation2 + $0x68] sm:$0xff]  ;;  %v3305_v3 = vld [vmem:[#allocation2 + $0x80] sm:$0xff]  ;;  %v4469_v17 = vld [vmem:[#allocation3 + $0x4] sm:$0xff] }
 0x3ef   : > { %v3338_v46 = vld [vmem:[#allocation2 + $0x83] sm:$0xff]  ;;  %v11645_v50 = vpop.f32.mrb[143].mxu1  ;;  %v3882_v8 = vld [vmem:[#allocation2 + $0x6e] sm:$0xff]  ;;  %v5030_v40 = vld [vmem:[#allocation5 + $0x2f8] sm:$0xff] }
 0x3f0   : > { %3282 = vst.msk [vmem:[#allocation2 + $0x98] sm:$0xff] %vm891_vm1, %v3099_v5  ;;  %v3075_v45 = vmul.f32 0.2, %v3050_v39  ;;  %11786 = vmatprep.mubr.msk.f32.mxu1 %vm891_vm1, %v3338_v46  ;;  %v2687_v58 = vpop.f32.mrb[144].mxu1  ;;  %v3306_v38 = vld [vmem:[#allocation2 + $0x88] sm:$0xff]  ;;  %v3884_v50 = vld [vmem:[#allocation2 + $0x7e] sm:$0xff] }
 0x3f1   : > { %v11648_v61 = vpop.f32.mrb[145].mxu1  ;;  %v3310_v5 = vld [vmem:[#allocation2 + $0xa8] sm:$0xff]  ;;  %v3312_v46 = vld [vmem:[#allocation2 + $0xb8] sm:$0x3f] }
 0x3f2   : > { %v3100_v48 = vmax.f32 %v3050_v39, %v3075_v45  ;;  %v2692_v2 = vpop.f32.mrb[146].mxu1  ;;  %v3311_v39 = vld [vmem:[#allocation2 + $0xb0] sm:$0xff]  ;;  %v3872_v45 = vld [vmem:[#allocation2 + $0x1e] sm:$0xff] }
 0x3f3   : > { %v3339_v13 = vld [vmem:[#allocation2 + $0x8b] sm:$0xff]  ;;  %v11651_v36 = vpop.f32.mrb[147].mxu1  ;;  %v4500_v2 = vld [vmem:[#allocation5 + $0x2b8] sm:$0xff] }
 0x3f4   : > { %v3258_v49 = vsel %vm3208_vm10, %v3100_v48, 0.0  ;;  %11787 = vmatmul.mubr.msk.f32.gmra.mrb[166].mxu1 %vm891_vm1, %v3339_v13  ;;  %v2697_v4 = vpop.f32.mrb[148].mxu1  ;;  %v3307_v60 = vld [vmem:[#allocation2 + $0x90] sm:$0xff]  ;;  %v3873_v48 = vld [vmem:[#allocation2 + $0x26] sm:$0xff]  ;;  %v12992_v36 = vpack.c.bf16 %v4500_v2, %v4499_v57 }
 0x3f5   : > { %3283 = vst.msk [vmem:[#allocation2 + $0xa0] sm:$0xff] %vm891_vm1, %v3258_v49  ;;  %v11654_v7 = vpop.f32.mrb[149].mxu1  ;;  %v3874_v13 = vld [vmem:[#allocation2 + $0x2e] sm:$0xff]  ;;  %v3875_v49 = vld [vmem:[#allocation2 + $0x36] sm:$0xff] }
 0x3f6   : > { %v11764_v31 = vpop.f32.mrb[150].mxu1  ;;  %v4498_v61 = vld [vmem:[#allocation5 + $0x2a8] sm:$0xff]  ;;  %v5025_v4 = vld [vmem:[#allocation5 + $0x2d0] sm:$0xff] }
 0x3f7   : > { %v3340_v12 = vld [vmem:[#allocation2 + $0x93] sm:$0xff] }
 0x3f8   : > { %11789 = vmatprep.mubr.msk.f32.mxu1 %vm891_vm1, %v3340_v12  ;;  %v3308_v10 = vld [vmem:[#allocation2 + $0x98] sm:$0xff]  ;;  %v3890_v31 = vld [vmem:[#allocation2 + $0xae] sm:$0xff] }
 0x3f9   : > { %v3876_v12 = vld [vmem:[#allocation2 + $0x3e] sm:$0xff]  ;;  %v3887_v58 = vld [vmem:[#allocation2 + $0x96] sm:$0xff]  ;;  %5546 = vst.msk [vmem:[#allocation2 + $0xb0] sm:$0x3f] %vm4435_vm11, %v13383_v42 }
 0x3fc   : > { %v3341_v34 = vld [vmem:[#allocation2 + $0x9b] sm:$0xff]  ;;  %v3342_v20 = vld [vmem:[#allocation2 + $0xa3] sm:$0xff] }
 0x3fd   : > { %11790 = vmatmul.mubr.msk.f32.gmra.mrb[168].mxu1 %vm891_vm1, %v3341_v34  ;;  %v14376_v52 = vld [vmem:[#allocation2 + $0xa0] sm:$0xff] }
 0x3fe   : > { %v14378_v55 = vld [vmem:[#allocation2 + $0x9e] sm:$0xff]  ;;  %v14380_v47 = vld [vmem:[#allocation2 + $0xa6] sm:$0xff]  ;;  %11792 = vmatprep.mubr.msk.f32.mxu1 %vm891_vm1, %v3342_v20 }
 0x3ff   : > { %5543 = vst.msk [vmem:[#allocation2 + $0xa0] sm:$0xff] %vm891_vm1, %v13383_v42  ;;  %v3880_v34 = vld [vmem:[#allocation2 + $0x5e] sm:$0xff]  ;;  %v3881_v20 = vld [vmem:[#allocation2 + $0x66] sm:$0xff]  ;;  %5544 = vst.msk [vmem:[#allocation2 + $0xa8] sm:$0xff] %vm891_vm1, %v13383_v42 }
 0x401   : > { %11793 = vmatmul.mubr.msk.f32.gmra.mrb[170].mxu1 %vm891_vm1, %v3343_v56  ;;  %v3885_v56 = vld [vmem:[#allocation2 + $0x86] sm:$0xff] }
 0x402   : > { %11795 = vmatprep.mubr.msk.f32.mxu1 %vm891_vm1, %v3344_v53  ;;  %v3886_v53 = vld [vmem:[#allocation2 + $0x8e] sm:$0xff] }
 0x405   : > { %11796 = vmatmul.mubr.msk.f32.gmra.mrb[172].mxu1 %vm891_vm1, %v3345_v21  ;;  %v4497_v21 = vld [vmem:[#allocation5 + $0x2a0] sm:$0xff] }
 0x406   : > { %11814 = vmatprep.mubr.msk.f32.mxu1 %vm891_vm1, %v14295_v19  ;;  %v3293_v19 = vld [vmem:[#allocation2 + $0x20] sm:$0xff]  ;;  %v12989_v62 = vpack.c.bf16 %v4498_v61, %v4497_v21 }
 0x407   : > { %v14512_v21 = vld [vmem:[%s16062_s4 + $0x2] ss:$0 sm:$0xff] }
 0x409   : > { %11815 = vmatmul.mubr.msk.f32.vlgmr.msra.gmra.mrb[174].mxu1 %vm891_vm1, %v14300_v63  ;;  %v3493_v63 = vpop.f32.mrb[151].mxu1 }
 0x40a   : > { %12969 = vmatpush3.bf16.msra.mxu1 %v14278_v44  ;;  %11817 = vmatprep.mubr.msk.f32.mxu1 %vm891_vm1, %v14310_v43  ;;  %v3294_v44 = vld [vmem:[#allocation2 + $0x28] sm:$0xff] }
 0x40b   : > { %12971 = vmatprep.subr.bf16.mxu1 %v12970_v0  ;;  %v4493_v43 = vld [vmem:[#allocation5 + $0x280] sm:$0xff]  ;;  %v5028_v63 = vld [vmem:[#allocation5 + $0x2e8] sm:$0xff] }
 0x40c   : > { %v12983_v23 = vpack.c.bf16 %v4494_v32, %v4493_v43  ;;  %v5029_v43 = vld [vmem:[#allocation5 + $0x2f0] sm:$0xff]  ;;  %v3892_v32 = vld [vmem:[#allocation2 + $0xbe] sm:$0x3f] }
 0x40d   : > { %11818 = vmatmul.mubr.msk.f32.gmra.mrb[176].mxu1 %vm891_vm1, %v3292_v9  ;;  %v5026_v9 = vld [vmem:[#allocation5 + $0x2d8] sm:$0xff] }
 0x40e   : > { %11820 = vmatprep.mubr.msk.f32.mxu1 %vm891_vm1, %v3293_v19  ;;  %12973 = vmatpush3.bf16.msra.mxu1 %v12970_v0  ;;  %v2722_v0 = vld [vmem:[#allocation3 + $0xac] sm:$0xff]  ;;  %v13010_v7 = vpack.c.bf16 %v5026_v9, %v5025_v4 }
 0x40f   : > { %12975 = vmatprep.subr.bf16.mxu1 %v12974_v14  ;;  %12984 = vmatpush3.bf16.msra.mxu0 %v12983_v23  ;;  %4433 = vst.msk [vmem:[#allocation3 + $0xa8] sm:$0xff] %vm891_vm1, %v13383_v42  ;;  %4434 = vst.msk [vmem:[#allocation3 + $0xb0] sm:$0xff] %vm891_vm1, %v13383_v42  ;;  %v5027_v19 = vld [vmem:[#allocation5 + $0x2e0] sm:$0xff]  ;;  %v13016_v23 = vpack.c.bf16 %v5030_v40, %v5029_v43 }
 0x410   : > { %12985 = vmatprep.subr.bf16.mxu0 %v13382_v1  ;;  %11735 = vmatmul.mubr.msk.f32.gmra.mrb[168].mxu0 %vm891_vm1, %v2722_v0 }
 0x411   : > { %11821 = vmatmul.mubr.msk.f32.gmra.mrb[154].mxu1 %vm891_vm1, %v3294_v44  ;;  %11737 = vmatprep.mubr.msk.f32.mxu0 %vm13384_vm2, %v13383_v42  ;;  %v2725_v44 = vld [vmem:[#allocation3 + $0xc4] sm:$0xf] }
 0x412   : > { %11823 = vmatprep.mubr.msk.f32.mxu1 %vm891_vm1, %v3295_v22  ;;  %12977 = vmatpush3.bf16.msra.mxu1 %v12974_v14  ;;  %v3891_v22 = vld [vmem:[#allocation2 + $0xb6] sm:$0xff] }
 0x413   : > { %12979 = vmatprep.subr.bf16.mxu1 %v12978_v18  ;;  %12987 = vmatpush3.bf16.msra.mxu0 %v12986_v54  ;;  %v4470_v54 = vld [vmem:[#allocation3 + $0xc] sm:$0xff] }
 0x414   : > { %12988 = vmatprep.subr.bf16.mxu0 %v13382_v1  ;;  %11738 = vmatmul.mubr.msk.f32.gmra.mrb[170].mxu0 %vm891_vm1, %v2723_v26 }
 0x415   : > { %11824 = vmatmul.mubr.msk.f32.gmra.mrb[156].mxu1 %vm891_vm1, %v3296_v30  ;;  %11740 = vmatprep.mubr.msk.f32.mxu0 %vm13384_vm2, %v13383_v42  ;;  %v14477_v30 = vld [vmem:[#allocation3 + $0x8] sm:$0xff] }
 0x416   : > { %11826 = vmatprep.mubr.msk.f32.mxu1 %vm891_vm1, %v3297_v25  ;;  %12981 = vmatpush3.bf16.msra.mxu1 %v12978_v18  ;;  %v13013_v18 = vpack.c.bf16 %v5028_v63, %v5027_v19  ;;  %v14488_v25 = vld [vmem:[#allocation3 + $0x10] sm:$0xff]  ;;  %6597 = vst.msk [vmem:[#allocation3 + $0x8] sm:$0xff] %vm891_vm1, %v13383_v42 }
 0x417   : > { %13006 = vmatprep.subr.bf16.mxu1 %v13382_v1  ;;  %12990 = vmatpush3.bf16.msra.mxu0 %v12989_v62 }
 0x418   : > { %12991 = vmatprep.subr.bf16.mxu0 %v13382_v1  ;;  %11741 = vmatmul.mubr.msk.f32.gmra.mrb[172].mxu0 %vm891_vm1, %v2724_v27 }
 0x419   : > { %11827 = vmatmul.mubr.msk.f32.gmra.mrb[158].mxu1 %vm891_vm1, %v3298_v28  ;;  %11743 = vmatprep.mubr.msk.f32.mxu0 %vm13384_vm2, %v13383_v42  ;;  %v4461_v28 = vld [vmem:[#allocation5 + $0x240] sm:$0xff] }
 0x41a   : > { %11829 = vmatprep.mubr.msk.f32.mxu1 %vm891_vm1, %v3299_v29  ;;  %v4462_v29 = vld [vmem:[#allocation5 + $0x248] sm:$0xff] }
 0x41b   : > { %12993 = vmatpush3.bf16.msra.mxu0 %v12992_v36 }
 0x41c   : > { %12994 = vmatprep.subr.bf16.mxu0 %v13382_v1  ;;  %11744 = vmatmul.mubr.msk.f32.gmra.mrb[174].mxu0 %vm891_vm1, %v2725_v44 }
 0x41d   : > { %11830 = vmatmul.mubr.msk.f32.gmra.mrb[160].mxu1 %vm891_vm1, %v3300_v37  ;;  %11918 = vmatprep.mubr.msk.f32.mxu0 %vm13384_vm2, %v13383_v42  ;;  %v12995_v37 = vpack.c.bf16 %v4462_v29, %v4461_v28 }
 0x41e   : > { %11832 = vmatprep.mubr.msk.f32.mxu1 %vm891_vm1, %v3301_v59  ;;  %v4463_v59 = vld [vmem:[#allocation5 + $0x250] sm:$0xff] }
 0x420   : > { %11919 = vmatmul.mubr.msk.f32.vlgmr.msra.gmra.mrb[176].mxu0 %vm891_vm1, %v4469_v17 }
 0x421   : > { %11833 = vmatmul.mubr.msk.f32.gmra.mrb[162].mxu1 %vm891_vm1, %v3302_v35  ;;  %11921 = vmatprep.mubr.msk.f32.mxu0 %vm13384_vm2, %v13383_v42  ;;  %v4464_v35 = vld [vmem:[#allocation5 + $0x258] sm:$0xff] }
 0x422   : > { %11835 = vmatprep.mubr.msk.f32.mxu1 %vm891_vm1, %v3303_v33  ;;  %12996 = vmatpush3.bf16.msra.mxu0 %v12995_v37  ;;  %v12998_v33 = vpack.c.bf16 %v4464_v35, %v4463_v59 }
 0x423   : > { %12997 = vmatprep.subr.bf16.mxu0 %v13382_v1 }
 0x424   : > { %11922 = vmatmul.mubr.msk.f32.gmra.mrb[178].mxu0 %vm891_vm1, %v4470_v54 }
 0x425   : > { %11836 = vmatmul.mubr.msk.f32.gmra.mrb[164].mxu1 %vm891_vm1, %v3304_v41  ;;  %11924 = vmatprep.mubr.msk.f32.mxu0 %vm13384_vm2, %v13383_v42  ;;  %v4465_v41 = vld [vmem:[#allocation5 + $0x260] sm:$0xff] }
 0x426   : > { %11838 = vmatprep.mubr.msk.f32.mxu1 %vm891_vm1, %v3305_v3  ;;  %12999 = vmatpush3.bf16.msra.mxu0 %v12998_v33  ;;  %v4466_v3 = vld [vmem:[#allocation5 + $0x268] sm:$0xff] }
 0x427   : > { %13000 = vmatprep.subr.bf16.mxu0 %v13382_v1 }
 0x429   : > { %11839 = vmatmul.mubr.msk.f32.gmra.mrb[166].mxu1 %vm891_vm1, %v3306_v38  ;;  %v13001_v38 = vpack.c.bf16 %v4466_v3, %v4465_v41 }
 0x42a   : > { %11841 = vmatprep.mubr.msk.f32.mxu1 %vm891_vm1, %v3307_v60 }
 0x42b   : > { %13002 = vmatpush3.bf16.msra.mxu0 %v13001_v38 }
 0x42c   : > { %13003 = vmatprep.subr.bf16.mxu0 %v13382_v1 }
 0x42d   : > { %11842 = vmatmul.mubr.msk.f32.gmra.mrb[168].mxu1 %vm891_vm1, %v3308_v10 }
 0x42e   : > { %11844 = vmatprep.mubr.msk.f32.mxu1 %vm891_vm1, %v14376_v52  ;;  %v3883_v52 = vld [vmem:[#allocation2 + $0x76] sm:$0xff] }
 0x431   : > { %11845 = vmatmul.mubr.msk.f32.gmra.mrb[178].mxu1 %vm891_vm1, %v3310_v5 }
 0x432   : > { %11847 = vmatprep.mubr.msk.f32.mxu1 %vm891_vm1, %v3311_v39 }
 0x435   : > { %11848 = vmatmul.mubr.msk.f32.gmra.mrb[180].mxu1 %vm891_vm1, %v3312_v46 }
 0x436   : > { %11866 = vmatprep.mubr.msk.f32.mxu1 %vm891_vm1, %v14297_v24  ;;  %v3877_v24 = vld [vmem:[#allocation2 + $0x46] sm:$0xff] }
 0x439   : > { %11867 = vmatmul.mubr.msk.f32.vlgmr.msra.gmra.mrb[182].mxu1 %vm891_vm1, %v14304_v51  ;;  %v3878_v51 = vld [vmem:[#allocation2 + $0x4e] sm:$0xff] }
 0x43a   : > { %11869 = vmatprep.mubr.msk.f32.mxu1 %vm891_vm1, %v14312_v11  ;;  %v3879_v11 = vld [vmem:[#allocation2 + $0x56] sm:$0xff] }
 0x43d   : > { %11870 = vmatmul.mubr.msk.f32.gmra.mrb[184].mxu1 %vm891_vm1, %v3872_v45 }
 0x43e   : > { %11872 = vmatprep.mubr.msk.f32.mxu1 %vm891_vm1, %v3873_v48  ;;  %v4467_v48 = vld [vmem:[#allocation5 + $0x270] sm:$0xff] }
 0x441   : > { %11873 = vmatmul.mubr.msk.f32.gmra.mrb[154].mxu1 %vm891_vm1, %v3874_v13  ;;  %v4468_v13 = vld [vmem:[#allocation5 + $0x278] sm:$0xff] }
 0x442   : > { %11875 = vmatprep.mubr.msk.f32.mxu1 %vm891_vm1, %v3875_v49  ;;  %v13004_v49 = vpack.c.bf16 %v4468_v13, %v4467_v48 }
 0x444   : > { %13005 = vmatpush3.bf16.msra.mxu0 %v13004_v49 }
 0x445   : > { %11876 = vmatmul.mubr.msk.f32.gmra.mrb[156].mxu1 %vm891_vm1, %v3876_v12 }
 0x446   : > { %11878 = vmatprep.mubr.msk.f32.mxu1 %vm891_vm1, %v3877_v24 }
 0x449   : > { %11879 = vmatmul.mubr.msk.f32.gmra.mrb[158].mxu1 %vm891_vm1, %v3878_v51 }
 0x44a   : > { %11881 = vmatprep.mubr.msk.f32.mxu1 %vm891_vm1, %v3879_v11  ;;  %v14502_v11 = vld [vmem:[#allocation3] sm:$0xff] }
 0x44b   : > { %6596 = vst.msk [vmem:[#allocation3] sm:$0xff] %vm891_vm1, %v13383_v42 }
 0x44d   : > { %11882 = vmatmul.mubr.msk.f32.gmra.mrb[160].mxu1 %vm891_vm1, %v3880_v34 }
 0x44e   : > { %11884 = vmatprep.mubr.msk.f32.mxu1 %vm891_vm1, %v3881_v20 }
 0x451   : > { %11885 = vmatmul.mubr.msk.f32.gmra.mrb[162].mxu1 %vm891_vm1, %v3882_v8 }
 0x452   : > { %11887 = vmatprep.mubr.msk.f32.mxu1 %vm891_vm1, %v3883_v52 }
 0x455   : > { %11888 = vmatmul.mubr.msk.f32.gmra.mrb[164].mxu1 %vm891_vm1, %v3884_v50 }
 0x456   : > { %11890 = vmatprep.mubr.msk.f32.mxu1 %vm891_vm1, %v3885_v56 }
 0x459   : > { %11891 = vmatmul.mubr.msk.f32.gmra.mrb[166].mxu1 %vm891_vm1, %v3886_v53  ;;  %v14507_v53 = vadd.s32 24, %v13637_v16 }
 0x45a   : > { %11893 = vmatprep.mubr.msk.f32.mxu1 %vm891_vm1, %v3887_v58 }
 0x45b   : > { %v4295_v62 = vadd.s32 4294967265, %v14507_v53 }
 0x45d   : > { %11894 = vmatmul.mubr.msk.f32.gmra.mrb[168].mxu1 %vm891_vm1, %v14378_v55  ;;  %v5023_v55 = vld [vmem:[#allocation5 + $0x2c0] sm:$0xff]  ;;  %vm4319_vm12 = vcmp.ge.s32.totalorder %v4295_v62, 0 }
 0x45e   : > { %11896 = vmatprep.mubr.msk.f32.mxu1 %vm891_vm1, %v14380_v47  ;;  %v5024_v47 = vld [vmem:[#allocation5 + $0x2c8] sm:$0xff] }
 0x45f   : > { %v13007_v6 = vpack.c.bf16 %v5024_v47, %v5023_v55 }
 0x461   : > { %13008 = vmatpush3.bf16.msra.mxu1 %v13007_v6 }
 0x462   : > { %13009 = vmatprep.subr.bf16.mxu1 %v13382_v1  ;;  %11897 = vmatmul.mubr.msk.f32.gmra.mrb[186].mxu1 %vm891_vm1, %v3890_v31 }
 0x463   : > { %11899 = vmatprep.mubr.msk.f32.mxu1 %vm891_vm1, %v3891_v22 }
 0x465   : > { %13011 = vmatpush3.bf16.msra.mxu1 %v13010_v7 }
 0x466   : > { %13012 = vmatprep.subr.bf16.mxu1 %v13382_v1  ;;  %11900 = vmatmul.mubr.msk.f32.gmra.mrb[188].mxu1 %vm891_vm1, %v3892_v32 }
 0x467   : > { %12088 = vmatprep.mubr.msk.f32.mxu1 %vm13384_vm2, %v13383_v42 }
 0x469   : > { %13014 = vmatpush3.bf16.msra.mxu1 %v13013_v18 }
 0x46a   : > { %13015 = vmatprep.subr.bf16.mxu1 %v13382_v1 }
 0x46d   : > { %13017 = vmatpush3.bf16.msra.mxu1 %v13016_v23 }
 0x470   : > { %12089 = vmatmul.mubr.msk.f32.vlgmr.msra.gmra.mrb[190].mxu1 %vm891_vm1, %v14477_v30 }
 0x471   : > { %12091 = vmatprep.mubr.msk.f32.mxu1 %vm13384_vm2, %v13383_v42 }
 0x474   : > { %12092 = vmatmul.mubr.msk.f32.gmra.mrb[192].mxu1 %vm891_vm1, %v14488_v25 }
 0x475   : > { %12094 = vmatprep.mubr.msk.f32.mxu1 %vm13384_vm2, %v13383_v42 }
 0x490   : > { %v14459_v14 = vpop.f32.mrb[152].mxu1 }
 0x491   : > { %v3503_v15 = vpop.f32.mrb[153].mxu1 }
 0x4d4   : > { %v11794_v60 = vpop.f32.mrb[170].mxu1 }
 0x4d5   : > { %v3593_v10 = vpop.f32.mrb[171].mxu1 }
 0x4d8   : > { %v11797_v5 = vpop.f32.mrb[172].mxu1 }
 0x4d9   : > { %v3603_v39 = vpop.f32.mrb[173].mxu1 }
 0x4dc   : > { %v11816_v46 = vpop.f32.mrb[174].mxu1 }
 0x4dd   : > { %v3750_v45 = vpop.f32.mrb[175].mxu1 }
 0x4e0   : > { %v11819_v12 = vpop.f32.mrb[176].mxu1 }
 0x4e1   : > { %v3766_v24 = vadd.f32 %v11819_v12, %v14459_v14  ;;  %v3760_v51 = vpop.f32.mrb[177].mxu1 }
 0x504   : > { %v11846_v34 = vpop.f32.mrb[178].mxu1 }
 0x505   : > { %v3850_v20 = vpop.f32.mrb[179].mxu1 }
 0x508   : > { %v11849_v8 = vpop.f32.mrb[180].mxu1 }
 0x509   : > { %v3860_v52 = vpop.f32.mrb[181].mxu1 }
 0x50c   : > { %v11868_v50 = vpop.f32.mrb[182].mxu1 }
 0x50d   : > { %v4040_v56 = vpop.f32.mrb[183].mxu1 }
 0x510   : > { %v11871_v58 = vpop.f32.mrb[184].mxu1 }
 0x511   : > { %v4162_v61 = vadd.f32 %v11871_v58, %v3766_v24  ;;  %v4050_v57 = vpop.f32.mrb[185].mxu1 }
 0x513   : > { %v4191_v2 = vadd.f32 %v14512_v21, %v4162_v61 }
 0x514   : > { %v11874_v36 = vpop.f32.mrb[154].mxu1 }
 0x515   : > { %v4215_v0 = vmul.f32 0.2, %v4191_v2  ;;  %v4193_v55 = vadd.f32 %v11874_v36, %v14512_v21  ;;  %v4060_v47 = vpop.f32.mrb[155].mxu1  ;;  %v14567_v36 = vadd.s32 152, %v13637_v16 }
 0x516   : > { %v4192_v6 = vadd.f32 %v14512_v21, %v4060_v47 }
 0x517   : > { %v4239_v26 = vmax.f32 %v4191_v2, %v4215_v0  ;;  %v4217_v4 = vmul.f32 0.2, %v4193_v55 }
 0x518   : > { %v4216_v9 = vmul.f32 0.2, %v4192_v6  ;;  %v11877_v7 = vpop.f32.mrb[156].mxu1 }
 0x519   : > { %v4391_v14 = vsel %vm4319_vm12, %v4239_v26, 0.0  ;;  %v4241_v15 = vmax.f32 %v4193_v55, %v4217_v4  ;;  %v4195_v27 = vadd.f32 %v11877_v7, %v14512_v21  ;;  %v4070_v19 = vpop.f32.mrb[157].mxu1 }
 0x51a   : > { %4415 = vst.msk [vmem:[#allocation3 + $0x18] sm:$0xff] %vm891_vm1, %v4391_v14  ;;  %v4240_v31 = vmax.f32 %v4192_v6, %v4216_v9  ;;  %v4194_v63 = vadd.f32 %v14512_v21, %v4070_v19 }
 0x51b   : > { %4417 = vst.msk [vmem:[#allocation3 + $0x28] sm:$0xff] %vm891_vm1, %v4241_v15  ;;  %v4219_v18 = vmul.f32 0.2, %v4195_v27 }
 0x51c   : > { %4416 = vst.msk [vmem:[#allocation3 + $0x20] sm:$0xff] %vm891_vm1, %v4240_v31  ;;  %v4218_v44 = vmul.f32 0.2, %v4194_v63  ;;  %v11880_v22 = vpop.f32.mrb[158].mxu1 }
 0x51d   : > { %v4243_v43 = vmax.f32 %v4195_v27, %v4219_v18  ;;  %v4197_v32 = vadd.f32 %v11880_v22, %v14512_v21  ;;  %v4080_v40 = vpop.f32.mrb[159].mxu1  ;;  %v4311_v27 = vadd.s32 4294967265, %v14567_v36 }
 0x51e   : > { %v4242_v23 = vmax.f32 %v4194_v63, %v4218_v44  ;;  %v4196_v17 = vadd.f32 %v14512_v21, %v4080_v40 }
 0x51f   : > { %4419 = vst.msk [vmem:[#allocation3 + $0x38] sm:$0xff] %vm891_vm1, %v4243_v43  ;;  %v4221_v54 = vmul.f32 0.2, %v4197_v32  ;;  %vm4359_vm13 = vcmp.lt.s32.totalorder %v4311_v27, 128 }
 0x520   : > { %4418 = vst.msk [vmem:[#allocation3 + $0x30] sm:$0xff] %vm891_vm1, %v4242_v23  ;;  %v4220_v28 = vmul.f32 0.2, %v4196_v17  ;;  %v11883_v29 = vpop.f32.mrb[160].mxu1 }
 0x521   : > { %v4245_v37 = vmax.f32 %v4197_v32, %v4221_v54  ;;  %v4199_v59 = vadd.f32 %v11883_v29, %v14512_v21  ;;  %v4090_v35 = vpop.f32.mrb[161].mxu1  ;;  %v4471_v33 = vld [vmem:[#allocation3 + $0x14] sm:$0xff] }
 0x522   : > { %v14528_v41 = vld [vmem:[#allocation3 + $0x18] sm:$0xff]  ;;  %v4244_v3 = vmax.f32 %v4196_v17, %v4220_v28  ;;  %v4198_v38 = vadd.f32 %v14512_v21, %v4090_v35  ;;  %11925 = vmatmul.mubr.msk.f32.gmra.mrb[180].mxu0 %vm891_vm1, %v4471_v33  ;;  %v14554_v56 = vld [vmem:[#allocation3 + $0x28] sm:$0xff] }
 0x523   : > { %12095 = vmatmul.mubr.msk.f32.gmra.mrb[194].mxu1 %vm891_vm1, %v14528_v41  ;;  %4421 = vst.msk [vmem:[#allocation3 + $0x48] sm:$0xff] %vm891_vm1, %v4245_v37  ;;  %v4223_v60 = vmul.f32 0.2, %v4199_v59  ;;  %11927 = vmatprep.mubr.msk.f32.mxu0 %vm13384_vm2, %v13383_v42  ;;  %v4472_v48 = vld [vmem:[#allocation3 + $0x1c] sm:$0xff]  ;;  %v4473_v50 = vld [vmem:[#allocation3 + $0x24] sm:$0xff] }
 0x524   : > { %12097 = vmatprep.mubr.msk.f32.mxu1 %vm13384_vm2, %v13383_v42  ;;  %4420 = vst.msk [vmem:[#allocation3 + $0x40] sm:$0xff] %vm891_vm1, %v4244_v3  ;;  %v4222_v10 = vmul.f32 0.2, %v4198_v38  ;;  %v11886_v5 = vpop.f32.mrb[162].mxu1  ;;  %v14541_v13 = vld [vmem:[#allocation3 + $0x20] sm:$0xff] }
 0x525   : > { %v4247_v39 = vmax.f32 %v4199_v59, %v4223_v60  ;;  %v4201_v46 = vadd.f32 %v11886_v5, %v14512_v21  ;;  %v4100_v45 = vpop.f32.mrb[163].mxu1  ;;  %v14634_v5 = vld [vmem:[#allocation3 + $0xa4] sm:$0xff] }
 0x526   : > { %v4246_v49 = vmax.f32 %v4198_v38, %v4222_v10  ;;  %v4200_v12 = vadd.f32 %v14512_v21, %v4100_v45  ;;  %11928 = vmatmul.mubr.msk.f32.gmra.mrb[182].mxu0 %vm891_vm1, %v4472_v48  ;;  %v14584_v44 = vld [vmem:[#allocation3 + $0x38] sm:$0xff] }
 0x527   : > { %12098 = vmatmul.mubr.msk.f32.gmra.mrb[196].mxu1 %vm891_vm1, %v14541_v13  ;;  %4423 = vst.msk [vmem:[#allocation3 + $0x58] sm:$0xff] %vm891_vm1, %v4247_v39  ;;  %v4225_v24 = vmul.f32 0.2, %v4201_v46  ;;  %11930 = vmatprep.mubr.msk.f32.mxu0 %vm13384_vm2, %v13383_v42  ;;  %v4474_v6 = vld [vmem:[#allocation3 + $0x2c] sm:$0xff]  ;;  %v4475_v18 = vld [vmem:[#allocation3 + $0x34] sm:$0xff]  ;;  %v14636_v39 = vld [vmem:[#allocation3 + $0xa0] sm:$0xff] }
 0x528   : > { %12100 = vmatprep.mubr.msk.f32.mxu1 %vm13384_vm2, %v13383_v42  ;;  %4422 = vst.msk [vmem:[#allocation3 + $0x50] sm:$0xff] %vm891_vm1, %v4246_v49  ;;  %v4224_v51 = vmul.f32 0.2, %v4200_v12  ;;  %v11889_v34 = vpop.f32.mrb[164].mxu1  ;;  %v14570_v26 = vld [vmem:[#allocation3 + $0x30] sm:$0xff] }
 0x529   : > { %v4249_v20 = vmax.f32 %v4201_v46, %v4225_v24  ;;  %v4203_v8 = vadd.f32 %v11889_v34, %v14512_v21  ;;  %v4110_v52 = vpop.f32.mrb[165].mxu1 }
 0x52a   : > { %v4248_v58 = vmax.f32 %v4200_v12, %v4224_v51  ;;  %v4202_v61 = vadd.f32 %v14512_v21, %v4110_v52  ;;  %11931 = vmatmul.mubr.msk.f32.gmra.mrb[184].mxu0 %vm891_vm1, %v4473_v50  ;;  %v14607_v37 = vld [vmem:[#allocation3 + $0x48] sm:$0xff] }
 0x52b   : > { %12101 = vmatmul.mubr.msk.f32.gmra.mrb[198].mxu1 %vm891_vm1, %v14554_v56  ;;  %4425 = vst.msk [vmem:[#allocation3 + $0x68] sm:$0xff] %vm891_vm1, %v4249_v20  ;;  %v4227_v57 = vmul.f32 0.2, %v4203_v8  ;;  %11933 = vmatprep.mubr.msk.f32.mxu0 %vm13384_vm2, %v13383_v42  ;;  %v14596_v17 = vld [vmem:[#allocation3 + $0x40] sm:$0xff] }
 0x52c   : > { %12103 = vmatprep.mubr.msk.f32.mxu1 %vm13384_vm2, %v13383_v42  ;;  %4424 = vst.msk [vmem:[#allocation3 + $0x60] sm:$0xff] %vm891_vm1, %v4248_v58  ;;  %v4226_v62 = vmul.f32 0.2, %v4202_v61  ;;  %v11892_v2 = vpop.f32.mrb[166].mxu1  ;;  %v4477_v29 = vld [vmem:[#allocation3 + $0x44] sm:$0xff]  ;;  %v2981_v58 = vpop.f32.mrb[168].mxu0 }
 0x52d   : > { %v4251_v0 = vmax.f32 %v4203_v8, %v4227_v57  ;;  %v4205_v55 = vadd.f32 %v11892_v2, %v14512_v21  ;;  %v4120_v47 = vpop.f32.mrb[167].mxu1 }
 0x52e   : > { %v4250_v4 = vmax.f32 %v4202_v61, %v4226_v62  ;;  %v4204_v9 = vadd.f32 %v14512_v21, %v4120_v47  ;;  %11934 = vmatmul.mubr.msk.f32.gmra.mrb[186].mxu0 %vm891_vm1, %v4474_v6  ;;  %v14627_v10 = vld [vmem:[#allocation3 + $0x58] sm:$0xff]  ;;  %v11736_v62 = vpop.f32.mrb[169].mxu0 }
 0x52f   : > { %12104 = vmatmul.mubr.msk.f32.gmra.mrb[200].mxu1 %vm891_vm1, %v14570_v26  ;;  %4427 = vst.msk [vmem:[#allocation3 + $0x78] sm:$0xff] %vm891_vm1, %v4251_v0  ;;  %v4229_v7 = vmul.f32 0.2, %v4205_v55  ;;  %11936 = vmatprep.mubr.msk.f32.mxu0 %vm13384_vm2, %v13383_v42  ;;  %v4478_v59 = vld [vmem:[#allocation3 + $0x4c] sm:$0xff]  ;;  %v4479_v60 = vld [vmem:[#allocation3 + $0x54] sm:$0xff]  ;;  %v2986_v2 = vpop.f32.mrb[170].mxu0 }
 0x530   : > { %12106 = vmatprep.mubr.msk.f32.mxu1 %vm13384_vm2, %v13383_v42  ;;  %4426 = vst.msk [vmem:[#allocation3 + $0x70] sm:$0xff] %vm891_vm1, %v4250_v4  ;;  %v4228_v14 = vmul.f32 0.2, %v4204_v9  ;;  %v11895_v15 = vpop.f32.mrb[168].mxu1  ;;  %v14616_v35 = vld [vmem:[#allocation3 + $0x50] sm:$0xff]  ;;  %v11739_v0 = vpop.f32.mrb[171].mxu0 }
 0x531   : > { %v4253_v19 = vmax.f32 %v4205_v55, %v4229_v7  ;;  %v4207_v31 = vadd.f32 %v11895_v15, %v14512_v21  ;;  %v4130_v63 = vpop.f32.mrb[169].mxu1  ;;  %v2991_v55 = vpop.f32.mrb[172].mxu0  ;;  %v4490_v15 = vld [vmem:[#allocation3 + $0xac] sm:$0xff] }
 0x532   : > { %v4252_v22 = vmax.f32 %v4204_v9, %v4228_v14  ;;  %v4206_v43 = vadd.f32 %v14512_v21, %v4130_v63  ;;  %11937 = vmatmul.mubr.msk.f32.gmra.mrb[188].mxu0 %vm891_vm1, %v4475_v18  ;;  %v4476_v21 = vld [vmem:[#allocation3 + $0x3c] sm:$0xff]  ;;  %v14653_v49 = vld [vmem:[#allocation3 + $0x68] sm:$0xff]  ;;  %v11742_v47 = vpop.f32.mrb[173].mxu0  ;;  %v4491_v63 = vld [vmem:[#allocation3 + $0xb4] sm:$0x3f] }
 0x533   : > { %12107 = vmatmul.mubr.msk.f32.gmra.mrb[202].mxu1 %vm891_vm1, %v14584_v44  ;;  %4429 = vst.msk [vmem:[#allocation3 + $0x88] sm:$0xff] %vm891_vm1, %v4253_v19  ;;  %v4231_v32 = vmul.f32 0.2, %v4207_v31  ;;  %11939 = vmatprep.mubr.msk.f32.mxu0 %vm13384_vm2, %v13383_v42  ;;  %v4480_v46 = vld [vmem:[#allocation3 + $0x5c] sm:$0xff]  ;;  %v4481_v48 = vld [vmem:[#allocation3 + $0x64] sm:$0xff]  ;;  %v2996_v9 = vpop.f32.mrb[174].mxu0 }
 0x534   : > { %12109 = vmatprep.mubr.msk.f32.mxu1 %vm13384_vm2, %v13383_v42  ;;  %4428 = vst.msk [vmem:[#allocation3 + $0x80] sm:$0xff] %vm891_vm1, %v4252_v22  ;;  %v4230_v40 = vmul.f32 0.2, %v4206_v43  ;;  %v14644_v45 = vld [vmem:[#allocation3 + $0x60] sm:$0xff]  ;;  %v11745_v7 = vpop.f32.mrb[175].mxu0 }
 0x535   : > { %v4255_v23 = vmax.f32 %v4207_v31, %v4231_v32  ;;  %v11898_v6 = vpop.f32.mrb[186].mxu1  ;;  %v4636_v19 = vpop.f32.mrb[176].mxu0  ;;  %v5571_v9 = vld [vmem:[#allocation5 + $0x308] sm:$0xff] }
 0x536   : > { %v4254_v54 = vmax.f32 %v4206_v43, %v4230_v40  ;;  %11940 = vmatmul.mubr.msk.f32.gmra.mrb[190].mxu0 %vm891_vm1, %v4476_v21  ;;  %v14671_v34 = vld [vmem:[#allocation3 + $0x78] sm:$0xff]  ;;  %v4140_v4 = vpop.f32.mrb[187].mxu1  ;;  %v11920_v31 = vpop.f32.mrb[177].mxu0 }
 0x537   : > { %12110 = vmatmul.mubr.msk.f32.gmra.mrb[204].mxu1 %vm891_vm1, %v14596_v17  ;;  %v4407_v28 = vsel %vm4359_vm13, %v4255_v23, 0.0  ;;  %11942 = vmatprep.mubr.msk.f32.mxu0 %vm13384_vm2, %v13383_v42  ;;  %v4482_v12 = vld [vmem:[#allocation3 + $0x6c] sm:$0xff]  ;;  %v4483_v51 = vld [vmem:[#allocation3 + $0x74] sm:$0xff]  ;;  %v4641_v43 = vpop.f32.mrb[178].mxu0 }
 0x538   : > { %12112 = vmatprep.mubr.msk.f32.mxu1 %vm13384_vm2, %v13383_v42  ;;  %4431 = vst.msk [vmem:[#allocation3 + $0x98] sm:$0xff] %vm891_vm1, %v4407_v28  ;;  %4430 = vst.msk [vmem:[#allocation3 + $0x90] sm:$0xff] %vm891_vm1, %v4254_v54  ;;  %v14662_v24 = vld [vmem:[#allocation3 + $0x70] sm:$0xff]  ;;  %v11923_v32 = vpop.f32.mrb[179].mxu0  ;;  %v5607_v54 = vld [vmem:[#allocation5 + $0x370] sm:$0xff] }
 0x539   : > { %v11901_v14 = vpop.f32.mrb[188].mxu1  ;;  %v5608_v28 = vld [vmem:[#allocation5 + $0x378] sm:$0xff]  ;;  %v5570_v4 = vld [vmem:[#allocation5 + $0x300] sm:$0xff]  ;;  %v5572_v43 = vld [vmem:[#allocation5 + $0x310] sm:$0xff] }
 0x53a   : > { %11943 = vmatmul.mubr.msk.f32.gmra.mrb[192].mxu0 %vm891_vm1, %v4477_v29  ;;  %v14689_v50 = vld [vmem:[#allocation3 + $0x88] sm:$0xff]  ;;  %v4150_v27 = vpop.f32.mrb[189].mxu1  ;;  %v13030_v29 = vpack.c.bf16 %v5608_v28, %v5607_v54  ;;  %v5575_v54 = vld [vmem:[#allocation5 + $0x328] sm:$0xff] }
 0x53b   : > { %12113 = vmatmul.mubr.msk.f32.gmra.mrb[206].mxu1 %vm891_vm1, %v14607_v37  ;;  %11945 = vmatprep.mubr.msk.f32.mxu0 %vm13384_vm2, %v13383_v42  ;;  %v4484_v20 = vld [vmem:[#allocation3 + $0x7c] sm:$0xff]  ;;  %v4485_v52 = vld [vmem:[#allocation3 + $0x84] sm:$0xff] }
 0x53c   : > { %12115 = vmatprep.mubr.msk.f32.mxu1 %vm13384_vm2, %v13383_v42  ;;  %v14680_v8 = vld [vmem:[#allocation3 + $0x80] sm:$0xff]  ;;  %v5573_v32 = vld [vmem:[#allocation5 + $0x318] sm:$0xff] }
 0x53e   : > { %11946 = vmatmul.mubr.msk.f32.gmra.mrb[194].mxu0 %vm891_vm1, %v4478_v59  ;;  %v5578_v59 = vld [vmem:[#allocation2 + $0x5] sm:$0xff] }
 0x53f   : > { %12116 = vmatmul.mubr.msk.f32.gmra.mrb[208].mxu1 %vm891_vm1, %v14616_v35  ;;  %11948 = vmatprep.mubr.msk.f32.mxu0 %vm13384_vm2, %v13383_v42  ;;  %v4487_v33 = vld [vmem:[#allocation3 + $0x94] sm:$0xff]  ;;  %v4488_v38 = vld [vmem:[#allocation3 + $0x9c] sm:$0xff]  ;;  %v4486_v61 = vld [vmem:[#allocation3 + $0x8c] sm:$0xff] }
 0x540   : > { %12118 = vmatprep.mubr.msk.f32.mxu1 %vm13384_vm2, %v13383_v42  ;;  %v14625_v3 = vld [vmem:[#allocation3 + $0x98] sm:$0xff]  ;;  %6616 = vst.msk [vmem:[#allocation3 + $0xa0] sm:$0xff] %vm891_vm1, %v13383_v42  ;;  %v14698_v57 = vld [vmem:[#allocation3 + $0x90] sm:$0xff] }
 0x541   : > { %6615 = vst.msk [vmem:[#allocation3 + $0x98] sm:$0xff] %vm891_vm1, %v13383_v42 }
 0x542   : > { %11949 = vmatmul.mubr.msk.f32.gmra.mrb[196].mxu0 %vm891_vm1, %v4479_v60 }
 0x543   : > { %12119 = vmatmul.mubr.msk.f32.gmra.mrb[210].mxu1 %vm891_vm1, %v14627_v10  ;;  %11951 = vmatprep.mubr.msk.f32.mxu0 %vm13384_vm2, %v13383_v42  ;;  %v5166_v18 = vpop.f32.mrb[190].mxu1 }
 0x544   : > { %12121 = vmatprep.mubr.msk.f32.mxu1 %vm13384_vm2, %v13383_v42  ;;  %v12090_v22 = vpop.f32.mrb[191].mxu1 }
 0x546   : > { %11952 = vmatmul.mubr.msk.f32.gmra.mrb[198].mxu0 %vm891_vm1, %v4480_v46 }
 0x547   : > { %12122 = vmatmul.mubr.msk.f32.gmra.mrb[212].mxu1 %vm891_vm1, %v14644_v45  ;;  %11954 = vmatprep.mubr.msk.f32.mxu0 %vm13384_vm2, %v13383_v42  ;;  %v5171_v40 = vpop.f32.mrb[192].mxu1 }
 0x548   : > { %12124 = vmatprep.mubr.msk.f32.mxu1 %vm13384_vm2, %v13383_v42  ;;  %v12093_v23 = vpop.f32.mrb[193].mxu1 }
 0x54a   : > { %11955 = vmatmul.mubr.msk.f32.gmra.mrb[200].mxu0 %vm891_vm1, %v4481_v48 }
 0x54b   : > { %12125 = vmatmul.mubr.msk.f32.gmra.mrb[214].mxu1 %vm891_vm1, %v14653_v49  ;;  %11957 = vmatprep.mubr.msk.f32.mxu0 %vm13384_vm2, %v13383_v42 }
 0x54c   : > { %12127 = vmatprep.mubr.msk.f32.mxu1 %vm13384_vm2, %v13383_v42 }
 0x54e   : > { %11958 = vmatmul.mubr.msk.f32.gmra.mrb[202].mxu0 %vm891_vm1, %v4482_v12 }
 0x54f   : > { %12128 = vmatmul.mubr.msk.f32.gmra.mrb[216].mxu1 %vm891_vm1, %v14662_v24  ;;  %11960 = vmatprep.mubr.msk.f32.mxu0 %vm13384_vm2, %v13383_v42 }
 0x550   : > { %12130 = vmatprep.mubr.msk.f32.mxu1 %vm13384_vm2, %v13383_v42 }
 0x552   : > { %11961 = vmatmul.mubr.msk.f32.gmra.mrb[204].mxu0 %vm891_vm1, %v4483_v51 }
 0x553   : > { %12131 = vmatmul.mubr.msk.f32.gmra.mrb[218].mxu1 %vm891_vm1, %v14671_v34  ;;  %11963 = vmatprep.mubr.msk.f32.mxu0 %vm13384_vm2, %v13383_v42 }
 0x554   : > { %12133 = vmatprep.mubr.msk.f32.mxu1 %vm13384_vm2, %v13383_v42 }
 0x556   : > { %11964 = vmatmul.mubr.msk.f32.gmra.mrb[206].mxu0 %vm891_vm1, %v4484_v20 }
 0x557   : > { %12134 = vmatmul.mubr.msk.f32.gmra.mrb[220].mxu1 %vm891_vm1, %v14680_v8  ;;  %11966 = vmatprep.mubr.msk.f32.mxu0 %vm13384_vm2, %v13383_v42 }
 0x558   : > { %12136 = vmatprep.mubr.msk.f32.mxu1 %vm13384_vm2, %v13383_v42 }
 0x55a   : > { %11967 = vmatmul.mubr.msk.f32.gmra.mrb[208].mxu0 %vm891_vm1, %v4485_v52 }
 0x55b   : > { %12137 = vmatmul.mubr.msk.f32.gmra.mrb[222].mxu1 %vm891_vm1, %v14689_v50  ;;  %11969 = vmatprep.mubr.msk.f32.mxu0 %vm13384_vm2, %v13383_v42 }
 0x55c   : > { %12139 = vmatprep.mubr.msk.f32.mxu1 %vm13384_vm2, %v13383_v42 }
 0x55e   : > { %11970 = vmatmul.mubr.msk.f32.gmra.mrb[210].mxu0 %vm891_vm1, %v4486_v61 }
 0x55f   : > { %12140 = vmatmul.mubr.msk.f32.gmra.mrb[224].mxu1 %vm891_vm1, %v14698_v57  ;;  %11972 = vmatprep.mubr.msk.f32.mxu0 %vm13384_vm2, %v13383_v42 }
 0x560   : > { %12142 = vmatprep.mubr.msk.f32.mxu1 %vm13384_vm2, %v13383_v42 }
 0x562   : > { %11973 = vmatmul.mubr.msk.f32.gmra.mrb[212].mxu0 %vm891_vm1, %v4487_v33 }
 0x563   : > { %12143 = vmatmul.mubr.msk.f32.gmra.mrb[226].mxu1 %vm891_vm1, %v14625_v3  ;;  %11975 = vmatprep.mubr.msk.f32.mxu0 %vm13384_vm2, %v13383_v42 }
 0x564   : > { %12145 = vmatprep.mubr.msk.f32.mxu1 %vm13384_vm2, %v13383_v42 }
 0x566   : > { %11976 = vmatmul.mubr.msk.f32.gmra.mrb[214].mxu0 %vm891_vm1, %v4488_v38 }
 0x567   : > { %12146 = vmatmul.mubr.msk.f32.gmra.mrb[228].mxu1 %vm891_vm1, %v14636_v39  ;;  %11978 = vmatprep.mubr.msk.f32.mxu0 %vm13384_vm2, %v13383_v42 }
 0x568   : > { %12148 = vmatprep.mubr.msk.f32.mxu1 %vm13384_vm2, %v13383_v42 }
 0x56a   : > { %11979 = vmatmul.mubr.msk.f32.gmra.mrb[216].mxu0 %vm891_vm1, %v14634_v5 }
 0x56b   : > { %11981 = vmatprep.mubr.msk.f32.mxu0 %vm13384_vm2, %v13383_v42 }
 0x56e   : > { %11982 = vmatmul.mubr.msk.f32.gmra.mrb[218].mxu0 %vm891_vm1, %v4490_v15  ;;  %v13034_v15 = vpack.c.bf16 %v5571_v9, %v5570_v4 }
 0x56f   : > { %11984 = vmatprep.mubr.msk.f32.mxu0 %vm13384_vm2, %v13383_v42 }
 0x572   : > { %11985 = vmatmul.mubr.msk.f32.gmra.mrb[220].mxu0 %vm891_vm1, %v4491_v63 }
 0x573   : > { %12003 = vmatprep.mubr.msk.f32.mxu0 %vm13384_vm2, %v13383_v42 }
 0x576   : > { %12004 = vmatmul.mubr.msk.f32.vlgmr.msra.gmra.mrb[222].mxu0 %vm891_vm1, %v14502_v11 }
 0x577   : > { %12006 = vmatprep.mubr.msk.f32.mxu0 %vm13384_vm2, %v13383_v42 }
 0x57a   : > { %12007 = vmatmul.mubr.msk.f32.gmra.mrb[224].mxu0 %vm891_vm1, %v14477_v30  ;;  %v5601_v30 = vld [vmem:[#allocation5 + $0x340] sm:$0xff] }
 0x57b   : > { %12009 = vmatprep.mubr.msk.f32.mxu0 %vm13384_vm2, %v13383_v42 }
 0x57e   : > { %12010 = vmatmul.mubr.msk.f32.gmra.mrb[226].mxu0 %vm891_vm1, %v14488_v25  ;;  %v5602_v25 = vld [vmem:[#allocation5 + $0x348] sm:$0xff] }
 0x57f   : > { %12012 = vmatprep.mubr.msk.f32.mxu0 %vm13384_vm2, %v13383_v42  ;;  %v13018_v11 = vpack.c.bf16 %v5602_v25, %v5601_v30  ;;  %v13038_v30 = vpack.c.bf16 %v5573_v32, %v5572_v43 }
 0x581   : > { %13019 = vmatprep.subr.bf16.mxu0 %v13018_v11 }
 0x582   : > { %12013 = vmatmul.mubr.msk.f32.gmra.mrb[228].mxu0 %vm891_vm1, %v14528_v41  ;;  %v5603_v41 = vld [vmem:[#allocation5 + $0x350] sm:$0xff] }
 0x583   : > { %12015 = vmatprep.mubr.msk.f32.mxu0 %vm13384_vm2, %v13383_v42  ;;  %13021 = vmatpush3.bf16.msra.mxu0 %v13018_v11 }
 0x586   : > { %12016 = vmatmul.mubr.msk.f32.gmra.mrb[230].mxu0 %vm891_vm1, %v14541_v13  ;;  %v5604_v13 = vld [vmem:[#allocation5 + $0x358] sm:$0xff] }
 0x587   : > { %12018 = vmatprep.mubr.msk.f32.mxu0 %vm13384_vm2, %v13383_v42 }
 0x58a   : > { %12019 = vmatmul.mubr.msk.f32.gmra.mrb[232].mxu0 %vm891_vm1, %v14554_v56  ;;  %v13022_v56 = vpack.c.bf16 %v5604_v13, %v5603_v41 }
 0x58b   : > { %12021 = vmatprep.mubr.msk.f32.mxu0 %vm13384_vm2, %v13383_v42 }
 0x58c   : > { %13023 = vmatprep.subr.bf16.mxu0 %v13022_v56 }
 0x58d   : > { %13025 = vmatpush3.bf16.msra.mxu0 %v13022_v56 }
 0x58e   : > { %12022 = vmatmul.mubr.msk.f32.gmra.mrb[234].mxu0 %vm891_vm1, %v14570_v26  ;;  %v5605_v26 = vld [vmem:[#allocation5 + $0x360] sm:$0xff] }
 0x58f   : > { %12024 = vmatprep.mubr.msk.f32.mxu0 %vm13384_vm2, %v13383_v42 }
 0x592   : > { %12025 = vmatmul.mubr.msk.f32.gmra.mrb[236].mxu0 %vm891_vm1, %v14584_v44  ;;  %v5606_v44 = vld [vmem:[#allocation5 + $0x368] sm:$0xff] }
 0x593   : > { %12027 = vmatprep.mubr.msk.f32.mxu0 %vm13384_vm2, %v13383_v42  ;;  %v13026_v21 = vpack.c.bf16 %v5606_v44, %v5605_v26 }
 0x595   : > { %13027 = vmatprep.subr.bf16.mxu0 %v13026_v21 }
 0x596   : > { %12028 = vmatmul.mubr.msk.f32.gmra.mrb[238].mxu0 %vm891_vm1, %v14596_v17  ;;  %v4458_v17 = vld [vmem:[#allocation3 + $0xa8] sm:$0xff] }
 0x597   : > { %12030 = vmatprep.mubr.msk.f32.mxu0 %vm13384_vm2, %v13383_v42  ;;  %6618 = vst.msk [vmem:[#allocation3 + $0xa8] sm:$0xf] %vm3287_vm6, %v13383_v42  ;;  %13029 = vmatpush3.bf16.msra.mxu0 %v13026_v21 }
 0x598   : > { %12149 = vmatmul.mubr.msk.f32.gmra.mrb[230].mxu1 %vm891_vm1, %v4458_v17  ;;  %13031 = vmatprep.subr.bf16.mxu0 %v13030_v29 }
 0x599   : > { %12151 = vmatprep.mubr.msk.f32.mxu1 %vm13384_vm2, %v13383_v42 }
 0x59a   : > { %12031 = vmatmul.mubr.msk.f32.gmra.mrb[240].mxu0 %vm891_vm1, %v14607_v37  ;;  %v4459_v37 = vld [vmem:[#allocation3 + $0xb0] sm:$0x3f] }
 0x59b   : > { %12033 = vmatprep.mubr.msk.f32.mxu0 %vm13384_vm2, %v13383_v42  ;;  %13033 = vmatpush3.bf16.msra.mxu0 %v13030_v29 }
 0x59c   : > { %13035 = vmatprep.subr.bf16.mxu0 %v13034_v15 }
 0x59e   : > { %12034 = vmatmul.mubr.msk.f32.gmra.mrb[242].mxu0 %vm891_vm1, %v14616_v35  ;;  %v5579_v35 = vld [vmem:[#allocation2 + $0xd] sm:$0xff] }
 0x59f   : > { %12036 = vmatprep.mubr.msk.f32.mxu0 %vm13384_vm2, %v13383_v42 }
 0x5a2   : > { %12037 = vmatmul.mubr.msk.f32.gmra.mrb[244].mxu0 %vm891_vm1, %v14627_v10 }
 0x5a3   : > { %12039 = vmatprep.mubr.msk.f32.mxu0 %vm13384_vm2, %v13383_v42 }
 0x5a6   : > { %12040 = vmatmul.mubr.msk.f32.gmra.mrb[246].mxu0 %vm891_vm1, %v14644_v45 }
 0x5a7   : > { %12042 = vmatprep.mubr.msk.f32.mxu0 %vm13384_vm2, %v13383_v42 }
 0x5aa   : > { %12043 = vmatmul.mubr.msk.f32.gmra.mrb[248].mxu0 %vm891_vm1, %v14653_v49 }
 0x5ab   : > { %12045 = vmatprep.mubr.msk.f32.mxu0 %vm13384_vm2, %v13383_v42 }
 0x5ae   : > { %12046 = vmatmul.mubr.msk.f32.gmra.mrb[250].mxu0 %vm891_vm1, %v14662_v24 }
 0x5af   : > { %12048 = vmatprep.mubr.msk.f32.mxu0 %vm13384_vm2, %v13383_v42 }
 0x5b2   : > { %12049 = vmatmul.mubr.msk.f32.gmra.mrb[252].mxu0 %vm891_vm1, %v14671_v34 }
 0x5b3   : > { %12051 = vmatprep.mubr.msk.f32.mxu0 %vm13384_vm2, %v13383_v42 }
 0x5b6   : > { %12052 = vmatmul.mubr.msk.f32.gmra.mrb[254].mxu0 %vm891_vm1, %v14680_v8 }
 0x5b7   : > { %12054 = vmatprep.mubr.msk.f32.mxu0 %vm13384_vm2, %v13383_v42 }
 0x5ba   : > { %12055 = vmatmul.mubr.msk.f32.gmra.mrb[0].mxu0 %vm891_vm1, %v14689_v50 }
 0x5bb   : > { %12057 = vmatprep.mubr.msk.f32.mxu0 %vm13384_vm2, %v13383_v42 }
 0x5be   : > { %12058 = vmatmul.mubr.msk.f32.gmra.mrb[2].mxu0 %vm891_vm1, %v14698_v57 }
 0x5bf   : > { %12060 = vmatprep.mubr.msk.f32.mxu0 %vm13384_vm2, %v13383_v42 }
 0x5c2   : > { %12061 = vmatmul.mubr.msk.f32.gmra.mrb[4].mxu0 %vm891_vm1, %v14625_v3 }
 0x5c3   : > { %12063 = vmatprep.mubr.msk.f32.mxu0 %vm13384_vm2, %v13383_v42 }
 0x5c6   : > { %12064 = vmatmul.mubr.msk.f32.gmra.mrb[6].mxu0 %vm891_vm1, %v14636_v39 }
 0x5c7   : > { %12066 = vmatprep.mubr.msk.f32.mxu0 %vm13384_vm2, %v13383_v42 }
 0x5ca   : > { %12067 = vmatmul.mubr.msk.f32.gmra.mrb[8].mxu0 %vm891_vm1, %v4458_v17  ;;  %v5574_v17 = vld [vmem:[#allocation5 + $0x320] sm:$0xff] }
 0x5cb   : > { %12069 = vmatprep.mubr.msk.f32.mxu0 %vm13384_vm2, %v13383_v42 }
 0x5ce   : > { %12070 = vmatmul.mubr.msk.f32.gmra.mrb[10].mxu0 %vm891_vm1, %v4459_v37  ;;  %v13042_v37 = vpack.c.bf16 %v5575_v54, %v5574_v17 }
 0x5cf   : > { %12173 = vmatprep.mubr.msk.f32.mxu0 %vm891_vm1, %v5578_v59  ;;  %v5576_v59 = vld [vmem:[#allocation5 + $0x330] sm:$0xff] }
 0x5d2   : > { %12174 = vmatmul.mubr.msk.f32.vlgmr.msra.gmra.mrb[12].mxu0 %vm891_vm1, %v5579_v35  ;;  %v5577_v35 = vld [vmem:[#allocation5 + $0x338] sm:$0xff] }
 0x5d3   : > { %13037 = vmatpush3.bf16.msra.mxu0 %v13034_v15 }
 0x5d4   : > { %13039 = vmatprep.subr.bf16.mxu0 %v13038_v30 }
 0x5d7   : > { %13041 = vmatpush3.bf16.msra.mxu0 %v13038_v30 }
 0x5d8   : > { %13043 = vmatprep.subr.bf16.mxu0 %v13042_v37 }
 0x5db   : > { %13045 = vmatpush3.bf16.msra.mxu0 %v13042_v37 }
 0x5f5   : > { %v4646_v33 = vpop.f32.mrb[180].mxu0 }
 0x5f6   : > { %v5176_v3 = vpop.f32.mrb[194].mxu1  ;;  %v11926_v38 = vpop.f32.mrb[181].mxu0 }
 0x5f7   : > { %v12096_v60 = vpop.f32.mrb[195].mxu1  ;;  %v13046_v38 = vpack.c.bf16 %v5577_v35, %v5576_v59 }
 0x5f9   : > { %v14826_v10 = vpop.f32.mrb[182].mxu0  ;;  %13047 = vmatprep.subr.bf16.mxu0 %v13046_v38 }
 0x5fa   : > { %v14828_v5 = vpop.f32.mrb[196].mxu1  ;;  %v11929_v39 = vpop.f32.mrb[183].mxu0  ;;  %13049 = vmatpush3.bf16.msra.mxu0 %v13046_v38 }
 0x5fb   : > { %v12099_v46 = vpop.f32.mrb[197].mxu1 }
 0x5fd   : > { %v14830_v45 = vpop.f32.mrb[184].mxu0 }
 0x5fe   : > { %v14832_v48 = vpop.f32.mrb[198].mxu1  ;;  %v11932_v49 = vpop.f32.mrb[185].mxu0 }
 0x5ff   : > { %v12102_v12 = vpop.f32.mrb[199].mxu1 }
 0x601   : > { %v14834_v24 = vpop.f32.mrb[186].mxu0 }
 0x602   : > { %v14836_v51 = vpop.f32.mrb[200].mxu1  ;;  %v11935_v34 = vpop.f32.mrb[187].mxu0 }
 0x603   : > { %v12105_v20 = vpop.f32.mrb[201].mxu1 }
 0x605   : > { %v14838_v8 = vpop.f32.mrb[188].mxu0 }
 0x606   : > { %v14840_v52 = vpop.f32.mrb[202].mxu1  ;;  %v11938_v50 = vpop.f32.mrb[189].mxu0 }
 0x607   : > { %v12108_v58 = vpop.f32.mrb[203].mxu1 }
 0x609   : > { %v14842_v61 = vpop.f32.mrb[190].mxu0 }
 0x60a   : > { %v14844_v57 = vpop.f32.mrb[204].mxu1  ;;  %v11941_v62 = vpop.f32.mrb[191].mxu0 }
 0x60b   : > { %v12111_v2 = vpop.f32.mrb[205].mxu1 }
 0x60c   : > { %v14882_v2 = vld [vmem:[#allocation2] sm:$0xff] }
 0x60d   : > { %v14846_v0 = vpop.f32.mrb[192].mxu0  ;;  %7593 = vst.msk [vmem:[#allocation2] sm:$0xff] %vm891_vm1, %v13383_v42 }
 0x60e   : > { %v14848_v55 = vpop.f32.mrb[206].mxu1  ;;  %v11944_v47 = vpop.f32.mrb[193].mxu0 }
 0x60f   : > { %v12114_v6 = vpop.f32.mrb[207].mxu1  ;;  %v6114_v47 = vld [vmem:[#allocation5 + $0x380] sm:$0xff] }
 0x610   : > { %v6115_v6 = vld [vmem:[#allocation5 + $0x388] sm:$0xff] }
 0x611   : > { %v14850_v7 = vpop.f32.mrb[194].mxu0  ;;  %v14886_v4 = vpack.c.bf16 %v6115_v6, %v6114_v47  ;;  %v14905_v47 = vld [vmem:[%s16062_s4 + $0x3] ss:$0 sm:$0xff] }
 0x612   : > { %v14852_v14 = vpop.f32.mrb[208].mxu1  ;;  %v11947_v27 = vpop.f32.mrb[195].mxu0 }
 0x613   : > { %v12117_v19 = vpop.f32.mrb[209].mxu1  ;;  %13051 = vmatprep.subr.bf16.mxu0 %v14886_v4 }
 0x615   : > { %v14854_v31 = vpop.f32.mrb[196].mxu0 }
 0x616   : > { %v14856_v63 = vpop.f32.mrb[210].mxu1  ;;  %v11950_v18 = vpop.f32.mrb[197].mxu0 }
 0x617   : > { %v12120_v22 = vpop.f32.mrb[211].mxu1 }
 0x619   : > { %v14858_v40 = vpop.f32.mrb[198].mxu0 }
 0x61a   : > { %v14860_v23 = vpop.f32.mrb[212].mxu1  ;;  %v11953_v25 = vpop.f32.mrb[199].mxu0 }
 0x61b   : > { %v12123_v11 = vpop.f32.mrb[213].mxu1 }
 0x61d   : > { %v14862_v41 = vpop.f32.mrb[200].mxu0 }
 0x61e   : > { %v14864_v13 = vpop.f32.mrb[214].mxu1  ;;  %v11956_v56 = vpop.f32.mrb[201].mxu0 }
 0x61f   : > { %v12126_v26 = vpop.f32.mrb[215].mxu1 }
 0x621   : > { %v14866_v44 = vpop.f32.mrb[202].mxu0 }
 0x622   : > { %v14868_v21 = vpop.f32.mrb[216].mxu1  ;;  %v11959_v28 = vpop.f32.mrb[203].mxu0 }
 0x623   : > { %v12129_v29 = vpop.f32.mrb[217].mxu1 }
 0x625   : > { %v14870_v33 = vpop.f32.mrb[204].mxu0 }
 0x626   : > { %v14872_v3 = vpop.f32.mrb[218].mxu1  ;;  %v11962_v60 = vpop.f32.mrb[205].mxu0 }
 0x627   : > { %v12132_v39 = vpop.f32.mrb[219].mxu1 }
 0x629   : > { %v14874_v46 = vpop.f32.mrb[206].mxu0 }
 0x62a   : > { %v14876_v49 = vpop.f32.mrb[220].mxu1  ;;  %v11965_v12 = vpop.f32.mrb[207].mxu0 }
 0x62b   : > { %v12135_v34 = vpop.f32.mrb[221].mxu1 }
 0x62d   : > { %v14878_v20 = vpop.f32.mrb[208].mxu0 }
 0x62e   : > { %v14880_v50 = vpop.f32.mrb[222].mxu1  ;;  %v11968_v58 = vpop.f32.mrb[209].mxu0 }
 0x62f   : > { %v12138_v62 = vpop.f32.mrb[223].mxu1 }
 0x631   : > { %v14888_v9 = vpop.f32.mrb[210].mxu0 }
 0x632   : > { %v14890_v15 = vpop.f32.mrb[224].mxu1  ;;  %v11971_v27 = vpop.f32.mrb[211].mxu0 }
 0x633   : > { %v12141_v19 = vpop.f32.mrb[225].mxu1  ;;  %v5411_v27 = vadd.s32 4294967269, %v14507_v53 }
 0x635   : > { %v14893_v18 = vpop.f32.mrb[212].mxu0  ;;  %vm5434_vm14 = vcmp.ge.s32.totalorder %v5411_v27, 0 }
 0x636   : > { %v14895_v22 = vpop.f32.mrb[226].mxu1  ;;  %v11974_v43 = vpop.f32.mrb[213].mxu0 }
 0x637   : > { %v12144_v32 = vpop.f32.mrb[227].mxu1 }
 0x639   : > { %v14897_v30 = vpop.f32.mrb[214].mxu0 }
 0x63a   : > { %v14899_v25 = vpop.f32.mrb[228].mxu1  ;;  %v11977_v11 = vpop.f32.mrb[215].mxu0 }
 0x63b   : > { %v12147_v56 = vpop.f32.mrb[229].mxu1 }
 0x63c   : > { %v14911_v56 = vld [vmem:[#allocation2 + $0x8] sm:$0xff] }
 0x63d   : > { %v4736_v26 = vpop.f32.mrb[216].mxu0 }
 0x63e   : > { %v11980_v17 = vpop.f32.mrb[217].mxu0  ;;  %v14913_v26 = vld [vmem:[#allocation2 + $0xa] sm:$0xff] }
 0x63f   : > { %7594 = vst.msk [vmem:[#allocation2 + $0x8] sm:$0xff] %vm891_vm1, %v13383_v42 }
 0x641   : > { %v4741_v54 = vpop.f32.mrb[218].mxu0 }
 0x642   : > { %v11983_v28 = vpop.f32.mrb[219].mxu0 }
 0x645   : > { %v4746_v29 = vpop.f32.mrb[220].mxu0 }
 0x646   : > { %v11986_v37 = vpop.f32.mrb[221].mxu0 }
 0x649   : > { %v4885_v59 = vpop.f32.mrb[222].mxu0 }
 0x64a   : > { %v12005_v35 = vpop.f32.mrb[223].mxu0 }
 0x64d   : > { %v4890_v38 = vpop.f32.mrb[224].mxu0 }
 0x64e   : > { %v12008_v60 = vpop.f32.mrb[225].mxu0 }
 0x651   : > { %v4895_v39 = vpop.f32.mrb[226].mxu0 }
 0x652   : > { %v12011_v12 = vpop.f32.mrb[227].mxu0 }
 0x655   : > { %v4900_v34 = vpop.f32.mrb[228].mxu0 }
 0x656   : > { %v4901_v58 = vadd.f32 %v4900_v34, %v14826_v10  ;;  %v12014_v62 = vpop.f32.mrb[229].mxu0 }
 0x658   : > { %v5283_v6 = vadd.f32 %v14828_v5, %v4901_v58 }
 0x659   : > { %v4905_v19 = vpop.f32.mrb[230].mxu0 }
 0x65a   : > { %v5311_v43 = vadd.f32 %v14905_v47, %v5283_v6  ;;  %v4906_v32 = vadd.f32 %v4905_v19, %v14830_v45  ;;  %v12017_v11 = vpop.f32.mrb[231].mxu0 }
 0x65c   : > { %v5334_v10 = vmul.f32 0.2, %v5311_v43  ;;  %v5284_v17 = vadd.f32 %v14832_v48, %v4906_v32 }
 0x65d   : > { %v4910_v5 = vpop.f32.mrb[232].mxu0 }
 0x65e   : > { %v5357_v54 = vmax.f32 %v5311_v43, %v5334_v10  ;;  %v5312_v53 = vadd.f32 %v14905_v47, %v5284_v17  ;;  %v4911_v28 = vadd.f32 %v4910_v5, %v14834_v24  ;;  %v12020_v29 = vpop.f32.mrb[233].mxu0 }
 0x660   : > { %v5503_v45 = vsel %vm5434_vm14, %v5357_v54, 0.0  ;;  %v5335_v37 = vmul.f32 0.2, %v5312_v53  ;;  %v5285_v59 = vadd.f32 %v14836_v51, %v4911_v28 }
 0x661   : > { %5526 = vst.msk [vmem:[#allocation2 + $0x18] sm:$0xff] %vm891_vm1, %v5503_v45  ;;  %v4915_v35 = vpop.f32.mrb[234].mxu0 }
 0x662   : > { %v5358_v38 = vmax.f32 %v5312_v53, %v5335_v37  ;;  %v5313_v60 = vadd.f32 %v14905_v47, %v5285_v59  ;;  %v4916_v48 = vadd.f32 %v4915_v35, %v14838_v8  ;;  %v12023_v39 = vpop.f32.mrb[235].mxu0 }
 0x664   : > { %5527 = vst.msk [vmem:[#allocation2 + $0x20] sm:$0xff] %vm891_vm1, %v5358_v38  ;;  %v5336_v12 = vmul.f32 0.2, %v5313_v60  ;;  %v5286_v34 = vadd.f32 %v14840_v52, %v4916_v48 }
 0x665   : > { %v4920_v24 = vpop.f32.mrb[236].mxu0 }
 0x666   : > { %v5359_v58 = vmax.f32 %v5313_v60, %v5336_v12  ;;  %v5314_v62 = vadd.f32 %v14905_v47, %v5286_v34  ;;  %v4921_v51 = vadd.f32 %v4920_v24, %v14842_v61  ;;  %v12026_v6 = vpop.f32.mrb[237].mxu0 }
 0x668   : > { %5528 = vst.msk [vmem:[#allocation2 + $0x28] sm:$0xff] %vm891_vm1, %v5359_v58  ;;  %v5337_v27 = vmul.f32 0.2, %v5314_v62  ;;  %v5287_v19 = vadd.f32 %v14844_v57, %v4921_v51  ;;  %v5580_v43 = vld [vmem:[#allocation2 + $0x15] sm:$0xff] }
 0x669   : > { %v4925_v8 = vpop.f32.mrb[238].mxu0  ;;  %12176 = vmatprep.mubr.msk.f32.mxu0 %vm891_vm1, %v5580_v43 }
 0x66a   : > { %v5360_v32 = vmax.f32 %v5314_v62, %v5337_v27  ;;  %v5315_v11 = vadd.f32 %v14905_v47, %v5287_v19  ;;  %v4926_v52 = vadd.f32 %v4925_v8, %v14846_v0  ;;  %v12029_v10 = vpop.f32.mrb[239].mxu0 }
 0x66b   : > { %v5581_v17 = vld [vmem:[#allocation2 + $0x1d] sm:$0xff] }
 0x66c   : > { %5529 = vst.msk [vmem:[#allocation2 + $0x30] sm:$0xff] %vm891_vm1, %v5360_v32  ;;  %v5338_v61 = vmul.f32 0.2, %v5315_v11  ;;  %v5288_v5 = vadd.f32 %v14848_v55, %v4926_v52  ;;  %12177 = vmatmul.mubr.msk.f32.gmra.mrb[14].mxu0 %vm891_vm1, %v5581_v17 }
 0x66d   : > { %v4930_v54 = vpop.f32.mrb[240].mxu0 }
 0x66e   : > { %v5361_v57 = vmax.f32 %v5315_v11, %v5338_v61  ;;  %v5316_v53 = vadd.f32 %v14905_v47, %v5288_v5  ;;  %v4931_v28 = vadd.f32 %v4930_v54, %v14850_v7  ;;  %v12032_v29 = vpop.f32.mrb[241].mxu0 }
 0x66f   : > { %v5582_v45 = vld [vmem:[#allocation2 + $0x25] sm:$0xff] }
 0x670   : > { %5530 = vst.msk [vmem:[#allocation2 + $0x38] sm:$0xff] %vm891_vm1, %v5361_v57  ;;  %v5339_v0 = vmul.f32 0.2, %v5316_v53  ;;  %v5289_v37 = vadd.f32 %v14852_v14, %v4931_v28  ;;  %12179 = vmatprep.mubr.msk.f32.mxu0 %vm891_vm1, %v5582_v45  ;;  %v6669_v29 = vld [vmem:[#allocation5 + $0x400] sm:$0xff]  ;;  %v6670_v45 = vld [vmem:[#allocation5 + $0x408] sm:$0xff] }
 0x671   : > { %v4935_v59 = vpop.f32.mrb[242].mxu0 }
 0x672   : > { %v5362_v35 = vmax.f32 %v5316_v53, %v5339_v0  ;;  %v5317_v55 = vadd.f32 %v14905_v47, %v5289_v37  ;;  %v4936_v38 = vadd.f32 %v4935_v59, %v14854_v31  ;;  %v12035_v60 = vpop.f32.mrb[243].mxu0 }
 0x673   : > { %v5583_v48 = vld [vmem:[#allocation2 + $0x2d] sm:$0xff] }
 0x674   : > { %5531 = vst.msk [vmem:[#allocation2 + $0x40] sm:$0xff] %vm891_vm1, %v5362_v35  ;;  %v5340_v7 = vmul.f32 0.2, %v5317_v55  ;;  %v5290_v39 = vadd.f32 %v14856_v63, %v4936_v38  ;;  %12180 = vmatmul.mubr.msk.f32.gmra.mrb[16].mxu0 %vm891_vm1, %v5583_v48 }
 0x675   : > { %v4940_v12 = vpop.f32.mrb[244].mxu0 }
 0x676   : > { %v5363_v34 = vmax.f32 %v5317_v55, %v5340_v7  ;;  %v5318_v14 = vadd.f32 %v14905_v47, %v5290_v39  ;;  %v4941_v24 = vadd.f32 %v4940_v12, %v14858_v40  ;;  %v12038_v58 = vpop.f32.mrb[245].mxu0 }
 0x677   : > { %v5584_v62 = vld [vmem:[#allocation2 + $0x35] sm:$0xff] }
 0x678   : > { %5532 = vst.msk [vmem:[#allocation2 + $0x48] sm:$0xff] %vm891_vm1, %v5363_v34  ;;  %v5341_v31 = vmul.f32 0.2, %v5318_v14  ;;  %v5291_v51 = vadd.f32 %v14860_v23, %v4941_v24  ;;  %12182 = vmatprep.mubr.msk.f32.mxu0 %vm891_vm1, %v5584_v62 }
 0x679   : > { %v4945_v6 = vpop.f32.mrb[246].mxu0 }
 0x67a   : > { %v5364_v27 = vmax.f32 %v5318_v14, %v5341_v31  ;;  %v5319_v63 = vadd.f32 %v14905_v47, %v5291_v51  ;;  %v4946_v19 = vadd.f32 %v4945_v6, %v14862_v41  ;;  %v12041_v43 = vpop.f32.mrb[247].mxu0 }
 0x67b   : > { %v5585_v8 = vld [vmem:[#allocation2 + $0x3d] sm:$0xff] }
 0x67c   : > { %5533 = vst.msk [vmem:[#allocation2 + $0x50] sm:$0xff] %vm891_vm1, %v5364_v27  ;;  %v5342_v40 = vmul.f32 0.2, %v5319_v63  ;;  %v5292_v32 = vadd.f32 %v14864_v13, %v4946_v19  ;;  %12183 = vmatmul.mubr.msk.f32.gmra.mrb[18].mxu0 %vm891_vm1, %v5585_v8 }
 0x67d   : > { %v4950_v11 = vpop.f32.mrb[248].mxu0 }
 0x67e   : > { %v5365_v52 = vmax.f32 %v5319_v63, %v5342_v40  ;;  %v5320_v23 = vadd.f32 %v14905_v47, %v5292_v32  ;;  %v4951_v10 = vadd.f32 %v4950_v11, %v14866_v44  ;;  %v12044_v17 = vpop.f32.mrb[249].mxu0  ;;  %v13066_v44 = vpack.c.bf16 %v6670_v45, %v6669_v29 }
 0x67f   : > { %v5586_v61 = vld [vmem:[#allocation2 + $0x45] sm:$0xff] }
 0x680   : > { %5534 = vst.msk [vmem:[#allocation2 + $0x58] sm:$0xff] %vm891_vm1, %v5365_v52  ;;  %v5343_v41 = vmul.f32 0.2, %v5320_v23  ;;  %v5293_v5 = vadd.f32 %v14868_v21, %v4951_v10  ;;  %12185 = vmatprep.mubr.msk.f32.mxu0 %vm891_vm1, %v5586_v61  ;;  %13067 = vmatprep.subr.bf16.mxu1 %v13066_v44 }
 0x681   : > { %v4955_v54 = vpop.f32.mrb[250].mxu0  ;;  %13069 = vmatpush3.bf16.msra.mxu1 %v13066_v44 }
 0x682   : > { %v5366_v57 = vmax.f32 %v5320_v23, %v5343_v41  ;;  %v5321_v13 = vadd.f32 %v14905_v47, %v5293_v5  ;;  %v4956_v53 = vadd.f32 %v4955_v54, %v14870_v33  ;;  %v12047_v28 = vpop.f32.mrb[251].mxu0  ;;  %v5427_v5 = vadd.s32 4294967269, %v14567_v36 }
 0x683   : > { %v5587_v0 = vld [vmem:[#allocation2 + $0x4d] sm:$0xff] }
 0x684   : > { %5535 = vst.msk [vmem:[#allocation2 + $0x60] sm:$0xff] %vm891_vm1, %v5366_v57  ;;  %v5344_v37 = vmul.f32 0.2, %v5321_v13  ;;  %v5294_v59 = vadd.f32 %v14872_v3, %v4956_v53  ;;  %12186 = vmatmul.mubr.msk.f32.gmra.mrb[20].mxu0 %vm891_vm1, %v5587_v0  ;;  %vm5473_vm15 = vcmp.lt.s32.totalorder %v5427_v5, 128  ;;  %v6097_v5 = vld [vmem:[#allocation2 + $0x3a] sm:$0xff] }
 0x685   : > { %v4960_v21 = vpop.f32.mrb[252].mxu0 }
 0x686   : > { %v5367_v35 = vmax.f32 %v5321_v13, %v5344_v37  ;;  %v5322_v55 = vadd.f32 %v14905_v47, %v5294_v59  ;;  %v4961_v38 = vadd.f32 %v4960_v21, %v14874_v46  ;;  %v12050_v33 = vpop.f32.mrb[253].mxu0 }
 0x687   : > { %v5588_v60 = vld [vmem:[#allocation2 + $0x55] sm:$0xff] }
 0x688   : > { %5536 = vst.msk [vmem:[#allocation2 + $0x68] sm:$0xff] %vm891_vm1, %v5367_v35  ;;  %v5345_v48 = vmul.f32 0.2, %v5322_v55  ;;  %v5295_v7 = vadd.f32 %v14876_v49, %v4961_v38  ;;  %12188 = vmatprep.mubr.msk.f32.mxu0 %vm891_vm1, %v5588_v60  ;;  %v6116_v38 = vld [vmem:[#allocation5 + $0x390] sm:$0xff]  ;;  %v6117_v33 = vld [vmem:[#allocation5 + $0x398] sm:$0xff] }
 0x689   : > { %v4965_v3 = vpop.f32.mrb[254].mxu0  ;;  %v5549_v60 = vld [vmem:[#allocation2 + $0x10] sm:$0xff] }
 0x68a   : > { %v5368_v39 = vmax.f32 %v5322_v55, %v5345_v48  ;;  %v5323_v12 = vadd.f32 %v14905_v47, %v5295_v7  ;;  %v4966_v34 = vadd.f32 %v4965_v3, %v14878_v20  ;;  %v12053_v14 = vpop.f32.mrb[255].mxu0  ;;  %v5599_v55 = vld [vmem:[#allocation2 + $0xad] sm:$0xf]  ;;  %v13054_v48 = vpack.c.bf16 %v6117_v33, %v6116_v38  ;;  %v6118_v7 = vld [vmem:[#allocation5 + $0x3a0] sm:$0xff]  ;;  %v6648_v33 = vld [vmem:[#allocation3 + $0x6] sm:$0xff] }
 0x68b   : > { %v5589_v24 = vld [vmem:[#allocation2 + $0x5d] sm:$0xff]  ;;  %v6119_v3 = vld [vmem:[#allocation5 + $0x3a8] sm:$0xff]  ;;  %v6120_v14 = vld [vmem:[#allocation5 + $0x3b0] sm:$0xff] }
 0x68c   : > { %5537 = vst.msk [vmem:[#allocation2 + $0x70] sm:$0xff] %vm891_vm1, %v5368_v39  ;;  %v5346_v46 = vmul.f32 0.2, %v5323_v12  ;;  %v5296_v58 = vadd.f32 %v14880_v50, %v4966_v34  ;;  %12189 = vmatmul.mubr.msk.f32.gmra.mrb[22].mxu0 %vm891_vm1, %v5589_v24  ;;  %v13058_v39 = vpack.c.bf16 %v6119_v3, %v6118_v7  ;;  %v5550_v34 = vld [vmem:[#allocation2 + $0x18] sm:$0xff]  ;;  %v15076_v3 = vld [vmem:[#allocation3] sm:$0xff] }
 0x68d   : > { %v4970_v62 = vpop.f32.mrb[0].mxu0  ;;  %v6121_v24 = vld [vmem:[#allocation5 + $0x3b8] sm:$0xff]  ;;  %8551 = vst.msk [vmem:[#allocation3] sm:$0xff] %vm891_vm1, %v13383_v42 }
 0x68e   : > { %v5369_v31 = vmax.f32 %v5323_v12, %v5346_v46  ;;  %v5324_v49 = vadd.f32 %v14905_v47, %v5296_v58  ;;  %v4971_v51 = vadd.f32 %v4970_v62, %v14888_v9  ;;  %v12056_v6 = vpop.f32.mrb[1].mxu0  ;;  %v5266_v58 = vpop.f32.mrb[230].mxu1 }
 0x68f   : > { %v5590_v27 = vld [vmem:[#allocation2 + $0x65] sm:$0xff]  ;;  %v12150_v62 = vpop.f32.mrb[231].mxu1 }
 0x690   : > { %5538 = vst.msk [vmem:[#allocation2 + $0x78] sm:$0xff] %vm891_vm1, %v5369_v31  ;;  %v5347_v20 = vmul.f32 0.2, %v5324_v49  ;;  %v5297_v63 = vadd.f32 %v14890_v15, %v4971_v51  ;;  %12191 = vmatprep.mubr.msk.f32.mxu0 %vm891_vm1, %v5590_v27  ;;  %v5552_v31 = vld [vmem:[#allocation2 + $0x28] sm:$0xff]  ;;  %v5553_v51 = vld [vmem:[#allocation2 + $0x30] sm:$0xff]  ;;  %v5554_v27 = vld [vmem:[#allocation2 + $0x38] sm:$0xff] }
 0x691   : > { %v4975_v19 = vpop.f32.mrb[2].mxu0 }
 0x692   : > { %v5370_v43 = vmax.f32 %v5324_v49, %v5347_v20  ;;  %v5325_v50 = vadd.f32 %v14905_v47, %v5297_v63  ;;  %v4976_v8 = vadd.f32 %v4975_v19, %v14893_v18  ;;  %v12059_v40 = vpop.f32.mrb[3].mxu0  ;;  %v5555_v63 = vld [vmem:[#allocation2 + $0x40] sm:$0xff]  ;;  %v5556_v19 = vld [vmem:[#allocation2 + $0x48] sm:$0xff] }
 0x693   : > { %v5591_v32 = vld [vmem:[#allocation2 + $0x6d] sm:$0xff] }
 0x694   : > { %5539 = vst.msk [vmem:[#allocation2 + $0x80] sm:$0xff] %vm891_vm1, %v5370_v43  ;;  %v5348_v9 = vmul.f32 0.2, %v5325_v50  ;;  %v5298_v11 = vadd.f32 %v14895_v22, %v4976_v8  ;;  %12192 = vmatmul.mubr.msk.f32.gmra.mrb[24].mxu0 %vm891_vm1, %v5591_v32  ;;  %v5557_v43 = vld [vmem:[#allocation2 + $0x50] sm:$0xff]  ;;  %v5559_v8 = vld [vmem:[#allocation2 + $0x60] sm:$0xff]  ;;  %v5560_v40 = vld [vmem:[#allocation2 + $0x68] sm:$0xff] }
 0x695   : > { %v4980_v52 = vpop.f32.mrb[4].mxu0  ;;  %v5561_v32 = vld [vmem:[#allocation2 + $0x70] sm:$0xff] }
 0x696   : > { %v5371_v23 = vmax.f32 %v5325_v50, %v5348_v9  ;;  %v5326_v15 = vadd.f32 %v14905_v47, %v5298_v11  ;;  %v4981_v10 = vadd.f32 %v4980_v52, %v14897_v30  ;;  %v12062_v17 = vpop.f32.mrb[5].mxu0  ;;  %v5558_v50 = vld [vmem:[#allocation2 + $0x58] sm:$0xff] }
 0x697   : > { %v5592_v61 = vld [vmem:[#allocation2 + $0x75] sm:$0xff] }
 0x698   : > { %5540 = vst.msk [vmem:[#allocation2 + $0x88] sm:$0xff] %vm891_vm1, %v5371_v23  ;;  %v5349_v18 = vmul.f32 0.2, %v5326_v15  ;;  %v5299_v41 = vadd.f32 %v14899_v25, %v4981_v10  ;;  %12194 = vmatprep.mubr.msk.f32.mxu0 %vm891_vm1, %v5592_v61  ;;  %v5598_v25 = vld [vmem:[#allocation2 + $0xa5] sm:$0xff]  ;;  %v5562_v9 = vld [vmem:[#allocation2 + $0x78] sm:$0xff] }
 0x699   : > { %v4985_v22 = vpop.f32.mrb[6].mxu0  ;;  %v5567_v23 = vld [vmem:[#allocation2 + $0xa0] sm:$0xff]  ;;  %v6092_v10 = vld [vmem:[#allocation2 + $0x12] sm:$0xff] }
 0x69a   : > { %v5372_v54 = vmax.f32 %v5326_v15, %v5349_v18  ;;  %v5327_v57 = vadd.f32 %v14905_v47, %v5299_v41  ;;  %v12065_v13 = vpop.f32.mrb[7].mxu0  ;;  %v5568_v15 = vld [vmem:[#allocation2 + $0xa8] sm:$0xf]  ;;  %v6093_v17 = vld [vmem:[#allocation2 + $0x1a] sm:$0xff]  ;;  %v6096_v41 = vld [vmem:[#allocation2 + $0x32] sm:$0xff] }
 0x69b   : > { %v5593_v53 = vld [vmem:[#allocation2 + $0x7d] sm:$0xff]  ;;  %v6095_v18 = vld [vmem:[#allocation2 + $0x2a] sm:$0xff] }
 0x69c   : > { %5541 = vst.msk [vmem:[#allocation2 + $0x90] sm:$0xff] %vm891_vm1, %v5372_v54  ;;  %v5350_v30 = vmul.f32 0.2, %v5327_v57  ;;  %12195 = vmatmul.mubr.msk.f32.gmra.mrb[26].mxu0 %vm891_vm1, %v5593_v53  ;;  %v5563_v11 = vld [vmem:[#allocation2 + $0x80] sm:$0xff]  ;;  %v6100_v54 = vld [vmem:[#allocation2 + $0x52] sm:$0xff]  ;;  %v6103_v53 = vld [vmem:[#allocation2 + $0x6a] sm:$0xff] }
 0x69d   : > { %v4990_v12 = vpop.f32.mrb[8].mxu0  ;;  %v6094_v61 = vld [vmem:[#allocation2 + $0x22] sm:$0xff] }
 0x69e   : > { %v5373_v28 = vmax.f32 %v5327_v57, %v5350_v30  ;;  %v12068_v46 = vpop.f32.mrb[9].mxu0  ;;  %v6098_v22 = vld [vmem:[#allocation2 + $0x42] sm:$0xff]  ;;  %v6101_v57 = vld [vmem:[#allocation2 + $0x5a] sm:$0xff]  ;;  %v6104_v30 = vld [vmem:[#allocation2 + $0x72] sm:$0xff] }
 0x69f   : > { %v5594_v29 = vld [vmem:[#allocation2 + $0x85] sm:$0xff] }
 0x6a0   : > { %v5519_v45 = vsel %vm5473_vm15, %v5373_v28, 0.0  ;;  %12197 = vmatprep.mubr.msk.f32.mxu0 %vm891_vm1, %v5594_v29  ;;  %v5564_v52 = vld [vmem:[#allocation2 + $0x88] sm:$0xff]  ;;  %v6105_v28 = vld [vmem:[#allocation2 + $0x7a] sm:$0xff] }
 0x6a1   : > { %5542 = vst.msk [vmem:[#allocation2 + $0x98] sm:$0xff] %vm891_vm1, %v5519_v45  ;;  %v6102_v13 = vld [vmem:[#allocation2 + $0x62] sm:$0xff] }
 0x6a2   : > { %v6106_v29 = vld [vmem:[#allocation2 + $0x82] sm:$0xff] }
 0x6a3   : > { %v5595_v36 = vld [vmem:[#allocation2 + $0x8d] sm:$0xff]  ;;  %v6110_v45 = vld [vmem:[#allocation2 + $0xa2] sm:$0xff] }
 0x6a4   : > { %12198 = vmatmul.mubr.msk.f32.gmra.mrb[28].mxu0 %vm891_vm1, %v5595_v36  ;;  %v14998_v47 = vld [vmem:[#allocation2 + $0x90] sm:$0xff] }
 0x6a5   : > { %v15000_v37 = vld [vmem:[#allocation2 + $0x8a] sm:$0xff] }
 0x6a6   : > { %v6671_v36 = vld [vmem:[#allocation5 + $0x410] sm:$0xff] }
 0x6a8   : > { %v5596_v0 = vld [vmem:[#allocation2 + $0x95] sm:$0xff]  ;;  %v5597_v44 = vld [vmem:[#allocation2 + $0x9d] sm:$0xff] }
 0x6a9   : > { %12200 = vmatprep.mubr.msk.f32.mxu0 %vm891_vm1, %v5596_v0  ;;  %v15003_v59 = vld [vmem:[#allocation2 + $0x98] sm:$0xff]  ;;  %v6673_v0 = vld [vmem:[#allocation5 + $0x420] sm:$0xff] }
 0x6aa   : > { %v15005_v21 = vld [vmem:[#allocation2 + $0x92] sm:$0xff]  ;;  %v15007_v35 = vld [vmem:[#allocation2 + $0x9a] sm:$0xff]  ;;  %12201 = vmatmul.mubr.msk.f32.gmra.mrb[30].mxu0 %vm891_vm1, %v5597_v44  ;;  %v6674_v44 = vld [vmem:[#allocation5 + $0x428] sm:$0xff] }
 0x6ab   : > { %7611 = vst.msk [vmem:[#allocation2 + $0x90] sm:$0xff] %vm891_vm1, %v13383_v42  ;;  %7612 = vst.msk [vmem:[#allocation2 + $0x98] sm:$0xff] %vm891_vm1, %v13383_v42  ;;  %12203 = vmatprep.mubr.msk.f32.mxu0 %vm891_vm1, %v5598_v25  ;;  %v6672_v25 = vld [vmem:[#allocation5 + $0x418] sm:$0xff] }
 0x6ae   : > { %12204 = vmatmul.mubr.msk.f32.gmra.mrb[32].mxu0 %vm891_vm1, %v5599_v55  ;;  %v6676_v55 = vld [vmem:[#allocation5 + $0x438] sm:$0xff] }
 0x6af   : > { %12222 = vmatprep.mubr.msk.f32.mxu0 %vm891_vm1, %v14882_v2  ;;  %v5551_v2 = vld [vmem:[#allocation2 + $0x20] sm:$0xff] }
 0x6b2   : > { %12223 = vmatmul.mubr.msk.f32.vlgmr.msra.gmra.mrb[34].mxu0 %vm891_vm1, %v14911_v56  ;;  %v13062_v56 = vpack.c.bf16 %v6121_v24, %v6120_v14 }
 0x6b3   : > { %13053 = vmatpush3.bf16.msra.mxu0 %v14886_v4  ;;  %12225 = vmatprep.mubr.msk.f32.mxu0 %vm891_vm1, %v5549_v60  ;;  %v4995_v4 = vpop.f32.mrb[10].mxu0  ;;  %v6640_v60 = vld [vmem:[#allocation5 + $0x3c0] sm:$0xff] }
 0x6b4   : > { %13055 = vmatprep.subr.bf16.mxu0 %v13054_v48  ;;  %v12071_v49 = vpop.f32.mrb[11].mxu0 }
 0x6b5   : > { %v12175_v6 = vpop.f32.mrb[12].mxu0 }
 0x6b6   : > { %12226 = vmatmul.mubr.msk.f32.gmra.mrb[14].mxu0 %vm891_vm1, %v5550_v34  ;;  %v5741_v20 = vpop.f32.mrb[13].mxu0  ;;  %v15086_v6 = vld [vmem:[%s16062_s4 + $0x4] ss:$0 sm:$0xff] }
 0x6b7   : > { %12228 = vmatprep.mubr.msk.f32.mxu0 %vm891_vm1, %v5551_v2  ;;  %13057 = vmatpush3.bf16.msra.mxu0 %v13054_v48  ;;  %v6641_v48 = vld [vmem:[#allocation5 + $0x3c8] sm:$0xff] }
 0x6b8   : > { %13059 = vmatprep.subr.bf16.mxu0 %v13058_v39  ;;  %v15073_v7 = vpack.c.bf16 %v6641_v48, %v6640_v60 }
 0x6ba   : > { %12229 = vmatmul.mubr.msk.f32.gmra.mrb[16].mxu0 %vm891_vm1, %v5552_v31 }
 0x6bb   : > { %12231 = vmatprep.mubr.msk.f32.mxu0 %vm891_vm1, %v5553_v51  ;;  %13061 = vmatpush3.bf16.msra.mxu0 %v13058_v39  ;;  %v342_v51 = vadd.s32 16, %v13637_v16 }
 0x6bc   : > { %13063 = vmatprep.subr.bf16.mxu0 %v13062_v56 }
 0x6be   : > { %12232 = vmatmul.mubr.msk.f32.gmra.mrb[18].mxu0 %vm891_vm1, %v5554_v27 }
 0x6bf   : > { %12234 = vmatprep.mubr.msk.f32.mxu0 %vm891_vm1, %v5555_v63  ;;  %13065 = vmatpush3.bf16.msra.mxu0 %v13062_v56 }
 0x6c0   : > { %13114 = vmatprep.subr.bf16.mxu0 %v13382_v1 }
 0x6c2   : > { %12235 = vmatmul.mubr.msk.f32.gmra.mrb[20].mxu0 %vm891_vm1, %v5556_v19  ;;  %v6488_v19 = vadd.s32 4294967274, %v342_v51 }
 0x6c3   : > { %12237 = vmatprep.mubr.msk.f32.mxu0 %vm891_vm1, %v5557_v43 }
 0x6c4   : > { %vm6510_vm0 = vcmp.ge.s32.totalorder %v6488_v19, 0 }
 0x6c6   : > { %12238 = vmatmul.mubr.msk.f32.gmra.mrb[22].mxu0 %vm891_vm1, %v5558_v50 }
 0x6c7   : > { %12240 = vmatprep.mubr.msk.f32.mxu0 %vm891_vm1, %v5559_v8 }
 0x6ca   : > { %12241 = vmatmul.mubr.msk.f32.gmra.mrb[24].mxu0 %vm891_vm1, %v5560_v40 }
 0x6cb   : > { %12243 = vmatprep.mubr.msk.f32.mxu0 %vm891_vm1, %v5561_v32 }
 0x6ce   : > { %12244 = vmatmul.mubr.msk.f32.gmra.mrb[26].mxu0 %vm891_vm1, %v5562_v9 }
 0x6cf   : > { %12246 = vmatprep.mubr.msk.f32.mxu0 %vm891_vm1, %v5563_v11 }
 0x6d2   : > { %12247 = vmatmul.mubr.msk.f32.gmra.mrb[28].mxu0 %vm891_vm1, %v5564_v52 }
 0x6d3   : > { %12249 = vmatprep.mubr.msk.f32.mxu0 %vm891_vm1, %v14998_v47  ;;  %v13070_v47 = vpack.c.bf16 %v6672_v25, %v6671_v36 }
 0x6d5   : > { %13071 = vmatprep.subr.bf16.mxu1 %v13070_v47 }
 0x6d6   : > { %12250 = vmatmul.mubr.msk.f32.gmra.mrb[36].mxu0 %vm891_vm1, %v15003_v59  ;;  %13073 = vmatpush3.bf16.msra.mxu1 %v13070_v47  ;;  %v13074_v59 = vpack.c.bf16 %v6674_v44, %v6673_v0  ;;  %v6644_v44 = vld [vmem:[#allocation5 + $0x3e0] sm:$0xff] }
 0x6d7   : > { %12252 = vmatprep.mubr.msk.f32.mxu0 %vm891_vm1, %v5567_v23 }
 0x6d8   : > { %13075 = vmatprep.subr.bf16.mxu1 %v13074_v59 }
 0x6da   : > { %12253 = vmatmul.mubr.msk.f32.gmra.mrb[38].mxu0 %vm891_vm1, %v5568_v15  ;;  %13077 = vmatpush3.bf16.msra.mxu1 %v13074_v59 }
 0x6db   : > { %12271 = vmatprep.mubr.msk.f32.mxu0 %vm891_vm1, %v14913_v26  ;;  %v6099_v26 = vld [vmem:[#allocation2 + $0x4a] sm:$0xff] }
 0x6de   : > { %12272 = vmatmul.mubr.msk.f32.vlgmr.msra.gmra.mrb[40].mxu0 %vm891_vm1, %v6092_v10 }
 0x6df   : > { %12274 = vmatprep.mubr.msk.f32.mxu0 %vm891_vm1, %v6093_v17 }
 0x6e2   : > { %12275 = vmatmul.mubr.msk.f32.gmra.mrb[14].mxu0 %vm891_vm1, %v6094_v61 }
 0x6e3   : > { %12277 = vmatprep.mubr.msk.f32.mxu0 %vm891_vm1, %v6095_v18 }
 0x6e6   : > { %12278 = vmatmul.mubr.msk.f32.gmra.mrb[16].mxu0 %vm891_vm1, %v6096_v41 }
 0x6e7   : > { %12280 = vmatprep.mubr.msk.f32.mxu0 %vm891_vm1, %v6097_v5 }
 0x6ea   : > { %12281 = vmatmul.mubr.msk.f32.gmra.mrb[18].mxu0 %vm891_vm1, %v6098_v22 }
 0x6eb   : > { %12283 = vmatprep.mubr.msk.f32.mxu0 %vm891_vm1, %v6099_v26 }
 0x6ee   : > { %12284 = vmatmul.mubr.msk.f32.gmra.mrb[20].mxu0 %vm891_vm1, %v6100_v54 }
 0x6ef   : > { %12286 = vmatprep.mubr.msk.f32.mxu0 %vm891_vm1, %v6101_v57 }
 0x6f2   : > { %12287 = vmatmul.mubr.msk.f32.gmra.mrb[22].mxu0 %vm891_vm1, %v6102_v13 }
 0x6f3   : > { %12289 = vmatprep.mubr.msk.f32.mxu0 %vm891_vm1, %v6103_v53  ;;  %v6642_v53 = vld [vmem:[#allocation5 + $0x3d0] sm:$0xff] }
 0x6f6   : > { %12290 = vmatmul.mubr.msk.f32.gmra.mrb[24].mxu0 %vm891_vm1, %v6104_v30  ;;  %v6643_v30 = vld [vmem:[#allocation5 + $0x3d8] sm:$0xff] }
 0x6f7   : > { %12292 = vmatprep.mubr.msk.f32.mxu0 %vm891_vm1, %v6105_v28  ;;  %v13086_v0 = vpack.c.bf16 %v6643_v30, %v6642_v53  ;;  %v358_v53 = vadd.s32 144, %v13637_v16 }
 0x6fa   : > { %12293 = vmatmul.mubr.msk.f32.gmra.mrb[26].mxu0 %vm891_vm1, %v6106_v29 }
 0x6fb   : > { %12295 = vmatprep.mubr.msk.f32.mxu0 %vm891_vm1, %v15000_v37  ;;  %v6675_v37 = vld [vmem:[#allocation5 + $0x430] sm:$0xff] }
 0x6fc   : > { %v13078_v38 = vpack.c.bf16 %v6676_v55, %v6675_v37 }
 0x6fe   : > { %12296 = vmatmul.mubr.msk.f32.gmra.mrb[28].mxu0 %vm891_vm1, %v15005_v21  ;;  %13079 = vmatprep.subr.bf16.mxu1 %v13078_v38  ;;  %v5020_v21 = vld [vmem:[#allocation3 + $0xb0] sm:$0xff] }
 0x6ff   : > { %12298 = vmatprep.mubr.msk.f32.mxu0 %vm891_vm1, %v15007_v35  ;;  %13081 = vmatpush3.bf16.msra.mxu1 %v13078_v38  ;;  %v5021_v35 = vld [vmem:[#allocation3 + $0xb8] sm:$0x3f] }
 0x700   : > { %12152 = vmatmul.mubr.msk.f32.gmra.mrb[232].mxu1 %vm891_vm1, %v5020_v21  ;;  %13083 = vmatprep.subr.bf16.mxu1 %v15073_v7  ;;  %v6645_v21 = vld [vmem:[#allocation5 + $0x3e8] sm:$0xff] }
 0x701   : > { %12154 = vmatprep.mubr.msk.f32.mxu1 %vm13384_vm2, %v13383_v42 }
 0x702   : > { %12299 = vmatmul.mubr.msk.f32.gmra.mrb[42].mxu0 %vm891_vm1, %v6110_v45 }
 0x704   : > { %12155 = vmatmul.mubr.msk.f32.gmra.mrb[234].mxu1 %vm891_vm1, %v5021_v35 }
 0x705   : > { %12320 = vmatprep.mubr.msk.f32.mxu1 %vm891_vm1, %v6648_v33 }
 0x77d   : > { %v12202_v39 = vpop.f32.mrb[30].mxu0 }
 0x77e   : > { %v5831_v12 = vpop.f32.mrb[31].mxu0 }
 0x781   : > { %v12205_v34 = vpop.f32.mrb[32].mxu0 }
 0x782   : > { %v5841_v14 = vpop.f32.mrb[33].mxu0 }
 0x783   : > { %v13090_v14 = vpack.c.bf16 %v6645_v21, %v6644_v44  ;;  %v6504_v44 = vadd.s32 4294967274, %v358_v53 }
 0x785   : > { %v12224_v24 = vpop.f32.mrb[34].mxu0  ;;  %vm6548_vm4 = vcmp.lt.s32.totalorder %v6504_v44, 128 }
 0x786   : > { %v5982_v46 = vpop.f32.mrb[35].mxu0 }
 0x7a9   : > { %v12251_v2 = vpop.f32.mrb[36].mxu0 }
 0x7aa   : > { %v6072_v58 = vpop.f32.mrb[37].mxu0  ;;  %v6646_v2 = vld [vmem:[#allocation5 + $0x3f0] sm:$0xff] }
 0x7ab   : > { %v15080_v62 = vadd.f32 %v6072_v58, %v5831_v12  ;;  %v6647_v58 = vld [vmem:[#allocation5 + $0x3f8] sm:$0xff] }
 0x7ad   : > { %v12254_v56 = vpop.f32.mrb[38].mxu0 }
 0x7ae   : > { %v6082_v4 = vpop.f32.mrb[39].mxu0 }
 0x7b1   : > { %v12273_v31 = vpop.f32.mrb[40].mxu0 }
 0x7b2   : > { %v6254_v49 = vpop.f32.mrb[41].mxu0 }
 0x7b5   : > { %v12276_v27 = vpop.f32.mrb[14].mxu0 }
 0x7b6   : > { %v6393_v20 = vadd.f32 %v12276_v27, %v15086_v6  ;;  %v6264_v63 = vpop.f32.mrb[15].mxu0 }
 0x7b7   : > { %v6392_v43 = vadd.f32 %v15086_v6, %v6264_v63  ;;  %v13094_v63 = vpack.c.bf16 %v6647_v58, %v6646_v2  ;;  %v6620_v2 = vld [vmem:[#allocation3 + $0x8] sm:$0xff] }
 0x7b8   : > { %v6415_v50 = vmul.f32 0.2, %v6393_v20 }
 0x7b9   : > { %v6414_v8 = vmul.f32 0.2, %v6392_v43  ;;  %v12279_v40 = vpop.f32.mrb[16].mxu0 }
 0x7ba   : > { %v6437_v32 = vmax.f32 %v6393_v20, %v6415_v50  ;;  %v6395_v9 = vadd.f32 %v12279_v40, %v15086_v6  ;;  %v6274_v11 = vpop.f32.mrb[17].mxu0  ;;  %v7148_v50 = vld [vmem:[#allocation5 + $0x440] sm:$0xff] }
 0x7bb   : > { %v6436_v52 = vmax.f32 %v6392_v43, %v6414_v8  ;;  %v6394_v23 = vadd.f32 %v15086_v6, %v6274_v11  ;;  %v7149_v8 = vld [vmem:[#allocation5 + $0x448] sm:$0xff] }
 0x7bc   : > { %6599 = vst.msk [vmem:[#allocation3 + $0x18] sm:$0xff] %vm891_vm1, %v6437_v32  ;;  %v6417_v15 = vmul.f32 0.2, %v6395_v9 }
 0x7bd   : > { %v6576_v10 = vsel %vm6510_vm0, %v6436_v52, 0.0  ;;  %v6416_v17 = vmul.f32 0.2, %v6394_v23  ;;  %v12282_v61 = vpop.f32.mrb[18].mxu0 }
 0x7be   : > { %6598 = vst.msk [vmem:[#allocation3 + $0x10] sm:$0xff] %vm891_vm1, %v6576_v10  ;;  %v6439_v18 = vmax.f32 %v6395_v9, %v6417_v15  ;;  %v6397_v41 = vadd.f32 %v12282_v61, %v15086_v6  ;;  %v6284_v5 = vpop.f32.mrb[19].mxu0 }
 0x7bf   : > { %v6438_v22 = vmax.f32 %v6394_v23, %v6416_v17  ;;  %v6396_v26 = vadd.f32 %v15086_v6, %v6284_v5  ;;  %v15120_v17 = vpack.c.bf16 %v7149_v8, %v7148_v50 }
 0x7c0   : > { %6601 = vst.msk [vmem:[#allocation3 + $0x28] sm:$0xff] %vm891_vm1, %v6439_v18  ;;  %v6419_v54 = vmul.f32 0.2, %v6397_v41 }
 0x7c1   : > { %6600 = vst.msk [vmem:[#allocation3 + $0x20] sm:$0xff] %vm891_vm1, %v6438_v22  ;;  %v6418_v57 = vmul.f32 0.2, %v6396_v26  ;;  %v12285_v13 = vpop.f32.mrb[20].mxu0 }
 0x7c2   : > { %v6441_v28 = vmax.f32 %v6397_v41, %v6419_v54  ;;  %v6399_v29 = vadd.f32 %v12285_v13, %v15086_v6  ;;  %v6294_v45 = vpop.f32.mrb[21].mxu0 }
 0x7c3   : > { %v6440_v36 = vmax.f32 %v6396_v26, %v6418_v57  ;;  %v6398_v25 = vadd.f32 %v15086_v6, %v6294_v45 }
 0x7c4   : > { %6603 = vst.msk [vmem:[#allocation3 + $0x38] sm:$0xff] %vm891_vm1, %v6441_v28  ;;  %v6421_v47 = vmul.f32 0.2, %v6399_v29 }
 0x7c5   : > { %6602 = vst.msk [vmem:[#allocation3 + $0x30] sm:$0xff] %vm891_vm1, %v6440_v36  ;;  %v6420_v59 = vmul.f32 0.2, %v6398_v25  ;;  %v12288_v37 = vpop.f32.mrb[22].mxu0  ;;  %v6649_v55 = vld [vmem:[#allocation3 + $0xe] sm:$0xff]  ;;  %v6650_v38 = vld [vmem:[#allocation3 + $0x16] sm:$0xff] }
 0x7c6   : > { %v6443_v35 = vmax.f32 %v6399_v29, %v6421_v47  ;;  %v6401_v33 = vadd.f32 %v12288_v37, %v15086_v6  ;;  %v6304_v60 = vpop.f32.mrb[23].mxu0  ;;  %12321 = vmatmul.mubr.msk.f32.vlgmr.msra.gmra.mrb[236].mxu1 %vm891_vm1, %v6649_v55 }
 0x7c7   : > { %v6442_v48 = vmax.f32 %v6398_v25, %v6420_v59  ;;  %v6400_v39 = vadd.f32 %v15086_v6, %v6304_v60  ;;  %12323 = vmatprep.mubr.msk.f32.mxu1 %vm891_vm1, %v6650_v38  ;;  %13085 = vmatpush3.bf16.msra.mxu1 %v15073_v7 }
 0x7c8   : > { %6605 = vst.msk [vmem:[#allocation3 + $0x48] sm:$0xff] %vm891_vm1, %v6443_v35  ;;  %v6423_v12 = vmul.f32 0.2, %v6401_v33  ;;  %v6651_v34 = vld [vmem:[#allocation3 + $0x1e] sm:$0xff]  ;;  %13087 = vmatprep.subr.bf16.mxu1 %v13086_v0  ;;  %v6652_v49 = vld [vmem:[#allocation3 + $0x26] sm:$0xff] }
 0x7c9   : > { %6604 = vst.msk [vmem:[#allocation3 + $0x40] sm:$0xff] %vm891_vm1, %v6442_v48  ;;  %v6422_v24 = vmul.f32 0.2, %v6400_v39  ;;  %v12291_v46 = vpop.f32.mrb[24].mxu0 }
 0x7ca   : > { %v6445_v56 = vmax.f32 %v6401_v33, %v6423_v12  ;;  %v6403_v4 = vadd.f32 %v12291_v46, %v15086_v6  ;;  %v6314_v31 = vpop.f32.mrb[25].mxu0  ;;  %12324 = vmatmul.mubr.msk.f32.gmra.mrb[238].mxu1 %vm891_vm1, %v6651_v34  ;;  %v7151_v46 = vld [vmem:[#allocation5 + $0x458] sm:$0xff] }
 0x7cb   : > { %v6444_v7 = vmax.f32 %v6400_v39, %v6422_v24  ;;  %v6402_v51 = vadd.f32 %v15086_v6, %v6314_v31  ;;  %12326 = vmatprep.mubr.msk.f32.mxu1 %vm891_vm1, %v6652_v49  ;;  %13089 = vmatpush3.bf16.msra.mxu1 %v13086_v0  ;;  %v7150_v24 = vld [vmem:[#allocation5 + $0x450] sm:$0xff]  ;;  %v6621_v31 = vld [vmem:[#allocation3 + $0x10] sm:$0xff] }
 0x7cc   : > { %6607 = vst.msk [vmem:[#allocation3 + $0x58] sm:$0xff] %vm891_vm1, %v6445_v56  ;;  %v6425_v27 = vmul.f32 0.2, %v6403_v4  ;;  %v6653_v20 = vld [vmem:[#allocation3 + $0x2e] sm:$0xff]  ;;  %13091 = vmatprep.subr.bf16.mxu1 %v13090_v14  ;;  %v6654_v11 = vld [vmem:[#allocation3 + $0x36] sm:$0xff]  ;;  %v13102_v58 = vpack.c.bf16 %v7151_v46, %v7150_v24 }
 0x7cd   : > { %6606 = vst.msk [vmem:[#allocation3 + $0x50] sm:$0xff] %vm891_vm1, %v6444_v7  ;;  %v6424_v19 = vmul.f32 0.2, %v6402_v51  ;;  %v12294_v43 = vpop.f32.mrb[26].mxu0  ;;  %v7152_v56 = vld [vmem:[#allocation5 + $0x460] sm:$0xff]  ;;  %v7636_v24 = vld [vmem:[#allocation5 + $0x498] sm:$0xff] }
 0x7ce   : > { %v6447_v40 = vmax.f32 %v6403_v4, %v6425_v27  ;;  %v6405_v32 = vadd.f32 %v12294_v43, %v15086_v6  ;;  %v6324_v9 = vpop.f32.mrb[27].mxu0  ;;  %12327 = vmatmul.mubr.msk.f32.gmra.mrb[240].mxu1 %vm891_vm1, %v6653_v20  ;;  %v7153_v4 = vld [vmem:[#allocation5 + $0x468] sm:$0xff]  ;;  %v7155_v27 = vld [vmem:[#allocation5 + $0x478] sm:$0xff] }
 0x7cf   : > { %v6446_v52 = vmax.f32 %v6402_v51, %v6424_v19  ;;  %v6404_v23 = vadd.f32 %v15086_v6, %v6324_v9  ;;  %12329 = vmatprep.mubr.msk.f32.mxu1 %vm891_vm1, %v6654_v11  ;;  %13093 = vmatpush3.bf16.msra.mxu1 %v13090_v14  ;;  %v6667_v14 = vld [vmem:[#allocation3 + $0x9e] sm:$0xff]  ;;  %v13106_v49 = vpack.c.bf16 %v7153_v4, %v7152_v56  ;;  %v6625_v19 = vld [vmem:[#allocation3 + $0x30] sm:$0xff]  ;;  %v6628_v8 = vld [vmem:[#allocation3 + $0x48] sm:$0xff] }
 0x7d0   : > { %6609 = vst.msk [vmem:[#allocation3 + $0x68] sm:$0xff] %vm891_vm1, %v6447_v40  ;;  %v6427_v15 = vmul.f32 0.2, %v6405_v32  ;;  %v6655_v10 = vld [vmem:[#allocation3 + $0x3e] sm:$0xff]  ;;  %13095 = vmatprep.subr.bf16.mxu1 %v13094_v63  ;;  %v6656_v26 = vld [vmem:[#allocation3 + $0x46] sm:$0xff]  ;;  %v7132_v53 = vld [vmem:[#allocation3 + $0x34] sm:$0xff] }
 0x7d1   : > { %6608 = vst.msk [vmem:[#allocation3 + $0x60] sm:$0xff] %vm891_vm1, %v6446_v52  ;;  %v6426_v61 = vmul.f32 0.2, %v6404_v23  ;;  %v12297_v18 = vpop.f32.mrb[28].mxu0  ;;  %v6622_v7 = vld [vmem:[#allocation3 + $0x18] sm:$0xff]  ;;  %v7154_v51 = vld [vmem:[#allocation5 + $0x470] sm:$0xff] }
 0x7d2   : > { %v6449_v41 = vmax.f32 %v6405_v32, %v6427_v15  ;;  %v6407_v5 = vadd.f32 %v12297_v18, %v15086_v6  ;;  %v6334_v22 = vpop.f32.mrb[29].mxu0  ;;  %12330 = vmatmul.mubr.msk.f32.gmra.mrb[242].mxu1 %vm891_vm1, %v6655_v10  ;;  %v6623_v20 = vld [vmem:[#allocation3 + $0x20] sm:$0xff]  ;;  %v6626_v43 = vld [vmem:[#allocation3 + $0x38] sm:$0xff] }
 0x7d3   : > { %v6448_v54 = vmax.f32 %v6404_v23, %v6426_v61  ;;  %v6406_v57 = vadd.f32 %v15086_v6, %v6334_v22  ;;  %12332 = vmatprep.mubr.msk.f32.mxu1 %vm891_vm1, %v6656_v26  ;;  %13097 = vmatpush3.bf16.msra.mxu1 %v13094_v63  ;;  %v6624_v63 = vld [vmem:[#allocation3 + $0x28] sm:$0xff]  ;;  %v6627_v50 = vld [vmem:[#allocation3 + $0x40] sm:$0xff]  ;;  %v6630_v32 = vld [vmem:[#allocation3 + $0x58] sm:$0xff]  ;;  %v5271_v61 = vpop.f32.mrb[232].mxu1 }
 0x7d4   : > { %6611 = vst.msk [vmem:[#allocation3 + $0x78] sm:$0xff] %vm891_vm1, %v6449_v41  ;;  %v6429_v13 = vmul.f32 0.2, %v6407_v5  ;;  %v6657_v30 = vld [vmem:[#allocation3 + $0x4e] sm:$0xff]  ;;  %13099 = vmatprep.subr.bf16.mxu1 %v15120_v17  ;;  %v6658_v25 = vld [vmem:[#allocation3 + $0x56] sm:$0xff]  ;;  %v12153_v18 = vpop.f32.mrb[233].mxu1 }
 0x7d5   : > { %6610 = vst.msk [vmem:[#allocation3 + $0x70] sm:$0xff] %vm891_vm1, %v6448_v54  ;;  %v6428_v28 = vmul.f32 0.2, %v6406_v57  ;;  %v12300_v29 = vpop.f32.mrb[42].mxu0  ;;  %v6629_v40 = vld [vmem:[#allocation3 + $0x50] sm:$0xff]  ;;  %v7129_v54 = vld [vmem:[#allocation3 + $0x1c] sm:$0xff] }
 0x7d6   : > { %v6451_v45 = vmax.f32 %v6407_v5, %v6429_v13  ;;  %v6344_v36 = vpop.f32.mrb[43].mxu0  ;;  %12333 = vmatmul.mubr.msk.f32.gmra.mrb[244].mxu1 %vm891_vm1, %v6657_v30  ;;  %v7127_v41 = vld [vmem:[#allocation3 + $0xc] sm:$0xff]  ;;  %v7128_v22 = vld [vmem:[#allocation3 + $0x14] sm:$0xff]  ;;  %v7133_v30 = vld [vmem:[#allocation3 + $0x3c] sm:$0xff] }
 0x7d7   : > { %v6450_v47 = vmax.f32 %v6406_v57, %v6428_v28  ;;  %v6381_v0 = vadd.f32 %v6344_v36, %v15080_v62  ;;  %12335 = vmatprep.mubr.msk.f32.mxu1 %vm891_vm1, %v6658_v25  ;;  %v6632_v11 = vld [vmem:[#allocation3 + $0x68] sm:$0xff]  ;;  %v5276_v5 = vpop.f32.mrb[234].mxu1  ;;  %v7145_v4 = vld [vmem:[#allocation3 + $0x9c] sm:$0xff] }
 0x7d8   : > { %6613 = vst.msk [vmem:[#allocation3 + $0x88] sm:$0xff] %vm891_vm1, %v6451_v45  ;;  %v6659_v59 = vld [vmem:[#allocation3 + $0x5e] sm:$0xff]  ;;  %v6660_v55 = vld [vmem:[#allocation3 + $0x66] sm:$0xff]  ;;  %v12156_v26 = vpop.f32.mrb[235].mxu1  ;;  %v7136_v45 = vld [vmem:[#allocation3 + $0x54] sm:$0xff] }
 0x7d9   : > { %6612 = vst.msk [vmem:[#allocation3 + $0x80] sm:$0xff] %vm891_vm1, %v6450_v47  ;;  %v6408_v37 = vadd.f32 %v15086_v6, %v6381_v0  ;;  %v6631_v9 = vld [vmem:[#allocation3 + $0x60] sm:$0xff]  ;;  %v7131_v13 = vld [vmem:[#allocation3 + $0x2c] sm:$0xff] }
 0x7da   : > { %12336 = vmatmul.mubr.msk.f32.gmra.mrb[246].mxu1 %vm891_vm1, %v6659_v59  ;;  %v7130_v57 = vld [vmem:[#allocation3 + $0x24] sm:$0xff]  ;;  %v7135_v29 = vld [vmem:[#allocation3 + $0x4c] sm:$0xff]  ;;  %v7137_v36 = vld [vmem:[#allocation3 + $0x5c] sm:$0xff] }
 0x7db   : > { %v6430_v38 = vmul.f32 0.2, %v6408_v37  ;;  %12338 = vmatprep.mubr.msk.f32.mxu1 %vm891_vm1, %v6660_v55  ;;  %v6634_v23 = vld [vmem:[#allocation3 + $0x78] sm:$0xff]  ;;  %v7134_v28 = vld [vmem:[#allocation3 + $0x44] sm:$0xff] }
 0x7dc   : > { %v6661_v21 = vld [vmem:[#allocation3 + $0x6e] sm:$0xff]  ;;  %v6662_v62 = vld [vmem:[#allocation3 + $0x76] sm:$0xff]  ;;  %v7138_v25 = vld [vmem:[#allocation3 + $0x64] sm:$0xff] }
 0x7dd   : > { %v6452_v35 = vmax.f32 %v6408_v37, %v6430_v38  ;;  %v6633_v52 = vld [vmem:[#allocation3 + $0x70] sm:$0xff]  ;;  %v7662_v38 = vld [vmem:[#allocation5 + $0x4c8] sm:$0xff] }
 0x7de   : > { %12339 = vmatmul.mubr.msk.f32.gmra.mrb[248].mxu1 %vm891_vm1, %v6661_v21  ;;  %v7139_v47 = vld [vmem:[#allocation3 + $0x6c] sm:$0xff]  ;;  %v7140_v0 = vld [vmem:[#allocation3 + $0x74] sm:$0xff]  ;;  %v7663_v21 = vld [vmem:[#allocation5 + $0x4d0] sm:$0xff] }
 0x7df   : > { %v6592_v33 = vsel %vm6548_vm4, %v6452_v35, 0.0  ;;  %12341 = vmatprep.mubr.msk.f32.mxu1 %vm891_vm1, %v6662_v62  ;;  %v6636_v10 = vld [vmem:[#allocation3 + $0x88] sm:$0xff]  ;;  %v7661_v55 = vld [vmem:[#allocation5 + $0x4c0] sm:$0xff]  ;;  %v8128_v61 = vld [vmem:[#allocation5 + $0x528] sm:$0xff] }
 0x7e0   : > { %6614 = vst.msk [vmem:[#allocation3 + $0x90] sm:$0xff] %vm891_vm1, %v6592_v33  ;;  %v6663_v60 = vld [vmem:[#allocation3 + $0x7e] sm:$0xff]  ;;  %v6664_v6 = vld [vmem:[#allocation3 + $0x86] sm:$0xff]  ;;  %v13115_v35 = vpack.c.bf16 %v7662_v38, %v7661_v55 }
 0x7e1   : > { %v6635_v15 = vld [vmem:[#allocation3 + $0x80] sm:$0xff]  ;;  %v7664_v62 = vld [vmem:[#allocation5 + $0x4d8] sm:$0xff] }
 0x7e2   : > { %12342 = vmatmul.mubr.msk.f32.gmra.mrb[250].mxu1 %vm891_vm1, %v6663_v60  ;;  %v7141_v44 = vld [vmem:[#allocation3 + $0x7c] sm:$0xff]  ;;  %v7142_v59 = vld [vmem:[#allocation3 + $0x84] sm:$0xff]  ;;  %13116 = vmatpush3.bf16.msra.mxu0 %v13115_v35  ;;  %v13118_v33 = vpack.c.bf16 %v7664_v62, %v7663_v21  ;;  %v7665_v60 = vld [vmem:[#allocation5 + $0x4e0] sm:$0xff] }
 0x7e3   : > { %12344 = vmatprep.mubr.msk.f32.mxu1 %vm891_vm1, %v6664_v6  ;;  %13117 = vmatprep.subr.bf16.mxu0 %v13382_v1  ;;  %v7666_v6 = vld [vmem:[#allocation5 + $0x4e8] sm:$0xff]  ;;  %v8130_v5 = vld [vmem:[#allocation5 + $0x538] sm:$0xff] }
 0x7e6   : > { %13119 = vmatpush3.bf16.msra.mxu0 %v13118_v33 }
 0x7e7   : > { %v6665_v48 = vld [vmem:[#allocation3 + $0x8e] sm:$0xff]  ;;  %v6666_v39 = vld [vmem:[#allocation3 + $0x96] sm:$0xff]  ;;  %13120 = vmatprep.subr.bf16.mxu0 %v13382_v1 }
 0x7e8   : > { %12345 = vmatmul.mubr.msk.f32.gmra.mrb[252].mxu1 %vm891_vm1, %v6665_v48  ;;  %v6637_v12 = vld [vmem:[#allocation3 + $0x90] sm:$0xff]  ;;  %v13121_v48 = vpack.c.bf16 %v7666_v6, %v7665_v60 }
 0x7e9   : > { %v15145_v34 = vld [vmem:[#allocation3 + $0x8c] sm:$0xff]  ;;  %12347 = vmatprep.mubr.msk.f32.mxu1 %vm891_vm1, %v6666_v39  ;;  %v7144_v37 = vld [vmem:[#allocation3 + $0x94] sm:$0xff] }
 0x7ea   : > { %8570 = vst.msk [vmem:[#allocation3 + $0x90] sm:$0x3] %vm917_vm3, %v13383_v42  ;;  %13122 = vmatpush3.bf16.msra.mxu0 %v13121_v48  ;;  %v7633_v39 = vld [vmem:[#allocation5 + $0x480] sm:$0xff] }
 0x7eb   : > { %13123 = vmatprep.subr.bf16.mxu0 %v13382_v1 }
 0x7ec   : > { %12348 = vmatmul.mubr.msk.f32.gmra.mrb[254].mxu1 %vm891_vm1, %v6667_v14  ;;  %v7635_v14 = vld [vmem:[#allocation5 + $0x490] sm:$0xff] }
 0x7ed   : > { %12366 = vmatprep.mubr.msk.f32.mxu1 %vm891_vm1, %v15076_v3  ;;  %v13110_v3 = vpack.c.bf16 %v7155_v27, %v7154_v51  ;;  %v13130_v46 = vpack.c.bf16 %v7636_v24, %v7635_v14  ;;  %v7667_v27 = vld [vmem:[#allocation5 + $0x4f0] sm:$0xff] }
 0x7f0   : > { %12367 = vmatmul.mubr.msk.f32.vlgmr.msra.gmra.mrb[0].mxu1 %vm891_vm1, %v6620_v2  ;;  %v7637_v2 = vld [vmem:[#allocation5 + $0x4a0] sm:$0xff] }
 0x7f1   : > { %13101 = vmatpush3.bf16.msra.mxu1 %v15120_v17  ;;  %12369 = vmatprep.mubr.msk.f32.mxu1 %vm891_vm1, %v6621_v31  ;;  %v6638_v17 = vld [vmem:[#allocation3 + $0x98] sm:$0xff]  ;;  %v7639_v31 = vld [vmem:[#allocation5 + $0x4b0] sm:$0xff] }
 0x7f2   : > { %13103 = vmatprep.subr.bf16.mxu1 %v13102_v58 }
 0x7f4   : > { %12370 = vmatmul.mubr.msk.f32.gmra.mrb[238].mxu1 %vm891_vm1, %v6622_v7  ;;  %v7146_v7 = vld [vmem:[#allocation3 + $0xa4] sm:$0xff] }
 0x7f5   : > { %12372 = vmatprep.mubr.msk.f32.mxu1 %vm891_vm1, %v6623_v20  ;;  %13105 = vmatpush3.bf16.msra.mxu1 %v13102_v58  ;;  %v7638_v58 = vld [vmem:[#allocation5 + $0x4a8] sm:$0xff]  ;;  %v7668_v20 = vld [vmem:[#allocation5 + $0x4f8] sm:$0xff] }
 0x7f6   : > { %13107 = vmatprep.subr.bf16.mxu1 %v13106_v49  ;;  %v13133_v56 = vpack.c.bf16 %v7638_v58, %v7637_v2 }
 0x7f8   : > { %12373 = vmatmul.mubr.msk.f32.gmra.mrb[240].mxu1 %vm891_vm1, %v6624_v63  ;;  %v13124_v63 = vpack.c.bf16 %v7668_v20, %v7667_v27 }
 0x7f9   : > { %12375 = vmatprep.mubr.msk.f32.mxu1 %vm891_vm1, %v6625_v19  ;;  %13109 = vmatpush3.bf16.msra.mxu1 %v13106_v49  ;;  %v7640_v49 = vld [vmem:[#allocation5 + $0x4b8] sm:$0xff]  ;;  %v6112_v19 = vld [vmem:[#allocation2 + $0xb2] sm:$0xf] }
 0x7fa   : > { %13111 = vmatprep.subr.bf16.mxu1 %v13110_v3  ;;  %v13136_v51 = vpack.c.bf16 %v7640_v49, %v7639_v31  ;;  %13125 = vmatpush3.bf16.msra.mxu0 %v13124_v63 }
 0x7fb   : > { %13138 = vmatprep.subr.bf16.mxu0 %v13382_v1 }
 0x7fc   : > { %12376 = vmatmul.mubr.msk.f32.gmra.mrb[242].mxu1 %vm891_vm1, %v6626_v43  ;;  %v7613_v43 = vld [vmem:[#allocation2] sm:$0xff] }
 0x7fd   : > { %12378 = vmatprep.mubr.msk.f32.mxu1 %vm891_vm1, %v6627_v50  ;;  %13113 = vmatpush3.bf16.msra.mxu1 %v13110_v3  ;;  %v6111_v3 = vld [vmem:[#allocation2 + $0xaa] sm:$0xff] }
 0x7fe   : > { %13126 = vmatprep.subr.bf16.mxu1 %v13382_v1  ;;  %12301 = vmatprep.mubr.msk.f32.mxu0 %vm891_vm1, %v6111_v3  ;;  %v7641_v50 = vld [vmem:[#allocation2 + $0x7] sm:$0xff] }
 0x7ff   : > { %12302 = vmatmul.mubr.msk.f32.gmra.mrb[44].mxu0 %vm891_vm1, %v6112_v19 }
 0x800   : > { %12379 = vmatmul.mubr.msk.f32.gmra.mrb[244].mxu1 %vm891_vm1, %v6628_v8  ;;  %12458 = vmatprep.mubr.msk.f32.mxu0 %vm13384_vm2, %v13383_v42  ;;  %v7614_v8 = vld [vmem:[#allocation2 + $0x8] sm:$0xff] }
 0x801   : > { %12381 = vmatprep.mubr.msk.f32.mxu1 %vm891_vm1, %v6629_v40  ;;  %v8123_v40 = vld [vmem:[#allocation5 + $0x500] sm:$0xff] }
 0x803   : > { %12459 = vmatmul.mubr.msk.f32.vlgmr.msra.gmra.mrb[46].mxu0 %vm891_vm1, %v7641_v50 }
 0x804   : > { %12382 = vmatmul.mubr.msk.f32.gmra.mrb[246].mxu1 %vm891_vm1, %v6630_v32  ;;  %12461 = vmatprep.mubr.msk.f32.mxu0 %vm13384_vm2, %v13383_v42  ;;  %v8124_v32 = vld [vmem:[#allocation5 + $0x508] sm:$0xff] }
 0x805   : > { %12384 = vmatprep.mubr.msk.f32.mxu1 %vm891_vm1, %v6631_v9  ;;  %v13139_v9 = vpack.c.bf16 %v8124_v32, %v8123_v40 }
 0x807   : > { %13140 = vmatpush3.bf16.msra.mxu0 %v13139_v9 }
 0x808   : > { %12385 = vmatmul.mubr.msk.f32.gmra.mrb[248].mxu1 %vm891_vm1, %v6632_v11  ;;  %13141 = vmatprep.subr.bf16.mxu0 %v13382_v1  ;;  %v8125_v11 = vld [vmem:[#allocation5 + $0x510] sm:$0xff] }
 0x809   : > { %12387 = vmatprep.mubr.msk.f32.mxu1 %vm891_vm1, %v6633_v52  ;;  %v8126_v52 = vld [vmem:[#allocation5 + $0x518] sm:$0xff] }
 0x80c   : > { %12388 = vmatmul.mubr.msk.f32.gmra.mrb[250].mxu1 %vm891_vm1, %v6634_v23  ;;  %v13142_v23 = vpack.c.bf16 %v8126_v52, %v8125_v11 }
 0x80d   : > { %12390 = vmatprep.mubr.msk.f32.mxu1 %vm891_vm1, %v6635_v15 }
 0x80e   : > { %13143 = vmatpush3.bf16.msra.mxu0 %v13142_v23 }
 0x80f   : > { %13144 = vmatprep.subr.bf16.mxu0 %v13382_v1 }
 0x810   : > { %12391 = vmatmul.mubr.msk.f32.gmra.mrb[252].mxu1 %vm891_vm1, %v6636_v10 }
 0x811   : > { %12393 = vmatprep.mubr.msk.f32.mxu1 %vm891_vm1, %v6637_v12  ;;  %v7634_v12 = vld [vmem:[#allocation5 + $0x488] sm:$0xff] }
 0x814   : > { %12394 = vmatmul.mubr.msk.f32.gmra.mrb[2].mxu1 %vm891_vm1, %v6638_v17  ;;  %v8127_v17 = vld [vmem:[#allocation5 + $0x520] sm:$0xff] }
 0x815   : > { %12412 = vmatprep.mubr.msk.f32.mxu1 %vm891_vm1, %v7127_v41  ;;  %v13145_v18 = vpack.c.bf16 %v8128_v61, %v8127_v17  ;;  %v8129_v41 = vld [vmem:[#allocation5 + $0x530] sm:$0xff] }
 0x817   : > { %13146 = vmatpush3.bf16.msra.mxu0 %v13145_v18 }
 0x818   : > { %12413 = vmatmul.mubr.msk.f32.vlgmr.msra.gmra.mrb[4].mxu1 %vm891_vm1, %v7128_v22  ;;  %13147 = vmatprep.subr.bf16.mxu0 %v13382_v1  ;;  %v13148_v22 = vpack.c.bf16 %v8130_v5, %v8129_v41 }
 0x819   : > { %12415 = vmatprep.mubr.msk.f32.mxu1 %vm891_vm1, %v7129_v54 }
 0x81b   : > { %13149 = vmatpush3.bf16.msra.mxu0 %v13148_v22 }
 0x81c   : > { %12416 = vmatmul.mubr.msk.f32.gmra.mrb[238].mxu1 %vm891_vm1, %v7130_v57  ;;  %13174 = vmatprep.subr.bf16.mxu0 %v13382_v1 }
 0x81d   : > { %12418 = vmatprep.mubr.msk.f32.mxu1 %vm891_vm1, %v7131_v13 }
 0x820   : > { %12419 = vmatmul.mubr.msk.f32.gmra.mrb[240].mxu1 %vm891_vm1, %v7132_v53 }
 0x821   : > { %12421 = vmatprep.mubr.msk.f32.mxu1 %vm891_vm1, %v7133_v30 }
 0x824   : > { %12422 = vmatmul.mubr.msk.f32.gmra.mrb[242].mxu1 %vm891_vm1, %v7134_v28 }
 0x825   : > { %12424 = vmatprep.mubr.msk.f32.mxu1 %vm891_vm1, %v7135_v29 }
 0x828   : > { %12425 = vmatmul.mubr.msk.f32.gmra.mrb[244].mxu1 %vm891_vm1, %v7136_v45  ;;  %v15225_v45 = vld [vmem:[%s16062_s4 + $0x5] ss:$0 sm:$0xff] }
 0x829   : > { %12427 = vmatprep.mubr.msk.f32.mxu1 %vm891_vm1, %v7137_v36 }
 0x82c   : > { %12428 = vmatmul.mubr.msk.f32.gmra.mrb[246].mxu1 %vm891_vm1, %v7138_v25 }
 0x82d   : > { %12430 = vmatprep.mubr.msk.f32.mxu1 %vm891_vm1, %v7139_v47 }
 0x830   : > { %12431 = vmatmul.mubr.msk.f32.gmra.mrb[248].mxu1 %vm891_vm1, %v7140_v0 }
 0x831   : > { %12433 = vmatprep.mubr.msk.f32.mxu1 %vm891_vm1, %v7141_v44 }
 0x834   : > { %12434 = vmatmul.mubr.msk.f32.gmra.mrb[250].mxu1 %vm891_vm1, %v7142_v59 }
 0x835   : > { %12436 = vmatprep.mubr.msk.f32.mxu1 %vm891_vm1, %v15145_v34  ;;  %v13127_v34 = vpack.c.bf16 %v7634_v12, %v7633_v39 }
 0x837   : > { %13128 = vmatpush3.bf16.msra.mxu1 %v13127_v34 }
 0x838   : > { %12437 = vmatmul.mubr.msk.f32.gmra.mrb[252].mxu1 %vm891_vm1, %v7144_v37  ;;  %13129 = vmatprep.subr.bf16.mxu1 %v13382_v1 }
 0x839   : > { %12439 = vmatprep.mubr.msk.f32.mxu1 %vm891_vm1, %v7145_v4 }
 0x83b   : > { %13131 = vmatpush3.bf16.msra.mxu1 %v13130_v46 }
 0x83c   : > { %13132 = vmatprep.subr.bf16.mxu1 %v13382_v1  ;;  %12440 = vmatmul.mubr.msk.f32.gmra.mrb[6].mxu1 %vm891_vm1, %v7146_v7 }
 0x83d   : > { %12531 = vmatprep.mubr.msk.f32.mxu1 %vm13384_vm2, %v13383_v42 }
 0x83f   : > { %13134 = vmatpush3.bf16.msra.mxu1 %v13133_v56 }
 0x840   : > { %13135 = vmatprep.subr.bf16.mxu1 %v13382_v1 }
 0x843   : > { %13137 = vmatpush3.bf16.msra.mxu1 %v13136_v51 }
 0x844   : > { %13150 = vmatprep.subr.bf16.mxu1 %v13382_v1 }
 0x846   : > { %12532 = vmatmul.mubr.msk.f32.vlgmr.msra.gmra.mrb[8].mxu1 %vm891_vm1, %v7613_v43 }
 0x847   : > { %12534 = vmatprep.mubr.msk.f32.mxu1 %vm13384_vm2, %v13383_v42 }
 0x84a   : > { %12535 = vmatmul.mubr.msk.f32.gmra.mrb[10].mxu1 %vm891_vm1, %v7614_v8 }
 0x84b   : > { %12537 = vmatprep.mubr.msk.f32.mxu1 %vm13384_vm2, %v13383_v42 }
 0x899   : > { %v12322_v15 = vpop.f32.mrb[236].mxu1 }
 0x89a   : > { %v6803_v10 = vpop.f32.mrb[237].mxu1 }
 0x8bf   : > { %v12349_v26 = vpop.f32.mrb[254].mxu1 }
 0x8c0   : > { %v6893_v54 = vpop.f32.mrb[255].mxu1 }
 0x8c3   : > { %v12368_v57 = vpop.f32.mrb[0].mxu1 }
 0x8c4   : > { %v7028_v13 = vpop.f32.mrb[1].mxu1 }
 0x8e7   : > { %v12395_v53 = vpop.f32.mrb[2].mxu1 }
 0x8e8   : > { %v7118_v30 = vpop.f32.mrb[3].mxu1 }
 0x8eb   : > { %v12414_v28 = vpop.f32.mrb[4].mxu1 }
 0x8ec   : > { %v7282_v29 = vpop.f32.mrb[5].mxu1 }
 0x8ef   : > { %v12417_v36 = vpop.f32.mrb[238].mxu1 }
 0x8f0   : > { %v7409_v25 = vadd.f32 %v12417_v36, %v15225_v45  ;;  %v7292_v47 = vpop.f32.mrb[239].mxu1 }
 0x8f1   : > { %v7408_v0 = vadd.f32 %v15225_v45, %v7292_v47 }
 0x8f2   : > { %v7429_v44 = vmul.f32 0.2, %v7409_v25 }
 0x8f3   : > { %v7428_v59 = vmul.f32 0.2, %v7408_v0  ;;  %v12420_v37 = vpop.f32.mrb[240].mxu1 }
 0x8f4   : > { %v7449_v55 = vmax.f32 %v7409_v25, %v7429_v44  ;;  %v7411_v38 = vadd.f32 %v12420_v37, %v15225_v45  ;;  %v7302_v21 = vpop.f32.mrb[241].mxu1 }
 0x8f5   : > { %v7448_v35 = vmax.f32 %v7408_v0, %v7428_v59  ;;  %v7410_v62 = vadd.f32 %v15225_v45, %v7302_v21 }
 0x8f6   : > { %7596 = vst.msk [vmem:[#allocation2 + $0x18] sm:$0xff] %vm891_vm1, %v7449_v55  ;;  %v7431_v33 = vmul.f32 0.2, %v7411_v38 }
 0x8f7   : > { %7595 = vst.msk [vmem:[#allocation2 + $0x10] sm:$0xff] %vm891_vm1, %v7448_v35  ;;  %v7430_v60 = vmul.f32 0.2, %v7410_v62  ;;  %v12423_v6 = vpop.f32.mrb[242].mxu1 }
 0x8f8   : > { %v7451_v48 = vmax.f32 %v7411_v38, %v7431_v33  ;;  %v7413_v39 = vadd.f32 %v12423_v6, %v15225_v45  ;;  %v7312_v12 = vpop.f32.mrb[243].mxu1 }
 0x8f9   : > { %v7450_v34 = vmax.f32 %v7410_v62, %v7430_v60  ;;  %v7412_v14 = vadd.f32 %v15225_v45, %v7312_v12 }
 0x8fa   : > { %7598 = vst.msk [vmem:[#allocation2 + $0x28] sm:$0xff] %vm891_vm1, %v7451_v48  ;;  %v7433_v24 = vmul.f32 0.2, %v7413_v39 }
 0x8fb   : > { %7597 = vst.msk [vmem:[#allocation2 + $0x20] sm:$0xff] %vm891_vm1, %v7450_v34  ;;  %v7432_v46 = vmul.f32 0.2, %v7412_v14  ;;  %v12426_v2 = vpop.f32.mrb[244].mxu1 }
 0x8fc   : > { %v7453_v58 = vmax.f32 %v7413_v39, %v7433_v24  ;;  %v7415_v56 = vadd.f32 %v12426_v2, %v15225_v45  ;;  %v7322_v4 = vpop.f32.mrb[245].mxu1 }
 0x8fd   : > { %v7452_v31 = vmax.f32 %v7412_v14, %v7432_v46  ;;  %v7414_v49 = vadd.f32 %v15225_v45, %v7322_v4  ;;  %v7616_v9 = vld [vmem:[#allocation2 + $0x18] sm:$0xff] }
 0x8fe   : > { %7600 = vst.msk [vmem:[#allocation2 + $0x38] sm:$0xff] %vm891_vm1, %v7453_v58  ;;  %v7435_v7 = vmul.f32 0.2, %v7415_v56  ;;  %v7642_v51 = vld [vmem:[#allocation2 + $0xf] sm:$0xff]  ;;  %v7643_v32 = vld [vmem:[#allocation2 + $0x17] sm:$0xff] }
 0x8ff   : > { %v7615_v27 = vld [vmem:[#allocation2 + $0x10] sm:$0xff]  ;;  %7599 = vst.msk [vmem:[#allocation2 + $0x30] sm:$0xff] %vm891_vm1, %v7452_v31  ;;  %v7434_v20 = vmul.f32 0.2, %v7414_v49  ;;  %v12429_v3 = vpop.f32.mrb[246].mxu1  ;;  %12462 = vmatmul.mubr.msk.f32.gmra.mrb[48].mxu0 %vm891_vm1, %v7642_v51 }
 0x900   : > { %12538 = vmatmul.mubr.msk.f32.gmra.mrb[12].mxu1 %vm891_vm1, %v7615_v27  ;;  %v7455_v63 = vmax.f32 %v7415_v56, %v7435_v7  ;;  %v7417_v19 = vadd.f32 %v12429_v3, %v15225_v45  ;;  %v7332_v43 = vpop.f32.mrb[247].mxu1  ;;  %12464 = vmatprep.mubr.msk.f32.mxu0 %vm13384_vm2, %v13383_v42 }
 0x901   : > { %12540 = vmatprep.mubr.msk.f32.mxu1 %vm13384_vm2, %v13383_v42  ;;  %v7454_v50 = vmax.f32 %v7414_v49, %v7434_v20  ;;  %v7416_v8 = vadd.f32 %v15225_v45, %v7332_v43  ;;  %v7618_v36 = vld [vmem:[#allocation2 + $0x28] sm:$0xff] }
 0x902   : > { %7602 = vst.msk [vmem:[#allocation2 + $0x48] sm:$0xff] %vm891_vm1, %v7455_v63  ;;  %v7437_v40 = vmul.f32 0.2, %v7417_v19  ;;  %v7644_v41 = vld [vmem:[#allocation2 + $0x1f] sm:$0xff]  ;;  %v7645_v29 = vld [vmem:[#allocation2 + $0x27] sm:$0xff] }
 0x903   : > { %7601 = vst.msk [vmem:[#allocation2 + $0x40] sm:$0xff] %vm891_vm1, %v7454_v50  ;;  %v7436_v11 = vmul.f32 0.2, %v7416_v8  ;;  %v12432_v52 = vpop.f32.mrb[248].mxu1  ;;  %12465 = vmatmul.mubr.msk.f32.gmra.mrb[50].mxu0 %vm891_vm1, %v7643_v32  ;;  %v7617_v5 = vld [vmem:[#allocation2 + $0x20] sm:$0xff] }
 0x904   : > { %12541 = vmatmul.mubr.msk.f32.gmra.mrb[14].mxu1 %vm891_vm1, %v7616_v9  ;;  %v7457_v23 = vmax.f32 %v7417_v19, %v7437_v40  ;;  %v7419_v15 = vadd.f32 %v12432_v52, %v15225_v45  ;;  %v7342_v10 = vpop.f32.mrb[249].mxu1  ;;  %12467 = vmatprep.mubr.msk.f32.mxu0 %vm13384_vm2, %v13383_v42  ;;  %v7659_v50 = vld [vmem:[#allocation2 + $0x97] sm:$0x3] }
 0x905   : > { %12543 = vmatprep.mubr.msk.f32.mxu1 %vm13384_vm2, %v13383_v42  ;;  %v7456_v17 = vmax.f32 %v7416_v8, %v7436_v11  ;;  %v7418_v61 = vadd.f32 %v15225_v45, %v7342_v10  ;;  %v7620_v6 = vld [vmem:[#allocation2 + $0x38] sm:$0xff]  ;;  %v8103_v8 = vld [vmem:[#allocation2 + $0xe] sm:$0xff]  ;;  %v12303_v11 = vpop.f32.mrb[44].mxu0 }
 0x906   : > { %7604 = vst.msk [vmem:[#allocation2 + $0x58] sm:$0xff] %vm891_vm1, %v7457_v23  ;;  %v7439_v18 = vmul.f32 0.2, %v7419_v15  ;;  %v7646_v21 = vld [vmem:[#allocation2 + $0x2f] sm:$0xff]  ;;  %v7647_v60 = vld [vmem:[#allocation2 + $0x37] sm:$0xff]  ;;  %v6354_v52 = vpop.f32.mrb[45].mxu0 }
 0x907   : > { %7603 = vst.msk [vmem:[#allocation2 + $0x50] sm:$0xff] %vm891_vm1, %v7456_v17  ;;  %v7438_v22 = vmul.f32 0.2, %v7418_v61  ;;  %v12435_v26 = vpop.f32.mrb[250].mxu1  ;;  %12468 = vmatmul.mubr.msk.f32.gmra.mrb[52].mxu0 %vm891_vm1, %v7644_v41  ;;  %v7619_v35 = vld [vmem:[#allocation2 + $0x30] sm:$0xff]  ;;  %v8105_v10 = vld [vmem:[#allocation2 + $0x1e] sm:$0xff] }
 0x908   : > { %12544 = vmatmul.mubr.msk.f32.gmra.mrb[16].mxu1 %vm891_vm1, %v7617_v5  ;;  %v7459_v54 = vmax.f32 %v7419_v15, %v7439_v18  ;;  %v7421_v57 = vadd.f32 %v12435_v26, %v15225_v45  ;;  %v7352_v13 = vpop.f32.mrb[251].mxu1  ;;  %12470 = vmatprep.mubr.msk.f32.mxu0 %vm13384_vm2, %v13383_v42  ;;  %v8104_v9 = vld [vmem:[#allocation2 + $0x16] sm:$0xff]  ;;  %v7792_v17 = vpop.f32.mrb[46].mxu0  ;;  %v8106_v5 = vld [vmem:[#allocation2 + $0x26] sm:$0xff] }
 0x909   : > { %12546 = vmatprep.mubr.msk.f32.mxu1 %vm13384_vm2, %v13383_v42  ;;  %v7458_v53 = vmax.f32 %v7418_v61, %v7438_v22  ;;  %v7420_v30 = vadd.f32 %v15225_v45, %v7352_v13  ;;  %v7622_v34 = vld [vmem:[#allocation2 + $0x48] sm:$0xff]  ;;  %v12460_v61 = vpop.f32.mrb[47].mxu0  ;;  %v8108_v26 = vld [vmem:[#allocation2 + $0x36] sm:$0xff] }
 0x90a   : > { %7606 = vst.msk [vmem:[#allocation2 + $0x68] sm:$0xff] %vm891_vm1, %v7459_v54  ;;  %v7441_v28 = vmul.f32 0.2, %v7421_v57  ;;  %v7648_v48 = vld [vmem:[#allocation2 + $0x3f] sm:$0xff]  ;;  %v7649_v12 = vld [vmem:[#allocation2 + $0x47] sm:$0xff] }
 0x90b   : > { %7605 = vst.msk [vmem:[#allocation2 + $0x60] sm:$0xff] %vm891_vm1, %v7458_v53  ;;  %v7440_v25 = vmul.f32 0.2, %v7420_v30  ;;  %v12438_v47 = vpop.f32.mrb[252].mxu1  ;;  %12471 = vmatmul.mubr.msk.f32.gmra.mrb[54].mxu0 %vm891_vm1, %v7645_v29  ;;  %v7621_v39 = vld [vmem:[#allocation2 + $0x40] sm:$0xff]  ;;  %v8107_v22 = vld [vmem:[#allocation2 + $0x2e] sm:$0xff] }
 0x90c   : > { %12547 = vmatmul.mubr.msk.f32.gmra.mrb[18].mxu1 %vm891_vm1, %v7618_v36  ;;  %v7461_v0 = vmax.f32 %v7421_v57, %v7441_v28  ;;  %v7423_v44 = vadd.f32 %v12438_v47, %v15225_v45  ;;  %v7362_v59 = vpop.f32.mrb[253].mxu1  ;;  %12473 = vmatprep.mubr.msk.f32.mxu0 %vm13384_vm2, %v13383_v42  ;;  %v8109_v54 = vld [vmem:[#allocation2 + $0x3e] sm:$0xff]  ;;  %v8110_v57 = vld [vmem:[#allocation2 + $0x46] sm:$0xff] }
 0x90d   : > { %12549 = vmatprep.mubr.msk.f32.mxu1 %vm13384_vm2, %v13383_v42  ;;  %v7460_v37 = vmax.f32 %v7420_v30, %v7440_v25  ;;  %v7422_v55 = vadd.f32 %v15225_v45, %v7362_v59  ;;  %v7624_v2 = vld [vmem:[#allocation2 + $0x58] sm:$0xff]  ;;  %v8600_v13 = vld [vmem:[#allocation5 + $0x580] sm:$0xff]  ;;  %v8601_v53 = vld [vmem:[#allocation5 + $0x588] sm:$0xff] }
 0x90e   : > { %7608 = vst.msk [vmem:[#allocation2 + $0x78] sm:$0xff] %vm891_vm1, %v7461_v0  ;;  %v7443_v38 = vmul.f32 0.2, %v7423_v44  ;;  %v7650_v14 = vld [vmem:[#allocation2 + $0x4f] sm:$0xff]  ;;  %v7651_v46 = vld [vmem:[#allocation2 + $0x57] sm:$0xff]  ;;  %v13151_v30 = vpack.c.bf16 %v8601_v53, %v8600_v13 }
 0x90f   : > { %7607 = vst.msk [vmem:[#allocation2 + $0x70] sm:$0xff] %vm891_vm1, %v7460_v37  ;;  %v7442_v62 = vmul.f32 0.2, %v7422_v55  ;;  %12474 = vmatmul.mubr.msk.f32.gmra.mrb[56].mxu0 %vm891_vm1, %v7646_v21  ;;  %v7623_v24 = vld [vmem:[#allocation2 + $0x50] sm:$0xff]  ;;  %v12441_v40 = vpop.f32.mrb[6].mxu1 }
 0x910   : > { %12550 = vmatmul.mubr.msk.f32.gmra.mrb[20].mxu1 %vm891_vm1, %v7619_v35  ;;  %v7463_v33 = vmax.f32 %v7423_v44, %v7443_v38  ;;  %12476 = vmatprep.mubr.msk.f32.mxu0 %vm13384_vm2, %v13383_v42  ;;  %v7372_v32 = vpop.f32.mrb[7].mxu1  ;;  %v8111_v28 = vld [vmem:[#allocation2 + $0x4e] sm:$0xff]  ;;  %v8112_v29 = vld [vmem:[#allocation2 + $0x56] sm:$0xff] }
 0x911   : > { %12552 = vmatprep.mubr.msk.f32.mxu1 %vm13384_vm2, %v13383_v42  ;;  %v7462_v45 = vmax.f32 %v7422_v55, %v7442_v62  ;;  %v7626_v31 = vld [vmem:[#allocation2 + $0x68] sm:$0xff]  ;;  %13152 = vmatpush3.bf16.msra.mxu1 %v13151_v30  ;;  %v8602_v0 = vld [vmem:[#allocation5 + $0x590] sm:$0xff]  ;;  %v8603_v44 = vld [vmem:[#allocation5 + $0x598] sm:$0xff] }
 0x912   : > { %7610 = vst.msk [vmem:[#allocation2 + $0x88] sm:$0xff] %vm891_vm1, %v7463_v33  ;;  %v7652_v58 = vld [vmem:[#allocation2 + $0x5f] sm:$0xff]  ;;  %v7653_v4 = vld [vmem:[#allocation2 + $0x67] sm:$0xff]  ;;  %13153 = vmatprep.subr.bf16.mxu1 %v13382_v1  ;;  %v13154_v59 = vpack.c.bf16 %v8603_v44, %v8602_v0  ;;  %v8120_v35 = vld [vmem:[#allocation2 + $0x96] sm:$0xff] }
 0x913   : > { %7609 = vst.msk [vmem:[#allocation2 + $0x80] sm:$0xff] %vm891_vm1, %v7462_v45  ;;  %12477 = vmatmul.mubr.msk.f32.gmra.mrb[58].mxu0 %vm891_vm1, %v7647_v60  ;;  %v7625_v56 = vld [vmem:[#allocation2 + $0x60] sm:$0xff]  ;;  %v8605_v33 = vld [vmem:[#allocation5 + $0x5a8] sm:$0xff]  ;;  %v8606_v60 = vld [vmem:[#allocation5 + $0x5b0] sm:$0xff] }
 0x914   : > { %12553 = vmatmul.mubr.msk.f32.gmra.mrb[22].mxu1 %vm891_vm1, %v7620_v6  ;;  %12479 = vmatprep.mubr.msk.f32.mxu0 %vm13384_vm2, %v13383_v42  ;;  %v8113_v36 = vld [vmem:[#allocation2 + $0x5e] sm:$0xff]  ;;  %v8114_v25 = vld [vmem:[#allocation2 + $0x66] sm:$0xff] }
 0x915   : > { %12555 = vmatprep.mubr.msk.f32.mxu1 %vm13384_vm2, %v13383_v42  ;;  %v7628_v27 = vld [vmem:[#allocation2 + $0x78] sm:$0xff]  ;;  %13155 = vmatpush3.bf16.msra.mxu1 %v13154_v59  ;;  %v8604_v62 = vld [vmem:[#allocation5 + $0x5a0] sm:$0xff] }
 0x916   : > { %v7654_v49 = vld [vmem:[#allocation2 + $0x6f] sm:$0xff]  ;;  %v7655_v51 = vld [vmem:[#allocation2 + $0x77] sm:$0xff]  ;;  %13156 = vmatprep.subr.bf16.mxu1 %v13382_v1  ;;  %v13157_v45 = vpack.c.bf16 %v8605_v33, %v8604_v62 }
 0x917   : > { %12480 = vmatmul.mubr.msk.f32.gmra.mrb[60].mxu0 %vm891_vm1, %v7648_v48  ;;  %v7627_v7 = vld [vmem:[#allocation2 + $0x70] sm:$0xff]  ;;  %v8607_v6 = vld [vmem:[#allocation5 + $0x5b8] sm:$0xff] }
 0x918   : > { %12556 = vmatmul.mubr.msk.f32.gmra.mrb[24].mxu1 %vm891_vm1, %v7621_v39  ;;  %12482 = vmatprep.mubr.msk.f32.mxu0 %vm13384_vm2, %v13383_v42  ;;  %v8115_v47 = vld [vmem:[#allocation2 + $0x6e] sm:$0xff]  ;;  %v8116_v37 = vld [vmem:[#allocation2 + $0x76] sm:$0xff]  ;;  %v13160_v48 = vpack.c.bf16 %v8607_v6, %v8606_v60  ;;  %v8983_v39 = vld [vmem:[#allocation5 + $0x5c0] sm:$0xff] }
 0x919   : > { %12558 = vmatprep.mubr.msk.f32.mxu1 %vm13384_vm2, %v13383_v42  ;;  %v7630_v19 = vld [vmem:[#allocation2 + $0x88] sm:$0xff]  ;;  %v8009_v23 = vpop.f32.mrb[8].mxu1  ;;  %13158 = vmatpush3.bf16.msra.mxu1 %v13157_v45 }
 0x91a   : > { %v7656_v20 = vld [vmem:[#allocation2 + $0x7f] sm:$0xff]  ;;  %v7657_v63 = vld [vmem:[#allocation2 + $0x87] sm:$0xff]  ;;  %v7658_v43 = vld [vmem:[#allocation2 + $0x8f] sm:$0xff]  ;;  %v12533_v15 = vpop.f32.mrb[9].mxu1  ;;  %13159 = vmatprep.subr.bf16.mxu1 %v13382_v1 }
 0x91b   : > { %12483 = vmatmul.mubr.msk.f32.gmra.mrb[62].mxu0 %vm891_vm1, %v7649_v12  ;;  %v7629_v3 = vld [vmem:[#allocation2 + $0x80] sm:$0xff]  ;;  %v8119_v21 = vld [vmem:[#allocation2 + $0x8e] sm:$0xff] }
 0x91c   : > { %12559 = vmatmul.mubr.msk.f32.gmra.mrb[26].mxu1 %vm891_vm1, %v7622_v34  ;;  %12485 = vmatprep.mubr.msk.f32.mxu0 %vm13384_vm2, %v13383_v42  ;;  %v8117_v55 = vld [vmem:[#allocation2 + $0x7e] sm:$0xff]  ;;  %v8118_v38 = vld [vmem:[#allocation2 + $0x86] sm:$0xff] }
 0x91d   : > { %12561 = vmatprep.mubr.msk.f32.mxu1 %vm13384_vm2, %v13383_v42  ;;  %v15368_v18 = vpop.f32.mrb[10].mxu1  ;;  %13161 = vmatpush3.bf16.msra.mxu1 %v13160_v48  ;;  %v8984_v12 = vld [vmem:[#allocation5 + $0x5c8] sm:$0xff] }
 0x91e   : > { %v12536_v41 = vpop.f32.mrb[11].mxu1  ;;  %13162 = vmatprep.subr.bf16.mxu1 %v13382_v1  ;;  %v13175_v34 = vpack.c.bf16 %v8984_v12, %v8983_v39 }
 0x91f   : > { %12486 = vmatmul.mubr.msk.f32.gmra.mrb[64].mxu0 %vm891_vm1, %v7650_v14  ;;  %v8985_v14 = vld [vmem:[#allocation5 + $0x5d0] sm:$0xff] }
 0x920   : > { %12562 = vmatmul.mubr.msk.f32.gmra.mrb[28].mxu1 %vm891_vm1, %v7623_v24  ;;  %12488 = vmatprep.mubr.msk.f32.mxu0 %vm13384_vm2, %v13383_v42  ;;  %v8986_v24 = vld [vmem:[#allocation5 + $0x5d8] sm:$0xff] }
 0x921   : > { %12564 = vmatprep.mubr.msk.f32.mxu1 %vm13384_vm2, %v13383_v42 }
 0x923   : > { %12489 = vmatmul.mubr.msk.f32.gmra.mrb[66].mxu0 %vm891_vm1, %v7651_v46  ;;  %v13178_v46 = vpack.c.bf16 %v8986_v24, %v8985_v14 }
 0x924   : > { %12565 = vmatmul.mubr.msk.f32.gmra.mrb[30].mxu1 %vm891_vm1, %v7624_v2  ;;  %12491 = vmatprep.mubr.msk.f32.mxu0 %vm13384_vm2, %v13383_v42  ;;  %v8987_v2 = vld [vmem:[#allocation5 + $0x5e0] sm:$0xff] }
 0x925   : > { %12567 = vmatprep.mubr.msk.f32.mxu1 %vm13384_vm2, %v13383_v42 }
 0x927   : > { %12492 = vmatmul.mubr.msk.f32.gmra.mrb[68].mxu0 %vm891_vm1, %v7652_v58  ;;  %v8988_v58 = vld [vmem:[#allocation5 + $0x5e8] sm:$0xff] }
 0x928   : > { %12568 = vmatmul.mubr.msk.f32.gmra.mrb[32].mxu1 %vm891_vm1, %v7625_v56  ;;  %12494 = vmatprep.mubr.msk.f32.mxu0 %vm13384_vm2, %v13383_v42  ;;  %v7631_v56 = vld [vmem:[#allocation2 + $0x90] sm:$0x3] }
 0x929   : > { %12570 = vmatprep.mubr.msk.f32.mxu1 %vm13384_vm2, %v13383_v42 }
 0x92b   : > { %12495 = vmatmul.mubr.msk.f32.gmra.mrb[70].mxu0 %vm891_vm1, %v7653_v4  ;;  %v13181_v4 = vpack.c.bf16 %v8988_v58, %v8987_v2 }
 0x92c   : > { %12571 = vmatmul.mubr.msk.f32.gmra.mrb[34].mxu1 %vm891_vm1, %v7626_v31  ;;  %12497 = vmatprep.mubr.msk.f32.mxu0 %vm13384_vm2, %v13383_v42  ;;  %v8989_v31 = vld [vmem:[#allocation5 + $0x5f0] sm:$0xff] }
 0x92d   : > { %12573 = vmatprep.mubr.msk.f32.mxu1 %vm13384_vm2, %v13383_v42 }
 0x92f   : > { %12498 = vmatmul.mubr.msk.f32.gmra.mrb[72].mxu0 %vm891_vm1, %v7654_v49  ;;  %v8990_v49 = vld [vmem:[#allocation5 + $0x5f8] sm:$0xff] }
 0x930   : > { %12574 = vmatmul.mubr.msk.f32.gmra.mrb[36].mxu1 %vm891_vm1, %v7627_v7  ;;  %12500 = vmatprep.mubr.msk.f32.mxu0 %vm13384_vm2, %v13383_v42  ;;  %v8121_v7 = vld [vmem:[#allocation2 + $0x9e] sm:$0x3] }
 0x931   : > { %12576 = vmatprep.mubr.msk.f32.mxu1 %vm13384_vm2, %v13383_v42 }
 0x933   : > { %12501 = vmatmul.mubr.msk.f32.gmra.mrb[74].mxu0 %vm891_vm1, %v7655_v51  ;;  %v13184_v51 = vpack.c.bf16 %v8990_v49, %v8989_v31 }
 0x934   : > { %12577 = vmatmul.mubr.msk.f32.gmra.mrb[38].mxu1 %vm891_vm1, %v7628_v27  ;;  %12503 = vmatprep.mubr.msk.f32.mxu0 %vm13384_vm2, %v13383_v42 }
 0x935   : > { %12579 = vmatprep.mubr.msk.f32.mxu1 %vm13384_vm2, %v13383_v42 }
 0x937   : > { %12504 = vmatmul.mubr.msk.f32.gmra.mrb[76].mxu0 %vm891_vm1, %v7656_v20 }
 0x938   : > { %12580 = vmatmul.mubr.msk.f32.gmra.mrb[40].mxu1 %vm891_vm1, %v7629_v3  ;;  %12506 = vmatprep.mubr.msk.f32.mxu0 %vm13384_vm2, %v13383_v42 }
 0x939   : > { %12582 = vmatprep.mubr.msk.f32.mxu1 %vm13384_vm2, %v13383_v42 }
 0x93b   : > { %12507 = vmatmul.mubr.msk.f32.gmra.mrb[78].mxu0 %vm891_vm1, %v7657_v63 }
 0x93c   : > { %12583 = vmatmul.mubr.msk.f32.gmra.mrb[42].mxu1 %vm891_vm1, %v7630_v19  ;;  %12509 = vmatprep.mubr.msk.f32.mxu0 %vm13384_vm2, %v13383_v42 }
 0x93d   : > { %12585 = vmatprep.mubr.msk.f32.mxu1 %vm13384_vm2, %v13383_v42 }
 0x93f   : > { %12510 = vmatmul.mubr.msk.f32.gmra.mrb[80].mxu0 %vm891_vm1, %v7658_v43 }
 0x940   : > { %12512 = vmatprep.mubr.msk.f32.mxu0 %vm13384_vm2, %v13383_v42  ;;  %12586 = vmatmul.mubr.msk.f32.gmra.mrb[44].mxu1 %vm891_vm1, %v7631_v56 }
 0x941   : > { %12677 = vmatprep.mubr.msk.f32.mxu1 %vm13384_vm2, %v13383_v42 }
 0x943   : > { %12513 = vmatmul.mubr.msk.f32.gmra.mrb[82].mxu0 %vm891_vm1, %v7659_v50 }
 0x944   : > { %12604 = vmatprep.mubr.msk.f32.mxu0 %vm13384_vm2, %v13383_v42 }
 0x947   : > { %12605 = vmatmul.mubr.msk.f32.vlgmr.msra.gmra.mrb[84].mxu0 %vm891_vm1, %v8103_v8 }
 0x948   : > { %12607 = vmatprep.mubr.msk.f32.mxu0 %vm13384_vm2, %v13383_v42  ;;  %13176 = vmatpush3.bf16.msra.mxu0 %v13175_v34 }
 0x949   : > { %13177 = vmatprep.subr.bf16.mxu0 %v13382_v1 }
 0x94b   : > { %12608 = vmatmul.mubr.msk.f32.gmra.mrb[86].mxu0 %vm891_vm1, %v8104_v9 }
 0x94c   : > { %12610 = vmatprep.mubr.msk.f32.mxu0 %vm13384_vm2, %v13383_v42  ;;  %13179 = vmatpush3.bf16.msra.mxu0 %v13178_v46 }
 0x94d   : > { %13180 = vmatprep.subr.bf16.mxu0 %v13382_v1 }
 0x94f   : > { %12611 = vmatmul.mubr.msk.f32.gmra.mrb[88].mxu0 %vm891_vm1, %v8105_v10 }
 0x950   : > { %12613 = vmatprep.mubr.msk.f32.mxu0 %vm13384_vm2, %v13383_v42  ;;  %13182 = vmatpush3.bf16.msra.mxu0 %v13181_v4 }
 0x951   : > { %13183 = vmatprep.subr.bf16.mxu0 %v13382_v1 }
 0x953   : > { %12614 = vmatmul.mubr.msk.f32.gmra.mrb[90].mxu0 %vm891_vm1, %v8106_v5 }
 0x954   : > { %12616 = vmatprep.mubr.msk.f32.mxu0 %vm13384_vm2, %v13383_v42  ;;  %13185 = vmatpush3.bf16.msra.mxu0 %v13184_v51 }
 0x957   : > { %12617 = vmatmul.mubr.msk.f32.gmra.mrb[92].mxu0 %vm891_vm1, %v8107_v22 }
 0x958   : > { %12619 = vmatprep.mubr.msk.f32.mxu0 %vm13384_vm2, %v13383_v42 }
 0x95b   : > { %12620 = vmatmul.mubr.msk.f32.gmra.mrb[94].mxu0 %vm891_vm1, %v8108_v26 }
 0x95c   : > { %12622 = vmatprep.mubr.msk.f32.mxu0 %vm13384_vm2, %v13383_v42 }
 0x95f   : > { %12623 = vmatmul.mubr.msk.f32.gmra.mrb[96].mxu0 %vm891_vm1, %v8109_v54 }
 0x960   : > { %12625 = vmatprep.mubr.msk.f32.mxu0 %vm13384_vm2, %v13383_v42 }
 0x963   : > { %12626 = vmatmul.mubr.msk.f32.gmra.mrb[98].mxu0 %vm891_vm1, %v8110_v57 }
 0x964   : > { %12628 = vmatprep.mubr.msk.f32.mxu0 %vm13384_vm2, %v13383_v42 }
 0x967   : > { %12629 = vmatmul.mubr.msk.f32.gmra.mrb[100].mxu0 %vm891_vm1, %v8111_v28 }
 0x968   : > { %12631 = vmatprep.mubr.msk.f32.mxu0 %vm13384_vm2, %v13383_v42 }
 0x96b   : > { %12632 = vmatmul.mubr.msk.f32.gmra.mrb[102].mxu0 %vm891_vm1, %v8112_v29 }
 0x96c   : > { %12634 = vmatprep.mubr.msk.f32.mxu0 %vm13384_vm2, %v13383_v42 }
 0x96f   : > { %12635 = vmatmul.mubr.msk.f32.gmra.mrb[104].mxu0 %vm891_vm1, %v8113_v36 }
 0x970   : > { %12637 = vmatprep.mubr.msk.f32.mxu0 %vm13384_vm2, %v13383_v42 }
 0x973   : > { %12638 = vmatmul.mubr.msk.f32.gmra.mrb[106].mxu0 %vm891_vm1, %v8114_v25 }
 0x974   : > { %12640 = vmatprep.mubr.msk.f32.mxu0 %vm13384_vm2, %v13383_v42 }
 0x977   : > { %12641 = vmatmul.mubr.msk.f32.gmra.mrb[108].mxu0 %vm891_vm1, %v8115_v47 }
 0x978   : > { %12643 = vmatprep.mubr.msk.f32.mxu0 %vm13384_vm2, %v13383_v42 }
 0x97b   : > { %12644 = vmatmul.mubr.msk.f32.gmra.mrb[110].mxu0 %vm891_vm1, %v8116_v37 }
 0x97c   : > { %12646 = vmatprep.mubr.msk.f32.mxu0 %vm13384_vm2, %v13383_v42 }
 0x97f   : > { %12647 = vmatmul.mubr.msk.f32.gmra.mrb[112].mxu0 %vm891_vm1, %v8117_v55 }
 0x980   : > { %12649 = vmatprep.mubr.msk.f32.mxu0 %vm13384_vm2, %v13383_v42 }
 0x983   : > { %12650 = vmatmul.mubr.msk.f32.gmra.mrb[114].mxu0 %vm891_vm1, %v8118_v38 }
 0x984   : > { %12652 = vmatprep.mubr.msk.f32.mxu0 %vm13384_vm2, %v13383_v42 }
 0x987   : > { %12653 = vmatmul.mubr.msk.f32.gmra.mrb[116].mxu0 %vm891_vm1, %v8119_v21 }
 0x988   : > { %12655 = vmatprep.mubr.msk.f32.mxu0 %vm13384_vm2, %v13383_v42 }
 0x98b   : > { %12656 = vmatmul.mubr.msk.f32.gmra.mrb[118].mxu0 %vm891_vm1, %v8120_v35 }
 0x98c   : > { %12658 = vmatprep.mubr.msk.f32.mxu0 %vm13384_vm2, %v13383_v42 }
 0x98f   : > { %12659 = vmatmul.mubr.msk.f32.gmra.mrb[120].mxu0 %vm891_vm1, %v8121_v7 }
 0x990   : > { %12811 = vmatprep.mubr.msk.f32.mxu0 %vm13384_vm2, %v13383_v42 }
 0x9d2   : > { %v7797_v27 = vpop.f32.mrb[48].mxu0 }
 0x9d3   : > { %v8019_v20 = vpop.f32.mrb[12].mxu1  ;;  %v15431_v3 = vadd.f32 %v15368_v18, %v7797_v27  ;;  %v12463_v63 = vpop.f32.mrb[49].mxu0 }
 0x9d4   : > { %v12539_v19 = vpop.f32.mrb[13].mxu1 }
 0x9d6   : > { %v7802_v43 = vpop.f32.mrb[50].mxu0 }
 0x9d7   : > { %v8024_v50 = vpop.f32.mrb[14].mxu1  ;;  %v15433_v8 = vadd.f32 %v8019_v20, %v7802_v43  ;;  %v12466_v40 = vpop.f32.mrb[51].mxu0 }
 0x9d8   : > { %v12542_v32 = vpop.f32.mrb[15].mxu1 }
 0x9da   : > { %v7807_v9 = vpop.f32.mrb[52].mxu0 }
 0x9db   : > { %v8029_v11 = vpop.f32.mrb[16].mxu1  ;;  %v15435_v52 = vadd.f32 %v8024_v50, %v7807_v9  ;;  %v12469_v23 = vpop.f32.mrb[53].mxu0 }
 0x9dc   : > { %v12545_v15 = vpop.f32.mrb[17].mxu1 }
 0x9de   : > { %v7812_v10 = vpop.f32.mrb[54].mxu0 }
 0x9df   : > { %v8034_v17 = vpop.f32.mrb[18].mxu1  ;;  %v15437_v61 = vadd.f32 %v8029_v11, %v7812_v10  ;;  %v12472_v18 = vpop.f32.mrb[55].mxu0 }
 0x9e0   : > { %v12548_v41 = vpop.f32.mrb[19].mxu1 }
 0x9e2   : > { %v7817_v5 = vpop.f32.mrb[56].mxu0 }
 0x9e3   : > { %v8039_v22 = vpop.f32.mrb[20].mxu1  ;;  %v15439_v26 = vadd.f32 %v8034_v17, %v7817_v5  ;;  %v12475_v54 = vpop.f32.mrb[57].mxu0 }
 0x9e4   : > { %v12551_v57 = vpop.f32.mrb[21].mxu1 }
 0x9e6   : > { %v7822_v13 = vpop.f32.mrb[58].mxu0 }
 0x9e7   : > { %v8044_v53 = vpop.f32.mrb[22].mxu1  ;;  %v15441_v30 = vadd.f32 %v8039_v22, %v7822_v13  ;;  %v12478_v28 = vpop.f32.mrb[59].mxu0 }
 0x9e8   : > { %v12554_v29 = vpop.f32.mrb[23].mxu1 }
 0x9ea   : > { %v7827_v36 = vpop.f32.mrb[60].mxu0 }
 0x9eb   : > { %v8049_v25 = vpop.f32.mrb[24].mxu1  ;;  %v15443_v47 = vadd.f32 %v8044_v53, %v7827_v36  ;;  %v12481_v0 = vpop.f32.mrb[61].mxu0 }
 0x9ec   : > { %v12557_v44 = vpop.f32.mrb[25].mxu1  ;;  %v341_v0 = vadd.s32 8, %v13637_v16 }
 0x9ee   : > { %v7832_v59 = vpop.f32.mrb[62].mxu0 }
 0x9ef   : > { %v8054_v37 = vpop.f32.mrb[26].mxu1  ;;  %v15445_v55 = vadd.f32 %v8049_v25, %v7832_v59  ;;  %v12484_v38 = vpop.f32.mrb[63].mxu0  ;;  %v15469_v59 = vld [vmem:[%s16062_s4 + $0x6] ss:$0 sm:$0xff] }
 0x9f0   : > { %v12560_v21 = vpop.f32.mrb[27].mxu1 }
 0x9f1   : > { %v8457_v21 = vadd.s32 4294967287, %v341_v0 }
 0x9f2   : > { %v7837_v35 = vpop.f32.mrb[64].mxu0 }
 0x9f3   : > { %v8059_v62 = vpop.f32.mrb[28].mxu1  ;;  %v15447_v33 = vadd.f32 %v8054_v37, %v7837_v35  ;;  %v12487_v45 = vpop.f32.mrb[65].mxu0  ;;  %vm8476_vm5 = vcmp.ge.s32.totalorder %v8457_v21, 0 }
 0x9f4   : > { %v12563_v60 = vpop.f32.mrb[29].mxu1 }
 0x9f6   : > { %v7842_v6 = vpop.f32.mrb[66].mxu0 }
 0x9f7   : > { %v8064_v48 = vpop.f32.mrb[30].mxu1  ;;  %v15449_v39 = vadd.f32 %v8059_v62, %v7842_v6  ;;  %v12490_v12 = vpop.f32.mrb[67].mxu0 }
 0x9f8   : > { %v12566_v34 = vpop.f32.mrb[31].mxu1 }
 0x9fa   : > { %v7847_v14 = vpop.f32.mrb[68].mxu0 }
 0x9fb   : > { %v8069_v24 = vpop.f32.mrb[32].mxu1  ;;  %v15451_v46 = vadd.f32 %v8064_v48, %v7847_v14  ;;  %v12493_v2 = vpop.f32.mrb[69].mxu0 }
 0x9fc   : > { %v12569_v58 = vpop.f32.mrb[33].mxu1 }
 0x9fe   : > { %v7852_v56 = vpop.f32.mrb[70].mxu0 }
 0x9ff   : > { %v8074_v4 = vpop.f32.mrb[34].mxu1  ;;  %v15453_v31 = vadd.f32 %v8069_v24, %v7852_v56  ;;  %v12496_v49 = vpop.f32.mrb[71].mxu0 }
 0xa00   : > { %v12572_v7 = vpop.f32.mrb[35].mxu1  ;;  %v8589_v49 = vld [vmem:[#allocation5 + $0x540] sm:$0xff] }
 0xa01   : > { %v8590_v7 = vld [vmem:[#allocation5 + $0x548] sm:$0xff] }
 0xa02   : > { %v7857_v51 = vpop.f32.mrb[72].mxu0 }
 0xa03   : > { %v8079_v27 = vpop.f32.mrb[36].mxu1  ;;  %v15455_v20 = vadd.f32 %v8074_v4, %v7857_v51  ;;  %v12499_v63 = vpop.f32.mrb[73].mxu0 }
 0xa04   : > { %v12575_v19 = vpop.f32.mrb[37].mxu1 }
 0xa06   : > { %v7862_v43 = vpop.f32.mrb[74].mxu0 }
 0xa07   : > { %v8084_v50 = vpop.f32.mrb[38].mxu1  ;;  %v15457_v40 = vadd.f32 %v8079_v27, %v7862_v43  ;;  %v12502_v32 = vpop.f32.mrb[75].mxu0  ;;  %v13163_v43 = vpack.c.bf16 %v8590_v7, %v8589_v49 }
 0xa08   : > { %v12578_v9 = vpop.f32.mrb[39].mxu1  ;;  %v8592_v32 = vld [vmem:[#allocation5 + $0x558] sm:$0xff] }
 0xa0a   : > { %v7867_v11 = vpop.f32.mrb[76].mxu0 }
 0xa0b   : > { %v8089_v23 = vpop.f32.mrb[40].mxu1  ;;  %v15459_v15 = vadd.f32 %v8084_v50, %v7867_v11  ;;  %v12505_v10 = vpop.f32.mrb[77].mxu0  ;;  %v8591_v50 = vld [vmem:[#allocation5 + $0x550] sm:$0xff] }
 0xa0c   : > { %v12581_v17 = vpop.f32.mrb[41].mxu1 }
 0xa0e   : > { %v7872_v18 = vpop.f32.mrb[78].mxu0 }
 0xa0f   : > { %v8094_v41 = vpop.f32.mrb[42].mxu1  ;;  %v15461_v5 = vadd.f32 %v8089_v23, %v7872_v18  ;;  %v12508_v22 = vpop.f32.mrb[79].mxu0  ;;  %v13166_v18 = vpack.c.bf16 %v8592_v32, %v8591_v50 }
 0xa10   : > { %v12584_v54 = vpop.f32.mrb[43].mxu1 }
 0xa11   : > { %v8594_v54 = vld [vmem:[#allocation5 + $0x568] sm:$0xff] }
 0xa12   : > { %v7877_v57 = vpop.f32.mrb[80].mxu0 }
 0xa13   : > { %v15463_v13 = vadd.f32 %v8094_v41, %v7877_v57  ;;  %v12511_v53 = vpop.f32.mrb[81].mxu0 }
 0xa16   : > { %v7882_v28 = vpop.f32.mrb[82].mxu0 }
 0xa17   : > { %v12514_v29 = vpop.f32.mrb[83].mxu0 }
 0xa1a   : > { %v8254_v36 = vpop.f32.mrb[84].mxu0 }
 0xa1b   : > { %v12606_v25 = vpop.f32.mrb[85].mxu0 }
 0xa1e   : > { %v8259_v44 = vpop.f32.mrb[86].mxu0 }
 0xa1f   : > { %v8349_v37 = vadd.f32 %v8259_v44, %v15431_v3  ;;  %v12609_v38 = vpop.f32.mrb[87].mxu0  ;;  %v8595_v44 = vld [vmem:[#allocation5 + $0x570] sm:$0xff] }
 0xa21   : > { %v8373_v35 = vadd.f32 %v15469_v59, %v8349_v37  ;;  %v8596_v37 = vld [vmem:[#allocation5 + $0x578] sm:$0xff] }
 0xa22   : > { %v8264_v62 = vpop.f32.mrb[88].mxu0 }
 0xa23   : > { %v8392_v45 = vmul.f32 0.2, %v8373_v35  ;;  %v8350_v60 = vadd.f32 %v8264_v62, %v15433_v8  ;;  %v12612_v6 = vpop.f32.mrb[89].mxu0 }
 0xa25   : > { %v8411_v48 = vmax.f32 %v8373_v35, %v8392_v45  ;;  %v8374_v12 = vadd.f32 %v15469_v59, %v8350_v60  ;;  %v13172_v60 = vpack.c.bf16 %v8596_v37, %v8595_v44 }
 0xa26   : > { %v8269_v34 = vpop.f32.mrb[90].mxu0 }
 0xa27   : > { %v8533_v14 = vsel %vm8476_vm5, %v8411_v48, 0.0  ;;  %v8393_v24 = vmul.f32 0.2, %v8374_v12  ;;  %v8351_v2 = vadd.f32 %v8269_v34, %v15435_v52  ;;  %v12615_v58 = vpop.f32.mrb[91].mxu0 }
 0xa28   : > { %8552 = vst.msk [vmem:[#allocation3 + $0x8] sm:$0xff] %vm891_vm1, %v8533_v14 }
 0xa29   : > { %v8412_v3 = vmax.f32 %v8374_v12, %v8393_v24  ;;  %v8375_v56 = vadd.f32 %v15469_v59, %v8351_v2 }
 0xa2a   : > { %v8274_v4 = vpop.f32.mrb[92].mxu0 }
 0xa2b   : > { %8553 = vst.msk [vmem:[#allocation3 + $0x10] sm:$0xff] %vm891_vm1, %v8412_v3  ;;  %v8394_v8 = vmul.f32 0.2, %v8375_v56  ;;  %v8352_v51 = vadd.f32 %v8274_v4, %v15437_v61  ;;  %v12618_v27 = vpop.f32.mrb[93].mxu0 }
 0xa2d   : > { %v8413_v63 = vmax.f32 %v8375_v56, %v8394_v8  ;;  %v8376_v19 = vadd.f32 %v15469_v59, %v8352_v51 }
 0xa2e   : > { %v8279_v52 = vpop.f32.mrb[94].mxu0 }
 0xa2f   : > { %8554 = vst.msk [vmem:[#allocation3 + $0x18] sm:$0xff] %vm891_vm1, %v8413_v63  ;;  %v8395_v9 = vmul.f32 0.2, %v8376_v19  ;;  %v8353_v11 = vadd.f32 %v8279_v52, %v15439_v26  ;;  %v12621_v23 = vpop.f32.mrb[95].mxu0  ;;  %v15483_v10 = vld [vmem:[#allocation3 + $0x8] sm:$0xff]  ;;  %v8593_v26 = vld [vmem:[#allocation5 + $0x560] sm:$0xff] }
 0xa30   : > { %12678 = vmatmul.mubr.msk.f32.vlgmr.msra.gmra.mrb[46].mxu1 %vm891_vm1, %v15483_v10  ;;  %v13169_v25 = vpack.c.bf16 %v8594_v54, %v8593_v26 }
 0xa31   : > { %v8414_v61 = vmax.f32 %v8376_v19, %v8395_v9  ;;  %v8377_v17 = vadd.f32 %v15469_v59, %v8353_v11  ;;  %13164 = vmatpush3.bf16.msra.mxu1 %v13163_v43  ;;  %12680 = vmatprep.mubr.msk.f32.mxu1 %vm13384_vm2, %v13383_v42 }
 0xa32   : > { %v8284_v41 = vpop.f32.mrb[96].mxu0  ;;  %v15490_v22 = vld [vmem:[#allocation3 + $0x10] sm:$0xff]  ;;  %13165 = vmatprep.subr.bf16.mxu1 %v13382_v1 }
 0xa33   : > { %8555 = vst.msk [vmem:[#allocation3 + $0x20] sm:$0xff] %vm891_vm1, %v8414_v61  ;;  %v8396_v57 = vmul.f32 0.2, %v8377_v17  ;;  %v8354_v53 = vadd.f32 %v8284_v41, %v15441_v30  ;;  %v12624_v28 = vpop.f32.mrb[97].mxu0  ;;  %12812 = vmatmul.mubr.msk.f32.vlgmr.msra.gmra.mrb[122].mxu0 %vm891_vm1, %v15490_v22 }
 0xa34   : > { %12681 = vmatmul.mubr.msk.f32.gmra.mrb[48].mxu1 %vm891_vm1, %v15490_v22  ;;  %12814 = vmatprep.mubr.msk.f32.mxu0 %vm13384_vm2, %v13383_v42 }
 0xa35   : > { %v8415_v29 = vmax.f32 %v8377_v17, %v8396_v57  ;;  %v8378_v36 = vadd.f32 %v15469_v59, %v8354_v53  ;;  %12683 = vmatprep.mubr.msk.f32.mxu1 %vm13384_vm2, %v13383_v42  ;;  %13167 = vmatpush3.bf16.msra.mxu1 %v13166_v18 }
 0xa36   : > { %v8289_v0 = vpop.f32.mrb[98].mxu0  ;;  %v15504_v30 = vld [vmem:[#allocation3 + $0x18] sm:$0xff]  ;;  %13168 = vmatprep.subr.bf16.mxu1 %v13382_v1 }
 0xa37   : > { %8556 = vst.msk [vmem:[#allocation3 + $0x28] sm:$0xff] %vm891_vm1, %v8415_v29  ;;  %v8397_v38 = vmul.f32 0.2, %v8378_v36  ;;  %v8355_v21 = vadd.f32 %v8289_v0, %v15443_v47  ;;  %v12627_v35 = vpop.f32.mrb[99].mxu0  ;;  %12815 = vmatmul.mubr.msk.f32.gmra.mrb[124].mxu0 %vm891_vm1, %v15504_v30 }
 0xa38   : > { %12684 = vmatmul.mubr.msk.f32.gmra.mrb[50].mxu1 %vm891_vm1, %v15504_v30  ;;  %12817 = vmatprep.mubr.msk.f32.mxu0 %vm13384_vm2, %v13383_v42 }
 0xa39   : > { %v8416_v62 = vmax.f32 %v8378_v36, %v8397_v38  ;;  %v8379_v45 = vadd.f32 %v15469_v59, %v8355_v21  ;;  %12686 = vmatprep.mubr.msk.f32.mxu1 %vm13384_vm2, %v13383_v42  ;;  %13170 = vmatpush3.bf16.msra.mxu1 %v13169_v25 }
 0xa3a   : > { %v8294_v6 = vpop.f32.mrb[100].mxu0  ;;  %v15518_v47 = vld [vmem:[#allocation3 + $0x20] sm:$0xff]  ;;  %13171 = vmatprep.subr.bf16.mxu1 %v13382_v1 }
 0xa3b   : > { %8557 = vst.msk [vmem:[#allocation3 + $0x30] sm:$0xff] %vm891_vm1, %v8416_v62  ;;  %v8398_v48 = vmul.f32 0.2, %v8379_v45  ;;  %v8356_v12 = vadd.f32 %v8294_v6, %v15445_v55  ;;  %v12630_v34 = vpop.f32.mrb[101].mxu0  ;;  %12818 = vmatmul.mubr.msk.f32.gmra.mrb[126].mxu0 %vm891_vm1, %v15518_v47 }
 0xa3c   : > { %12687 = vmatmul.mubr.msk.f32.gmra.mrb[52].mxu1 %vm891_vm1, %v15518_v47  ;;  %12820 = vmatprep.mubr.msk.f32.mxu0 %vm13384_vm2, %v13383_v42 }
 0xa3d   : > { %v8417_v14 = vmax.f32 %v8379_v45, %v8398_v48  ;;  %v8380_v24 = vadd.f32 %v15469_v59, %v8356_v12  ;;  %12689 = vmatprep.mubr.msk.f32.mxu1 %vm13384_vm2, %v13383_v42  ;;  %13173 = vmatpush3.bf16.msra.mxu1 %v13172_v60 }
 0xa3e   : > { %v8299_v1 = vpop.f32.mrb[102].mxu0  ;;  %v15532_v2 = vld [vmem:[#allocation3 + $0x28] sm:$0xff] }
 0xa3f   : > { %8558 = vst.msk [vmem:[#allocation3 + $0x38] sm:$0xff] %vm891_vm1, %v8417_v14  ;;  %v8399_v55 = vmul.f32 0.2, %v8380_v24  ;;  %v8357_v58 = vadd.f32 %v8299_v1, %v15447_v33  ;;  %v12633_v3 = vpop.f32.mrb[103].mxu0  ;;  %12821 = vmatmul.mubr.msk.f32.gmra.mrb[128].mxu0 %vm891_vm1, %v15532_v2 }
 0xa40   : > { %12690 = vmatmul.mubr.msk.f32.gmra.mrb[54].mxu1 %vm891_vm1, %v15532_v2  ;;  %12823 = vmatprep.mubr.msk.f32.mxu0 %vm13384_vm2, %v13383_v42 }
 0xa41   : > { %v8418_v56 = vmax.f32 %v8380_v24, %v8399_v55  ;;  %v8381_v4 = vadd.f32 %v15469_v59, %v8357_v58  ;;  %12692 = vmatprep.mubr.msk.f32.mxu1 %vm13384_vm2, %v13383_v42  ;;  %v357_v24 = vadd.s32 136, %v13637_v16 }
 0xa42   : > { %v8304_v49 = vpop.f32.mrb[104].mxu0  ;;  %v15545_v7 = vld [vmem:[#allocation3 + $0x30] sm:$0xff] }
 0xa43   : > { %8559 = vst.msk [vmem:[#allocation3 + $0x40] sm:$0xff] %vm891_vm1, %v8418_v56  ;;  %v8400_v33 = vmul.f32 0.2, %v8381_v4  ;;  %v8358_v8 = vadd.f32 %v8304_v49, %v15449_v39  ;;  %v12636_v51 = vpop.f32.mrb[105].mxu0  ;;  %12824 = vmatmul.mubr.msk.f32.gmra.mrb[130].mxu0 %vm891_vm1, %v15545_v7  ;;  %v8473_v49 = vadd.s32 4294967287, %v357_v24 }
 0xa44   : > { %12693 = vmatmul.mubr.msk.f32.gmra.mrb[56].mxu1 %vm891_vm1, %v15545_v7  ;;  %12826 = vmatprep.mubr.msk.f32.mxu0 %vm13384_vm2, %v13383_v42 }
 0xa45   : > { %v8419_v27 = vmax.f32 %v8381_v4, %v8400_v33  ;;  %v8382_v63 = vadd.f32 %v15469_v59, %v8358_v8  ;;  %12695 = vmatprep.mubr.msk.f32.mxu1 %vm13384_vm2, %v13383_v42  ;;  %vm8511_vm6 = vcmp.lt.s32.totalorder %v8473_v49, 128 }
 0xa46   : > { %v8309_v19 = vpop.f32.mrb[106].mxu0  ;;  %v15558_v43 = vld [vmem:[#allocation3 + $0x38] sm:$0xff] }
 0xa47   : > { %8560 = vst.msk [vmem:[#allocation3 + $0x48] sm:$0xff] %vm891_vm1, %v8419_v27  ;;  %v8401_v39 = vmul.f32 0.2, %v8382_v63  ;;  %v8359_v52 = vadd.f32 %v8309_v19, %v15451_v46  ;;  %v12639_v50 = vpop.f32.mrb[107].mxu0  ;;  %12827 = vmatmul.mubr.msk.f32.gmra.mrb[132].mxu0 %vm891_vm1, %v15558_v43 }
 0xa48   : > { %12696 = vmatmul.mubr.msk.f32.gmra.mrb[58].mxu1 %vm891_vm1, %v15558_v43  ;;  %12829 = vmatprep.mubr.msk.f32.mxu0 %vm13384_vm2, %v13383_v42  ;;  %v8571_v50 = vld [vmem:[#allocation3] sm:$0xff] }
 0xa49   : > { %v8420_v32 = vmax.f32 %v8382_v63, %v8401_v39  ;;  %v8383_v9 = vadd.f32 %v15469_v59, %v8359_v52  ;;  %12698 = vmatprep.mubr.msk.f32.mxu1 %vm13384_vm2, %v13383_v42 }
 0xa4a   : > { %v8314_v11 = vpop.f32.mrb[108].mxu0  ;;  %v15571_v23 = vld [vmem:[#allocation3 + $0x40] sm:$0xff] }
 0xa4b   : > { %8561 = vst.msk [vmem:[#allocation3 + $0x50] sm:$0xff] %vm891_vm1, %v8420_v32  ;;  %v8402_v46 = vmul.f32 0.2, %v8383_v9  ;;  %v8360_v61 = vadd.f32 %v8314_v11, %v15453_v31  ;;  %v12642_v17 = vpop.f32.mrb[109].mxu0  ;;  %12830 = vmatmul.mubr.msk.f32.gmra.mrb[134].mxu0 %vm891_vm1, %v15571_v23  ;;  %v8981_v32 = vld [vmem:[#allocation3 + $0x90] sm:$0x3] }
 0xa4c   : > { %12699 = vmatmul.mubr.msk.f32.gmra.mrb[60].mxu1 %vm891_vm1, %v15571_v23  ;;  %12832 = vmatprep.mubr.msk.f32.mxu0 %vm13384_vm2, %v13383_v42 }
 0xa4d   : > { %v8421_v18 = vmax.f32 %v8383_v9, %v8402_v46  ;;  %v8384_v41 = vadd.f32 %v15469_v59, %v8360_v61  ;;  %12701 = vmatprep.mubr.msk.f32.mxu1 %vm13384_vm2, %v13383_v42  ;;  %v8099_v9 = vpop.f32.mrb[44].mxu1 }
 0xa4e   : > { %v8319_v26 = vpop.f32.mrb[110].mxu0  ;;  %v15584_v54 = vld [vmem:[#allocation3 + $0x48] sm:$0xff]  ;;  %v12587_v11 = vpop.f32.mrb[45].mxu1 }
 0xa4f   : > { %8562 = vst.msk [vmem:[#allocation3 + $0x58] sm:$0xff] %vm891_vm1, %v8421_v18  ;;  %v8403_v31 = vmul.f32 0.2, %v8384_v41  ;;  %v8361_v57 = vadd.f32 %v8319_v26, %v15455_v20  ;;  %v12645_v53 = vpop.f32.mrb[111].mxu0  ;;  %12833 = vmatmul.mubr.msk.f32.gmra.mrb[136].mxu0 %vm891_vm1, %v15584_v54 }
 0xa50   : > { %12702 = vmatmul.mubr.msk.f32.gmra.mrb[62].mxu1 %vm891_vm1, %v15584_v54  ;;  %12835 = vmatprep.mubr.msk.f32.mxu0 %vm13384_vm2, %v13383_v42 }
 0xa51   : > { %v8422_v28 = vmax.f32 %v8384_v41, %v8403_v31  ;;  %v8385_v29 = vadd.f32 %v15469_v59, %v8361_v57  ;;  %12704 = vmatprep.mubr.msk.f32.mxu1 %vm13384_vm2, %v13383_v42 }
 0xa52   : > { %v8324_v36 = vpop.f32.mrb[112].mxu0  ;;  %v15597_v25 = vld [vmem:[#allocation3 + $0x50] sm:$0xff] }
 0xa53   : > { %8563 = vst.msk [vmem:[#allocation3 + $0x60] sm:$0xff] %vm891_vm1, %v8422_v28  ;;  %v8404_v20 = vmul.f32 0.2, %v8385_v29  ;;  %v8362_v0 = vadd.f32 %v8324_v36, %v15457_v40  ;;  %v12648_v44 = vpop.f32.mrb[113].mxu0  ;;  %12836 = vmatmul.mubr.msk.f32.gmra.mrb[138].mxu0 %vm891_vm1, %v15597_v25 }
 0xa54   : > { %12705 = vmatmul.mubr.msk.f32.gmra.mrb[64].mxu1 %vm891_vm1, %v15597_v25  ;;  %12838 = vmatprep.mubr.msk.f32.mxu0 %vm13384_vm2, %v13383_v42 }
 0xa55   : > { %v8423_v37 = vmax.f32 %v8385_v29, %v8404_v20  ;;  %v8386_v38 = vadd.f32 %v15469_v59, %v8362_v0  ;;  %12707 = vmatprep.mubr.msk.f32.mxu1 %vm13384_vm2, %v13383_v42 }
 0xa56   : > { %v8329_v21 = vpop.f32.mrb[114].mxu0  ;;  %v15610_v35 = vld [vmem:[#allocation3 + $0x58] sm:$0xff] }
 0xa57   : > { %8564 = vst.msk [vmem:[#allocation3 + $0x68] sm:$0xff] %vm891_vm1, %v8423_v37  ;;  %v8405_v40 = vmul.f32 0.2, %v8386_v38  ;;  %v8363_v62 = vadd.f32 %v8329_v21, %v15459_v15  ;;  %v12651_v45 = vpop.f32.mrb[115].mxu0  ;;  %12839 = vmatmul.mubr.msk.f32.gmra.mrb[140].mxu0 %vm891_vm1, %v15610_v35 }
 0xa58   : > { %12708 = vmatmul.mubr.msk.f32.gmra.mrb[66].mxu1 %vm891_vm1, %v15610_v35  ;;  %12841 = vmatprep.mubr.msk.f32.mxu0 %vm13384_vm2, %v13383_v42 }
 0xa59   : > { %v8424_v60 = vmax.f32 %v8386_v38, %v8405_v40  ;;  %v8387_v6 = vadd.f32 %v15469_v59, %v8363_v62  ;;  %12710 = vmatprep.mubr.msk.f32.mxu1 %vm13384_vm2, %v13383_v42 }
 0xa5a   : > { %v8334_v48 = vpop.f32.mrb[116].mxu0  ;;  %v15623_v12 = vld [vmem:[#allocation3 + $0x60] sm:$0xff] }
 0xa5b   : > { %8565 = vst.msk [vmem:[#allocation3 + $0x70] sm:$0xff] %vm891_vm1, %v8424_v60  ;;  %v8406_v15 = vmul.f32 0.2, %v8387_v6  ;;  %v8364_v34 = vadd.f32 %v8334_v48, %v15461_v5  ;;  %v12654_v14 = vpop.f32.mrb[117].mxu0  ;;  %12842 = vmatmul.mubr.msk.f32.gmra.mrb[142].mxu0 %vm891_vm1, %v15623_v12 }
 0xa5c   : > { %12711 = vmatmul.mubr.msk.f32.gmra.mrb[68].mxu1 %vm891_vm1, %v15623_v12  ;;  %12844 = vmatprep.mubr.msk.f32.mxu0 %vm13384_vm2, %v13383_v42 }
 0xa5d   : > { %v8425_v1 = vmax.f32 %v8387_v6, %v8406_v15  ;;  %v8388_v55 = vadd.f32 %v15469_v59, %v8364_v34  ;;  %12713 = vmatprep.mubr.msk.f32.mxu1 %vm13384_vm2, %v13383_v42 }
 0xa5e   : > { %v8339_v58 = vpop.f32.mrb[118].mxu0  ;;  %v15637_v5 = vld [vmem:[#allocation3 + $0x68] sm:$0xff] }
 0xa5f   : > { %8566 = vst.msk [vmem:[#allocation3 + $0x78] sm:$0xff] %vm891_vm1, %v8425_v1  ;;  %v8407_v3 = vmul.f32 0.2, %v8388_v55  ;;  %v8365_v56 = vadd.f32 %v8339_v58, %v15463_v13  ;;  %v12657_v4 = vpop.f32.mrb[119].mxu0  ;;  %12845 = vmatmul.mubr.msk.f32.gmra.mrb[144].mxu0 %vm891_vm1, %v15637_v5 }
 0xa60   : > { %12714 = vmatmul.mubr.msk.f32.gmra.mrb[70].mxu1 %vm891_vm1, %v15637_v5  ;;  %12847 = vmatprep.mubr.msk.f32.mxu0 %vm13384_vm2, %v13383_v42 }
 0xa61   : > { %v8426_v33 = vmax.f32 %v8388_v55, %v8407_v3  ;;  %v8389_v8 = vadd.f32 %v15469_v59, %v8365_v56  ;;  %12716 = vmatprep.mubr.msk.f32.mxu1 %vm13384_vm2, %v13383_v42 }
 0xa62   : > { %v8977_v51 = vld [vmem:[#allocation3 + $0x70] sm:$0xff]  ;;  %v8344_v46 = vpop.f32.mrb[120].mxu0 }
 0xa63   : > { %8567 = vst.msk [vmem:[#allocation3 + $0x80] sm:$0xff] %vm891_vm1, %v8426_v33  ;;  %v8408_v13 = vmul.f32 0.2, %v8389_v8  ;;  %12848 = vmatmul.mubr.msk.f32.gmra.mrb[146].mxu0 %vm891_vm1, %v8977_v51 }
 0xa64   : > { %12717 = vmatmul.mubr.msk.f32.gmra.mrb[72].mxu1 %vm891_vm1, %v8977_v51  ;;  %12850 = vmatprep.mubr.msk.f32.mxu0 %vm13384_vm2, %v13383_v42 }
 0xa65   : > { %v8427_v27 = vmax.f32 %v8389_v8, %v8408_v13  ;;  %12719 = vmatprep.mubr.msk.f32.mxu1 %vm13384_vm2, %v13383_v42 }
 0xa66   : > { %v8978_v59 = vld [vmem:[#allocation3 + $0x78] sm:$0xff] }
 0xa67   : > { %v8549_v63 = vsel %vm8511_vm6, %v8427_v27, 0.0  ;;  %12851 = vmatmul.mubr.msk.f32.gmra.mrb[148].mxu0 %vm891_vm1, %v8978_v59 }
 0xa68   : > { %8568 = vst.msk [vmem:[#allocation3 + $0x88] sm:$0xff] %vm891_vm1, %v8549_v63  ;;  %12720 = vmatmul.mubr.msk.f32.gmra.mrb[74].mxu1 %vm891_vm1, %v8978_v59  ;;  %12853 = vmatprep.mubr.msk.f32.mxu0 %vm13384_vm2, %v13383_v42 }
 0xa69   : > { %12722 = vmatprep.mubr.msk.f32.mxu1 %vm13384_vm2, %v13383_v42 }
 0xa6a   : > { %v8979_v19 = vld [vmem:[#allocation3 + $0x80] sm:$0xff] }
 0xa6b   : > { %12854 = vmatmul.mubr.msk.f32.gmra.mrb[150].mxu0 %vm891_vm1, %v8979_v19 }
 0xa6c   : > { %12723 = vmatmul.mubr.msk.f32.gmra.mrb[76].mxu1 %vm891_vm1, %v8979_v19  ;;  %12856 = vmatprep.mubr.msk.f32.mxu0 %vm13384_vm2, %v13383_v42 }
 0xa6d   : > { %12725 = vmatprep.mubr.msk.f32.mxu1 %vm13384_vm2, %v13383_v42 }
 0xa6f   : > { %v8598_v39 = vld [vmem:[#allocation3 + $0x88] sm:$0x3] }
 0xa70   : > { %v8980_v52 = vld [vmem:[#allocation3 + $0x88] sm:$0xff]  ;;  %12726 = vmatmul.mubr.msk.f32.gmra.mrb[78].mxu1 %vm891_vm1, %v8598_v39 }
 0xa71   : > { %12857 = vmatmul.mubr.msk.f32.gmra.mrb[152].mxu0 %vm891_vm1, %v8980_v52  ;;  %12744 = vmatprep.mubr.msk.f32.mxu1 %vm13384_vm2, %v13383_v42 }
 0xa72   : > { %12859 = vmatprep.mubr.msk.f32.mxu0 %vm13384_vm2, %v13383_v42 }
 0xa74   : > { %12745 = vmatmul.mubr.msk.f32.vlgmr.msra.gmra.mrb[80].mxu1 %vm891_vm1, %v8571_v50 }
 0xa75   : > { %12860 = vmatmul.mubr.msk.f32.gmra.mrb[154].mxu0 %vm891_vm1, %v8981_v32  ;;  %12747 = vmatprep.mubr.msk.f32.mxu1 %vm13384_vm2, %v13383_v42 }
 0xa78   : > { %12748 = vmatmul.mubr.msk.f32.gmra.mrb[82].mxu1 %vm891_vm1, %v15483_v10  ;;  %v12660_v10 = vpop.f32.mrb[121].mxu0 }
 0xa79   : > { %12750 = vmatprep.mubr.msk.f32.mxu1 %vm13384_vm2, %v13383_v42 }
 0xa7c   : > { %12751 = vmatmul.mubr.msk.f32.gmra.mrb[84].mxu1 %vm891_vm1, %v15490_v22  ;;  %v8587_v22 = vld [vmem:[#allocation3 + $0x80] sm:$0x3] }
 0xa7d   : > { %12753 = vmatprep.mubr.msk.f32.mxu1 %vm13384_vm2, %v13383_v42 }
 0xa80   : > { %12754 = vmatmul.mubr.msk.f32.gmra.mrb[86].mxu1 %vm891_vm1, %v15504_v30 }
 0xa81   : > { %12756 = vmatprep.mubr.msk.f32.mxu1 %vm13384_vm2, %v13383_v42 }
 0xa84   : > { %12757 = vmatmul.mubr.msk.f32.gmra.mrb[88].mxu1 %vm891_vm1, %v15518_v47 }
 0xa85   : > { %12759 = vmatprep.mubr.msk.f32.mxu1 %vm13384_vm2, %v13383_v42 }
 0xa88   : > { %12760 = vmatmul.mubr.msk.f32.gmra.mrb[90].mxu1 %vm891_vm1, %v15532_v2 }
 0xa89   : > { %12762 = vmatprep.mubr.msk.f32.mxu1 %vm13384_vm2, %v13383_v42 }
 0xa8c   : > { %12763 = vmatmul.mubr.msk.f32.gmra.mrb[92].mxu1 %vm891_vm1, %v15545_v7 }
 0xa8d   : > { %12765 = vmatprep.mubr.msk.f32.mxu1 %vm13384_vm2, %v13383_v42 }
 0xa90   : > { %12766 = vmatmul.mubr.msk.f32.gmra.mrb[94].mxu1 %vm891_vm1, %v15558_v43 }
 0xa91   : > { %12768 = vmatprep.mubr.msk.f32.mxu1 %vm13384_vm2, %v13383_v42 }
 0xa94   : > { %12769 = vmatmul.mubr.msk.f32.gmra.mrb[96].mxu1 %vm891_vm1, %v15571_v23 }
 0xa95   : > { %12771 = vmatprep.mubr.msk.f32.mxu1 %vm13384_vm2, %v13383_v42 }
 0xa98   : > { %12772 = vmatmul.mubr.msk.f32.gmra.mrb[98].mxu1 %vm891_vm1, %v15584_v54 }
 0xa99   : > { %12774 = vmatprep.mubr.msk.f32.mxu1 %vm13384_vm2, %v13383_v42 }
 0xa9c   : > { %12775 = vmatmul.mubr.msk.f32.gmra.mrb[100].mxu1 %vm891_vm1, %v15597_v25 }
 0xa9d   : > { %12777 = vmatprep.mubr.msk.f32.mxu1 %vm13384_vm2, %v13383_v42 }
 0xaa0   : > { %12778 = vmatmul.mubr.msk.f32.gmra.mrb[102].mxu1 %vm891_vm1, %v15610_v35 }
 0xaa1   : > { %12780 = vmatprep.mubr.msk.f32.mxu1 %vm13384_vm2, %v13383_v42 }
 0xaa4   : > { %12781 = vmatmul.mubr.msk.f32.gmra.mrb[104].mxu1 %vm891_vm1, %v15623_v12 }
 0xaa5   : > { %12783 = vmatprep.mubr.msk.f32.mxu1 %vm13384_vm2, %v13383_v42 }
 0xaa8   : > { %12784 = vmatmul.mubr.msk.f32.gmra.mrb[106].mxu1 %vm891_vm1, %v15637_v5 }
 0xaa9   : > { %12786 = vmatprep.mubr.msk.f32.mxu1 %vm13384_vm2, %v13383_v42 }
 0xaac   : > { %12787 = vmatmul.mubr.msk.f32.gmra.mrb[108].mxu1 %vm891_vm1, %v8977_v51 }
 0xaad   : > { %12789 = vmatprep.mubr.msk.f32.mxu1 %vm13384_vm2, %v13383_v42 }
 0xab0   : > { %12790 = vmatmul.mubr.msk.f32.gmra.mrb[110].mxu1 %vm891_vm1, %v8978_v59 }
 0xab1   : > { %12792 = vmatprep.mubr.msk.f32.mxu1 %vm13384_vm2, %v13383_v42 }
 0xab4   : > { %12793 = vmatmul.mubr.msk.f32.gmra.mrb[112].mxu1 %vm891_vm1, %v8587_v22 }
 0xb03   : > { %v15739_v30 = vpop.f32.mrb[46].mxu1 }
 0xb04   : > { %v12679_v47 = vpop.f32.mrb[47].mxu1 }
 0xb06   : > { %v15741_v2 = vpop.f32.mrb[122].mxu0 }
 0xb07   : > { %v15743_v7 = vpop.f32.mrb[48].mxu1  ;;  %v12813_v43 = vpop.f32.mrb[123].mxu0 }
 0xb08   : > { %v12682_v23 = vpop.f32.mrb[49].mxu1 }
 0xb0a   : > { %v15745_v61 = vpop.f32.mrb[124].mxu0 }
 0xb0b   : > { %v15747_v17 = vpop.f32.mrb[50].mxu1  ;;  %v12816_v18 = vpop.f32.mrb[125].mxu0 }
 0xb0c   : > { %v12685_v41 = vpop.f32.mrb[51].mxu1 }
 0xb0e   : > { %v15749_v26 = vpop.f32.mrb[126].mxu0 }
 0xb0f   : > { %v15751_v42 = vpop.f32.mrb[52].mxu1  ;;  %v12819_v54 = vpop.f32.mrb[127].mxu0 }
 0xb10   : > { %v12688_v31 = vpop.f32.mrb[53].mxu1 }
 0xb12   : > { %v15753_v57 = vpop.f32.mrb[128].mxu0 }
 0xb13   : > { %v15755_v53 = vpop.f32.mrb[54].mxu1  ;;  %v12822_v28 = vpop.f32.mrb[129].mxu0 }
 0xb14   : > { %v12691_v29 = vpop.f32.mrb[55].mxu1 }
 0xb15   : > { %v15811_v29 = vld [vmem:[%s16062_s4 + $0x7] ss:$0 sm:$0xff] }
 0xb16   : > { %v15757_v36 = vpop.f32.mrb[130].mxu0 }
 0xb17   : > { %v15759_v25 = vpop.f32.mrb[56].mxu1  ;;  %v12825_v20 = vpop.f32.mrb[131].mxu0 }
 0xb18   : > { %v12694_v0 = vpop.f32.mrb[57].mxu1 }
 0xb19   : > { %v9290_v0 = vadd.s32 4294967295, %v13637_v16 }
 0xb1a   : > { %v15761_v44 = vpop.f32.mrb[132].mxu0 }
 0xb1b   : > { %v15763_v37 = vpop.f32.mrb[58].mxu1  ;;  %v12828_v38 = vpop.f32.mrb[133].mxu0  ;;  %vm9307_vm2 = vcmp.ge.s32.totalorder %v9290_v0, 0 }
 0xb1c   : > { %v12697_v21 = vpop.f32.mrb[59].mxu1 }
 0xb1e   : > { %v15765_v35 = vpop.f32.mrb[134].mxu0 }
 0xb1f   : > { %v15767_v40 = vpop.f32.mrb[60].mxu1  ;;  %v12831_v62 = vpop.f32.mrb[135].mxu0 }
 0xb20   : > { %v12700_v45 = vpop.f32.mrb[61].mxu1 }
 0xb22   : > { %v15769_v60 = vpop.f32.mrb[136].mxu0 }
 0xb23   : > { %v15771_v6 = vpop.f32.mrb[62].mxu1  ;;  %v12834_v48 = vpop.f32.mrb[137].mxu0 }
 0xb24   : > { %v12703_v12 = vpop.f32.mrb[63].mxu1 }
 0xb26   : > { %v15773_v15 = vpop.f32.mrb[138].mxu0 }
 0xb27   : > { %v15775_v34 = vpop.f32.mrb[64].mxu1  ;;  %v12837_v14 = vpop.f32.mrb[139].mxu0 }
 0xb28   : > { %v12706_v24 = vpop.f32.mrb[65].mxu1 }
 0xb2a   : > { %v15777_v1 = vpop.f32.mrb[140].mxu0 }
 0xb2b   : > { %v15779_v55 = vpop.f32.mrb[66].mxu1  ;;  %v12840_v58 = vpop.f32.mrb[141].mxu0 }
 0xb2c   : > { %v12709_v5 = vpop.f32.mrb[67].mxu1 }
 0xb2e   : > { %v15781_v3 = vpop.f32.mrb[142].mxu0 }
 0xb2f   : > { %v15783_v56 = vpop.f32.mrb[68].mxu1  ;;  %v12843_v4 = vpop.f32.mrb[143].mxu0 }
 0xb30   : > { %v12712_v49 = vpop.f32.mrb[69].mxu1 }
 0xb32   : > { %v15785_v33 = vpop.f32.mrb[144].mxu0 }
 0xb33   : > { %v15787_v8 = vpop.f32.mrb[70].mxu1  ;;  %v12846_v51 = vpop.f32.mrb[145].mxu0 }
 0xb34   : > { %v12715_v13 = vpop.f32.mrb[71].mxu1 }
 0xb36   : > { %v15789_v27 = vpop.f32.mrb[146].mxu0 }
 0xb37   : > { %v15791_v59 = vpop.f32.mrb[72].mxu1  ;;  %v12849_v63 = vpop.f32.mrb[147].mxu0 }
 0xb38   : > { %v12718_v19 = vpop.f32.mrb[73].mxu1 }
 0xb3a   : > { %v15793_v39 = vpop.f32.mrb[148].mxu0 }
 0xb3b   : > { %v15795_v52 = vpop.f32.mrb[74].mxu1  ;;  %v12852_v50 = vpop.f32.mrb[149].mxu0 }
 0xb3c   : > { %v12721_v32 = vpop.f32.mrb[75].mxu1 }
 0xb3e   : > { %v15797_v9 = vpop.f32.mrb[150].mxu0 }
 0xb3f   : > { %v15799_v11 = vpop.f32.mrb[76].mxu1  ;;  %v12855_v46 = vpop.f32.mrb[151].mxu0 }
 0xb40   : > { %v12724_v10 = vpop.f32.mrb[77].mxu1 }
 0xb43   : > { %v15801_v22 = vpop.f32.mrb[78].mxu1 }
 0xb44   : > { %v15803_v47 = vpop.f32.mrb[152].mxu0  ;;  %v12727_v43 = vpop.f32.mrb[79].mxu1 }
 0xb45   : > { %v12858_v23 = vpop.f32.mrb[153].mxu0  ;;  %v15831_v43 = vld [vmem:[%s16063_s5] ss:$0 sm:$0xff] }
 0xb47   : > { %v8881_v18 = vpop.f32.mrb[80].mxu1 }
 0xb48   : > { %v15805_v41 = vpop.f32.mrb[154].mxu0  ;;  %v8882_v54 = vadd.f32 %v8881_v18, %v15739_v30  ;;  %v12746_v31 = vpop.f32.mrb[81].mxu1 }
 0xb49   : > { %v12861_v28 = vpop.f32.mrb[155].mxu0 }
 0xb4a   : > { %v9192_v20 = vadd.f32 %v15741_v2, %v8882_v54 }
 0xb4b   : > { %v8886_v38 = vpop.f32.mrb[82].mxu1 }
 0xb4c   : > { %v9214_v21 = vadd.f32 %v15811_v29, %v9192_v20  ;;  %v8887_v62 = vadd.f32 %v8886_v38, %v15743_v7  ;;  %v12749_v45 = vpop.f32.mrb[83].mxu1 }
 0xb4e   : > { %v9231_v48 = vmul.f32 0.2, %v9214_v21  ;;  %v9193_v30 = vadd.f32 %v15745_v61, %v8887_v62 }
 0xb4f   : > { %v8891_v12 = vpop.f32.mrb[84].mxu1 }
 0xb50   : > { %v9248_v14 = vmax.f32 %v9214_v21, %v9231_v48  ;;  %v9215_v24 = vadd.f32 %v15811_v29, %v9193_v30  ;;  %v8892_v58 = vadd.f32 %v8891_v12, %v15747_v17  ;;  %v12752_v5 = vpop.f32.mrb[85].mxu1  ;;  %v15845_v48 = vld [vmem:[%s16063_s5 + $0x1] ss:$0 sm:$0xff] }
 0xb52   : > { %v9358_v2 = vsel %vm9307_vm2, %v9248_v14, 0.0  ;;  %v9232_v4 = vmul.f32 0.2, %v9215_v24  ;;  %v9194_v49 = vadd.f32 %v15749_v26, %v8892_v58 }
 0xb53   : > { %9375 = vst.msk [vmem:[#allocation2] sm:$0xff] %vm891_vm1, %v9358_v2  ;;  %v8896_v51 = vpop.f32.mrb[86].mxu1 }
 0xb54   : > { %v9249_v7 = vmax.f32 %v9215_v24, %v9232_v4  ;;  %v9216_v13 = vadd.f32 %v15811_v29, %v9194_v49  ;;  %v8897_v61 = vadd.f32 %v8896_v51, %v15751_v42  ;;  %v12755_v63 = vpop.f32.mrb[87].mxu1 }
 0xb56   : > { %9376 = vst.msk [vmem:[#allocation2 + $0x8] sm:$0xff] %vm891_vm1, %v9249_v7  ;;  %v9233_v19 = vmul.f32 0.2, %v9216_v13  ;;  %v9195_v50 = vadd.f32 %v15753_v57, %v8897_v61 }
 0xb57   : > { %v8901_v17 = vpop.f32.mrb[88].mxu1 }
 0xb58   : > { %v9250_v32 = vmax.f32 %v9216_v13, %v9233_v19  ;;  %v9217_v46 = vadd.f32 %v15811_v29, %v9195_v50  ;;  %v8902_v26 = vadd.f32 %v8901_v17, %v15755_v53  ;;  %v12758_v10 = vpop.f32.mrb[89].mxu1 }
 0xb5a   : > { %9377 = vst.msk [vmem:[#allocation2 + $0x10] sm:$0xff] %vm891_vm1, %v9250_v32  ;;  %v9234_v42 = vmul.f32 0.2, %v9217_v46  ;;  %v9196_v23 = vadd.f32 %v15757_v36, %v8902_v26  ;;  %v9393_v18 = vld [vmem:[#allocation2] sm:$0xff] }
 0xb5b   : > { %v8906_v54 = vpop.f32.mrb[90].mxu1  ;;  %v9414_v57 = vmul.f32 %v15831_v43, %v9393_v18 }
 0xb5c   : > { %v9251_v31 = vmax.f32 %v9217_v46, %v9234_v42  ;;  %v9218_v28 = vadd.f32 %v15811_v29, %v9196_v23  ;;  %v8907_v53 = vadd.f32 %v8906_v54, %v15759_v25  ;;  %v12761_v20 = vpop.f32.mrb[91].mxu1 }
 0xb5d   : > { %v9430_v0 = vsel %vm891_vm1, %v9414_v57, 0.0  ;;  %v9394_v38 = vld [vmem:[#allocation2 + $0x8] sm:$0xff] }
 0xb5e   : > { %9378 = vst.msk [vmem:[#allocation2 + $0x18] sm:$0xff] %vm891_vm1, %v9251_v31  ;;  %v9235_v21 = vmul.f32 0.2, %v9218_v28  ;;  %v9197_v62 = vadd.f32 %v15761_v44, %v8907_v53  ;;  %9431 = vadd.xlane.f32.xlu0 %v9430_v0  ;;  %v9415_v36 = vmul.f32 %v15831_v43, %v9394_v38  ;;  %v9494_v45 = vld [vmem:[#allocation2 + $0x1] sm:$0xff] }
 0xb5f   : > { %v8911_v30 = vpop.f32.mrb[92].mxu1  ;;  %v9515_v44 = vmul.f32 %v15845_v48, %v9494_v45  ;;  %v9595_v7 = vld [vmem:[#allocation2 + $0x2] sm:$0xff] }
 0xb60   : > { %v9252_v25 = vmax.f32 %v9218_v28, %v9235_v21  ;;  %v9219_v12 = vadd.f32 %v15811_v29, %v9197_v62  ;;  %v8912_v14 = vadd.f32 %v8911_v30, %v15763_v37  ;;  %v12764_v24 = vpop.f32.mrb[93].mxu1  ;;  %v9433_v58 = vsel %vm891_vm1, %v9415_v36, 0.0  ;;  %v15857_v37 = vld [vmem:[%s16063_s5 + $0x2] ss:$0 sm:$0xff] }
 0xb61   : > { %v9395_v5 = vld [vmem:[#allocation2 + $0x10] sm:$0xff]  ;;  %v9531_v46 = vsel %vm891_vm1, %v9515_v44, 0.0  ;;  %v9616_v26 = vmul.f32 %v15857_v37, %v9595_v7 }
 0xb62   : > { %v9495_v2 = vld [vmem:[#allocation2 + $0x9] sm:$0xff]  ;;  %9379 = vst.msk [vmem:[#allocation2 + $0x20] sm:$0xff] %vm891_vm1, %v9252_v25  ;;  %v9236_v4 = vmul.f32 0.2, %v9219_v12  ;;  %v9198_v49 = vadd.f32 %v15765_v35, %v8912_v14  ;;  %9434 = vadd.xlane.f32.xlu0 %v9433_v58  ;;  %v9416_v51 = vmul.f32 %v15831_v43, %v9395_v5 }
 0xb63   : > { %v8916_v13 = vpop.f32.mrb[94].mxu1  ;;  %v9516_v61 = vmul.f32 %v15845_v48, %v9495_v2  ;;  %v9596_v32 = vld [vmem:[#allocation2 + $0xa] sm:$0xff]  ;;  %v9632_v0 = vsel %vm891_vm1, %v9616_v26, 0.0 }
 0xb64   : > { %v9253_v63 = vmax.f32 %v9219_v12, %v9236_v4  ;;  %v9220_v19 = vadd.f32 %v15811_v29, %v9198_v49  ;;  %v8917_v50 = vadd.f32 %v8916_v13, %v15767_v40  ;;  %v12767_v17 = vpop.f32.mrb[95].mxu1  ;;  %v9436_v35 = vsel %vm891_vm1, %v9416_v51, 0.0 }
 0xb65   : > { %9437 = vadd.xlane.f32.xlu1 %v9436_v35  ;;  %v9496_v23 = vld [vmem:[#allocation2 + $0x11] sm:$0xff]  ;;  %v9617_v54 = vmul.f32 %v15857_v37, %v9596_v32  ;;  %v9534_v53 = vsel %vm891_vm1, %v9516_v61, 0.0 }
 0xb66   : > { %9380 = vst.msk [vmem:[#allocation2 + $0x28] sm:$0xff] %vm891_vm1, %v9253_v63  ;;  %v9237_v10 = vmul.f32 0.2, %v9220_v19  ;;  %v9199_v42 = vadd.f32 %v15769_v60, %v8917_v50  ;;  %9532 = vadd.xlane.f32.xlu0 %v9531_v46  ;;  %v9396_v20 = vld [vmem:[#allocation2 + $0x18] sm:$0xff]  ;;  %v9517_v38 = vmul.f32 %v15845_v48, %v9496_v23 }
 0xb67   : > { %v8921_v18 = vpop.f32.mrb[96].mxu1  ;;  %v9597_v62 = vld [vmem:[#allocation2 + $0x12] sm:$0xff]  ;;  %v9417_v45 = vmul.f32 %v15831_v43, %v9396_v20  ;;  %v9635_v14 = vsel %vm891_vm1, %v9617_v54, 0.0 }
 0xb68   : > { %v9254_v40 = vmax.f32 %v9220_v19, %v9237_v10  ;;  %v9221_v57 = vadd.f32 %v15811_v29, %v9199_v42  ;;  %v8922_v31 = vadd.f32 %v8921_v18, %v15771_v6  ;;  %v12770_v28 = vpop.f32.mrb[97].mxu1  ;;  %v9537_v24 = vsel %vm891_vm1, %v9517_v38, 0.0 }
 0xb69   : > { %9535 = vadd.xlane.f32.xlu1 %v9534_v53  ;;  %v9618_v58 = vmul.f32 %v15857_v37, %v9597_v62  ;;  %v9497_v5 = vld [vmem:[#allocation2 + $0x19] sm:$0xff]  ;;  %v9439_v49 = vsel %vm891_vm1, %v9417_v45, 0.0 }
 0xb6a   : > { %9381 = vst.msk [vmem:[#allocation2 + $0x30] sm:$0xff] %vm891_vm1, %v9254_v40  ;;  %v9238_v60 = vmul.f32 0.2, %v9221_v57  ;;  %v9200_v21 = vadd.f32 %v15773_v15, %v8922_v31  ;;  %9633 = vadd.xlane.f32.xlu0 %v9632_v0  ;;  %v9397_v2 = vld [vmem:[#allocation2 + $0x20] sm:$0xff]  ;;  %v9518_v61 = vmul.f32 %v15845_v48, %v9497_v5 }
 0xb6b   : > { %v8926_v36 = vpop.f32.mrb[98].mxu1  ;;  %v9598_v63 = vld [vmem:[#allocation2 + $0x1a] sm:$0xff]  ;;  %v9638_v19 = vsel %vm891_vm1, %v9618_v58, 0.0  ;;  %v9418_v50 = vmul.f32 %v15831_v43, %v9397_v2 }
 0xb6c   : > { %v9255_v6 = vmax.f32 %v9221_v57, %v9238_v60  ;;  %v9222_v30 = vadd.f32 %v15811_v29, %v9200_v21  ;;  %v8927_v25 = vadd.f32 %v8926_v36, %v15775_v34  ;;  %v12773_v12 = vpop.f32.mrb[99].mxu1  ;;  %v9619_v46 = vmul.f32 %v15857_v37, %v9598_v63 }
 0xb6d   : > { %9636 = vadd.xlane.f32.xlu1 %v9635_v14  ;;  %v9498_v35 = vld [vmem:[#allocation2 + $0x21] sm:$0xff]  ;;  %v9540_v23 = vsel %vm891_vm1, %v9518_v61, 0.0  ;;  %v9442_v54 = vsel %vm891_vm1, %v9418_v50, 0.0 }
 0xb6e   : > { %9382 = vst.msk [vmem:[#allocation2 + $0x38] sm:$0xff] %vm891_vm1, %v9255_v6  ;;  %v9239_v15 = vmul.f32 0.2, %v9222_v30  ;;  %v9201_v44 = vadd.f32 %v15777_v1, %v8927_v25  ;;  %9538 = vadd.xlane.f32.xlu0 %v9537_v24  ;;  %v9398_v18 = vld [vmem:[#allocation2 + $0x28] sm:$0xff]  ;;  %v9519_v40 = vmul.f32 %v15845_v48, %v9498_v35  ;;  %v9641_v60 = vsel %vm891_vm1, %v9619_v46, 0.0 }
 0xb6f   : > { %v8931_v4 = vpop.f32.mrb[100].mxu1  ;;  %v9599_v31 = vld [vmem:[#allocation2 + $0x22] sm:$0xff]  ;;  %v9419_v53 = vmul.f32 %v15831_v43, %v9398_v18 }
 0xb70   : > { %v9256_v34 = vmax.f32 %v9222_v30, %v9239_v15  ;;  %v9223_v51 = vadd.f32 %v15811_v29, %v9201_v44  ;;  %v8932_v7 = vadd.f32 %v8931_v4, %v15779_v55  ;;  %v12776_v13 = vpop.f32.mrb[101].mxu1  ;;  %v9543_v21 = vsel %vm891_vm1, %v9519_v40, 0.0 }
 0xb71   : > { %9440 = vadd.xlane.f32.xlu1 %v9439_v49  ;;  %v9620_v62 = vmul.f32 %v15857_v37, %v9599_v31  ;;  %v9499_v36 = vld [vmem:[#allocation2 + $0x29] sm:$0xff]  ;;  %v9445_v25 = vsel %vm891_vm1, %v9419_v53, 0.0 }
 0xb72   : > { %9383 = vst.msk [vmem:[#allocation2 + $0x40] sm:$0xff] %vm891_vm1, %v9256_v34  ;;  %v9240_v1 = vmul.f32 0.2, %v9223_v51  ;;  %v9202_v17 = vadd.f32 %v15781_v3, %v8932_v7  ;;  %9639 = vadd.xlane.f32.xlu0 %v9638_v19  ;;  %v9399_v6 = vld [vmem:[#allocation2 + $0x30] sm:$0xff]  ;;  %v9520_v58 = vmul.f32 %v15845_v48, %v9499_v36 }
 0xb73   : > { %v8936_v32 = vpop.f32.mrb[102].mxu1  ;;  %v9600_v5 = vld [vmem:[#allocation2 + $0x2a] sm:$0xff]  ;;  %v9644_v15 = vsel %vm891_vm1, %v9620_v62, 0.0  ;;  %v9420_v44 = vmul.f32 %v15831_v43, %v9399_v6 }
 0xb74   : > { %v9257_v55 = vmax.f32 %v9223_v51, %v9240_v1  ;;  %v9224_v26 = vadd.f32 %v15811_v29, %v9202_v17  ;;  %v8937_v10 = vadd.f32 %v8936_v32, %v15783_v56  ;;  %v12779_v42 = vpop.f32.mrb[103].mxu1  ;;  %v9621_v34 = vmul.f32 %v15857_v37, %v9600_v5 }
 0xb75   : > { %9541 = vadd.xlane.f32.xlu1 %v9540_v23  ;;  %v9500_v4 = vld [vmem:[#allocation2 + $0x31] sm:$0xff]  ;;  %v9546_v61 = vsel %vm891_vm1, %v9520_v58, 0.0  ;;  %v9448_v19 = vsel %vm891_vm1, %v9420_v44, 0.0 }
 0xb76   : > { %9384 = vst.msk [vmem:[#allocation2 + $0x48] sm:$0xff] %vm891_vm1, %v9257_v55  ;;  %v9241_v3 = vmul.f32 0.2, %v9224_v26  ;;  %v9203_v57 = vadd.f32 %v15785_v33, %v8937_v10  ;;  %9443 = vadd.xlane.f32.xlu0 %v9442_v54  ;;  %v9400_v63 = vld [vmem:[#allocation2 + $0x38] sm:$0xff]  ;;  %v9521_v50 = vmul.f32 %v15845_v48, %v9500_v4  ;;  %v9647_v10 = vsel %vm891_vm1, %v9621_v34, 0.0 }
 0xb77   : > { %v8941_v28 = vpop.f32.mrb[104].mxu1  ;;  %v9601_v17 = vld [vmem:[#allocation2 + $0x32] sm:$0xff]  ;;  %v9421_v32 = vmul.f32 %v15831_v43, %v9400_v63 }
 0xb78   : > { %v9258_v56 = vmax.f32 %v9224_v26, %v9241_v3  ;;  %v9225_v20 = vadd.f32 %v15811_v29, %v9203_v57  ;;  %v8942_v0 = vadd.f32 %v8941_v28, %v15787_v8  ;;  %v12782_v38 = vpop.f32.mrb[105].mxu1  ;;  %v9549_v42 = vsel %vm891_vm1, %v9521_v50, 0.0 }
 0xb79   : > { %9642 = vadd.xlane.f32.xlu1 %v9641_v60  ;;  %v9622_v23 = vmul.f32 %v15857_v37, %v9601_v17  ;;  %v9501_v18 = vld [vmem:[#allocation2 + $0x39] sm:$0xff]  ;;  %v356_v57 = vadd.s32 128, %v13637_v16 }
 0xb7a   : > { %9385 = vst.msk [vmem:[#allocation2 + $0x50] sm:$0xff] %vm891_vm1, %v9258_v56  ;;  %v9242_v33 = vmul.f32 0.2, %v9225_v20  ;;  %v9204_v45 = vadd.f32 %v15789_v27, %v8942_v0  ;;  %9544 = vadd.xlane.f32.xlu0 %v9543_v21  ;;  %v9401_v40 = vld [vmem:[#allocation2 + $0x40] sm:$0xff] }
 0xb7b   : > { %v8946_v30 = vpop.f32.mrb[106].mxu1  ;;  %v9650_v0 = vsel %vm891_vm1, %v9622_v23, 0.0  ;;  %v9602_v38 = vld [vmem:[#allocation2 + $0x3a] sm:$0xff]  ;;  %v9306_v62 = vadd.s32 4294967295, %v356_v57 }
 0xb7c   : > { %v9259_v8 = vmax.f32 %v9225_v20, %v9242_v33  ;;  %v9226_v12 = vadd.f32 %v15811_v29, %v9204_v45  ;;  %v8947_v14 = vadd.f32 %v8946_v30, %v15791_v59  ;;  %v12785_v24 = vpop.f32.mrb[107].mxu1  ;;  %v9522_v20 = vmul.f32 %v15845_v48, %v9501_v18 }
 0xb7d   : > { %9446 = vadd.xlane.f32.xlu1 %v9445_v25  ;;  %v9502_v21 = vld [vmem:[#allocation2 + $0x41] sm:$0xff]  ;;  %v9623_v45 = vmul.f32 %v15857_v37, %v9602_v38  ;;  %vm9340_vm7 = vcmp.lt.s32.totalorder %v9306_v62, 128 }
 0xb7e   : > { %9386 = vst.msk [vmem:[#allocation2 + $0x58] sm:$0xff] %vm891_vm1, %v9259_v8  ;;  %v9243_v27 = vmul.f32 0.2, %v9226_v12  ;;  %v9205_v2 = vadd.f32 %v15793_v39, %v8947_v14  ;;  %9645 = vadd.xlane.f32.xlu0 %v9644_v15  ;;  %v9552_v33 = vsel %vm891_vm1, %v9522_v20, 0.0  ;;  %v9523_v30 = vmul.f32 %v15845_v48, %v9502_v21  ;;  %v9402_v25 = vld [vmem:[#allocation2 + $0x48] sm:$0xff] }
 0xb7f   : > { %v8951_v49 = vpop.f32.mrb[108].mxu1  ;;  %v9653_v14 = vsel %vm891_vm1, %v9623_v45, 0.0 }
 0xb80   : > { %v9260_v59 = vmax.f32 %v9226_v12, %v9243_v27  ;;  %v9227_v51 = vadd.f32 %v15811_v29, %v9205_v2  ;;  %v8952_v7 = vadd.f32 %v8951_v49, %v15795_v52  ;;  %v12788_v13 = vpop.f32.mrb[109].mxu1  ;;  %v9555_v24 = vsel %vm891_vm1, %v9523_v30, 0.0 }
 0xb81   : > { %9547 = vadd.xlane.f32.xlu1 %v9546_v61  ;;  %v9503_v5 = vld [vmem:[#allocation2 + $0x49] sm:$0xff] }
 0xb82   : > { %9387 = vst.msk [vmem:[#allocation2 + $0x60] sm:$0xff] %vm891_vm1, %v9260_v59  ;;  %v9244_v39 = vmul.f32 0.2, %v9227_v51  ;;  %v9206_v1 = vadd.f32 %v15797_v9, %v8952_v7  ;;  %9449 = vadd.xlane.f32.xlu0 %v9448_v19  ;;  %v9403_v44 = vld [vmem:[#allocation2 + $0x50] sm:$0xff]  ;;  %v9524_v2 = vmul.f32 %v15845_v48, %v9503_v5 }
 0xb83   : > { %v8956_v35 = vpop.f32.mrb[110].mxu1  ;;  %v9424_v49 = vmul.f32 %v15831_v43, %v9403_v44  ;;  %v9604_v34 = vld [vmem:[#allocation2 + $0x4a] sm:$0xff] }
 0xb84   : > { %v9261_v52 = vmax.f32 %v9227_v51, %v9244_v39  ;;  %v9228_v46 = vadd.f32 %v15811_v29, %v9206_v1  ;;  %v8957_v55 = vadd.f32 %v8956_v35, %v15799_v11  ;;  %v12791_v26 = vpop.f32.mrb[111].mxu1  ;;  %v9451_v11 = vsel %vm891_vm1, %v9421_v32, 0.0 }
 0xb85   : > { %9648 = vadd.xlane.f32.xlu1 %v9647_v10  ;;  %v9504_v59 = vld [vmem:[#allocation2 + $0x51] sm:$0xff]  ;;  %v9558_v51 = vsel %vm891_vm1, %v9524_v2, 0.0  ;;  %v9625_v7 = vmul.f32 %v15857_v37, %v9604_v34  ;;  %v9460_v13 = vsel %vm891_vm1, %v9424_v49, 0.0  ;;  %v15994_v49 = vld [vmem:[#allocation4] ss:$0 sm:$0xff] }
 0xb86   : > { %9388 = vst.msk [vmem:[#allocation2 + $0x68] sm:$0xff] %vm891_vm1, %v9261_v52  ;;  %v9245_v9 = vmul.f32 0.2, %v9228_v46  ;;  %v9207_v54 = vadd.f32 %v15803_v47, %v8957_v55  ;;  %9550 = vadd.xlane.f32.xlu0 %v9549_v42  ;;  %v9422_v47 = vmul.f32 %v15831_v43, %v9401_v40  ;;  %v9525_v61 = vmul.f32 %v15845_v48, %v9504_v59  ;;  %v9404_v63 = vld [vmem:[#allocation2 + $0x58] sm:$0xff] }
 0xb87   : > { %v8961_v3 = vpop.f32.mrb[112].mxu1  ;;  %v9605_v19 = vld [vmem:[#allocation2 + $0x52] sm:$0xff]  ;;  %v9659_v50 = vsel %vm891_vm1, %v9625_v7, 0.0  ;;  %v9425_v39 = vmul.f32 %v15831_v43, %v9404_v63 }
 0xb88   : > { %v9262_v31 = vmax.f32 %v9228_v46, %v9245_v9  ;;  %v9229_v28 = vadd.f32 %v15811_v29, %v9207_v54  ;;  %v8962_v53 = vadd.f32 %v8961_v3, %v15801_v22  ;;  %v12794_v56 = vpop.f32.mrb[113].mxu1  ;;  %v9454_v6 = vsel %vm891_vm1, %v9422_v47, 0.0 }
 0xb89   : > { %9452 = vadd.xlane.f32.xlu1 %v9451_v11  ;;  %v9561_v1 = vsel %vm891_vm1, %v9525_v61, 0.0  ;;  %v9626_v17 = vmul.f32 %v15857_v37, %v9605_v19  ;;  %v9505_v35 = vld [vmem:[#allocation2 + $0x59] sm:$0xff]  ;;  %v9463_v52 = vsel %vm891_vm1, %v9425_v39, 0.0 }
 0xb8a   : > { %9389 = vst.msk [vmem:[#allocation2 + $0x70] sm:$0xff] %vm891_vm1, %v9262_v31  ;;  %v9246_v60 = vmul.f32 0.2, %v9229_v28  ;;  %v9208_v16 = vadd.f32 %v15805_v41, %v8962_v53  ;;  %9651 = vadd.xlane.f32.xlu0 %v9650_v0  ;;  %v9603_v41 = vld [vmem:[#allocation2 + $0x42] sm:$0xff]  ;;  %v9526_v46 = vmul.f32 %v15845_v48, %v9505_v35  ;;  %v9606_v10 = vld [vmem:[#allocation2 + $0x5a] sm:$0xff] }
 0xb8b   : > { %v9624_v58 = vmul.f32 %v15857_v37, %v9603_v41  ;;  %v9405_v32 = vld [vmem:[#allocation2 + $0x60] sm:$0xff]  ;;  %v9662_v55 = vsel %vm891_vm1, %v9626_v17, 0.0  ;;  %v9627_v18 = vmul.f32 %v15857_v37, %v9606_v10 }
 0xb8c   : > { %v9263_v36 = vmax.f32 %v9229_v28, %v9246_v60  ;;  %v9230_v22 = vadd.f32 %v15811_v29, %v9208_v16  ;;  %v9423_v29 = vmul.f32 %v15831_v43, %v9402_v25  ;;  %v9426_v26 = vmul.f32 %v15831_v43, %v9405_v32 }
 0xb8d   : > { %9553 = vadd.xlane.f32.xlu1 %v9552_v33  ;;  %v9656_v4 = vsel %vm891_vm1, %v9624_v58, 0.0  ;;  %v9506_v42 = vld [vmem:[#allocation2 + $0x61] sm:$0xff]  ;;  %v9564_v23 = vsel %vm891_vm1, %v9526_v46, 0.0  ;;  %v9665_v57 = vsel %vm891_vm1, %v9627_v18, 0.0 }
 0xb8e   : > { %9390 = vst.msk [vmem:[#allocation2 + $0x78] sm:$0xff] %vm891_vm1, %v9263_v36  ;;  %v9247_v8 = vmul.f32 0.2, %v9230_v22  ;;  %9455 = vadd.xlane.f32.xlu0 %v9454_v6  ;;  %v9457_v27 = vsel %vm891_vm1, %v9423_v29, 0.0  ;;  %v9466_v9 = vsel %vm891_vm1, %v9426_v26, 0.0  ;;  %v9527_v54 = vmul.f32 %v15845_v48, %v9506_v42  ;;  %v9406_v40 = vld [vmem:[#allocation2 + $0x68] sm:$0xff] }
 0xb8f   : > { %v9607_v3 = vld [vmem:[#allocation2 + $0x62] sm:$0xff]  ;;  %v9427_v11 = vmul.f32 %v15831_v43, %v9406_v40 }
 0xb90   : > { %v9264_v12 = vmax.f32 %v9230_v22, %v9247_v8  ;;  %v9567_v31 = vsel %vm891_vm1, %v9527_v54, 0.0  ;;  %v9628_v28 = vmul.f32 %v15857_v37, %v9607_v3 }
 0xb91   : > { %9654 = vadd.xlane.f32.xlu1 %v9653_v14  ;;  %v9507_v53 = vld [vmem:[#allocation2 + $0x69] sm:$0xff]  ;;  %v9469_v20 = vsel %vm891_vm1, %v9427_v11, 0.0 }
 0xb92   : > { %v9374_v15 = vsel %vm9340_vm7, %v9264_v12, 0.0  ;;  %9556 = vadd.xlane.f32.xlu0 %v9555_v24  ;;  %v9407_v56 = vld [vmem:[#allocation2 + $0x70] sm:$0xff]  ;;  %v9528_v0 = vmul.f32 %v15845_v48, %v9507_v53  ;;  %v9668_v47 = vsel %vm891_vm1, %v9628_v28, 0.0 }
 0xb93   : > { %9392 = vst.msk [vmem:[#allocation2 + $0x80] sm:$0x3] %vm917_vm3, %v9374_v15  ;;  %v9428_v38 = vmul.f32 %v15831_v43, %v9407_v56  ;;  %v9608_v60 = vld [vmem:[#allocation2 + $0x6a] sm:$0xff] }
 0xb94   : > { %v9570_v21 = vsel %vm891_vm1, %v9528_v0, 0.0  ;;  %v9629_v62 = vmul.f32 %v15857_v37, %v9608_v60 }
 0xb95   : > { %9458 = vadd.xlane.f32.xlu1 %v9457_v27  ;;  %v9508_v16 = vld [vmem:[#allocation2 + $0x71] sm:$0xff]  ;;  %v9472_v36 = vsel %vm891_vm1, %v9428_v38, 0.0 }
 0xb96   : > { %9657 = vadd.xlane.f32.xlu0 %v9656_v4  ;;  %v9529_v22 = vmul.f32 %v15845_v48, %v9508_v16  ;;  %v9408_v33 = vld [vmem:[#allocation2 + $0x78] sm:$0xff]  ;;  %v9671_v6 = vsel %vm891_vm1, %v9629_v62, 0.0 }
 0xb97   : > { %v9609_v45 = vld [vmem:[#allocation2 + $0x72] sm:$0xff]  ;;  %v9429_v30 = vmul.f32 %v15831_v43, %v9408_v33 }
 0xb98   : > { %v9573_v25 = vsel %vm891_vm1, %v9529_v22, 0.0  ;;  %v9630_v8 = vmul.f32 %v15857_v37, %v9609_v45 }
 0xb99   : > { %9559 = vadd.xlane.f32.xlu1 %v9558_v51  ;;  %v9475_v12 = vsel %vm891_vm1, %v9429_v30, 0.0 }
 0xb9a   : > { %9461 = vadd.xlane.f32.xlu0 %v9460_v13  ;;  %v9509_v41 = vld [vmem:[#allocation2 + $0x79] sm:$0xff]  ;;  %v9674_v29 = vsel %vm891_vm1, %v9630_v8, 0.0 }
 0xb9b   : > { %v9530_v14 = vmul.f32 %v15845_v48, %v9509_v41  ;;  %v9610_v24 = vld [vmem:[#allocation2 + $0x7a] sm:$0xff] }
 0xb9c   : > { %v9631_v43 = vmul.f32 %v15857_v37, %v9610_v24 }
 0xb9d   : > { %9660 = vadd.xlane.f32.xlu1 %v9659_v50  ;;  %v9576_v58 = vsel %vm891_vm1, %v9530_v14, 0.0 }
 0xb9e   : > { %9562 = vadd.xlane.f32.xlu0 %v9561_v1  ;;  %v9677_v5 = vsel %vm891_vm1, %v9631_v43, 0.0  ;;  %vm9719_vm1 = vcmask 7168  }
 0xba1   : > { %9464 = vadd.xlane.f32.xlu1 %v9463_v52 }
 0xba2   : > { %9663 = vadd.xlane.f32.xlu0 %v9662_v55 }
 0xba5   : > { %9565 = vadd.xlane.f32.xlu1 %v9564_v23 }
 0xba6   : > { %9467 = vadd.xlane.f32.xlu0 %v9466_v9 }
 0xba9   : > { %9666 = vadd.xlane.f32.xlu1 %v9665_v57 }
 0xbaa   : > { %9568 = vadd.xlane.f32.xlu0 %v9567_v31 }
 0xbad   : > { %9470 = vadd.xlane.f32.xlu1 %v9469_v20 }
 0xbae   : > { %9669 = vadd.xlane.f32.xlu0 %v9668_v47 }
 0xbb1   : > { %9571 = vadd.xlane.f32.xlu1 %v9570_v21 }
 0xbb2   : > { %9473 = vadd.xlane.f32.xlu0 %v9472_v36 }
 0xbb5   : > { %9672 = vadd.xlane.f32.xlu1 %v9671_v6 }
 0xbb6   : > { %9574 = vadd.xlane.f32.xlu0 %v9573_v25 }
 0xbb9   : > { %9476 = vadd.xlane.f32.xlu1 %v9475_v12 }
 0xbba   : > { %9675 = vadd.xlane.f32.xlu0 %v9674_v29 }
 0xbbd   : > { %9577 = vadd.xlane.f32.xlu1 %v9576_v58 }
 0xbc1   : > { %9678 = vadd.xlane.f32.xlu1 %v9677_v5 }
 0xbeb   : > { %v9432_v15 = vpop.xlane.xlu0 %9431 }
 0xbef   : > { %v9435_v44 = vpop.xlane.xlu0 %9434 }
 0xbf2   : > { %v9438_v27 = vpop.xlane.xlu1 %9437 }
 0xbf3   : > { %v9533_v2 = vpop.xlane.xlu0 %9532 }
 0xbf4   : > { %v9579_v4 = vadd.f32 %v9533_v2, %v9432_v15 }
 0xbf6   : > { %v9536_v48 = vpop.xlane.xlu1 %9535 }
 0xbf7   : > { %v9634_v34 = vpop.xlane.xlu0 %9633  ;;  %v9580_v51 = vadd.f32 %v9536_v48, %v9435_v44 }
 0xbf8   : > { %v9680_v59 = vadd.f32 %v9634_v34, %v9579_v4 }
 0xbfa   : > { %v9703_v37 = vadd.f32 %v15994_v49, %v9680_v59  ;;  %v9637_v7 = vpop.xlane.xlu1 %9636 }
 0xbfb   : > { %v9681_v13 = vadd.f32 %v9637_v7, %v9580_v51  ;;  %v9539_v61 = vpop.xlane.xlu0 %9538 }
 0xbfc   : > { %9720 = vst.msk [vmem:[%s15999_s17] sm:$0xff] %vm9719_vm1, %v9703_v37  ;;  %v9581_v19 = vadd.f32 %v9539_v61, %v9438_v27 }
 0xbfd   : > { %v9704_v63 = vadd.f32 %v15994_v49, %v9681_v13 }
 0xbfe   : > { %v9441_v50 = vpop.xlane.xlu1 %9440 }
 0xbff   : > { %9721 = vst.msk [vmem:[%s15999_s17 + $0x8] sm:$0xff] %vm9719_vm1, %v9704_v63  ;;  %v9640_v39 = vpop.xlane.xlu0 %9639 }
 0xc00   : > { %v9682_v1 = vadd.f32 %v9640_v39, %v9581_v19 }
 0xc02   : > { %v9705_v17 = vadd.f32 %v15994_v49, %v9682_v1  ;;  %v9542_v35 = vpop.xlane.xlu1 %9541 }
 0xc03   : > { %v9444_v32 = vpop.xlane.xlu0 %9443  ;;  %v9582_v52 = vadd.f32 %v9542_v35, %v9441_v50 }
 0xc04   : > { %9722 = vst.msk [vmem:[%s15999_s17 + $0x10] sm:$0xff] %vm9719_vm1, %v9705_v17 }
 0xc06   : > { %v9643_v46 = vpop.xlane.xlu1 %9642 }
 0xc07   : > { %v9683_v55 = vadd.f32 %v9643_v46, %v9582_v52  ;;  %v9545_v26 = vpop.xlane.xlu0 %9544 }
 0xc08   : > { %v9583_v42 = vadd.f32 %v9545_v26, %v9444_v32 }
 0xc09   : > { %v9706_v10 = vadd.f32 %v15994_v49, %v9683_v55 }
 0xc0a   : > { %v9447_v23 = vpop.xlane.xlu1 %9446 }
 0xc0b   : > { %9723 = vst.msk [vmem:[%s15999_s17 + $0x18] sm:$0xff] %vm9719_vm1, %v9706_v10  ;;  %v9646_v18 = vpop.xlane.xlu0 %9645 }
 0xc0c   : > { %v9684_v9 = vadd.f32 %v9646_v18, %v9583_v42 }
 0xc0e   : > { %v9707_v54 = vadd.f32 %v15994_v49, %v9684_v9  ;;  %v9548_v40 = vpop.xlane.xlu1 %9547 }
 0xc0f   : > { %v9450_v3 = vpop.xlane.xlu0 %9449  ;;  %v9584_v57 = vadd.f32 %v9548_v40, %v9447_v23 }
 0xc10   : > { %9724 = vst.msk [vmem:[%s15999_s17 + $0x20] sm:$0xff] %vm9719_vm1, %v9707_v54 }
 0xc12   : > { %v9649_v11 = vpop.xlane.xlu1 %9648 }
 0xc13   : > { %v9685_v31 = vadd.f32 %v9649_v11, %v9584_v57  ;;  %v9551_v28 = vpop.xlane.xlu0 %9550 }
 0xc14   : > { %v9585_v56 = vadd.f32 %v9551_v28, %v9450_v3 }
 0xc15   : > { %v9708_v53 = vadd.f32 %v15994_v49, %v9685_v31 }
 0xc16   : > { %v9453_v20 = vpop.xlane.xlu1 %9452 }
 0xc17   : > { %9725 = vst.msk [vmem:[%s15999_s17 + $0x28] sm:$0xff] %vm9719_vm1, %v9708_v53  ;;  %v9652_v0 = vpop.xlane.xlu0 %9651 }
 0xc18   : > { %v9686_v47 = vadd.f32 %v9652_v0, %v9585_v56 }
 0xc1a   : > { %v9709_v38 = vadd.f32 %v15994_v49, %v9686_v47  ;;  %v9554_v60 = vpop.xlane.xlu1 %9553 }
 0xc1b   : > { %v9456_v16 = vpop.xlane.xlu0 %9455  ;;  %v9586_v21 = vadd.f32 %v9554_v60, %v9453_v20 }
 0xc1c   : > { %9726 = vst.msk [vmem:[%s15999_s17 + $0x30] sm:$0xff] %vm9719_vm1, %v9709_v38 }
 0xc1e   : > { %v9655_v62 = vpop.xlane.xlu1 %9654 }
 0xc1f   : > { %v9687_v36 = vadd.f32 %v9655_v62, %v9586_v21  ;;  %v9557_v22 = vpop.xlane.xlu0 %9556 }
 0xc20   : > { %v9587_v45 = vadd.f32 %v9557_v22, %v9456_v16 }
 0xc21   : > { %v9710_v33 = vadd.f32 %v15994_v49, %v9687_v36 }
 0xc22   : > { %v9459_v6 = vpop.xlane.xlu1 %9458 }
 0xc23   : > { %9727 = vst.msk [vmem:[%s15999_s17 + $0x38] sm:$0xff] %vm9719_vm1, %v9710_v33  ;;  %v9658_v30 = vpop.xlane.xlu0 %9657 }
 0xc24   : > { %v9688_v25 = vadd.f32 %v9658_v30, %v9587_v45 }
 0xc26   : > { %v9711_v8 = vadd.f32 %v15994_v49, %v9688_v25  ;;  %v9560_v41 = vpop.xlane.xlu1 %9559 }
 0xc27   : > { %v9462_v12 = vpop.xlane.xlu0 %9461  ;;  %v9588_v14 = vadd.f32 %v9560_v41, %v9459_v6 }
 0xc28   : > { %9728 = vst.msk [vmem:[%s15999_s17 + $0x40] sm:$0xff] %vm9719_vm1, %v9711_v8 }
 0xc2a   : > { %v9661_v29 = vpop.xlane.xlu1 %9660 }
 0xc2b   : > { %v9689_v24 = vadd.f32 %v9661_v29, %v9588_v14  ;;  %v9563_v58 = vpop.xlane.xlu0 %9562 }
 0xc2c   : > { %v9589_v5 = vadd.f32 %v9563_v58, %v9462_v12 }
 0xc2d   : > { %v9712_v43 = vadd.f32 %v15994_v49, %v9689_v24 }
 0xc2e   : > { %v9465_v15 = vpop.xlane.xlu1 %9464 }
 0xc2f   : > { %9729 = vst.msk [vmem:[%s15999_s17 + $0x48] sm:$0xff] %vm9719_vm1, %v9712_v43  ;;  %v9664_v44 = vpop.xlane.xlu0 %9663 }
 0xc30   : > { %v9690_v27 = vadd.f32 %v9664_v44, %v9589_v5 }
 0xc32   : > { %v9713_v2 = vadd.f32 %v15994_v49, %v9690_v27  ;;  %v9566_v4 = vpop.xlane.xlu1 %9565 }
 0xc33   : > { %v9468_v48 = vpop.xlane.xlu0 %9467  ;;  %v9590_v34 = vadd.f32 %v9566_v4, %v9465_v15 }
 0xc34   : > { %9730 = vst.msk [vmem:[%s15999_s17 + $0x50] sm:$0xff] %vm9719_vm1, %v9713_v2 }
 0xc36   : > { %v9667_v59 = vpop.xlane.xlu1 %9666 }
 0xc37   : > { %v9691_v51 = vadd.f32 %v9667_v59, %v9590_v34  ;;  %v9569_v37 = vpop.xlane.xlu0 %9568 }
 0xc38   : > { %v9591_v13 = vadd.f32 %v9569_v37, %v9468_v48 }
 0xc39   : > { %v9714_v7 = vadd.f32 %v15994_v49, %v9691_v51 }
 0xc3a   : > { %v9471_v61 = vpop.xlane.xlu1 %9470 }
 0xc3b   : > { %9731 = vst.msk [vmem:[%s15999_s17 + $0x58] sm:$0xff] %vm9719_vm1, %v9714_v7  ;;  %v9670_v63 = vpop.xlane.xlu0 %9669 }
 0xc3c   : > { %v9692_v19 = vadd.f32 %v9670_v63, %v9591_v13 }
 0xc3e   : > { %v9715_v50 = vadd.f32 %v15994_v49, %v9692_v19  ;;  %v9572_v39 = vpop.xlane.xlu1 %9571 }
 0xc3f   : > { %v9474_v1 = vpop.xlane.xlu0 %9473  ;;  %v9592_v17 = vadd.f32 %v9572_v39, %v9471_v61 }
 0xc40   : > { %9732 = vst.msk [vmem:[%s15999_s17 + $0x60] sm:$0xff] %vm9719_vm1, %v9715_v50 }
 0xc42   : > { %v9673_v35 = vpop.xlane.xlu1 %9672 }
 0xc43   : > { %v9693_v32 = vadd.f32 %v9673_v35, %v9592_v17  ;;  %v9575_v52 = vpop.xlane.xlu0 %9574 }
 0xc44   : > { %v9593_v55 = vadd.f32 %v9575_v52, %v9474_v1 }
 0xc45   : > { %v9716_v46 = vadd.f32 %v15994_v49, %v9693_v32 }
 0xc46   : > { %v9477_v26 = vpop.xlane.xlu1 %9476 }
 0xc47   : > { %9733 = vst.msk [vmem:[%s15999_s17 + $0x68] sm:$0xff] %vm9719_vm1, %v9716_v46  ;;  %v9676_v10 = vpop.xlane.xlu0 %9675 }
 0xc48   : > { %v9694_v42 = vadd.f32 %v9676_v10, %v9593_v55 }
 0xc4a   : > { %v9717_v23 = vadd.f32 %v15994_v49, %v9694_v42  ;;  %v9578_v18 = vpop.xlane.xlu1 %9577 }
 0xc4b   : > { %v9594_v9 = vadd.f32 %v9578_v18, %v9477_v26 }
 0xc4c   : > { %9734 = vst.msk [vmem:[%s15999_s17 + $0x70] sm:$0xff] %vm9719_vm1, %v9717_v23 }
 0xc4e   : > { %v9679_v54 = vpop.xlane.xlu1 %9678 }
 0xc4f   : > { %v9695_v40 = vadd.f32 %v9679_v54, %v9594_v9 }
 0xc51   : > { %v9718_v3 = vadd.f32 %v15994_v49, %v9695_v40 }
 0xc53   : > { %9735 = vst.msk [vmem:[%s15999_s17 + $0x78] sm:$0xff] %vm9719_vm1, %v9718_v3 }
 0xc54 PF: > { %s20_s28 = sadd.s32 1, %s13377_s28   ;;  %s16074_s26 = smov %s13373_s27 }
 0xc55   : > { %p17_p4 = scmp.ge.s32.totalorder %s20_s28, 4   ;;  %s16075_s27 = smov %s16077_s29 }
 0xc57   :  { %19 = sbr.rel (!%p17_p4) target bundleno = 5 (0x5), region = 178 }
 0xc5e   :  { %9766 = vsyncpa [#allocation6], 1 }
 0xc5f   :  { %9768 = vsyncpa [#allocation6 + $0x1], 1 }

</bundles_post_ra>
